<compile_context>
chip_gen: v5e
topology: v5e:2x2
jax: 0.10.0
libtpu: 0.0.40
codegen_flags: <defaults>
</compile_context>

<pallas_src>
import functools

import jax
import jax.numpy as jnp
from jax import lax
from jax.experimental import pallas as pl
from jax.experimental.pallas import tpu as pltpu


def _resnet_block_kernel(x_ref, mask_ref, w1_ref, s1_ref, b1_ref,
                         w2_ref, s2_ref, b2_ref, wr_ref, br_ref,
                         o_ref, h1pad_ref, res_ref, *, H, W):
    # x_ref    : ((H+3)*(W+2), Cin)  bf16  flat zero-padded input slab (1 image)
    # mask_ref : (H*(W+2), 1)        f32   1.0 on valid columns, 0.0 on the 2 junk cols
    # w1_ref   : (9, Cin, Cmid)      bf16  dense per-tap conv1 weights (k = 3*dy+dx)
    # s1/b1    : (1, Cmid)           f32   folded BN1 scale / shift
    # w2_ref   : (9, Cmid, Cout)     bf16  dense per-tap conv2 weights
    # s2/b2    : (1, Cout)           f32
    # wr_ref   : (Cin, Cout)         bf16  1x1 residual weight;  br: (1, Cout) f32
    # o_ref    : (H*(W+2), Cout)     bf16  flat output (junk cols stripped in wrapper)
    # h1pad_ref: ((H+3)*(W+2), Cmid) bf16  VMEM scratch = zero-padded intermediate
    # res_ref  : (H*(W+2), Cout)     f32   VMEM scratch = residual stash
    Wp = W + 2
    M = H * Wp
    Cmid = h1pad_ref.shape[1]

    # ---- residual 1x1 conv (bias=True); its LHS is the center slice, which
    # shares flat coordinates with the output.  Stash in VMEM so it is not a
    # live f32 register accumulator during the conv matmuls.
    res_ref[...] = (jnp.dot(x_ref[Wp + 1:Wp + 1 + M, :], wr_ref[...],
                            preferred_element_type=jnp.float32) + br_ref[...])

    # ---- conv1 (3x3, padding=1, bias=False): 9 dense channel-on-lanes matmuls,
    # each LHS a contiguous slice of the flat slab, f32 accumulation.
    acc1 = jnp.zeros((M, Cmid), jnp.float32)
    for dy in range(3):
        for dx in range(3):
            off = dy * Wp + dx
            acc1 = acc1 + jnp.dot(x_ref[off:off + M, :], w1_ref[3 * dy + dx],
                                  preferred_element_type=jnp.float32)
    h1 = jnp.maximum(acc1 * s1_ref[...] + b1_ref[...], 0.0)   # folded BN1 + ReLU
    # The 2 junk columns of each image row land exactly on the left/right
    # zero-pad columns of conv2's input, so masking them to 0 here implements
    # the spatial zero padding of h1.
    h1 = h1 * mask_ref[...]

    # ---- write h1 into the flat zero-padded scratch (bf16).  Only the halo
    # rows are zeroed (done every step: batch axis is "parallel", each core has
    # its own uninitialized scratch); the interior is fully overwritten.
    h1pad_ref[0:Wp + 1, :] = jnp.zeros((Wp + 1, Cmid), h1pad_ref.dtype)
    h1pad_ref[Wp + 1 + M:(H + 3) * Wp, :] = jnp.zeros((2 * Wp - 1, Cmid),
                                                      h1pad_ref.dtype)
    h1pad_ref[Wp + 1:Wp + 1 + M, :] = h1.astype(h1pad_ref.dtype)

    # ---- conv2 (3x3, padding=1, bias=False)
    Cout = o_ref.shape[1]
    acc2 = jnp.zeros((M, Cout), jnp.float32)
    for dy in range(3):
        for dx in range(3):
            off = dy * Wp + dx
            acc2 = acc2 + jnp.dot(h1pad_ref[off:off + M, :], w2_ref[3 * dy + dx],
                                  preferred_element_type=jnp.float32)
    h2 = jnp.maximum(acc2 * s2_ref[...] + b2_ref[...], 0.0)   # folded BN2 + ReLU

    o_ref[...] = (h2 + res_ref[...]).astype(o_ref.dtype)


def resnet_block_pallas(x_nchw, params):
    """x_nchw: (N, Cin, H, W) float32 -> (N, Cout, H, W) float32."""
    (w1, g1, be1, m1, v1, w2, g2, be2, m2, v2, wr, br) = params
    N, Cin, H, W = x_nchw.shape
    Cmid, Cout = w1.shape[0], w2.shape[0]
    eps = 1e-5
    Wp = W + 2
    M = H * Wp                 # flat rows per image (each row carries 2 junk cols)
    R = (H + 3) * Wp           # flat padded-input rows (pad: 1 top, 2 bottom, 1 L/R)

    # Activations: NCHW -> NHWC -> zero-pad -> flatten spatial onto sublanes
    # (channels on lanes).  bf16 in HBM halves activation DMA; accumulation in
    # the kernel is f32.  TODO(synk): in a full model keep this flat NHWC layout
    # across blocks; the NCHW<->NHWC transposes only exist for the PyTorch API.
    x = jnp.transpose(x_nchw, (0, 2, 3, 1))
    xpad = jnp.pad(x, ((0, 0), (1, 2), (1, 1), (0, 0)))       # (N, H+3, W+2, Cin)
    xflat = xpad.reshape(N, R, Cin).astype(jnp.bfloat16)

    # Dense per-tap weights, channel-on-lanes: OIHW -> (3*dy+dx, I, O).
    w1t = jnp.transpose(w1, (2, 3, 1, 0)).reshape(9, Cin, Cmid).astype(jnp.bfloat16)
    w2t = jnp.transpose(w2, (2, 3, 1, 0)).reshape(9, Cmid, Cout).astype(jnp.bfloat16)
    wrt = jnp.transpose(wr[:, :, 0, 0], (1, 0)).astype(jnp.bfloat16)   # (Cin, Cout)

    # Folded BatchNorm (eval mode) scale/shift, kept in f32 (per-lane broadcast).
    s1 = g1 / jnp.sqrt(v1 + eps)
    s2 = g2 / jnp.sqrt(v2 + eps)
    s1v = s1.reshape(1, Cmid).astype(jnp.float32)
    b1v = (be1 - m1 * s1).reshape(1, Cmid).astype(jnp.float32)
    s2v = s2.reshape(1, Cout).astype(jnp.float32)
    b2v = (be2 - m2 * s2).reshape(1, Cout).astype(jnp.float32)
    brv = br.reshape(1, Cout).astype(jnp.float32)

    # Column-validity mask: flat row p = y*(W+2)+x is junk for x >= W.
    cols = jnp.arange(M, dtype=jnp.int32) % Wp
    maskv = (cols < W).astype(jnp.float32).reshape(M, 1)

    const = dict(pipeline_mode=pl.Buffered(1))   # fetch once, single-buffered
    kernel = functools.partial(_resnet_block_kernel, H=H, W=W)

    out_flat = pl.pallas_call(
        kernel,
        out_shape=jax.ShapeDtypeStruct((N, M, Cout), jnp.bfloat16),
        grid_spec=pltpu.PrefetchScalarGridSpec(
            num_scalar_prefetch=0,
            grid=(N,),
            in_specs=[
                pl.BlockSpec((None, R, Cin), lambda n: (n, 0, 0)),
                pl.BlockSpec((M, 1), lambda n: (0, 0), **const),
                pl.BlockSpec((9, Cin, Cmid), lambda n: (0, 0, 0), **const),
                pl.BlockSpec((1, Cmid), lambda n: (0, 0), **const),
                pl.BlockSpec((1, Cmid), lambda n: (0, 0), **const),
                pl.BlockSpec((9, Cmid, Cout), lambda n: (0, 0, 0), **const),
                pl.BlockSpec((1, Cout), lambda n: (0, 0), **const),
                pl.BlockSpec((1, Cout), lambda n: (0, 0), **const),
                pl.BlockSpec((Cin, Cout), lambda n: (0, 0), **const),
                pl.BlockSpec((1, Cout), lambda n: (0, 0), **const),
            ],
            out_specs=pl.BlockSpec((None, M, Cout), lambda n: (n, 0, 0)),
            scratch_shapes=[
                pltpu.VMEM(((H + 3) * Wp, Cmid), jnp.bfloat16),   # zero-padded h1
                pltpu.VMEM((M, Cout), jnp.float32),               # residual stash
            ],
        ),
        compiler_params=pltpu.CompilerParams(
            dimension_semantics=("parallel",)),    # batch split across TCs (v7x)
    )(xflat, maskv, w1t, s1v, b1v, w2t, s2v, b2v, wrt, brv)

    out = out_flat.reshape(N, H, Wp, Cout)[:, :, :W, :]   # drop the 2 junk cols
    return jnp.transpose(out, (0, 3, 1, 2)).astype(jnp.float32)


def resnet_block_reference(x, params):
    """Pure-JAX f32 reference (NCHW), mirrors the PyTorch module semantics."""
    (w1, g1, be1, m1, v1, w2, g2, be2, m2, v2, wr, br) = params
    eps = 1e-5

    def conv(x, w, pad):
        return lax.conv_general_dilated(
            x, w, window_strides=(1, 1), padding=[(pad, pad), (pad, pad)],
            dimension_numbers=('NCHW', 'OIHW', 'NCHW'))

    def bn(x, g, b, m, v):
        return (g[None, :, None, None] * (x - m[None, :, None, None])
                / jnp.sqrt(v[None, :, None, None] + eps)
                + b[None, :, None, None])

    h = jax.nn.relu(bn(conv(x, w1, 1), g1, be1, m1, v1))
    h = jax.nn.relu(bn(conv(h, w2, 1), g2, be2, m2, v2))
    r = conv(x, wr, 0) + br[None, :, None, None]
    return h + r


def make_params(key, Cin, Cmid, Cout):
    ks = jax.random.split(key, 8)
    w1 = 0.1 * jax.random.normal(ks[0], (Cmid, Cin, 3, 3), jnp.float32)
    g1 = 0.5 + jax.random.uniform(ks[1], (Cmid,), jnp.float32)
    be1 = 0.1 * jax.random.normal(ks[2], (Cmid,), jnp.float32)
    m1 = 0.1 * jax.random.normal(ks[3], (Cmid,), jnp.float32)
    v1 = 0.5 + jax.random.uniform(ks[4], (Cmid,), jnp.float32)
    w2 = 0.1 * jax.random.normal(ks[5], (Cout, Cmid, 3, 3), jnp.float32)
    g2 = 0.5 + jax.random.uniform(ks[6], (Cout,), jnp.float32)
    ks2 = jax.random.split(ks[7], 6)
    be2 = 0.1 * jax.random.normal(ks2[0], (Cout,), jnp.float32)
    m2 = 0.1 * jax.random.normal(ks2[1], (Cout,), jnp.float32)
    v2 = 0.5 + jax.random.uniform(ks2[2], (Cout,), jnp.float32)
    wr = 0.1 * jax.random.normal(ks2[3], (Cout, Cin, 1, 1), jnp.float32)
    br = 0.1 * jax.random.normal(ks2[4], (Cout,), jnp.float32)
    return (w1, g1, be1, m1, v1, w2, g2, be2, m2, v2, wr, br)


if __name__ == "__main__":
    N, Cin, Cmid, Cout, H, W = 2, 4, 8, 8, 16, 16
    key = jax.random.PRNGKey(0)
    kx, kp = jax.random.split(key)
    x = jax.random.normal(kx, (N, Cin, H, W), jnp.float32)
    params = make_params(kp, Cin, Cmid, Cout)

    out = jax.block_until_ready(resnet_block_pallas(x, params))
    ref = jax.block_until_ready(resnet_block_reference(x, params))

    assert out.shape == (N, Cout, H, W)
    # bf16 activations/weights/output with f32 accumulation -> loosened tolerance.
    err = jnp.max(jnp.abs(out - ref))
    assert jnp.allclose(out, ref, atol=3e-2, rtol=3e-2), f"max abs err {err}"
    print("KERNEL_OK")
</pallas_src>

<mosaic_0001>
module attributes {stable_mosaic.version = 11 : i64} {
  func.func @_resnet_block_kernel(%arg0: i32, %arg1: memref<1x342x4xbf16, #tpu.memory_space<vmem>>, %arg2: memref<288x1xf32, #tpu.memory_space<vmem>>, %arg3: memref<9x4x8xbf16, #tpu.memory_space<vmem>>, %arg4: memref<1x8xf32, #tpu.memory_space<vmem>>, %arg5: memref<1x8xf32, #tpu.memory_space<vmem>>, %arg6: memref<9x8x8xbf16, #tpu.memory_space<vmem>>, %arg7: memref<1x8xf32, #tpu.memory_space<vmem>>, %arg8: memref<1x8xf32, #tpu.memory_space<vmem>>, %arg9: memref<4x8xbf16, #tpu.memory_space<vmem>>, %arg10: memref<1x8xf32, #tpu.memory_space<vmem>>, %arg11: memref<1x288x8xbf16, #tpu.memory_space<vmem>>, %arg12: memref<342x8xbf16, #tpu.memory_space<vmem>>, %arg13: memref<288x8xf32, #tpu.memory_space<vmem>>) attributes {dimension_semantics = [#tpu.dimension_semantics<parallel>], iteration_bounds = array<i64: 2>, scalar_prefetch = 0 : i64, scratch_operands = 2 : i64, tpu.core_type = #tpu.core_type<tc>, window_params = [{transform_indices = @transform_0, window_bounds = array<i64: 1, 342, 4>}, {pipeline_mode = #tpu.pipeline_mode<synchronous>, transform_indices = @transform_1, window_bounds = array<i64: 288, 1>}, {pipeline_mode = #tpu.pipeline_mode<synchronous>, transform_indices = @transform_2, window_bounds = array<i64: 9, 4, 8>}, {pipeline_mode = #tpu.pipeline_mode<synchronous>, transform_indices = @transform_3, window_bounds = array<i64: 1, 8>}, {pipeline_mode = #tpu.pipeline_mode<synchronous>, transform_indices = @transform_4, window_bounds = array<i64: 1, 8>}, {pipeline_mode = #tpu.pipeline_mode<synchronous>, transform_indices = @transform_5, window_bounds = array<i64: 9, 8, 8>}, {pipeline_mode = #tpu.pipeline_mode<synchronous>, transform_indices = @transform_6, window_bounds = array<i64: 1, 8>}, {pipeline_mode = #tpu.pipeline_mode<synchronous>, transform_indices = @transform_7, window_bounds = array<i64: 1, 8>}, {pipeline_mode = #tpu.pipeline_mode<synchronous>, transform_indices = @transform_8, window_bounds = array<i64: 4, 8>}, {pipeline_mode = #tpu.pipeline_mode<synchronous>, transform_indices = @transform_9, window_bounds = array<i64: 1, 8>}, {transform_indices = @transform_10, window_bounds = array<i64: 1, 288, 8>}]} {
    %c0 = arith.constant 0 : index
    %c19 = arith.constant 19 : index
    %c0_0 = arith.constant 0 : index
    %0 = vector.load %arg1[%c0, %c19, %c0_0] : memref<1x342x4xbf16, #tpu.memory_space<vmem>>, vector<1x288x4xbf16>
    %1 = vector.shape_cast %0 : vector<1x288x4xbf16> to vector<288x4xbf16>
    %c0_1 = arith.constant 0 : index
    %c0_2 = arith.constant 0 : index
    %2 = vector.load %arg9[%c0_1, %c0_2] : memref<4x8xbf16, #tpu.memory_space<vmem>>, vector<4x8xbf16>
    %cst = arith.constant dense<0.000000e+00> : vector<288x8xf32>
    %3 = tpu.matmul %1, %2, %cst {dimension_numbers = #tpu.dot_dimension_numbers<[1], [0], [0], [1], [0, 0, 1, 1], [], []>} : vector<288x4xbf16>, vector<4x8xbf16>, vector<288x8xf32> -> vector<288x8xf32>
    %c0_3 = arith.constant 0 : index
    %c0_4 = arith.constant 0 : index
    %4 = vector.load %arg10[%c0_3, %c0_4] : memref<1x8xf32, #tpu.memory_space<vmem>>, vector<1x8xf32>
    %5 = vector.broadcast %4 : vector<1x8xf32> to vector<288x8xf32>
    %6 = arith.addf %3, %5 : vector<288x8xf32>
    %c0_5 = arith.constant 0 : index
    %c0_6 = arith.constant 0 : index
    %7 = vector.load %arg13[%c0_5, %c0_6] : memref<288x8xf32, #tpu.memory_space<vmem>>, vector<288x8xf32>
    tpu.vector_store %arg13[%c0_5, %c0_6], %6 {strides = array<i32>} : memref<288x8xf32, #tpu.memory_space<vmem>>, vector<288x8xf32>,
    %cst_7 = arith.constant 0.000000e+00 : f32
    %8 = vector.broadcast %cst_7 : f32 to vector<288x8xf32>
    %c0_8 = arith.constant 0 : index
    %c0_9 = arith.constant 0 : index
    %c0_10 = arith.constant 0 : index
    %9 = vector.load %arg1[%c0_8, %c0_9, %c0_10] : memref<1x342x4xbf16, #tpu.memory_space<vmem>>, vector<1x288x4xbf16>
    %10 = vector.shape_cast %9 : vector<1x288x4xbf16> to vector<288x4xbf16>
    %c0_11 = arith.constant 0 : index
    %c0_12 = arith.constant 0 : index
    %c0_13 = arith.constant 0 : index
    %11 = vector.load %arg3[%c0_11, %c0_12, %c0_13] : memref<9x4x8xbf16, #tpu.memory_space<vmem>>, vector<1x4x8xbf16>
    %12 = vector.shape_cast %11 : vector<1x4x8xbf16> to vector<4x8xbf16>
    %cst_14 = arith.constant dense<0.000000e+00> : vector<288x8xf32>
    %13 = tpu.matmul %10, %12, %cst_14 {dimension_numbers = #tpu.dot_dimension_numbers<[1], [0], [0], [1], [0, 0, 1, 1], [], []>} : vector<288x4xbf16>, vector<4x8xbf16>, vector<288x8xf32> -> vector<288x8xf32>
    %14 = arith.addf %8, %13 : vector<288x8xf32>
    %c0_15 = arith.constant 0 : index
    %c1 = arith.constant 1 : index
    %c0_16 = arith.constant 0 : index
    %15 = vector.load %arg1[%c0_15, %c1, %c0_16] : memref<1x342x4xbf16, #tpu.memory_space<vmem>>, vector<1x288x4xbf16>
    %16 = vector.shape_cast %15 : vector<1x288x4xbf16> to vector<288x4xbf16>
    %c1_17 = arith.constant 1 : index
    %c0_18 = arith.constant 0 : index
    %c0_19 = arith.constant 0 : index
    %17 = vector.load %arg3[%c1_17, %c0_18, %c0_19] : memref<9x4x8xbf16, #tpu.memory_space<vmem>>, vector<1x4x8xbf16>
    %18 = vector.shape_cast %17 : vector<1x4x8xbf16> to vector<4x8xbf16>
    %cst_20 = arith.constant dense<0.000000e+00> : vector<288x8xf32>
    %19 = tpu.matmul %16, %18, %cst_20 {dimension_numbers = #tpu.dot_dimension_numbers<[1], [0], [0], [1], [0, 0, 1, 1], [], []>} : vector<288x4xbf16>, vector<4x8xbf16>, vector<288x8xf32> -> vector<288x8xf32>
    %20 = arith.addf %14, %19 : vector<288x8xf32>
    %c0_21 = arith.constant 0 : index
    %c2 = arith.constant 2 : index
    %c0_22 = arith.constant 0 : index
    %21 = vector.load %arg1[%c0_21, %c2, %c0_22] : memref<1x342x4xbf16, #tpu.memory_space<vmem>>, vector<1x288x4xbf16>
    %22 = vector.shape_cast %21 : vector<1x288x4xbf16> to vector<288x4xbf16>
    %c2_23 = arith.constant 2 : index
    %c0_24 = arith.constant 0 : index
    %c0_25 = arith.constant 0 : index
    %23 = vector.load %arg3[%c2_23, %c0_24, %c0_25] : memref<9x4x8xbf16, #tpu.memory_space<vmem>>, vector<1x4x8xbf16>
    %24 = vector.shape_cast %23 : vector<1x4x8xbf16> to vector<4x8xbf16>
    %cst_26 = arith.constant dense<0.000000e+00> : vector<288x8xf32>
    %25 = tpu.matmul %22, %24, %cst_26 {dimension_numbers = #tpu.dot_dimension_numbers<[1], [0], [0], [1], [0, 0, 1, 1], [], []>} : vector<288x4xbf16>, vector<4x8xbf16>, vector<288x8xf32> -> vector<288x8xf32>
    %26 = arith.addf %20, %25 : vector<288x8xf32>
    %c0_27 = arith.constant 0 : index
    %c18 = arith.constant 18 : index
    %c0_28 = arith.constant 0 : index
    %27 = vector.load %arg1[%c0_27, %c18, %c0_28] : memref<1x342x4xbf16, #tpu.memory_space<vmem>>, vector<1x288x4xbf16>
    %28 = vector.shape_cast %27 : vector<1x288x4xbf16> to vector<288x4xbf16>
    %c3 = arith.constant 3 : index
    %c0_29 = arith.constant 0 : index
    %c0_30 = arith.constant 0 : index
    %29 = vector.load %arg3[%c3, %c0_29, %c0_30] : memref<9x4x8xbf16, #tpu.memory_space<vmem>>, vector<1x4x8xbf16>
    %30 = vector.shape_cast %29 : vector<1x4x8xbf16> to vector<4x8xbf16>
    %cst_31 = arith.constant dense<0.000000e+00> : vector<288x8xf32>
    %31 = tpu.matmul %28, %30, %cst_31 {dimension_numbers = #tpu.dot_dimension_numbers<[1], [0], [0], [1], [0, 0, 1, 1], [], []>} : vector<288x4xbf16>, vector<4x8xbf16>, vector<288x8xf32> -> vector<288x8xf32>
    %32 = arith.addf %26, %31 : vector<288x8xf32>
    %c0_32 = arith.constant 0 : index
    %c19_33 = arith.constant 19 : index
    %c0_34 = arith.constant 0 : index
    %33 = vector.load %arg1[%c0_32, %c19_33, %c0_34] : memref<1x342x4xbf16, #tpu.memory_space<vmem>>, vector<1x288x4xbf16>
    %34 = vector.shape_cast %33 : vector<1x288x4xbf16> to vector<288x4xbf16>
    %c4 = arith.constant 4 : index
    %c0_35 = arith.constant 0 : index
    %c0_36 = arith.constant 0 : index
    %35 = vector.load %arg3[%c4, %c0_35, %c0_36] : memref<9x4x8xbf16, #tpu.memory_space<vmem>>, vector<1x4x8xbf16>
    %36 = vector.shape_cast %35 : vector<1x4x8xbf16> to vector<4x8xbf16>
    %cst_37 = arith.constant dense<0.000000e+00> : vector<288x8xf32>
    %37 = tpu.matmul %34, %36, %cst_37 {dimension_numbers = #tpu.dot_dimension_numbers<[1], [0], [0], [1], [0, 0, 1, 1], [], []>} : vector<288x4xbf16>, vector<4x8xbf16>, vector<288x8xf32> -> vector<288x8xf32>
    %38 = arith.addf %32, %37 : vector<288x8xf32>
    %c0_38 = arith.constant 0 : index
    %c20 = arith.constant 20 : index
    %c0_39 = arith.constant 0 : index
    %39 = vector.load %arg1[%c0_38, %c20, %c0_39] : memref<1x342x4xbf16, #tpu.memory_space<vmem>>, vector<1x288x4xbf16>
    %40 = vector.shape_cast %39 : vector<1x288x4xbf16> to vector<288x4xbf16>
    %c5 = arith.constant 5 : index
    %c0_40 = arith.constant 0 : index
    %c0_41 = arith.constant 0 : index
    %41 = vector.load %arg3[%c5, %c0_40, %c0_41] : memref<9x4x8xbf16, #tpu.memory_space<vmem>>, vector<1x4x8xbf16>
    %42 = vector.shape_cast %41 : vector<1x4x8xbf16> to vector<4x8xbf16>
    %cst_42 = arith.constant dense<0.000000e+00> : vector<288x8xf32>
    %43 = tpu.matmul %40, %42, %cst_42 {dimension_numbers = #tpu.dot_dimension_numbers<[1], [0], [0], [1], [0, 0, 1, 1], [], []>} : vector<288x4xbf16>, vector<4x8xbf16>, vector<288x8xf32> -> vector<288x8xf32>
    %44 = arith.addf %38, %43 : vector<288x8xf32>
    %c0_43 = arith.constant 0 : index
    %c36 = arith.constant 36 : index
    %c0_44 = arith.constant 0 : index
    %45 = vector.load %arg1[%c0_43, %c36, %c0_44] : memref<1x342x4xbf16, #tpu.memory_space<vmem>>, vector<1x288x4xbf16>
    %46 = vector.shape_cast %45 : vector<1x288x4xbf16> to vector<288x4xbf16>
    %c6 = arith.constant 6 : index
    %c0_45 = arith.constant 0 : index
    %c0_46 = arith.constant 0 : index
    %47 = vector.load %arg3[%c6, %c0_45, %c0_46] : memref<9x4x8xbf16, #tpu.memory_space<vmem>>, vector<1x4x8xbf16>
    %48 = vector.shape_cast %47 : vector<1x4x8xbf16> to vector<4x8xbf16>
    %cst_47 = arith.constant dense<0.000000e+00> : vector<288x8xf32>
    %49 = tpu.matmul %46, %48, %cst_47 {dimension_numbers = #tpu.dot_dimension_numbers<[1], [0], [0], [1], [0, 0, 1, 1], [], []>} : vector<288x4xbf16>, vector<4x8xbf16>, vector<288x8xf32> -> vector<288x8xf32>
    %50 = arith.addf %44, %49 : vector<288x8xf32>
    %c0_48 = arith.constant 0 : index
    %c37 = arith.constant 37 : index
    %c0_49 = arith.constant 0 : index
    %51 = vector.load %arg1[%c0_48, %c37, %c0_49] : memref<1x342x4xbf16, #tpu.memory_space<vmem>>, vector<1x288x4xbf16>
    %52 = vector.shape_cast %51 : vector<1x288x4xbf16> to vector<288x4xbf16>
    %c7 = arith.constant 7 : index
    %c0_50 = arith.constant 0 : index
    %c0_51 = arith.constant 0 : index
    %53 = vector.load %arg3[%c7, %c0_50, %c0_51] : memref<9x4x8xbf16, #tpu.memory_space<vmem>>, vector<1x4x8xbf16>
    %54 = vector.shape_cast %53 : vector<1x4x8xbf16> to vector<4x8xbf16>
    %cst_52 = arith.constant dense<0.000000e+00> : vector<288x8xf32>
    %55 = tpu.matmul %52, %54, %cst_52 {dimension_numbers = #tpu.dot_dimension_numbers<[1], [0], [0], [1], [0, 0, 1, 1], [], []>} : vector<288x4xbf16>, vector<4x8xbf16>, vector<288x8xf32> -> vector<288x8xf32>
    %56 = arith.addf %50, %55 : vector<288x8xf32>
    %c0_53 = arith.constant 0 : index
    %c38 = arith.constant 38 : index
    %c0_54 = arith.constant 0 : index
    %57 = vector.load %arg1[%c0_53, %c38, %c0_54] : memref<1x342x4xbf16, #tpu.memory_space<vmem>>, vector<1x288x4xbf16>
    %58 = vector.shape_cast %57 : vector<1x288x4xbf16> to vector<288x4xbf16>
    %c8 = arith.constant 8 : index
    %c0_55 = arith.constant 0 : index
    %c0_56 = arith.constant 0 : index
    %59 = vector.load %arg3[%c8, %c0_55, %c0_56] : memref<9x4x8xbf16, #tpu.memory_space<vmem>>, vector<1x4x8xbf16>
    %60 = vector.shape_cast %59 : vector<1x4x8xbf16> to vector<4x8xbf16>
    %cst_57 = arith.constant dense<0.000000e+00> : vector<288x8xf32>
    %61 = tpu.matmul %58, %60, %cst_57 {dimension_numbers = #tpu.dot_dimension_numbers<[1], [0], [0], [1], [0, 0, 1, 1], [], []>} : vector<288x4xbf16>, vector<4x8xbf16>, vector<288x8xf32> -> vector<288x8xf32>
    %62 = arith.addf %56, %61 : vector<288x8xf32>
    %c0_58 = arith.constant 0 : index
    %c0_59 = arith.constant 0 : index
    %63 = vector.load %arg4[%c0_58, %c0_59] : memref<1x8xf32, #tpu.memory_space<vmem>>, vector<1x8xf32>
    %64 = vector.broadcast %63 : vector<1x8xf32> to vector<288x8xf32>
    %65 = arith.mulf %62, %64 : vector<288x8xf32>
    %c0_60 = arith.constant 0 : index
    %c0_61 = arith.constant 0 : index
    %66 = vector.load %arg5[%c0_60, %c0_61] : memref<1x8xf32, #tpu.memory_space<vmem>>, vector<1x8xf32>
    %67 = vector.broadcast %66 : vector<1x8xf32> to vector<288x8xf32>
    %68 = arith.addf %65, %67 : vector<288x8xf32>
    %cst_62 = arith.constant 0.000000e+00 : f32
    %69 = vector.broadcast %cst_62 : f32 to vector<288x8xf32>
    %70 = arith.maximumf %68, %69 : vector<288x8xf32>
    %c0_63 = arith.constant 0 : index
    %c0_64 = arith.constant 0 : index
    %71 = vector.load %arg2[%c0_63, %c0_64] : memref<288x1xf32, #tpu.memory_space<vmem>>, vector<288x1xf32>
    %72 = vector.broadcast %71 : vector<288x1xf32> to vector<288x8xf32>
    %73 = arith.mulf %70, %72 : vector<288x8xf32>
    %cst_65 = arith.constant 0.000000e+00 : bf16
    %74 = vector.broadcast %cst_65 : bf16 to vector<19x8xbf16>
    %c0_66 = arith.constant 0 : index
    %c0_67 = arith.constant 0 : index
    %75 = vector.load %arg12[%c0_66, %c0_67] : memref<342x8xbf16, #tpu.memory_space<vmem>>, vector<19x8xbf16>
    tpu.vector_store %arg12[%c0_66, %c0_67], %74 {strides = array<i32>} : memref<342x8xbf16, #tpu.memory_space<vmem>>, vector<19x8xbf16>,
    %cst_68 = arith.constant 0.000000e+00 : bf16
    %76 = vector.broadcast %cst_68 : bf16 to vector<35x8xbf16>
    %c307 = arith.constant 307 : index
    %c0_69 = arith.constant 0 : index
    %77 = vector.load %arg12[%c307, %c0_69] : memref<342x8xbf16, #tpu.memory_space<vmem>>, vector<35x8xbf16>
    tpu.vector_store %arg12[%c307, %c0_69], %76 {strides = array<i32>} : memref<342x8xbf16, #tpu.memory_space<vmem>>, vector<35x8xbf16>,
    %78 = arith.truncf %73 : vector<288x8xf32> to vector<288x8xbf16>
    %c19_70 = arith.constant 19 : index
    %c0_71 = arith.constant 0 : index
    %79 = vector.load %arg12[%c19_70, %c0_71] : memref<342x8xbf16, #tpu.memory_space<vmem>>, vector<288x8xbf16>
    tpu.vector_store %arg12[%c19_70, %c0_71], %78 {strides = array<i32>} : memref<342x8xbf16, #tpu.memory_space<vmem>>, vector<288x8xbf16>,
    %cst_72 = arith.constant 0.000000e+00 : f32
    %80 = vector.broadcast %cst_72 : f32 to vector<288x8xf32>
    %c0_73 = arith.constant 0 : index
    %c0_74 = arith.constant 0 : index
    %81 = vector.load %arg12[%c0_73, %c0_74] : memref<342x8xbf16, #tpu.memory_space<vmem>>, vector<288x8xbf16>
    %c0_75 = arith.constant 0 : index
    %c0_76 = arith.constant 0 : index
    %c0_77 = arith.constant 0 : index
    %82 = vector.load %arg6[%c0_75, %c0_76, %c0_77] : memref<9x8x8xbf16, #tpu.memory_space<vmem>>, vector<1x8x8xbf16>
    %83 = vector.shape_cast %82 : vector<1x8x8xbf16> to vector<8x8xbf16>
    %cst_78 = arith.constant dense<0.000000e+00> : vector<288x8xf32>
    %84 = tpu.matmul %81, %83, %cst_78 {dimension_numbers = #tpu.dot_dimension_numbers<[1], [0], [0], [1], [0, 0, 1, 1], [], []>} : vector<288x8xbf16>, vector<8x8xbf16>, vector<288x8xf32> -> vector<288x8xf32>
    %85 = arith.addf %80, %84 : vector<288x8xf32>
    %c1_79 = arith.constant 1 : index
    %c0_80 = arith.constant 0 : index
    %86 = vector.load %arg12[%c1_79, %c0_80] : memref<342x8xbf16, #tpu.memory_space<vmem>>, vector<288x8xbf16>
    %c1_81 = arith.constant 1 : index
    %c0_82 = arith.constant 0 : index
    %c0_83 = arith.constant 0 : index
    %87 = vector.load %arg6[%c1_81, %c0_82, %c0_83] : memref<9x8x8xbf16, #tpu.memory_space<vmem>>, vector<1x8x8xbf16>
    %88 = vector.shape_cast %87 : vector<1x8x8xbf16> to vector<8x8xbf16>
    %cst_84 = arith.constant dense<0.000000e+00> : vector<288x8xf32>
    %89 = tpu.matmul %86, %88, %cst_84 {dimension_numbers = #tpu.dot_dimension_numbers<[1], [0], [0], [1], [0, 0, 1, 1], [], []>} : vector<288x8xbf16>, vector<8x8xbf16>, vector<288x8xf32> -> vector<288x8xf32>
    %90 = arith.addf %85, %89 : vector<288x8xf32>
    %c2_85 = arith.constant 2 : index
    %c0_86 = arith.constant 0 : index
    %91 = vector.load %arg12[%c2_85, %c0_86] : memref<342x8xbf16, #tpu.memory_space<vmem>>, vector<288x8xbf16>
    %c2_87 = arith.constant 2 : index
    %c0_88 = arith.constant 0 : index
    %c0_89 = arith.constant 0 : index
    %92 = vector.load %arg6[%c2_87, %c0_88, %c0_89] : memref<9x8x8xbf16, #tpu.memory_space<vmem>>, vector<1x8x8xbf16>
    %93 = vector.shape_cast %92 : vector<1x8x8xbf16> to vector<8x8xbf16>
    %cst_90 = arith.constant dense<0.000000e+00> : vector<288x8xf32>
    %94 = tpu.matmul %91, %93, %cst_90 {dimension_numbers = #tpu.dot_dimension_numbers<[1], [0], [0], [1], [0, 0, 1, 1], [], []>} : vector<288x8xbf16>, vector<8x8xbf16>, vector<288x8xf32> -> vector<288x8xf32>
    %95 = arith.addf %90, %94 : vector<288x8xf32>
    %c18_91 = arith.constant 18 : index
    %c0_92 = arith.constant 0 : index
    %96 = vector.load %arg12[%c18_91, %c0_92] : memref<342x8xbf16, #tpu.memory_space<vmem>>, vector<288x8xbf16>
    %c3_93 = arith.constant 3 : index
    %c0_94 = arith.constant 0 : index
    %c0_95 = arith.constant 0 : index
    %97 = vector.load %arg6[%c3_93, %c0_94, %c0_95] : memref<9x8x8xbf16, #tpu.memory_space<vmem>>, vector<1x8x8xbf16>
    %98 = vector.shape_cast %97 : vector<1x8x8xbf16> to vector<8x8xbf16>
    %cst_96 = arith.constant dense<0.000000e+00> : vector<288x8xf32>
    %99 = tpu.matmul %96, %98, %cst_96 {dimension_numbers = #tpu.dot_dimension_numbers<[1], [0], [0], [1], [0, 0, 1, 1], [], []>} : vector<288x8xbf16>, vector<8x8xbf16>, vector<288x8xf32> -> vector<288x8xf32>
    %100 = arith.addf %95, %99 : vector<288x8xf32>
    %c19_97 = arith.constant 19 : index
    %c0_98 = arith.constant 0 : index
    %101 = vector.load %arg12[%c19_97, %c0_98] : memref<342x8xbf16, #tpu.memory_space<vmem>>, vector<288x8xbf16>
    %c4_99 = arith.constant 4 : index
    %c0_100 = arith.constant 0 : index
    %c0_101 = arith.constant 0 : index
    %102 = vector.load %arg6[%c4_99, %c0_100, %c0_101] : memref<9x8x8xbf16, #tpu.memory_space<vmem>>, vector<1x8x8xbf16>
    %103 = vector.shape_cast %102 : vector<1x8x8xbf16> to vector<8x8xbf16>
    %cst_102 = arith.constant dense<0.000000e+00> : vector<288x8xf32>
    %104 = tpu.matmul %101, %103, %cst_102 {dimension_numbers = #tpu.dot_dimension_numbers<[1], [0], [0], [1], [0, 0, 1, 1], [], []>} : vector<288x8xbf16>, vector<8x8xbf16>, vector<288x8xf32> -> vector<288x8xf32>
    %105 = arith.addf %100, %104 : vector<288x8xf32>
    %c20_103 = arith.constant 20 : index
    %c0_104 = arith.constant 0 : index
    %106 = vector.load %arg12[%c20_103, %c0_104] : memref<342x8xbf16, #tpu.memory_space<vmem>>, vector<288x8xbf16>
    %c5_105 = arith.constant 5 : index
    %c0_106 = arith.constant 0 : index
    %c0_107 = arith.constant 0 : index
    %107 = vector.load %arg6[%c5_105, %c0_106, %c0_107] : memref<9x8x8xbf16, #tpu.memory_space<vmem>>, vector<1x8x8xbf16>
    %108 = vector.shape_cast %107 : vector<1x8x8xbf16> to vector<8x8xbf16>
    %cst_108 = arith.constant dense<0.000000e+00> : vector<288x8xf32>
    %109 = tpu.matmul %106, %108, %cst_108 {dimension_numbers = #tpu.dot_dimension_numbers<[1], [0], [0], [1], [0, 0, 1, 1], [], []>} : vector<288x8xbf16>, vector<8x8xbf16>, vector<288x8xf32> -> vector<288x8xf32>
    %110 = arith.addf %105, %109 : vector<288x8xf32>
    %c36_109 = arith.constant 36 : index
    %c0_110 = arith.constant 0 : index
    %111 = vector.load %arg12[%c36_109, %c0_110] : memref<342x8xbf16, #tpu.memory_space<vmem>>, vector<288x8xbf16>
    %c6_111 = arith.constant 6 : index
    %c0_112 = arith.constant 0 : index
    %c0_113 = arith.constant 0 : index
    %112 = vector.load %arg6[%c6_111, %c0_112, %c0_113] : memref<9x8x8xbf16, #tpu.memory_space<vmem>>, vector<1x8x8xbf16>
    %113 = vector.shape_cast %112 : vector<1x8x8xbf16> to vector<8x8xbf16>
    %cst_114 = arith.constant dense<0.000000e+00> : vector<288x8xf32>
    %114 = tpu.matmul %111, %113, %cst_114 {dimension_numbers = #tpu.dot_dimension_numbers<[1], [0], [0], [1], [0, 0, 1, 1], [], []>} : vector<288x8xbf16>, vector<8x8xbf16>, vector<288x8xf32> -> vector<288x8xf32>
    %115 = arith.addf %110, %114 : vector<288x8xf32>
    %c37_115 = arith.constant 37 : index
    %c0_116 = arith.constant 0 : index
    %116 = vector.load %arg12[%c37_115, %c0_116] : memref<342x8xbf16, #tpu.memory_space<vmem>>, vector<288x8xbf16>
    %c7_117 = arith.constant 7 : index
    %c0_118 = arith.constant 0 : index
    %c0_119 = arith.constant 0 : index
    %117 = vector.load %arg6[%c7_117, %c0_118, %c0_119] : memref<9x8x8xbf16, #tpu.memory_space<vmem>>, vector<1x8x8xbf16>
    %118 = vector.shape_cast %117 : vector<1x8x8xbf16> to vector<8x8xbf16>
    %cst_120 = arith.constant dense<0.000000e+00> : vector<288x8xf32>
    %119 = tpu.matmul %116, %118, %cst_120 {dimension_numbers = #tpu.dot_dimension_numbers<[1], [0], [0], [1], [0, 0, 1, 1], [], []>} : vector<288x8xbf16>, vector<8x8xbf16>, vector<288x8xf32> -> vector<288x8xf32>
    %120 = arith.addf %115, %119 : vector<288x8xf32>
    %c38_121 = arith.constant 38 : index
    %c0_122 = arith.constant 0 : index
    %121 = vector.load %arg12[%c38_121, %c0_122] : memref<342x8xbf16, #tpu.memory_space<vmem>>, vector<288x8xbf16>
    %c8_123 = arith.constant 8 : index
    %c0_124 = arith.constant 0 : index
    %c0_125 = arith.constant 0 : index
    %122 = vector.load %arg6[%c8_123, %c0_124, %c0_125] : memref<9x8x8xbf16, #tpu.memory_space<vmem>>, vector<1x8x8xbf16>
    %123 = vector.shape_cast %122 : vector<1x8x8xbf16> to vector<8x8xbf16>
    %cst_126 = arith.constant dense<0.000000e+00> : vector<288x8xf32>
    %124 = tpu.matmul %121, %123, %cst_126 {dimension_numbers = #tpu.dot_dimension_numbers<[1], [0], [0], [1], [0, 0, 1, 1], [], []>} : vector<288x8xbf16>, vector<8x8xbf16>, vector<288x8xf32> -> vector<288x8xf32>
    %125 = arith.addf %120, %124 : vector<288x8xf32>
    %c0_127 = arith.constant 0 : index
    %c0_128 = arith.constant 0 : index
    %126 = vector.load %arg7[%c0_127, %c0_128] : memref<1x8xf32, #tpu.memory_space<vmem>>, vector<1x8xf32>
    %127 = vector.broadcast %126 : vector<1x8xf32> to vector<288x8xf32>
    %128 = arith.mulf %125, %127 : vector<288x8xf32>
    %c0_129 = arith.constant 0 : index
    %c0_130 = arith.constant 0 : index
    %129 = vector.load %arg8[%c0_129, %c0_130] : memref<1x8xf32, #tpu.memory_space<vmem>>, vector<1x8xf32>
    %130 = vector.broadcast %129 : vector<1x8xf32> to vector<288x8xf32>
    %131 = arith.addf %128, %130 : vector<288x8xf32>
    %cst_131 = arith.constant 0.000000e+00 : f32
    %132 = vector.broadcast %cst_131 : f32 to vector<288x8xf32>
    %133 = arith.maximumf %131, %132 : vector<288x8xf32>
    %c0_132 = arith.constant 0 : index
    %c0_133 = arith.constant 0 : index
    %134 = vector.load %arg13[%c0_132, %c0_133] : memref<288x8xf32, #tpu.memory_space<vmem>>, vector<288x8xf32>
    %135 = arith.addf %133, %134 : vector<288x8xf32>
    %136 = arith.truncf %135 : vector<288x8xf32> to vector<288x8xbf16>
    %c0_134 = arith.constant 0 : index
    %c0_135 = arith.constant 0 : index
    %c0_136 = arith.constant 0 : index
    %137 = vector.load %arg11[%c0_134, %c0_135, %c0_136] : memref<1x288x8xbf16, #tpu.memory_space<vmem>>, vector<1x288x8xbf16>
    %138 = vector.shape_cast %137 : vector<1x288x8xbf16> to vector<288x8xbf16>
    %139 = vector.shape_cast %136 : vector<288x8xbf16> to vector<1x288x8xbf16>
    tpu.vector_store %arg11[%c0_134, %c0_135, %c0_136], %139 {strides = array<i32>} : memref<1x288x8xbf16, #tpu.memory_space<vmem>>, vector<1x288x8xbf16>,
    return
  }
  func.func @transform_0(%arg0: i32) -> (i32, i32, i32) {
    %c0_i32 = arith.constant 0 : i32
    %c0_i32_0 = arith.constant 0 : i32
    %c0_i32_1 = arith.constant 0 : i32
    return %arg0, %c0_i32, %c0_i32_0 : i32, i32, i32
  }
  func.func @transform_1(%arg0: i32) -> (i32, i32) {
    %c0_i32 = arith.constant 0 : i32
    %c0_i32_0 = arith.constant 0 : i32
    %c0_i32_1 = arith.constant 0 : i32
    return %c0_i32, %c0_i32_0 : i32, i32
  }
  func.func @transform_2(%arg0: i32) -> (i32, i32, i32) {
    %c0_i32 = arith.constant 0 : i32
    %c0_i32_0 = arith.constant 0 : i32
    %c0_i32_1 = arith.constant 0 : i32
    %c0_i32_2 = arith.constant 0 : i32
    return %c0_i32, %c0_i32_0, %c0_i32_1 : i32, i32, i32
  }
  func.func @transform_3(%arg0: i32) -> (i32, i32) {
    %c0_i32 = arith.constant 0 : i32
    %c0_i32_0 = arith.constant 0 : i32
    %c0_i32_1 = arith.constant 0 : i32
    return %c0_i32, %c0_i32_0 : i32, i32
  }
  func.func @transform_4(%arg0: i32) -> (i32, i32) {
    %c0_i32 = arith.constant 0 : i32
    %c0_i32_0 = arith.constant 0 : i32
    %c0_i32_1 = arith.constant 0 : i32
    return %c0_i32, %c0_i32_0 : i32, i32
  }
  func.func @transform_5(%arg0: i32) -> (i32, i32, i32) {
    %c0_i32 = arith.constant 0 : i32
    %c0_i32_0 = arith.constant 0 : i32
    %c0_i32_1 = arith.constant 0 : i32
    %c0_i32_2 = arith.constant 0 : i32
    return %c0_i32, %c0_i32_0, %c0_i32_1 : i32, i32, i32
  }
  func.func @transform_6(%arg0: i32) -> (i32, i32) {
    %c0_i32 = arith.constant 0 : i32
    %c0_i32_0 = arith.constant 0 : i32
    %c0_i32_1 = arith.constant 0 : i32
    return %c0_i32, %c0_i32_0 : i32, i32
  }
  func.func @transform_7(%arg0: i32) -> (i32, i32) {
    %c0_i32 = arith.constant 0 : i32
    %c0_i32_0 = arith.constant 0 : i32
    %c0_i32_1 = arith.constant 0 : i32
    return %c0_i32, %c0_i32_0 : i32, i32
  }
  func.func @transform_8(%arg0: i32) -> (i32, i32) {
    %c0_i32 = arith.constant 0 : i32
    %c0_i32_0 = arith.constant 0 : i32
    %c0_i32_1 = arith.constant 0 : i32
    return %c0_i32, %c0_i32_0 : i32, i32
  }
  func.func @transform_9(%arg0: i32) -> (i32, i32) {
    %c0_i32 = arith.constant 0 : i32
    %c0_i32_0 = arith.constant 0 : i32
    %c0_i32_1 = arith.constant 0 : i32
    return %c0_i32, %c0_i32_0 : i32, i32
  }
  func.func @transform_10(%arg0: i32) -> (i32, i32, i32) {
    %c0_i32 = arith.constant 0 : i32
    %c0_i32_0 = arith.constant 0 : i32
    %c0_i32_1 = arith.constant 0 : i32
    return %arg0, %c0_i32, %c0_i32_0 : i32, i32, i32
  }
}

</mosaic_0001>

<bundles_post_ra>
// kernel: tpu_custom_call.1
= control target key start
LH: loop header
LB: loop body
LE: loop exit
PB: predicated region body
PF: predicated region fallthrough
CT: control target
= control target key end

     0   :  { %s8624_s13 = smov 0   ;;  %s12176_s0 = inlined_call_operand.vmem [shape: bf16[2,342,4], index: 0, kind: input, shape index: {}]   ;;  %s12177_s1 = inlined_call_operand.vmem [shape: f32[288,1], index: 1, kind: input, shape index: {}]   ;;  %s12178_s2 = inlined_call_operand.vmem [shape: bf16[9,4,8], index: 2, kind: input, shape index: {}]   ;;  %s12179_s3 = inlined_call_operand.vmem [shape: f32[1,8], index: 3, kind: input, shape index: {}]   ;;  %s12180_s4 = inlined_call_operand.vmem [shape: f32[1,8], index: 4, kind: input, shape index: {}]   ;;  %s12181_s5 = inlined_call_operand.vmem [shape: bf16[9,8,8], index: 5, kind: input, shape index: {}]   ;;  %s12182_s6 = inlined_call_operand.vmem [shape: f32[1,8], index: 6, kind: input, shape index: {}]   ;;  %s12183_s7 = inlined_call_operand.vmem [shape: f32[1,8], index: 7, kind: input, shape index: {}]   ;;  %s12184_s8 = inlined_call_operand.vmem [shape: bf16[4,8], index: 8, kind: input, shape index: {}]   ;;  %s12185_s9 = inlined_call_operand.vmem [shape: f32[1,8], index: 9, kind: input, shape index: {}]   ;;  %s12186_s10 = inlined_call_operand.vmem [shape: bf16[2,288,8], index: 10, kind: output, shape index: {}]  }
   0x1 LB: > { %s7522_s14 = sadd.s32 4294967295, %s8566_s13   ;;  %p7526_p0 = scmp.ge.s32.totalorder %s8566_s13, 1  ;;  %s8566_s13 = sphi %s8624_s13, %s20_s13  }
   0x2   : > { %p312_p1 = scmp.lt.s32.totalorder %s8566_s13, 3 }
   0x4   : > { %p313_p2 = pnand %p7526_p0, %p312_p1 }
   0x6   : > { %316 = sbr.rel (%p313_p2) target bundleno = 1709 (0x6ad), region = 60 }
   0xb   : > { %vm722_vm0 = vcmask 1041408   ;;  %v898_v0 = vld [vmem:[%s12178_s2] sm:$0x3]  ;;  %p350_p3 = scmp.lt.s32.totalorder %s7522_s14, 1  ;;  %v7619_v2 = vld [vmem:[%s12178_s2 + $0x2] sm:$0x3] }
   0xc   : > { %v8636_v1 = vsel %vm722_vm0, %v898_v0, 0  ;;  %v398_v3 = vld [vmem:[%s12184_s8] sm:$0x3]  ;;  %v1199_v4 = vsel %vm722_vm0, %v7619_v2, 0  ;;  %v7743_v6 = vld [vmem:[%s12178_s2 + $0x6] sm:$0x3] }
   0xd   : > { %1346 = vmatpush.bf16.msra.mxu2 %v8636_v1  ;;  %s12459_s14 = smov (!%p350_p3, %s7522_s14), 1  ;;  %v724_v5 = vsel %vm722_vm0, %v398_v3, 0  ;;  %1208 = vmatpush.bf16.msra.mxu1 %v1199_v4  ;;  %v7830_v7 = vld [vmem:[%s12178_s2 + $0x8] sm:$0x3]  ;;  %vm667_vm1 = vcmask 31744   ;;  %v1898_v8 = vsel %vm722_vm0, %v7743_v6, 0 }
   0xe   : > { %733 = vmatpush.bf16.msra.mxu0 %v724_v5  ;;  %s8506_s25 = smul.u32 172, %s12459_s14  ;;  %8503 = vmatpush.bf16.msra.mxu3 %v724_v5  ;;  %v2266_v9 = vsel %vm722_vm0, %v7830_v7, 0  ;;  %vm995_vm2 = vsmask.f32 7424  ;;  %vm496_vm3 = vsmask.f32 6400 }
   0xf   : > { %vm825_vm4 = vcmask 64512   ;;  %vm1444_vm5 = vcmask 1046528   ;;  %vm2409_vm6 = vcmask 1045504   ;;  %vm4803_vm7 = vcmask 1043456  }
  0x10   : > { %s8661_s28 = scalar_lea.vmem %s12176_s0, %s8506_s25  ;;  %vm3973_vm8 = vcmask 60416   ;;  %vm3375_vm9 = vcmask 1044480   ;;  %vm3006_vm10 = vsmask.f32 5376  ;;  %vm3976_vm11 = vcmask 58368   ;;  %s8507_s25 = smul.u32 144, %s12459_s14 }
  0x11   : > { %2275 = vmatpush.bf16.msrb.mxu1 %v2266_v9  ;;  %v8490_v10 = vld [vmem:[%s8661_s28] sm:$0xff]   ;;  %v8665_v11 = vld [vmem:[%s8661_s28 + $0x8] sm:$0xff]  ;;  %v8370_v16 = vld [vmem:[%s8661_s28 + $0x10] sm:$0xff]  ;;  %vm3977_vm12 = vsmask.f32 1280  ;;  %vm3982_vm13 = vcmask 60417  }
  0x12   : > { %1907 = vmatpush.bf16.msrb.mxu0 %v1898_v8  ;;  %8504 = vmatpush.bf16.msrb.mxu3 %v1199_v4  ;;  %v7531_v12 = vld [vmem:[%s8661_s28 + $0x8] sm:$0xe]  ;;  %v997_v13 = vshrl.u32 %v8490_v10, 16  ;;  %v999_v14 = vshll.u32 %v8490_v10, 16  ;;  %v8369_v15 = vld [vmem:[%s8661_s28 + $0x8] sm:$0xf0]  ;;  %vm9769_vm14 = vmand %vm3976_vm11, %vm3977_vm12  ;;  %s11905_s29 = scalar_lea.vmem %s12186_s10, %s8507_s25 }
  0x13   : > { %7706 = vmatmul.msk.bf16.vlgmr.msra.gmra.mxu2 %vm667_vm1, %v8490_v10  ;;  %v8383_v17 = vld [vmem:[%s8661_s28 + $0x78] sm:$0xff]  ;;  %v1004_v18 = vshll.u32 %v8665_v11, 16  ;;  %v7532_v19 = vor.u32 %v8369_v15, %v7531_v12  ;;  %v8384_v20 = vld [vmem:[%s8661_s28 + $0x80] sm:$0xff]  ;;  %v506_v22 = vshrl.u32 %v8370_v16, 16  ;;  %v509_v23 = vshll.u32 %v8370_v16, 16  ;;  %v8680_v45 = vld [vmem:[%s8661_s28 + $0x10] sm:$0xff] }
  0x14   : > { %v1001_v21 = vrot.slane %v999_v14, 1  ;;  %v623_v24 = vshrl.u32 %v8383_v17, 16  ;;  %v626_v28 = vshll.u32 %v8383_v17, 16  ;;  %v632_v36 = vshrl.u32 %v8384_v20, 16  ;;  %v8371_v42 = vld [vmem:[%s8661_s28 + $0x18] sm:$0xff]  ;;  %v8385_v48 = vld [vmem:[%s8661_s28 + $0x88] sm:$0xff] }
  0x15   : > { %v1006_v25 = vrot.slane %v1004_v18, 1  ;;  %v498_v26 = vshrl.u32 %v7532_v19, 16  ;;  %v501_v27 = vshll.u32 %v7532_v19, 16  ;;  %v508_v30 = vrot.slane %v506_v22, 1  ;;  %v8372_v3 = vld [vmem:[%s8661_s28 + $0x20] sm:$0xff]  ;;  %v8386_v5 = vld [vmem:[%s8661_s28 + $0x90] sm:$0xff] }
  0x16   : > { %v1002_v29 = vor.u32 %v1001_v21, %v997_v13  ;;  %v511_v31 = vrot.slane %v509_v23, 2  ;;  %v625_v32 = vrot.slane %v623_v24, 1  ;;  %v628_v35 = vrot.slane %v626_v28, 2 }
  0x17   : > { %v500_v33 = vrot.slane %v498_v26, 1  ;;  %v503_v34 = vrot.slane %v501_v27, 2  ;;  %v635_v39 = vshll.u32 %v8384_v20, 16  ;;  %v634_v41 = vrot.slane %v632_v36, 1  ;;  %v397_v20 = vld [vmem:[%s8661_s28 + $0x98] sm:$0x3] }
  0x18   : > { %v1007_v37 = vsel %vm995_vm2, %v1002_v29, %v1006_v25  ;;  %v512_v38 = vor.u32 %v511_v31, %v508_v30  ;;  %v8677_v43 = vor.u32 %v628_v35, %v625_v32  ;;  %v515_v49 = vshrl.u32 %v8371_v42, 16  ;;  %v8714_v26 = vld [vmem:[%s8661_s28 + $0x20] sm:$0xff] }
  0x19   : > { %7688 = vmatmul.msk.bf16.vlgmr.msra.gmra.mxu1 %vm667_vm1, %v1007_v37  ;;  %v504_v40 = vor.u32 %v503_v34, %v500_v33  ;;  %v637_v44 = vrot.slane %v635_v39, 2  ;;  %v518_v50 = vshll.u32 %v8371_v42, 16  ;;  %v1008_v52 = vshrl.u32 %v8665_v11, 16 }
  0x1a   : > { %v1012_v53 = vshll.u32 %v8680_v45, 16  ;;  %v641_v54 = vshrl.u32 %v8385_v48, 16  ;;  %v644_v55 = vshll.u32 %v8385_v48, 16  ;;  %v517_v56 = vrot.slane %v515_v49, 1  ;;  %v8728_v48 = vld [vmem:[%s8661_s28 + $0x28] sm:$0xff] }
  0x1b   : > { %v513_v46 = vsel %vm496_vm3, %v504_v40, %v512_v38  ;;  %v638_v47 = vor.u32 %v637_v44, %v634_v41  ;;  %v520_v57 = vrot.slane %v518_v50, 2  ;;  %v1010_v58 = vor.u32 %v1008_v52, %v1006_v25  ;;  %v8373_v25 = vld [vmem:[%s8661_s28 + $0x28] sm:$0xff]  ;;  %v8733_v50 = vld [vmem:[%s8661_s28 + $0x70] sm:$0xff] }
  0x1c   : > { %7601 = vmatmul.msk.bf16.vlgmr.msra.gmra.mxu0 %vm667_vm1, %v513_v46  ;;  %v1014_v59 = vrot.slane %v1012_v53, 1  ;;  %v643_v60 = vrot.slane %v641_v54, 1  ;;  %v646_v61 = vrot.slane %v644_v55, 2  ;;  %v524_v6 = vshrl.u32 %v8372_v3, 16  ;;  %v8739_v55 = vld [vmem:[%s8661_s28 + $0x78] sm:$0xff] }
  0x1d   : > { %v639_v51 = vsel %vm496_vm3, %v8677_v43, %v638_v47  ;;  %v521_v62 = vor.u32 %v520_v57, %v517_v56  ;;  %v527_v7 = vshll.u32 %v8372_v3, 16  ;;  %v1016_v8 = vshrl.u32 %v8680_v45, 16 }
  0x1e   : > { %7615 = vmatmul.msk.bf16.vlgmr.msra.gmra.mxu3 %vm667_vm1, %v639_v51  ;;  %v1015_v63 = vsel %vm995_vm2, %v1010_v58, %v1014_v59  ;;  %v647_v0 = vor.u32 %v646_v61, %v643_v60  ;;  %v650_v10 = vshrl.u32 %v8386_v5, 16  ;;  %v653_v12 = vshll.u32 %v8386_v5, 16 }
  0x1f   : > { %8505 = vmatpush.bf16.msra.mxu3 %v8636_v1  ;;  %v522_v2 = vsel %vm496_vm3, %v512_v38, %v521_v62  ;;  %v8698_v1 = vld [vmem:[%s8661_s28 + $0x18] sm:$0xff]  ;;  %v526_v13 = vrot.slane %v524_v6, 1  ;;  %v529_v14 = vrot.slane %v527_v7, 2  ;;  %v1018_v15 = vor.u32 %v1016_v8, %v1014_v59  ;;  %v8754_v7 = vld [vmem:[%s8661_s28 + $0x30] sm:$0xff] }
  0x20   : > { %v648_v4 = vsel %vm496_vm3, %v638_v47, %v647_v0  ;;  %v1020_v9 = vshll.u32 %v8698_v1, 16  ;;  %v652_v17 = vrot.slane %v650_v10, 1  ;;  %v655_v18 = vrot.slane %v653_v12, 2  ;;  %v8374_v47 = vld [vmem:[%s8661_s28 + $0x30] sm:$0xff]  ;;  %v8375_v6 = vld [vmem:[%s8661_s28 + $0x38] sm:$0xff] }
  0x21   : > { %v530_v19 = vor.u32 %v529_v14, %v526_v13  ;;  %v476_v23 = vunpack.c.l.b16 %v397_v20  ;;  %v533_v29 = vshrl.u32 %v8373_v25, 16  ;;  %v536_v30 = vshll.u32 %v8373_v25, 16  ;;  %v8762_v14 = vld [vmem:[%s8661_s28 + $0x80] sm:$0xff] }
  0x22   : > { %v1022_v16 = vrot.slane %v1020_v9, 1  ;;  %v656_v22 = vor.u32 %v655_v18, %v652_v17  ;;  %v1024_v31 = vshrl.u32 %v8698_v1, 16  ;;  %v1028_v32 = vshll.u32 %v8714_v26, 16 }
  0x23   : > { %7707 = vmatmul.msk.bf16.gmra.mxu2 %vm667_vm1, %v8665_v11  ;;  %v531_v24 = vsel %vm496_vm3, %v521_v62, %v530_v19  ;;  %v495_v28 = vpack.c.b16 %v476_v23, %v476_v23  ;;  %v535_v35 = vrot.slane %v533_v29, 1  ;;  %v538_v36 = vrot.slane %v536_v30, 2 }
  0x24   : > { %v1023_v21 = vsel %vm995_vm2, %v1018_v15, %v1022_v16  ;;  %v657_v27 = vsel %vm496_vm3, %v647_v0, %v656_v22  ;;  %v1026_v37 = vor.u32 %v1024_v31, %v1022_v16  ;;  %v1030_v38 = vrot.slane %v1028_v32, 1 }
  0x25   : > { %v659_v33 = vshrl.u32 %v495_v28, 16  ;;  %v662_v34 = vshll.u32 %v495_v28, 16  ;;  %v539_v41 = vor.u32 %v538_v36, %v535_v35  ;;  %v542_v51 = vshrl.u32 %v8374_v47, 16  ;;  %v8773_v28 = vld [vmem:[%s8661_s28 + $0x38] sm:$0xff] }
  0x26   : > { %v1031_v42 = vsel %vm995_vm2, %v1026_v37, %v1030_v38  ;;  %v545_v52 = vshll.u32 %v8374_v47, 16  ;;  %v1032_v53 = vshrl.u32 %v8714_v26, 16  ;;  %v1036_v54 = vshll.u32 %v8728_v48, 16 }
  0x27   : > { %v661_v39 = vrot.slane %v659_v33, 1  ;;  %v664_v40 = vrot.slane %v662_v34, 2  ;;  %v540_v46 = vsel %vm496_vm3, %v530_v19, %v539_v41  ;;  %v1108_v56 = vshll.u32 %v8733_v50, 16  ;;  %v8781_v34 = vld [vmem:[%s8661_s28 + $0x88] sm:$0xff] }
  0x28   : > { %v544_v57 = vrot.slane %v542_v51, 1  ;;  %v547_v58 = vrot.slane %v545_v52, 2  ;;  %v1034_v59 = vor.u32 %v1032_v53, %v1030_v38  ;;  %v1038_v60 = vrot.slane %v1036_v54, 1  ;;  %v899_v51 = vld [vmem:[%s8661_s28 + $0x90] sm:$0x1]  ;;  %v8793_v52 = vld [vmem:[%s8661_s28 + $0x40] sm:$0xff] }
  0x29   : > { %7689 = vmatmul.msk.bf16.gmra.mxu1 %vm667_vm1, %v1015_v63  ;;  %v665_v44 = vor.u32 %v664_v40, %v661_v39  ;;  %v8744_v61 = vrot.slane %v1108_v56, 1  ;;  %v1112_v62 = vshrl.u32 %v8733_v50, 16  ;;  %v1116_v63 = vshll.u32 %v8739_v55, 16 }
  0x2a   : > { %v548_v0 = vor.u32 %v547_v58, %v544_v57  ;;  %v551_v9 = vshrl.u32 %v8375_v6, 16  ;;  %v554_v10 = vshll.u32 %v8375_v6, 16  ;;  %v1040_v12 = vshrl.u32 %v8728_v48, 16 }
  0x2b   : > { %v666_v49 = vsel %vm496_vm3, %v656_v22, %v665_v44  ;;  %v1114_v3 = vor.u32 %v1112_v62, %v8744_v61  ;;  %v1044_v13 = vshll.u32 %v8754_v7, 16  ;;  %v1120_v19 = vshrl.u32 %v8739_v55, 16 }
  0x2c   : > { %7602 = vmatmul.msk.bf16.gmra.mxu0 %vm667_vm1, %v522_v2  ;;  %v1039_v2 = vsel %vm995_vm2, %v1034_v59, %v1038_v60  ;;  %v549_v5 = vsel %vm496_vm3, %v539_v41, %v548_v0  ;;  %v553_v15 = vrot.slane %v551_v9, 1  ;;  %v556_v16 = vrot.slane %v554_v10, 2 }
  0x2d   : > { %v1042_v17 = vor.u32 %v1040_v12, %v1038_v60  ;;  %v1046_v18 = vrot.slane %v1044_v13, 1  ;;  %v1124_v20 = vshll.u32 %v8762_v14, 16  ;;  %v1048_v32 = vshrl.u32 %v8754_v7, 16  ;;  %v8378_v12 = vld [vmem:[%s8661_s28 + $0x50] sm:$0xff]  ;;  %v8811_v13 = vld [vmem:[%s8661_s28 + $0x48] sm:$0xff] }
  0x2e   : > { %7616 = vmatmul.msk.bf16.gmra.mxu3 %vm667_vm1, %v648_v4  ;;  %v1118_v4 = vrot.slane %v1116_v63, 1  ;;  %v1052_v33 = vshll.u32 %v8773_v28, 16  ;;  %v1128_v39 = vshrl.u32 %v8762_v14, 16  ;;  %v1132_v40 = vshll.u32 %v8781_v34, 16 }
  0x2f   : > { %v1047_v22 = vsel %vm995_vm2, %v1042_v17, %v1046_v18  ;;  %v1050_v37 = vor.u32 %v1048_v32, %v1046_v18  ;;  %v975_v54 = vunpack.c.l.b16 %v899_v51  ;;  %v1056_v58 = vshrl.u32 %v8773_v28, 16 }
  0x30   : > { %v1119_v8 = vsel %vm995_vm2, %v1114_v3, %v1118_v4  ;;  %v1122_v23 = vor.u32 %v1120_v19, %v1118_v4  ;;  %v1054_v38 = vrot.slane %v1052_v33, 1  ;;  %v1060_v59 = vshll.u32 %v8793_v52, 16 }
  0x31   : > { %v8800_v60 = vpack.c.b16 %v975_v54, %v975_v54  ;;  %v1136_v3 = vshrl.u32 %v8781_v34, 16  ;;  %v581_v17 = vshll.u32 %v8378_v12, 16  ;;  %v1064_v18 = vshrl.u32 %v8793_v52, 16 }
  0x32   : > { %v1068_v19 = vshll.u32 %v8811_v13, 16  ;;  %vm3983_vm15 = vsmask.f32 7942  ;;  %vm4029_vm11 = vsmask.f32 5392 }
  0x33   : > { %7708 = vmatmul.msk.bf16.gmra.mxu2 %vm667_vm1, %v8680_v45  ;;  %v1140_v4 = vshll.u32 %v8800_v60, 16 }
  0x35   : > { %v1142_v9 = vrot.slane %v1140_v4, 1 }
  0x39   : > { %7690 = vmatmul.msk.bf16.gmra.mxu1 %vm667_vm1, %v1023_v21  ;;  %v557_v21 = vor.u32 %v556_v16, %v553_v15  ;;  %v578_v16 = vshrl.u32 %v8378_v12, 16 }
  0x3b   : > { %v558_v25 = vsel %vm496_vm3, %v548_v0, %v557_v21  ;;  %v1058_v0 = vor.u32 %v1056_v58, %v1054_v38 }
  0x3c   : > { %7603 = vmatmul.msk.bf16.gmra.mxu0 %vm667_vm1, %v531_v24  ;;  %v1126_v24 = vrot.slane %v1124_v20, 1  ;;  %v580_v20 = vrot.slane %v578_v16, 1 }
  0x3e   : > { %7617 = vmatmul.msk.bf16.gmra.mxu3 %vm667_vm1, %v657_v27  ;;  %v8376_v27 = vld [vmem:[%s8661_s28 + $0x40] sm:$0xff]  ;;  %v1127_v29 = vsel %vm995_vm2, %v1122_v23, %v1126_v24  ;;  %v1130_v44 = vor.u32 %v1128_v39, %v1126_v24  ;;  %v1070_v23 = vrot.slane %v1068_v19, 1  ;;  %v8837_v39 = vld [vmem:[%s8661_s28 + $0x50] sm:$0xff] }
  0x3f   : > { %v560_v30 = vshrl.u32 %v8376_v27, 16  ;;  %v563_v31 = vshll.u32 %v8376_v27, 16  ;;  %v7724_v27 = vld [vmem:[%s12178_s2 + $0x4] sm:$0x3] }
  0x40   : > { %v1537_v32 = vsel %vm722_vm0, %v7724_v27, 0 }
  0x41   : > { %v562_v35 = vrot.slane %v560_v30, 1  ;;  %v565_v36 = vrot.slane %v563_v31, 2  ;;  %v8826_v30 = vld [vmem:[%s12185_s9] ss:$0 sm:$0xff] }
  0x43   : > { %7709 = vmatmul.msk.bf16.gmra.mxu2 %vm667_vm1, %v8698_v1  ;;  %v566_v41 = vor.u32 %v565_v36, %v562_v35 }
  0x45   : > { %v567_v47 = vsel %vm496_vm3, %v557_v21, %v566_v41  ;;  %v583_v21 = vrot.slane %v581_v17, 2 }
  0x49   : > { %7691 = vmatmul.msk.bf16.gmra.mxu1 %vm667_vm1, %v1031_v42  ;;  %v1055_v42 = vsel %vm995_vm2, %v1050_v37, %v1054_v38  ;;  %v8379_v37 = vld [vmem:[%s8661_s28 + $0x58] sm:$0xff] }
  0x4c   : > { %7604 = vmatmul.msk.bf16.gmra.mxu0 %vm667_vm1, %v540_v46  ;;  %v1134_v46 = vrot.slane %v1132_v40, 1 }
  0x4e   : > { %7618 = vmatmul.msk.bf16.gmra.mxu3 %vm667_vm1, %v666_v49  ;;  %v8377_v49 = vld [vmem:[%s8661_s28 + $0x48] sm:$0xff]  ;;  %v1135_v53 = vsel %vm995_vm2, %v1130_v44, %v1134_v46 }
  0x4f   : > { %v569_v56 = vshrl.u32 %v8377_v49, 16  ;;  %v572_v57 = vshll.u32 %v8377_v49, 16 }
  0x51   : > { %v571_v62 = vrot.slane %v569_v56, 1  ;;  %v574_v63 = vrot.slane %v572_v57, 2 }
  0x53   : > { %7710 = vmatmul.msk.bf16.gmra.mxu2 %vm667_vm1, %v8714_v26 }
  0x59   : > { %7692 = vmatmul.msk.bf16.gmra.mxu1 %vm667_vm1, %v1039_v2  ;;  %v1062_v2 = vrot.slane %v1060_v59, 1 }
  0x5b   : > { %v1063_v6 = vsel %vm995_vm2, %v1058_v0, %v1062_v2  ;;  %v7849_v0 = vld [vmem:[%s12178_s2 + $0xa] sm:$0x3] }
  0x5c   : > { %7605 = vmatmul.msk.bf16.gmra.mxu0 %vm667_vm1, %v549_v5  ;;  %v575_v5 = vor.u32 %v574_v63, %v571_v62  ;;  %v2502_v4 = vsel %vm722_vm0, %v7849_v0, 0 }
  0x5d   : > { %2511 = vmatpush.bf16.msrb.mxu2 %v2502_v4 }
  0x5e   : > { %7702 = vmatmul.msk.bf16.vlgmr.msrb.gmra.mxu3 %vm667_vm1, %v1119_v8  ;;  %v1138_v8 = vor.u32 %v1136_v3, %v1134_v46  ;;  %v576_v10 = vsel %vm496_vm3, %v566_v41, %v575_v5  ;;  %v587_v41 = vshrl.u32 %v8379_v37, 16  ;;  %v1072_v46 = vshrl.u32 %v8811_v13, 16 }
  0x5f   : > { %1546 = vmatpush.bf16.msrb.mxu3 %v1537_v32 }
  0x60   : > { %v1143_v15 = vsel %vm995_vm2, %v1138_v8, %v1142_v9  ;;  %v1074_v58 = vor.u32 %v1072_v46, %v1070_v23  ;;  %v8380_v9 = vld [vmem:[%s8661_s28 + $0x60] sm:$0xff]  ;;  %v8381_v46 = vld [vmem:[%s8661_s28 + $0x68] sm:$0xff] }
  0x61   : > { %v599_v19 = vshll.u32 %v8380_v9, 16 }
  0x63   : > { %7711 = vmatmul.msk.bf16.gmra.mxu2 %vm667_vm1, %v8728_v48  ;;  %v601_v27 = vrot.slane %v599_v19, 2 }
  0x69   : > { %7693 = vmatmul.msk.bf16.gmra.mxu1 %vm667_vm1, %v1047_v22  ;;  %v1066_v22 = vor.u32 %v1064_v18, %v1062_v2  ;;  %v596_v18 = vshrl.u32 %v8380_v9, 16 }
  0x6b   : > { %v1071_v31 = vsel %vm995_vm2, %v1066_v22, %v1070_v23 }
  0x6c   : > { %7606 = vmatmul.msk.bf16.gmra.mxu0 %vm667_vm1, %v558_v25  ;;  %v584_v25 = vor.u32 %v583_v21, %v580_v20  ;;  %v1080_v21 = vshrl.u32 %v8837_v39, 16 }
  0x6e   : > { %7703 = vmatmul.msk.bf16.gmra.mxu3 %vm667_vm1, %v1127_v29  ;;  %v585_v36 = vsel %vm496_vm3, %v575_v5, %v584_v25 }
  0x73   : > { %7712 = vmatmul.msk.bf16.gmra.mxu2 %vm667_vm1, %v8754_v7 }
  0x79   : > { %7694 = vmatmul.msk.bf16.gmra.mxu1 %vm667_vm1, %v1055_v42  ;;  %v590_v42 = vshll.u32 %v8379_v37, 16 }
  0x7b   : > { %v592_v54 = vrot.slane %v590_v42, 2 }
  0x7c   : > { %7607 = vmatmul.msk.bf16.gmra.mxu0 %vm667_vm1, %v567_v47  ;;  %v1076_v47 = vshll.u32 %v8837_v39, 16 }
  0x7e   : > { %7704 = vmatmul.msk.bf16.gmra.mxu3 %vm667_vm1, %v1135_v53  ;;  %v589_v53 = vrot.slane %v587_v41, 1  ;;  %v1078_v59 = vrot.slane %v1076_v47, 1 }
  0x80   : > { %v593_v63 = vor.u32 %v592_v54, %v589_v53  ;;  %v1079_v3 = vsel %vm995_vm2, %v1074_v58, %v1078_v59  ;;  %v1082_v32 = vor.u32 %v1080_v21, %v1078_v59  ;;  %v8891_v53 = vld [vmem:[%s8661_s28 + $0x60] sm:$0xff]  ;;  %v608_v58 = vshll.u32 %v8381_v46, 16  ;;  %v8382_v21 = vld [vmem:[%s8661_s28 + $0x70] sm:$0xff] }
  0x82   : > { %v594_v8 = vsel %vm496_vm3, %v584_v25, %v593_v63  ;;  %v598_v25 = vrot.slane %v596_v18, 1 }
  0x83   : > { %7713 = vmatmul.msk.bf16.gmra.mxu2 %vm667_vm1, %v8773_v28 }
  0x84   : > { %v602_v37 = vor.u32 %v601_v27, %v598_v25  ;;  %v8917_v25 = vld [vmem:[%s8661_s28 + $0x68] sm:$0xff] }
  0x89   : > { %7695 = vmatmul.msk.bf16.gmra.mxu1 %vm667_vm1, %v1063_v6 }
  0x8c   : > { %7608 = vmatmul.msk.bf16.gmra.mxu0 %vm667_vm1, %v576_v10 }
  0x8e   : > { %7705 = vmatmul.msk.bf16.gmra.mxu3 %vm667_vm1, %v1143_v15  ;;  %v8865_v15 = vld [vmem:[%s8661_s28 + $0x58] sm:$0xff] }
  0x8f   : > { %v1084_v22 = vshll.u32 %v8865_v15, 16 }
  0x93   : > { %7714 = vmatmul.msk.bf16.gmra.mxu2 %vm667_vm1, %v8793_v52 }
  0x96   : > { %v1348_v24 = vpop.f32.mrf.mxu2  ;;  %v1210_v29 = vpop.f32.mrf.mxu1 }
  0x97   : > { %v8830_v33 = vadd.f32 %v1348_v24, %v1210_v29 }
  0x99   : > { %v735_v35 = vpop.f32.mrf.mxu0  ;;  %7696 = vmatmul.msk.bf16.gmra.mxu1 %vm667_vm1, %v1071_v31 }
  0x9a   : > { %v736_v38 = vadd.f32 %v8826_v30, %v735_v35  ;;  %v1086_v35 = vrot.slane %v1084_v22, 1 }
  0x9c   : > { %826 = vst.msk [vmem:[#allocation3] sm:$0xff] %vm825_vm4, %v736_v38  ;;  %7609 = vmatmul.msk.bf16.gmra.mxu0 %vm667_vm1, %v585_v36 }
  0x9e   : > { %v1350_v40 = vpop.f32.mrf.mxu2  ;;  %v1212_v44 = vpop.f32.mrf.mxu1  ;;  %7720 = vmatmul.msk.bf16.vlgmr.msra.gmra.mxu3 %vm667_vm1, %v8733_v50 }
  0x9f   : > { %v8845_v49 = vadd.f32 %v1350_v40, %v1212_v44  ;;  %v1087_v40 = vsel %vm995_vm2, %v1082_v32, %v1086_v35  ;;  %v603_v44 = vsel %vm496_vm3, %v593_v63, %v602_v37  ;;  %v617_v32 = vshll.u32 %v8382_v21, 16 }
  0xa1   : > { %v737_v51 = vpop.f32.mrf.mxu0  ;;  %v805_v56 = vpop.f32.mrf.mxu3 }
  0xa2   : > { %v738_v57 = vadd.f32 %v8826_v30, %v737_v51  ;;  %v806_v62 = vadd.f32 %v8826_v30, %v805_v56 }
  0xa3   : > { %7715 = vmatmul.msk.bf16.gmra.mxu2 %vm667_vm1, %v8811_v13 }
  0xa4   : > { %827 = vst.msk [vmem:[#allocation3 + $0x8] sm:$0xff] %vm825_vm4, %v738_v57  ;;  %v605_v57 = vshrl.u32 %v8381_v46, 16  ;;  %v8498_v46 = vld [vmem:[%s8661_s28] sm:$0xe] }
  0xa5   : > { %854 = vst.msk [vmem:[#allocation3 + $0xe0] sm:$0xff] %vm825_vm4, %v806_v62  ;;  %v1088_v62 = vshrl.u32 %v8865_v15, 16 }
  0xa6   : > { %v1353_v50 = vpop.f32.mrf.mxu2  ;;  %v1215_v2 = vpop.f32.mrf.mxu1 }
  0xa7   : > { %v8858_v5 = vadd.f32 %v1353_v50, %v1215_v2  ;;  %v1092_v50 = vshll.u32 %v8891_v53, 16  ;;  %v607_v2 = vrot.slane %v605_v57, 1 }
  0xa9   : > { %v740_v6 = vpop.f32.mrf.mxu0  ;;  %7697 = vmatmul.msk.bf16.gmra.mxu1 %vm667_vm1, %v1079_v3  ;;  %v807_v10 = vpop.f32.mrf.mxu3  ;;  %v610_v3 = vrot.slane %v608_v58, 2  ;;  %v1094_v9 = vrot.slane %v1092_v50, 1  ;;  %v7868_v58 = vld [vmem:[%s12178_s2 + $0xc] sm:$0x3] }
  0xaa   : > { %v741_v12 = vadd.f32 %v8826_v30, %v740_v6  ;;  %v808_v16 = vadd.f32 %v8826_v30, %v807_v10  ;;  %v2863_v50 = vsel %vm722_vm0, %v7868_v58, 0 }
  0xab   : > { %2872 = vmatpush.bf16.msra.mxu3 %v2863_v50 }
  0xac   : > { %828 = vst.msk [vmem:[#allocation3 + $0x10] sm:$0xff] %vm825_vm4, %v741_v12  ;;  %7610 = vmatmul.msk.bf16.gmra.mxu0 %vm667_vm1, %v594_v8  ;;  %v1090_v8 = vor.u32 %v1088_v62, %v1086_v35  ;;  %v611_v12 = vor.u32 %v610_v3, %v607_v2 }
  0xad   : > { %855 = vst.msk [vmem:[#allocation3 + $0xe8] sm:$0xff] %vm825_vm4, %v808_v16 }
  0xae   : > { %v1355_v17 = vpop.f32.mrf.mxu2  ;;  %v1217_v20 = vpop.f32.mrf.mxu1  ;;  %7721 = vmatmul.msk.bf16.gmra.mxu3 %vm667_vm1, %v8739_v55 }
  0xaf   : > { %v8875_v23 = vadd.f32 %v1355_v17, %v1217_v20  ;;  %v1095_v17 = vsel %vm995_vm2, %v1090_v8, %v1094_v9  ;;  %v612_v20 = vsel %vm496_vm3, %v602_v37, %v611_v12 }
  0xb1   : > { %v742_v24 = vpop.f32.mrf.mxu0  ;;  %v810_v29 = vpop.f32.mrf.mxu3 }
  0xb2   : > { %v743_v31 = vadd.f32 %v8826_v30, %v742_v24  ;;  %v811_v36 = vadd.f32 %v8826_v30, %v810_v29 }
  0xb3   : > { %7716 = vmatmul.msk.bf16.gmra.mxu2 %vm667_vm1, %v8837_v39 }
  0xb4   : > { %829 = vst.msk [vmem:[#allocation3 + $0x18] sm:$0xff] %vm825_vm4, %v743_v31  ;;  %v614_v31 = vshrl.u32 %v8382_v21, 16  ;;  %v1675_v21 = vld [vmem:[%s8661_s28 + $0xc] sm:$0xf] }
  0xb5   : > { %856 = vst.msk [vmem:[#allocation3 + $0xf0] sm:$0xff] %vm825_vm4, %v811_v36  ;;  %v1096_v36 = vshrl.u32 %v8891_v53, 16 }
  0xb6   : > { %v1358_v55 = vpop.f32.mrf.mxu2  ;;  %v1220_v38 = vpop.f32.mrf.mxu1 }
  0xb7   : > { %v8884_v41 = vadd.f32 %v1358_v55, %v1220_v38  ;;  %v1100_v55 = vshll.u32 %v8917_v25, 16 }
  0xb9   : > { %v745_v42 = vpop.f32.mrf.mxu0  ;;  %7698 = vmatmul.msk.bf16.gmra.mxu1 %vm667_vm1, %v1087_v40  ;;  %v812_v47 = vpop.f32.mrf.mxu3  ;;  %v616_v40 = vrot.slane %v614_v31, 1 }
  0xba   : > { %v746_v51 = vadd.f32 %v8826_v30, %v745_v42  ;;  %v813_v54 = vadd.f32 %v8826_v30, %v812_v47  ;;  %v619_v42 = vrot.slane %v617_v32, 2 }
  0xbc   : > { %830 = vst.msk [vmem:[#allocation3 + $0x20] sm:$0xff] %vm825_vm4, %v746_v51  ;;  %7611 = vmatmul.msk.bf16.gmra.mxu0 %vm667_vm1, %v603_v44  ;;  %v8497_v44 = vld [vmem:[%s8661_s28] sm:$0xf0]  ;;  %v620_v62 = vor.u32 %v619_v42, %v616_v40 }
  0xbd   : > { %857 = vst.msk [vmem:[#allocation3 + $0xf8] sm:$0xff] %vm825_vm4, %v813_v54  ;;  %v1098_v54 = vor.u32 %v1096_v36, %v1094_v9 }
  0xbe   : > { %v1360_v56 = vpop.f32.mrf.mxu2  ;;  %v1222_v59 = vpop.f32.mrf.mxu1  ;;  %7722 = vmatmul.msk.bf16.gmra.mxu3 %vm667_vm1, %v8762_v14  ;;  %v621_v9 = vsel %vm496_vm3, %v611_v12, %v620_v62  ;;  %v1674_v12 = vld [vmem:[%s8661_s28 + $0x8] sm:$0xe] }
  0xbf   : > { %v8901_v63 = vadd.f32 %v1360_v56, %v1222_v59  ;;  %v1102_v56 = vrot.slane %v1100_v55, 1  ;;  %v1750_v36 = vunpack.c.l.b16 %v1674_v12  ;;  %v1751_v55 = vunpack.c.l.b16 %v1675_v21 }
  0xc1   : > { %v747_v0 = vpop.f32.mrf.mxu0  ;;  %v815_v4 = vpop.f32.mrf.mxu3  ;;  %v1103_v2 = vsel %vm995_vm2, %v1098_v54, %v1102_v56 }
  0xc2   : > { %v748_v6 = vadd.f32 %v8826_v30, %v747_v0  ;;  %v816_v10 = vadd.f32 %v8826_v30, %v815_v4 }
  0xc3   : > { %7717 = vmatmul.msk.bf16.gmra.mxu2 %vm667_vm1, %v8865_v15 }
  0xc4   : > { %831 = vst.msk [vmem:[#allocation3 + $0x28] sm:$0xff] %vm825_vm4, %v748_v6  ;;  %v1446_v6 = vrot.slane %v8665_v11, 1 }
  0xc5   : > { %858 = vst.msk [vmem:[#allocation3 + $0x100] sm:$0xff] %vm825_vm4, %v816_v10 }
  0xc6   : > { %v1363_v14 = vpop.f32.mrf.mxu2  ;;  %v1225_v16 = vpop.f32.mrf.mxu1 }
  0xc7   : > { %v8910_v18 = vadd.f32 %v1363_v14, %v1225_v16 }
  0xc9   : > { %v750_v19 = vpop.f32.mrf.mxu0  ;;  %7699 = vmatmul.msk.bf16.gmra.mxu1 %vm667_vm1, %v1095_v17  ;;  %v817_v22 = vpop.f32.mrf.mxu3 }
  0xca   : > { %v751_v24 = vadd.f32 %v8826_v30, %v750_v19  ;;  %v818_v27 = vadd.f32 %v8826_v30, %v817_v22 }
  0xcc   : > { %832 = vst.msk [vmem:[#allocation3 + $0x30] sm:$0xff] %vm825_vm4, %v751_v24  ;;  %7612 = vmatmul.msk.bf16.gmra.mxu0 %vm667_vm1, %v612_v20  ;;  %v1104_v20 = vshrl.u32 %v8917_v25, 16  ;;  %v7955_v24 = vld [vmem:[%s12178_s2 + $0xe] sm:$0x3] }
  0xcd   : > { %859 = vst.msk [vmem:[#allocation3 + $0x108] sm:$0xff] %vm825_vm4, %v818_v27  ;;  %v7974_v27 = vld [vmem:[%s12178_s2 + $0x10] sm:$0x3]  ;;  %v3232_v31 = vsel %vm722_vm0, %v7955_v24, 0 }
  0xce   : > { %v1365_v29 = vpop.f32.mrf.mxu2  ;;  %v1227_v35 = vpop.f32.mrf.mxu1  ;;  %7723 = vmatmul.msk.bf16.gmra.mxu3 %vm667_vm1, %v8781_v34  ;;  %v8499_v34 = vor.u32 %v8498_v46, %v8497_v44  ;;  %v3468_v32 = vsel %vm722_vm0, %v7974_v27, 0  ;;  %3241 = vmatpush.bf16.msra.mxu0 %v3232_v31  ;;  %v1106_v42 = vor.u32 %v1104_v20, %v1102_v56  ;;  %v630_v56 = vsel %vm496_vm3, %v620_v62, %v8677_v43  ;;  %vm9776_vm0 = vmand %vm3982_vm13, %vm3983_vm15 }
  0xcf   : > { %v8927_v37 = vadd.f32 %v1365_v29, %v1227_v35  ;;  %v2403_v29 = vld [vmem:[%s8661_s28 + $0x8] sm:$0xc]  ;;  %3477 = vmatpush.bf16.msra.mxu1 %v3468_v32  ;;  %vm9865_vm13 = vmor %vm3977_vm12, %vm4029_vm11 }
  0xd0   : > { %v1445_v4 = vrot.slane %v8499_v34, 1  ;;  %v2407_v44 = vunpack.c.l.b16 %v2403_v29  ;;  %v1111_v54 = vsel %vm995_vm2, %v1106_v42, %v8744_v61 }
  0xd1   : > { %v752_v38 = vpop.f32.mrf.mxu0  ;;  %v820_v47 = vpop.f32.mrf.mxu3 }
  0xd2   : > { %v753_v51 = vadd.f32 %v8826_v30, %v752_v38  ;;  %v821_v57 = vadd.f32 %v8826_v30, %v820_v47  ;;  %v1447_v17 = vsel %vm1444_vm5, %v1445_v4, %v1446_v6  ;;  %v1787_v47 = vpack.c.b16 %v1751_v55, %v1750_v36 }
  0xd3   : > { %7718 = vmatmul.msk.bf16.gmra.mxu2 %vm667_vm1, %v8891_v53  ;;  %v2408_v58 = vpack.c.b16 %v1751_v55, %v2407_v44  ;;  %v1450_v44 = vrot.slane %v8698_v1, 1 }
  0xd4   : > { %833 = vst.msk [vmem:[#allocation3 + $0x38] sm:$0xff] %vm825_vm4, %v753_v51  ;;  %v1806_v32 = vrot.slane %v1787_v47, 1 }
  0xd5   : > { %860 = vst.msk [vmem:[#allocation3 + $0x110] sm:$0xff] %vm825_vm4, %v821_v57  ;;  %v8977_v57 = vld [vmem:[%s8661_s28 + $0x10] sm:$0xff] }
  0xd6   : > { %v1368_v59 = vpop.f32.mrf.mxu2  ;;  %v1230_v0 = vpop.f32.mrf.mxu1  ;;  %v2050_v61 = vshrl.u32 %v8977_v57, 16 }
  0xd7   : > { %v8942_v3 = vadd.f32 %v1368_v59, %v1230_v0  ;;  %v1448_v59 = vrot.slane %v8680_v45, 1  ;;  %v2042_v0 = vshrl.u32 %v1787_v47, 16 }
  0xd9   : > { %v755_v8 = vpop.f32.mrf.mxu0  ;;  %7700 = vmatmul.msk.bf16.gmra.mxu1 %vm667_vm1, %v1103_v2  ;;  %v822_v10 = vpop.f32.mrf.mxu3  ;;  %v1449_v45 = vsel %vm1444_vm5, %v1446_v6, %v1448_v59 }
  0xda   : > { %v756_v14 = vadd.f32 %v8826_v30, %v755_v8  ;;  %v823_v16 = vadd.f32 %v8826_v30, %v822_v10  ;;  %v2045_v8 = vshll.u32 %v1787_v47, 16  ;;  %v2410_v10 = vrot.slane %v2408_v58, 2 }
  0xdc   : > { %834 = vst.msk [vmem:[#allocation3 + $0x40] sm:$0xff] %vm825_vm4, %v756_v14  ;;  %7613 = vmatmul.msk.bf16.gmra.mxu0 %vm667_vm1, %v621_v9  ;;  %v2053_v9 = vshll.u32 %v8977_v57, 16  ;;  %v2411_v14 = vrot.slane %v8977_v57, 2 }
  0xdd   : > { %861 = vst.msk [vmem:[#allocation3 + $0x118] sm:$0xff] %vm825_vm4, %v823_v16  ;;  %v2044_v16 = vrot.slane %v2042_v0, 1 }
  0xde   : > { %v1370_v11 = vpop.f32.mrf.mxu2  ;;  %v1232_v19 = vpop.f32.mrf.mxu1  ;;  %7725 = vmatmul.msk.bf16.vlgmr.msrb.gmra.mxu3 %vm667_vm1, %v1447_v17  ;;  %v2047_v17 = vrot.slane %v2045_v8, 2  ;;  %v2412_v12 = vsel %vm2409_vm6, %v2410_v10, %v2411_v14 }
  0xdf   : > { %v8957_v22 = vadd.f32 %v1370_v11, %v1232_v19  ;;  %v2052_v11 = vrot.slane %v2050_v61, 1  ;;  %v2055_v19 = vrot.slane %v2053_v9, 2 }
  0xe0   : > { %v2048_v6 = vor.u32 %v2047_v17, %v2044_v16 }
  0xe1   : > { %v757_v35 = vpop.f32.mrf.mxu0  ;;  %v8968_v38 = vpop.f32.mrf.mxu3  ;;  %v2056_v29 = vor.u32 %v2055_v19, %v2052_v11  ;;  %v9034_v19 = vld [vmem:[%s8661_s28 + $0x20] sm:$0xff] }
  0xe2   : > { %v758_v40 = vadd.f32 %v8826_v30, %v757_v35  ;;  %v1807_v35 = vrot.slane %v8977_v57, 1 }
  0xe3   : > { %7719 = vmatmul.msk.bf16.gmra.mxu2 %vm667_vm1, %v8917_v25  ;;  %v2057_v55 = vsel %vm496_vm3, %v2048_v6, %v2056_v29 }
  0xe4   : > { %835 = vst.msk [vmem:[#allocation3 + $0x48] sm:$0xff] %vm825_vm4, %v758_v40  ;;  %v9006_v40 = vld [vmem:[%s8661_s28 + $0x18] sm:$0xff] }
  0xe5   : > { %v2059_v57 = vshrl.u32 %v9006_v40, 16  ;;  %v2062_v58 = vshll.u32 %v9006_v40, 16  ;;  %v1809_v16 = vrot.slane %v9006_v40, 1 }
  0xe6   : > { %v1373_v46 = vpop.f32.mrf.mxu2  ;;  %v1235_v51 = vpop.f32.mrf.mxu1 }
  0xe7   : > { %v8979_v34 = vadd.f32 %v1373_v46, %v1235_v51  ;;  %v1808_v51 = vsel %vm1444_vm5, %v1806_v32, %v1807_v35  ;;  %v2064_v8 = vrot.slane %v2062_v58, 2  ;;  %v2068_v32 = vshrl.u32 %v9034_v19, 16 }
  0xe9   : > { %v760_v50 = vpop.f32.mrf.mxu0  ;;  %7701 = vmatmul.msk.bf16.gmra.mxu1 %vm667_vm1, %v1111_v54  ;;  %v8985_v2 = vpop.f32.mrf.mxu3 }
  0xea   : > { %v761_v4 = vadd.f32 %v8826_v30, %v760_v50  ;;  %v2413_v50 = vrot.slane %v9006_v40, 2 }
  0xec   : > { %836 = vst.msk [vmem:[#allocation3 + $0x50] sm:$0xff] %vm825_vm4, %v761_v4  ;;  %7614 = vmatmul.msk.bf16.gmra.mxu0 %vm667_vm1, %v630_v56  ;;  %v1451_v56 = vsel %vm1444_vm5, %v1448_v59, %v1450_v44  ;;  %v2061_v4 = vrot.slane %v2059_v57, 1  ;;  %v2414_v9 = vsel %vm2409_vm6, %v2411_v14, %v2413_v50  ;;  %v1452_v14 = vrot.slane %v8714_v26, 1 }
  0xee   : > { %v1375_v43 = vpop.f32.mrf.mxu2  ;;  %v1237_v62 = vpop.f32.mrf.mxu1  ;;  %7726 = vmatmul.msk.bf16.gmra.mxu3 %vm667_vm1, %v1449_v45 }
  0xef   : > { %v8995_v20 = vadd.f32 %v1375_v43, %v1237_v62  ;;  %v2065_v62 = vor.u32 %v2064_v8, %v2061_v4 }
  0xf1   : > { %v762_v21 = vpop.f32.mrf.mxu0  ;;  %v8998_v24 = vpop.f32.mrf.mxu3  ;;  %v2066_v11 = vsel %vm496_vm3, %v2056_v29, %v2065_v62  ;;  %v2415_v29 = vrot.slane %v9034_v19, 2 }
  0xf2   : > { %v763_v27 = vadd.f32 %v8826_v30, %v762_v21 }
  0xf3   : > { %7850 = vmatmul.msk.bf16.vlgmr.msrb.gmra.mxu2 %vm667_vm1, %v2412_v12 }
  0xf4   : > { %837 = vst.msk [vmem:[#allocation3 + $0x58] sm:$0xff] %vm825_vm4, %v763_v27  ;;  %v1810_v27 = vsel %vm1444_vm5, %v1807_v35, %v1809_v16  ;;  %v2070_v35 = vrot.slane %v2068_v32, 1 }
  0xf6   : > { %v1378_v31 = vpop.f32.mrf.mxu2  ;;  %v1240_v36 = vpop.f32.mrf.mxu1 }
  0xf7   : > { %v9008_v42 = vadd.f32 %v1378_v31, %v1240_v36  ;;  %v2071_v36 = vshll.u32 %v9034_v19, 16 }
  0xf9   : > { %v765_v46 = vpop.f32.mrf.mxu0  ;;  %7831 = vmatmul.msk.bf16.vlgmr.msrb.gmra.mxu1 %vm667_vm1, %v2057_v55  ;;  %v9013_v54 = vpop.f32.mrf.mxu3  ;;  %v1453_v55 = vsel %vm1444_vm5, %v1450_v44, %v1452_v14 }
  0xfa   : > { %v766_v47 = vadd.f32 %v8826_v30, %v765_v46  ;;  %v2073_v46 = vrot.slane %v2071_v36, 2 }
  0xfc   : > { %838 = vst.msk [vmem:[#allocation3 + $0x60] sm:$0xff] %vm825_vm4, %v766_v47  ;;  %7812 = vmatmul.msk.bf16.vlgmr.msrb.gmra.mxu0 %vm667_vm1, %v1808_v51  ;;  %v2416_v47 = vsel %vm2409_vm6, %v2413_v50, %v2415_v29  ;;  %v1454_v50 = vrot.slane %v8728_v48, 1 }
  0xfe   : > { %v1380_v1 = vpop.f32.mrf.mxu2  ;;  %v1242_v0 = vpop.f32.mrf.mxu1  ;;  %7727 = vmatmul.msk.bf16.gmra.mxu3 %vm667_vm1, %v1451_v56 }
  0xff   : > { %v9023_v61 = vadd.f32 %v1380_v1, %v1242_v0  ;;  %v2074_v1 = vor.u32 %v2073_v46, %v2070_v35  ;;  %v1811_v0 = vrot.slane %v9034_v19, 1 }
 0x101   : > { %v767_v10 = vpop.f32.mrf.mxu0  ;;  %v9026_v45 = vpop.f32.mrf.mxu3  ;;  %v2075_v8 = vsel %vm496_vm3, %v2065_v62, %v2074_v1 }
 0x102   : > { %v768_v43 = vadd.f32 %v8826_v30, %v767_v10 }
 0x103   : > { %7851 = vmatmul.msk.bf16.gmra.mxu2 %vm667_vm1, %v2414_v9  ;;  %v9062_v9 = vld [vmem:[%s8661_s28 + $0x28] sm:$0xff] }
 0x104   : > { %839 = vst.msk [vmem:[#allocation3 + $0x68] sm:$0xff] %vm825_vm4, %v768_v43  ;;  %v2077_v19 = vshrl.u32 %v9062_v9, 16  ;;  %v2417_v62 = vrot.slane %v9062_v9, 2 }
 0x106   : > { %v1383_v59 = vpop.f32.mrf.mxu2  ;;  %v1245_v17 = vpop.f32.mrf.mxu1  ;;  %v2079_v32 = vrot.slane %v2077_v19, 1 }
 0x107   : > { %v9036_v12 = vadd.f32 %v1383_v59, %v1245_v17  ;;  %v1812_v59 = vsel %vm1444_vm5, %v1809_v16, %v1811_v0 }
 0x109   : > { %v770_v21 = vpop.f32.mrf.mxu0  ;;  %7832 = vmatmul.msk.bf16.gmra.mxu1 %vm667_vm1, %v2066_v11  ;;  %v9041_v6 = vpop.f32.mrf.mxu3 }
 0x10a   : > { %v771_v31 = vadd.f32 %v8826_v30, %v770_v21  ;;  %v2080_v21 = vshll.u32 %v9062_v9, 16 }
 0x10c   : > { %840 = vst.msk [vmem:[#allocation3 + $0x70] sm:$0xff] %vm825_vm4, %v771_v31  ;;  %7813 = vmatmul.msk.bf16.gmra.mxu0 %vm667_vm1, %v1810_v27  ;;  %v1455_v27 = vsel %vm1444_vm5, %v1452_v14, %v1454_v50  ;;  %v2082_v16 = vrot.slane %v2080_v21, 2 }
 0x10e   : > { %v1385_v26 = vpop.f32.mrf.mxu2  ;;  %v1247_v40 = vpop.f32.mrf.mxu1  ;;  %7728 = vmatmul.msk.bf16.gmra.mxu3 %vm667_vm1, %v1453_v55  ;;  %v2418_v55 = vsel %vm2409_vm6, %v2415_v29, %v2417_v62  ;;  %v2083_v46 = vor.u32 %v2082_v16, %v2079_v32 }
 0x10f   : > { %v9051_v51 = vadd.f32 %v1385_v26, %v1247_v40 }
 0x111   : > { %v772_v57 = vpop.f32.mrf.mxu0  ;;  %v9054_v58 = vpop.f32.mrf.mxu3 }
 0x112   : > { %v773_v56 = vadd.f32 %v8826_v30, %v772_v57  ;;  %v1813_v57 = vrot.slane %v9062_v9, 1 }
 0x113   : > { %7852 = vmatmul.msk.bf16.gmra.mxu2 %vm667_vm1, %v2416_v47 }
 0x114   : > { %841 = vst.msk [vmem:[#allocation3 + $0x78] sm:$0xff] %vm825_vm4, %v773_v56 }
 0x116   : > { %v1388_v44 = vpop.f32.mrf.mxu2  ;;  %v1250_v4 = vpop.f32.mrf.mxu1 }
 0x117   : > { %v9064_v10 = vadd.f32 %v1388_v44, %v1250_v4  ;;  %v2084_v44 = vsel %vm496_vm3, %v2074_v1, %v2083_v46  ;;  %v9091_v4 = vld [vmem:[%s8661_s28 + $0x30] sm:$0xff] }
 0x118   : > { %v2086_v19 = vshrl.u32 %v9091_v4, 16  ;;  %v2089_v9 = vshll.u32 %v9091_v4, 16  ;;  %v2419_v21 = vrot.slane %v9091_v4, 2 }
 0x119   : > { %v775_v43 = vpop.f32.mrf.mxu0  ;;  %7833 = vmatmul.msk.bf16.gmra.mxu1 %vm667_vm1, %v2075_v8  ;;  %v9069_v17 = vpop.f32.mrf.mxu3  ;;  %v1456_v8 = vrot.slane %v8754_v7, 1 }
 0x11a   : > { %v776_v11 = vadd.f32 %v8826_v30, %v775_v43 }
 0x11b   : > { %v1457_v7 = vsel %vm1444_vm5, %v1454_v50, %v1456_v8 }
 0x11c   : > { %842 = vst.msk [vmem:[#allocation3 + $0x80] sm:$0xff] %vm825_vm4, %v776_v11  ;;  %7814 = vmatmul.msk.bf16.gmra.mxu0 %vm667_vm1, %v1812_v59 }
 0x11e   : > { %v1390_v48 = vpop.f32.mrf.mxu2  ;;  %v1252_v31 = vpop.f32.mrf.mxu1  ;;  %7729 = vmatmul.msk.bf16.gmra.mxu3 %vm667_vm1, %v1455_v27 }
 0x11f   : > { %v9079_v36 = vadd.f32 %v1390_v48, %v1252_v31  ;;  %v2088_v48 = vrot.slane %v2086_v19, 1  ;;  %v2091_v31 = vrot.slane %v2089_v9, 2 }
 0x121   : > { %v777_v26 = vpop.f32.mrf.mxu0  ;;  %v1418_v40 = vpop.f32.mrf.mxu3 }
 0x122   : > { %v778_v35 = vadd.f32 %v8826_v30, %v777_v26  ;;  %v9085_v14 = vadd.f32 %v1418_v40, %v8968_v38  ;;  %v1814_v38 = vsel %vm1444_vm5, %v1811_v0, %v1813_v57  ;;  %v2092_v40 = vor.u32 %v2091_v31, %v2088_v48 }
 0x123   : > { %7853 = vmatmul.msk.bf16.gmra.mxu2 %vm667_vm1, %v2418_v55 }
 0x124   : > { %843 = vst.msk [vmem:[#allocation3 + $0x88] sm:$0xff] %vm825_vm4, %v778_v35 }
 0x126   : > { %v1393_v47 = vpop.f32.mrf.mxu2  ;;  %v1255_v56 = vpop.f32.mrf.mxu1 }
 0x127   : > { %v9093_v29 = vadd.f32 %v1393_v47, %v1255_v56  ;;  %v1815_v47 = vrot.slane %v9091_v4, 1 }
 0x129   : > { %v780_v43 = vpop.f32.mrf.mxu0  ;;  %7834 = vmatmul.msk.bf16.gmra.mxu1 %vm667_vm1, %v2084_v44  ;;  %v1420_v59 = vpop.f32.mrf.mxu3  ;;  %v2093_v44 = vsel %vm496_vm3, %v2083_v46, %v2092_v40 }
 0x12a   : > { %v781_v11 = vadd.f32 %v8826_v30, %v780_v43  ;;  %v9102_v1 = vadd.f32 %v1420_v59, %v8985_v2  ;;  %v2420_v2 = vsel %vm2409_vm6, %v2417_v62, %v2419_v21  ;;  %v9121_v43 = vld [vmem:[%s8661_s28 + $0x38] sm:$0xff] }
 0x12b   : > { %v2095_v9 = vshrl.u32 %v9121_v43, 16  ;;  %v2098_v4 = vshll.u32 %v9121_v43, 16 }
 0x12c   : > { %844 = vst.msk [vmem:[#allocation3 + $0x90] sm:$0xff] %vm825_vm4, %v781_v11  ;;  %7815 = vmatmul.msk.bf16.gmra.mxu0 %vm667_vm1, %v1814_v38  ;;  %v1458_v38 = vrot.slane %v8773_v28, 1 }
 0x12d   : > { %v2100_v48 = vrot.slane %v2098_v4, 2 }
 0x12e   : > { %v1395_v27 = vpop.f32.mrf.mxu2  ;;  %v1257_v0 = vpop.f32.mrf.mxu1  ;;  %7730 = vmatmul.msk.bf16.gmra.mxu3 %vm667_vm1, %v1457_v7  ;;  %v2421_v7 = vrot.slane %v9121_v43, 2  ;;  %v1459_v28 = vsel %vm1444_vm5, %v1456_v8, %v1458_v38 }
 0x12f   : > { %v9109_v32 = vadd.f32 %v1395_v27, %v1257_v0  ;;  %v2097_v0 = vrot.slane %v2095_v9, 1 }
 0x131   : > { %v782_v16 = vpop.f32.mrf.mxu0  ;;  %v1423_v55 = vpop.f32.mrf.mxu3 }
 0x132   : > { %v783_v26 = vadd.f32 %v8826_v30, %v782_v16  ;;  %v9115_v50 = vadd.f32 %v1423_v55, %v8998_v24  ;;  %v1816_v24 = vsel %vm1444_vm5, %v1813_v57, %v1815_v47 }
 0x133   : > { %7854 = vmatmul.msk.bf16.gmra.mxu2 %vm667_vm1, %v2420_v2 }
 0x134   : > { %845 = vst.msk [vmem:[#allocation3 + $0x98] sm:$0xff] %vm825_vm4, %v783_v26  ;;  %v2101_v26 = vor.u32 %v2100_v48, %v2097_v0 }
 0x136   : > { %v1398_v35 = vpop.f32.mrf.mxu2  ;;  %v1260_v56 = vpop.f32.mrf.mxu1 }
 0x137   : > { %v9123_v62 = vadd.f32 %v1398_v35, %v1260_v56  ;;  %v1817_v56 = vrot.slane %v9121_v43, 1 }
 0x139   : > { %v785_v59 = vpop.f32.mrf.mxu0  ;;  %7835 = vmatmul.msk.bf16.gmra.mxu1 %vm667_vm1, %v2093_v44  ;;  %v1425_v11 = vpop.f32.mrf.mxu3 }
 0x13a   : > { %v786_v19 = vadd.f32 %v8826_v30, %v785_v59  ;;  %v9132_v46 = vadd.f32 %v1425_v11, %v9013_v54  ;;  %v2422_v54 = vsel %vm2409_vm6, %v2419_v21, %v2421_v7  ;;  %v2102_v59 = vsel %vm496_vm3, %v2092_v40, %v2101_v26 }
 0x13b   : > { %v1460_v11 = vrot.slane %v8793_v52, 1 }
 0x13c   : > { %846 = vst.msk [vmem:[#allocation3 + $0xa0] sm:$0xff] %vm825_vm4, %v786_v19  ;;  %7816 = vmatmul.msk.bf16.gmra.mxu0 %vm667_vm1, %v1816_v24  ;;  %v9151_v24 = vld [vmem:[%s8661_s28 + $0x40] sm:$0xff] }
 0x13d   : > { %v2107_v43 = vshll.u32 %v9151_v24, 16  ;;  %v1461_v52 = vsel %vm1444_vm5, %v1458_v38, %v1460_v11 }
 0x13e   : > { %v1400_v27 = vpop.f32.mrf.mxu2  ;;  %v1262_v57 = vpop.f32.mrf.mxu1  ;;  %7731 = vmatmul.msk.bf16.gmra.mxu3 %vm667_vm1, %v1459_v28  ;;  %v2104_v28 = vshrl.u32 %v9151_v24, 16 }
 0x13f   : > { %v9139_v31 = vadd.f32 %v1400_v27, %v1262_v57  ;;  %v2423_v27 = vrot.slane %v9151_v24, 2  ;;  %v2109_v48 = vrot.slane %v2107_v43, 2 }
 0x140   : > { %v2106_v0 = vrot.slane %v2104_v28, 1 }
 0x141   : > { %v787_v2 = vpop.f32.mrf.mxu0  ;;  %v1428_v16 = vpop.f32.mrf.mxu3 }
 0x142   : > { %v788_v55 = vadd.f32 %v8826_v30, %v787_v2  ;;  %v9145_v8 = vadd.f32 %v1428_v16, %v9026_v45  ;;  %v1818_v45 = vsel %vm1444_vm5, %v1815_v47, %v1817_v56 }
 0x143   : > { %7855 = vmatmul.msk.bf16.gmra.mxu2 %vm667_vm1, %v2422_v54 }
 0x144   : > { %847 = vst.msk [vmem:[#allocation3 + $0xa8] sm:$0xff] %vm825_vm4, %v788_v55 }
 0x146   : > { %v1403_v35 = vpop.f32.mrf.mxu2  ;;  %v1265_v44 = vpop.f32.mrf.mxu1 }
 0x147   : > { %v9153_v21 = vadd.f32 %v1403_v35, %v1265_v44  ;;  %v2110_v35 = vor.u32 %v2109_v48, %v2106_v0 }
 0x149   : > { %v790_v19 = vpop.f32.mrf.mxu0  ;;  %7836 = vmatmul.msk.bf16.gmra.mxu1 %vm667_vm1, %v2102_v59  ;;  %v1430_v9 = vpop.f32.mrf.mxu3  ;;  %v1819_v59 = vrot.slane %v9151_v24, 1 }
 0x14a   : > { %v791_v4 = vadd.f32 %v8826_v30, %v790_v19  ;;  %v9162_v40 = vadd.f32 %v1430_v9, %v9041_v6  ;;  %v2424_v6 = vsel %vm2409_vm6, %v2421_v7, %v2423_v27  ;;  %v9181_v9 = vld [vmem:[%s8661_s28 + $0x48] sm:$0xff] }
 0x14b   : > { %v2116_v24 = vshll.u32 %v9181_v9, 16 }
 0x14c   : > { %848 = vst.msk [vmem:[#allocation3 + $0xb0] sm:$0xff] %vm825_vm4, %v791_v4  ;;  %7817 = vmatmul.msk.bf16.gmra.mxu0 %vm667_vm1, %v1818_v45  ;;  %v2111_v45 = vsel %vm496_vm3, %v2101_v26, %v2110_v35  ;;  %v1462_v4 = vrot.slane %v8811_v13, 1 }
 0x14e   : > { %v1405_v57 = vpop.f32.mrf.mxu2  ;;  %v1267_v47 = vpop.f32.mrf.mxu1  ;;  %7732 = vmatmul.msk.bf16.gmra.mxu3 %vm667_vm1, %v1461_v52  ;;  %v1463_v13 = vsel %vm1444_vm5, %v1460_v11, %v1462_v4 }
 0x14f   : > { %v9169_v54 = vadd.f32 %v1405_v57, %v1267_v47  ;;  %v2113_v57 = vshrl.u32 %v9181_v9, 16  ;;  %v2425_v47 = vrot.slane %v9181_v9, 2 }
 0x151   : > { %v792_v2 = vpop.f32.mrf.mxu0  ;;  %v1433_v16 = vpop.f32.mrf.mxu3  ;;  %v2115_v48 = vrot.slane %v2113_v57, 1  ;;  %v1464_v57 = vrot.slane %v8837_v39, 1 }
 0x152   : > { %v793_v55 = vadd.f32 %v8826_v30, %v792_v2  ;;  %v9175_v38 = vadd.f32 %v1433_v16, %v9054_v58  ;;  %v1820_v58 = vsel %vm1444_vm5, %v1817_v56, %v1819_v59 }
 0x153   : > { %7856 = vmatmul.msk.bf16.gmra.mxu2 %vm667_vm1, %v2424_v6  ;;  %v2118_v6 = vrot.slane %v2116_v24, 2  ;;  %v1465_v39 = vsel %vm1444_vm5, %v1462_v4, %v1464_v57 }
 0x154   : > { %849 = vst.msk [vmem:[#allocation3 + $0xb8] sm:$0xff] %vm825_vm4, %v793_v55 }
 0x156   : > { %v1408_v44 = vpop.f32.mrf.mxu2  ;;  %v1270_v19 = vpop.f32.mrf.mxu1 }
 0x157   : > { %v9183_v7 = vadd.f32 %v1408_v44, %v1270_v19  ;;  %v2119_v19 = vor.u32 %v2118_v6, %v2115_v48 }
 0x159   : > { %v795_v28 = vpop.f32.mrf.mxu0  ;;  %7837 = vmatmul.msk.bf16.gmra.mxu1 %vm667_vm1, %v2111_v45  ;;  %v1435_v43 = vpop.f32.mrf.mxu3 }
 0x15a   : > { %v796_v52 = vadd.f32 %v8826_v30, %v795_v28  ;;  %v9192_v26 = vadd.f32 %v1435_v43, %v9069_v17  ;;  %v2426_v17 = vsel %vm2409_vm6, %v2423_v27, %v2425_v47  ;;  %v1821_v28 = vrot.slane %v9181_v9, 1 }
 0x15b   : > { %v2120_v43 = vsel %vm496_vm3, %v2110_v35, %v2119_v19 }
 0x15c   : > { %850 = vst.msk [vmem:[#allocation3 + $0xc0] sm:$0xff] %vm825_vm4, %v796_v52  ;;  %7818 = vmatmul.msk.bf16.gmra.mxu0 %vm667_vm1, %v1820_v58  ;;  %v9209_v52 = vld [vmem:[%s8661_s28 + $0x50] sm:$0xff] }
 0x15d   : > { %v2125_v9 = vshll.u32 %v9209_v52, 16  ;;  %v2427_v48 = vrot.slane %v9209_v52, 2 }
 0x15e   : > { %v1410_v0 = vpop.f32.mrf.mxu2  ;;  %v1272_v56 = vpop.f32.mrf.mxu1  ;;  %7733 = vmatmul.msk.bf16.gmra.mxu3 %vm667_vm1, %v1463_v13  ;;  %v1822_v13 = vsel %vm1444_vm5, %v1819_v59, %v1821_v28 }
 0x15f   : > { %v9199_v2 = vadd.f32 %v1410_v0, %v1272_v56  ;;  %v2122_v56 = vshrl.u32 %v9209_v52, 16 }
 0x161   : > { %v797_v16 = vpop.f32.mrf.mxu0  ;;  %v1548_v55 = vpop.f32.mrf.mxu3  ;;  %v2124_v59 = vrot.slane %v2122_v56, 1  ;;  %v9235_v56 = vld [vmem:[%s8661_s28 + $0x58] sm:$0xff] }
 0x162   : > { %v798_v44 = vadd.f32 %v8826_v30, %v797_v16  ;;  %v1638_v11 = vadd.f32 %v1548_v55, %v8830_v33  ;;  %v2127_v16 = vrot.slane %v2125_v9, 2 }
 0x163   : > { %7857 = vmatmul.msk.bf16.gmra.mxu2 %vm667_vm1, %v2426_v17 }
 0x164   : > { %851 = vst.msk [vmem:[#allocation3 + $0xc8] sm:$0xff] %vm825_vm4, %v798_v44  ;;  %v2428_v44 = vsel %vm2409_vm6, %v2425_v47, %v2427_v48  ;;  %v1466_v47 = vrot.slane %v8865_v15, 1 }
 0x166   : > { %v1413_v45 = vpop.f32.mrf.mxu2  ;;  %v1275_v58 = vpop.f32.mrf.mxu1 }
 0x167   : > { %v9211_v27 = vadd.f32 %v1413_v45, %v1275_v58 }
 0x169   : > { %v800_v24 = vpop.f32.mrf.mxu0  ;;  %7838 = vmatmul.msk.bf16.gmra.mxu1 %vm667_vm1, %v2120_v43  ;;  %v1550_v33 = vpop.f32.mrf.mxu3  ;;  %v2128_v43 = vor.u32 %v2127_v16, %v2124_v59  ;;  %v2429_v59 = vrot.slane %v9235_v56, 2 }
 0x16a   : > { %v801_v0 = vadd.f32 %v8826_v30, %v800_v24  ;;  %v1639_v35 = vadd.f32 %v1550_v33, %v8845_v49  ;;  %v1823_v24 = vrot.slane %v9209_v52, 1 }
 0x16c   : > { %852 = vst.msk [vmem:[#allocation3 + $0xd0] sm:$0xff] %vm825_vm4, %v801_v0  ;;  %7819 = vmatmul.msk.bf16.gmra.mxu0 %vm667_vm1, %v1822_v13  ;;  %v2129_v0 = vsel %vm496_vm3, %v2119_v19, %v2128_v43  ;;  %v1467_v19 = vsel %vm1444_vm5, %v1464_v57, %v1466_v47 }
 0x16e   : > { %v1415_v6 = vpop.f32.mrf.mxu2  ;;  %v1277_v17 = vpop.f32.mrf.mxu1  ;;  %7734 = vmatmul.msk.bf16.gmra.mxu3 %vm667_vm1, %v1465_v39 }
 0x16f   : > { %v9225_v55 = vadd.f32 %v1415_v6, %v1277_v17  ;;  %v2134_v17 = vshll.u32 %v9235_v56, 16 }
 0x171   : > { %v802_v49 = vpop.f32.mrf.mxu0  ;;  %v1553_v45 = vpop.f32.mrf.mxu3 }
 0x172   : > { %v803_v58 = vadd.f32 %v8826_v30, %v802_v49  ;;  %v1640_v4 = vadd.f32 %v1553_v45, %v8858_v5  ;;  %v1824_v30 = vsel %vm1444_vm5, %v1821_v28, %v1823_v24  ;;  %v2131_v5 = vshrl.u32 %v9235_v56, 16 }
 0x173   : > { %7858 = vmatmul.msk.bf16.gmra.mxu2 %vm667_vm1, %v2428_v44  ;;  %v2430_v45 = vsel %vm2409_vm6, %v2427_v48, %v2429_v59 }
 0x174   : > { %853 = vst.msk [vmem:[#allocation3 + $0xd8] sm:$0xff] %vm825_vm4, %v803_v58  ;;  %v2133_v28 = vrot.slane %v2131_v5, 1 }
 0x176   : > { %v2513_v13 = vpop.f32.mrf.mxu2  ;;  %v2277_v33 = vpop.f32.mrf.mxu1 }
 0x179   : > { %v1909_v9 = vpop.f32.mrf.mxu0  ;;  %7839 = vmatmul.msk.bf16.gmra.mxu1 %vm667_vm1, %v2129_v0  ;;  %v1555_v39 = vpop.f32.mrf.mxu3 }
 0x17a   : > { %v1999_v6 = vadd.f32 %v1909_v9, %v1638_v11  ;;  %v1641_v52 = vadd.f32 %v1555_v39, %v8875_v23  ;;  %v2136_v11 = vrot.slane %v2134_v17, 2  ;;  %v9257_v17 = vld [vmem:[%s8661_s28 + $0x60] sm:$0xff] }
 0x17c   : > { %7820 = vmatmul.msk.bf16.gmra.mxu0 %vm667_vm1, %v1824_v30  ;;  %v2367_v15 = vadd.f32 %v2277_v33, %v1999_v6  ;;  %v2137_v9 = vor.u32 %v2136_v11, %v2133_v28  ;;  %v2431_v11 = vrot.slane %v9257_v17, 2 }
 0x17e   : > { %v2515_v16 = vpop.f32.mrf.mxu2  ;;  %v9246_v44 = vadd.f32 %v2513_v13, %v2367_v15  ;;  %v2279_v49 = vpop.f32.mrf.mxu1  ;;  %7735 = vmatmul.msk.bf16.gmra.mxu3 %vm667_vm1, %v1467_v19  ;;  %v1825_v13 = vrot.slane %v9235_v56, 1  ;;  %v2138_v5 = vsel %vm496_vm3, %v2128_v43, %v2137_v9  ;;  %v2140_v43 = vshrl.u32 %v9257_v17, 16 }
 0x180   : > { %v1826_v56 = vsel %vm1444_vm5, %v1823_v24, %v1825_v13  ;;  %v2142_v24 = vrot.slane %v2140_v43, 1  ;;  %v9283_v43 = vld [vmem:[%s8661_s28 + $0x68] sm:$0xff] }
 0x181   : > { %v1911_v58 = vpop.f32.mrf.mxu0  ;;  %v1558_v23 = vpop.f32.mrf.mxu3 }
 0x182   : > { %v2000_v0 = vadd.f32 %v1911_v58, %v1639_v35  ;;  %v1642_v57 = vadd.f32 %v1558_v23, %v8884_v41  ;;  %v7993_v35 = vld [vmem:[%s12181_s5 + $0x4] sm:$0xf]  ;;  %v1468_v41 = vrot.slane %v8891_v53, 1 }
 0x183   : > { %7859 = vmatmul.msk.bf16.gmra.mxu2 %vm667_vm1, %v2430_v45  ;;  %v4805_v48 = vsel %vm4803_vm7, %v7993_v35, 0 }
 0x184   : > { %v2368_v33 = vadd.f32 %v2279_v49, %v2000_v0  ;;  %4814 = vmatpush.bf16.msra.mxu2 %v4805_v48  ;;  %v2143_v49 = vshll.u32 %v9257_v17, 16  ;;  %v1469_v45 = vsel %vm1444_vm5, %v1466_v47, %v1468_v41 }
 0x186   : > { %v2518_v30 = vpop.f32.mrf.mxu2  ;;  %v9253_v39 = vadd.f32 %v2515_v16, %v2368_v33  ;;  %v2282_v6 = vpop.f32.mrf.mxu1  ;;  %v2432_v33 = vsel %vm2409_vm6, %v2429_v59, %v2431_v11  ;;  %v1470_v59 = vrot.slane %v8917_v25, 1 }
 0x189   : > { %v1914_v19 = vpop.f32.mrf.mxu0  ;;  %7840 = vmatmul.msk.bf16.gmra.mxu1 %vm667_vm1, %v2138_v5  ;;  %v1560_v15 = vpop.f32.mrf.mxu3 }
 0x18a   : > { %v2001_v16 = vadd.f32 %v1914_v19, %v1640_v4  ;;  %v1643_v28 = vadd.f32 %v1560_v15, %v8901_v63  ;;  %v2145_v4 = vrot.slane %v2143_v49, 2 }
 0x18c   : > { %7821 = vmatmul.msk.bf16.gmra.mxu0 %vm667_vm1, %v1826_v56  ;;  %v2369_v53 = vadd.f32 %v2282_v6, %v2001_v16  ;;  %v2146_v48 = vor.u32 %v2145_v4, %v2142_v24 }
 0x18e   : > { %v2520_v58 = vpop.f32.mrf.mxu2  ;;  %v9272_v23 = vadd.f32 %v2518_v30, %v2369_v53  ;;  %v2284_v0 = vpop.f32.mrf.mxu1  ;;  %7736 = vmatmul.msk.bf16.gmra.mxu3 %vm667_vm1, %v1469_v45  ;;  %v1827_v30 = vrot.slane %v9257_v17, 1  ;;  %v2147_v16 = vsel %vm496_vm3, %v2137_v9, %v2146_v48  ;;  %v2149_v53 = vshrl.u32 %v9283_v43, 16 }
 0x18f   : > { %v2152_v17 = vshll.u32 %v9283_v43, 16  ;;  %v1471_v9 = vsel %vm1444_vm5, %v1468_v41, %v1470_v59 }
 0x191   : > { %v1916_v5 = vpop.f32.mrf.mxu0  ;;  %v1563_v63 = vpop.f32.mrf.mxu3 }
 0x192   : > { %v2002_v35 = vadd.f32 %v1916_v5, %v1641_v52  ;;  %v1644_v47 = vadd.f32 %v1563_v63, %v8910_v18  ;;  %v1828_v52 = vsel %vm1444_vm5, %v1825_v13, %v1827_v30  ;;  %v2151_v13 = vrot.slane %v2149_v53, 1 }
 0x193   : > { %7860 = vmatmul.msk.bf16.gmra.mxu2 %vm667_vm1, %v2432_v33 }
 0x194   : > { %v2370_v6 = vadd.f32 %v2284_v0, %v2002_v35  ;;  %v2433_v0 = vrot.slane %v9283_v43, 2 }
 0x196   : > { %v2523_v19 = vpop.f32.mrf.mxu2  ;;  %v9279_v56 = vadd.f32 %v2520_v58, %v2370_v6  ;;  %v2287_v15 = vpop.f32.mrf.mxu1  ;;  %v2434_v5 = vsel %vm2409_vm6, %v2431_v11, %v2433_v0  ;;  %v8525_v11 = vld [vmem:[%s8661_s28 + $0x70] sm:$0xff] }
 0x197   : > { %v1472_v53 = vrot.slane %v8525_v11, 1 }
 0x199   : > { %v1919_v49 = vpop.f32.mrf.mxu0  ;;  %7841 = vmatmul.msk.bf16.gmra.mxu1 %vm667_vm1, %v2147_v16  ;;  %v1565_v45 = vpop.f32.mrf.mxu3 }
 0x19a   : > { %v2003_v18 = vadd.f32 %v1919_v49, %v1642_v57  ;;  %v1645_v58 = vadd.f32 %v1565_v45, %v8927_v37  ;;  %v2154_v57 = vrot.slane %v2152_v17, 2 }
 0x19c   : > { %7822 = vmatmul.msk.bf16.gmra.mxu0 %vm667_vm1, %v1828_v52  ;;  %v2371_v25 = vadd.f32 %v2287_v15, %v2003_v18  ;;  %v2155_v6 = vor.u32 %v2154_v57, %v2151_v13  ;;  %v9305_v18 = vld [vmem:[%s8661_s28 + $0x70] sm:$0xff] }
 0x19e   : > { %v2525_v24 = vpop.f32.mrf.mxu2  ;;  %v9294_v4 = vadd.f32 %v2523_v19, %v2371_v25  ;;  %v2289_v33 = vpop.f32.mrf.mxu1  ;;  %7737 = vmatmul.msk.bf16.gmra.mxu3 %vm667_vm1, %v1471_v9  ;;  %v1829_v19 = vrot.slane %v9283_v43, 1  ;;  %v2156_v45 = vsel %vm496_vm3, %v2146_v48, %v2155_v6  ;;  %v2158_v25 = vshrl.u32 %v9305_v18, 16 }
 0x19f   : > { %v2161_v43 = vshll.u32 %v9305_v18, 16  ;;  %v1473_v48 = vsel %vm1444_vm5, %v1470_v59, %v1472_v53 }
 0x1a1   : > { %v1921_v37 = vpop.f32.mrf.mxu0  ;;  %v1568_v63 = vpop.f32.mrf.mxu3 }
 0x1a2   : > { %v2004_v35 = vadd.f32 %v1921_v37, %v1643_v28  ;;  %v1646_v41 = vadd.f32 %v1568_v63, %v8942_v3  ;;  %v1830_v28 = vsel %vm1444_vm5, %v1827_v30, %v1829_v19  ;;  %v2160_v30 = vrot.slane %v2158_v25, 1 }
 0x1a3   : > { %7861 = vmatmul.msk.bf16.gmra.mxu2 %vm667_vm1, %v2434_v5 }
 0x1a4   : > { %v2372_v15 = vadd.f32 %v2289_v33, %v2004_v35  ;;  %v2435_v33 = vrot.slane %v9305_v18, 2 }
 0x1a6   : > { %v2528_v16 = vpop.f32.mrf.mxu2  ;;  %v9301_v49 = vadd.f32 %v2525_v24, %v2372_v15  ;;  %v2292_v52 = vpop.f32.mrf.mxu1  ;;  %v2436_v63 = vsel %vm2409_vm6, %v2433_v0, %v2435_v33  ;;  %v8526_v0 = vld [vmem:[%s8661_s28 + $0x78] sm:$0xff] }
 0x1a7   : > { %v1474_v25 = vrot.slane %v8526_v0, 1  ;;  %v3722_v0 = vld [vmem:[%s12177_s1 + $0x8] sm:$0xff] }
 0x1a9   : > { %v1924_v17 = vpop.f32.mrf.mxu0  ;;  %7842 = vmatmul.msk.bf16.gmra.mxu1 %vm667_vm1, %v2156_v45  ;;  %v1570_v9 = vpop.f32.mrf.mxu3 }
 0x1aa   : > { %v2005_v3 = vadd.f32 %v1924_v17, %v1644_v47  ;;  %v1647_v24 = vadd.f32 %v1570_v9, %v8957_v22  ;;  %v2163_v47 = vrot.slane %v2161_v43, 2 }
 0x1ac   : > { %7823 = vmatmul.msk.bf16.gmra.mxu0 %vm667_vm1, %v1830_v28  ;;  %v2373_v13 = vadd.f32 %v2292_v52, %v2005_v3  ;;  %v2164_v45 = vor.u32 %v2163_v47, %v2160_v30  ;;  %v9327_v3 = vld [vmem:[%s8661_s28 + $0x78] sm:$0xff]  ;;  %v1475_v30 = vsel %vm1444_vm5, %v1472_v53, %v1474_v25 }
 0x1ae   : > { %v2530_v57 = vpop.f32.mrf.mxu2  ;;  %v9316_v5 = vadd.f32 %v2528_v16, %v2373_v13  ;;  %v2294_v37 = vpop.f32.mrf.mxu1  ;;  %7738 = vmatmul.msk.bf16.gmra.mxu3 %vm667_vm1, %v1473_v48  ;;  %v1831_v16 = vrot.slane %v9305_v18, 1  ;;  %v2165_v9 = vsel %vm496_vm3, %v2155_v6, %v2164_v45  ;;  %v2167_v13 = vshrl.u32 %v9327_v3, 16 }
 0x1af   : > { %v2170_v18 = vshll.u32 %v9327_v3, 16  ;;  %v2437_v6 = vrot.slane %v9327_v3, 2 }
 0x1b1   : > { %v1926_v22 = vpop.f32.mrf.mxu0  ;;  %v1573_v35 = vpop.f32.mrf.mxu3  ;;  %v2438_v53 = vsel %vm2409_vm6, %v2435_v33, %v2437_v6  ;;  %v1833_v33 = vrot.slane %v9327_v3, 1 }
 0x1b2   : > { %v2006_v15 = vadd.f32 %v1926_v22, %v1645_v58  ;;  %v1648_v59 = vadd.f32 %v1573_v35, %v8979_v34  ;;  %v1832_v58 = vsel %vm1444_vm5, %v1829_v19, %v1831_v16  ;;  %v2169_v22 = vrot.slane %v2167_v13, 1 }
 0x1b3   : > { %7862 = vmatmul.msk.bf16.gmra.mxu2 %vm667_vm1, %v2436_v63  ;;  %v2172_v35 = vrot.slane %v2170_v18, 2  ;;  %v8527_v18 = vld [vmem:[%s8661_s28 + $0x80] sm:$0xff] }
 0x1b4   : > { %v2374_v52 = vadd.f32 %v2294_v37, %v2006_v15  ;;  %v3721_v37 = vld [vmem:[%s12177_s1] sm:$0xff] }
 0x1b6   : > { %v2533_v11 = vpop.f32.mrf.mxu2  ;;  %v9323_v17 = vadd.f32 %v2530_v57, %v2374_v52  ;;  %v2297_v28 = vpop.f32.mrf.mxu1 }
 0x1b9   : > { %v1929_v43 = vpop.f32.mrf.mxu0  ;;  %7843 = vmatmul.msk.bf16.gmra.mxu1 %vm667_vm1, %v2165_v9  ;;  %v1575_v48 = vpop.f32.mrf.mxu3  ;;  %v2173_v9 = vor.u32 %v2172_v35, %v2169_v22  ;;  %v3727_v35 = vld [vmem:[%s12177_s1 + $0x30] sm:$0xff] }
 0x1ba   : > { %v2007_v34 = vadd.f32 %v1929_v43, %v1646_v41  ;;  %v9335_v57 = vadd.f32 %v1575_v48, %v8995_v20  ;;  %v8568_v41 = vmov 0  }
 0x1bb   : > { %8517 = vset.pattern.permute.xlu0 %v8568_v41  ;;  %3974 = vst.msk [vmem:[#allocation2] sm:$0xf] %vm3973_vm8, %v8568_v41  ;;  %8518 = vset.pattern.permute.xlu1 %v8568_v41  ;;  %v2174_v13 = vsel %vm496_vm3, %v2164_v45, %v2173_v9  ;;  %v3723_v45 = vld [vmem:[%s12177_s1 + $0x10] sm:$0xff] }
 0x1bc   : > { %7824 = vmatmul.msk.bf16.gmra.mxu0 %vm667_vm1, %v1832_v58  ;;  %v2375_v19 = vadd.f32 %v2297_v28, %v2007_v34  ;;  %3975 = vst.msk [vmem:[#allocation2 + $0x4] sm:$0xf] %vm3973_vm8, %v8568_v41  ;;  %3759 = vperm.xlu0 %8517, %v3721_v37   ;;  %v1476_v37 = vrot.slane %v8527_v18, 1 }
 0x1bd   : > { %3988 = vst.msk [vmem:[#allocation2 + $0x9c] sm:$0xf] %vm3973_vm8, %v8568_v41  ;;  %8519 = vset.pattern.permute.xlu2 %v8568_v41  ;;  %3769 = vperm.xlu1 %8518, %v3723_v45  }
 0x1be   : > { %v2535_v47 = vpop.f32.mrf.mxu2  ;;  %v9345_v20 = vadd.f32 %v2533_v11, %v2375_v19  ;;  %v2299_v63 = vpop.f32.mrf.mxu1  ;;  %7739 = vmatmul.msk.bf16.gmra.mxu3 %vm667_vm1, %v1475_v30  ;;  %3989 = vst.msk [vmem:[#allocation2 + $0xa0] sm:$0xf] %vm3973_vm8, %v8568_v41 }
 0x1c1   : > { %v1931_v15 = vpop.f32.mrf.mxu0  ;;  %v1578_v52 = vpop.f32.mrf.mxu3 }
 0x1c2   : > { %v2008_v28 = vadd.f32 %v1931_v15, %v1647_v24  ;;  %v1650_v11 = vadd.f32 %v1578_v52, %v9008_v42  ;;  %v9361_v24 = vld [vmem:[%s8661_s28 + $0x80] sm:$0xff]  ;;  %v1834_v42 = vsel %vm1444_vm5, %v1831_v16, %v1833_v33  ;;  %v1477_v16 = vsel %vm1444_vm5, %v1474_v25, %v1476_v37 }
 0x1c3   : > { %7863 = vmatmul.msk.bf16.gmra.mxu2 %vm667_vm1, %v2438_v53  ;;  %v2176_v3 = vshrl.u32 %v9361_v24, 16  ;;  %v2439_v22 = vrot.slane %v9361_v24, 2 }
 0x1c4   : > { %v2376_v43 = vadd.f32 %v2299_v63, %v2008_v28  ;;  %3764 = vperm.xlu0 %8517, %v3722_v0   ;;  %v2179_v63 = vshll.u32 %v9361_v24, 16 }
 0x1c5   : > { %v2178_v52 = vrot.slane %v2176_v3, 1  ;;  %v2440_v0 = vsel %vm2409_vm6, %v2437_v6, %v2439_v22 }
 0x1c6   : > { %v2538_v58 = vpop.f32.mrf.mxu2  ;;  %v9357_v48 = vadd.f32 %v2535_v47, %v2376_v43  ;;  %v2302_v34 = vpop.f32.mrf.mxu1  ;;  %v2181_v28 = vrot.slane %v2179_v63, 2  ;;  %v8528_v63 = vld [vmem:[%s8661_s28 + $0x88] sm:$0xff] }
 0x1c7   : > { %v1478_v45 = vrot.slane %v8528_v63, 1 }
 0x1c8   : > { %v2182_v18 = vor.u32 %v2181_v28, %v2178_v52  ;;  %v3728_v28 = vld [vmem:[%s12177_s1 + $0x38] sm:$0xff] }
 0x1c9   : > { %v1934_v30 = vpop.f32.mrf.mxu0  ;;  %7844 = vmatmul.msk.bf16.gmra.mxu1 %vm667_vm1, %v2174_v13  ;;  %v1580_v19 = vpop.f32.mrf.mxu3 }
 0x1ca   : > { %v2009_v41 = vadd.f32 %v1934_v30, %v1648_v59  ;;  %v1651_v47 = vadd.f32 %v1580_v19, %v9023_v61  ;;  %v3730_v30 = vld [vmem:[%s12177_s1 + $0x48] sm:$0xff]  ;;  %v2183_v3 = vsel %vm496_vm3, %v2173_v9, %v2182_v18 }
 0x1cc   : > { %7825 = vmatmul.msk.bf16.gmra.mxu0 %vm667_vm1, %v1834_v42  ;;  %v2377_v59 = vadd.f32 %v2302_v34, %v2009_v41  ;;  %3789 = vperm.xlu0 %8517, %v3727_v35   ;;  %v1835_v42 = vrot.slane %v9361_v24, 1 }
 0x1ce   : > { %v2540_v53 = vpop.f32.mrf.mxu2  ;;  %v9378_v15 = vadd.f32 %v2538_v58, %v2377_v59  ;;  %v2304_v61 = vpop.f32.mrf.mxu1  ;;  %7740 = vmatmul.msk.bf16.gmra.mxu3 %vm667_vm1, %v1477_v16  ;;  %v3724_v58 = vld [vmem:[%s12177_s1 + $0x18] sm:$0xff]  ;;  %v1836_v16 = vsel %vm1444_vm5, %v1833_v33, %v1835_v42  ;;  %v1479_v33 = vsel %vm1444_vm5, %v1476_v37, %v1478_v45 }
 0x1cf   : > { %3774 = vperm.xlu1 %8518, %v3724_v58  }
 0x1d1   : > { %v1936_v43 = vpop.f32.mrf.mxu0  ;;  %v1583_v13 = vpop.f32.mrf.mxu3 }
 0x1d2   : > { %v2010_v25 = vadd.f32 %v1936_v43, %v9335_v57  ;;  %v1652_v34 = vadd.f32 %v1583_v13, %v9036_v12  ;;  %v9396_v12 = vld [vmem:[%s8661_s28 + $0x88] sm:$0xff] }
 0x1d3   : > { %7864 = vmatmul.msk.bf16.gmra.mxu2 %vm667_vm1, %v2440_v0  ;;  %v2185_v24 = vshrl.u32 %v9396_v12, 16  ;;  %v2188_v52 = vshll.u32 %v9396_v12, 16  ;;  %v2441_v9 = vrot.slane %v9396_v12, 2  ;;  %v3733_v0 = vld [vmem:[%s12177_s1 + $0x60] sm:$0xff] }
 0x1d4   : > { %v2378_v6 = vadd.f32 %v2304_v61, %v2010_v25  ;;  %3804 = vperm.xlu0 %8517, %v3730_v30  }
 0x1d5   : > { %v2187_v25 = vrot.slane %v2185_v24, 1  ;;  %v2190_v58 = vrot.slane %v2188_v52, 2  ;;  %v2442_v30 = vsel %vm2409_vm6, %v2439_v22, %v2441_v9  ;;  %v1837_v22 = vrot.slane %v9396_v12, 1 }
 0x1d6   : > { %v2543_v19 = vpop.f32.mrf.mxu2  ;;  %v9392_v57 = vadd.f32 %v2540_v53, %v2378_v6  ;;  %v2307_v41 = vpop.f32.mrf.mxu1  ;;  %v1480_v24 = vrot.slane %v8800_v60, 1  ;;  %v3734_v60 = vld [vmem:[%s12177_s1 + $0x68] sm:$0xff] }
 0x1d7   : > { %3794 = vperm.xlu1 %8518, %v3728_v28   ;;  %v2191_v63 = vor.u32 %v2190_v58, %v2187_v25  ;;  %v1838_v28 = vsel %vm1444_vm5, %v1835_v42, %v1837_v22  ;;  %v3739_v42 = vld [vmem:[%s12177_s1 + $0x90] sm:$0xff] }
 0x1d9   : > { %v1939_v35 = vpop.f32.mrf.mxu0  ;;  %7845 = vmatmul.msk.bf16.gmra.mxu1 %vm667_vm1, %v2183_v3  ;;  %v1585_v59 = vpop.f32.mrf.mxu3 }
 0x1da   : > { %v2011_v61 = vadd.f32 %v1939_v35, %v1650_v11  ;;  %v9404_v53 = vadd.f32 %v1585_v59, %v9051_v51  ;;  %v3736_v35 = vld [vmem:[%s12177_s1 + $0x78] sm:$0xff] }
 0x1dc   : > { %7826 = vmatmul.msk.bf16.gmra.mxu0 %vm667_vm1, %v1836_v16  ;;  %v2379_v11 = vadd.f32 %v2307_v41, %v2011_v61  ;;  %3819 = vperm.xlu0 %8517, %v3733_v0   ;;  %v2192_v61 = vsel %vm496_vm3, %v2182_v18, %v2191_v63 }
 0x1de   : > { %v9415_v43 = vpop.f32.mrf.mxu2  ;;  %v9417_v51 = vadd.f32 %v2543_v19, %v2379_v11  ;;  %v2309_v13 = vpop.f32.mrf.mxu1  ;;  %7741 = vmatmul.msk.bf16.gmra.mxu3 %vm667_vm1, %v1479_v33  ;;  %v3731_v19 = vld [vmem:[%s12177_s1 + $0x50] sm:$0xff] }
 0x1df   : > { %3809 = vperm.xlu1 %8518, %v3731_v19  }
 0x1e1   : > { %v1941_v6 = vpop.f32.mrf.mxu0  ;;  %v1588_v3 = vpop.f32.mrf.mxu3 }
 0x1e2   : > { %v2012_v37 = vadd.f32 %v1941_v6, %v1651_v47  ;;  %v9423_v41 = vadd.f32 %v1588_v3, %v9064_v10  ;;  %v9436_v10 = vld [vmem:[%s8661_s28 + $0x90] sm:$0xff] }
 0x1e3   : > { %7865 = vmatmul.msk.bf16.gmra.mxu2 %vm667_vm1, %v2442_v30  ;;  %v2194_v12 = vshrl.u32 %v9436_v10, 16  ;;  %v2197_v11 = vshll.u32 %v9436_v10, 16  ;;  %v12188_v18 = vrot.slane %v9436_v10, 2  ;;  %v9459_v30 = vld [vmem:[%s8661_s28 + $0x14] sm:$0xf] }
 0x1e4   : > { %v9431_v16 = vadd.f32 %v2309_v13, %v2012_v37  ;;  %3834 = vperm.xlu0 %8517, %v3736_v35   ;;  %v2035_v35 = vld [vmem:[%s8661_s28 + $0x98] sm:$0x3] }
 0x1e5   : > { %v2196_v37 = vrot.slane %v2194_v12, 1  ;;  %v2199_v19 = vrot.slane %v2197_v11, 2  ;;  %v3737_v12 = vld [vmem:[%s12177_s1 + $0x80] sm:$0xff] }
 0x1e6   : > { %v2548_v47 = vpop.f32.mrf.mxu2  ;;  %v2312_v59 = vpop.f32.mrf.mxu1 }
 0x1e7   : > { %3824 = vperm.xlu1 %8518, %v3734_v60   ;;  %v9488_v60 = vld [vmem:[%s8661_s28 + $0x18] sm:$0xff] }
 0x1e9   : > { %v1944_v52 = vpop.f32.mrf.mxu0  ;;  %7846 = vmatmul.msk.bf16.gmra.mxu1 %vm667_vm1, %v2192_v61  ;;  %v1590_v0 = vpop.f32.mrf.mxu3  ;;  %v12187_v61 = vunpack.c.l.b16 %v9459_v30 }
 0x1ea   : > { %v2013_v33 = vadd.f32 %v1944_v52, %v1652_v34  ;;  %v9444_v13 = vadd.f32 %v1590_v0, %v9079_v36  ;;  %v1481_v34 = vsel %vm1444_vm5, %v1478_v45, %v1480_v24  ;;  %v2639_v36 = vld [vmem:[%s8661_s28 + $0x10] sm:$0xc]  ;;  %v2444_v45 = vsel %vm2409_vm6, %v2441_v9, %v12188_v18  ;;  %v3725_v9 = vld [vmem:[%s12177_s1 + $0x20] sm:$0xff] }
 0x1eb   : > { %v2039_v0 = vunpack.c.l.b16 %v2035_v35  ;;  %3779 = vperm.xlu2 %8519, %v3725_v9   ;;  %v1710_v9 = vld [vmem:[%s8661_s28 + $0x98] sm:$0x1] }
 0x1ec   : > { %7827 = vmatmul.msk.bf16.gmra.mxu0 %vm667_vm1, %v1838_v28  ;;  %v2381_v25 = vadd.f32 %v2312_v59, %v2013_v33  ;;  %3849 = vperm.xlu0 %8517, %v3739_v42   ;;  %v2715_v59 = vunpack.c.l.b16 %v2639_v36  ;;  %v1839_v42 = vrot.slane %v9436_v10, 1 }
 0x1ee   : > { %v9455_v58 = vpop.f32.mrf.mxu2  ;;  %v9461_v6 = vadd.f32 %v2548_v47, %v2381_v25  ;;  %v2314_v3 = vpop.f32.mrf.mxu1  ;;  %7742 = vmatmul.msk.bf16.gmra.mxu3 %vm667_vm1, %v1481_v34  ;;  %v9470_v47 = vor.u32 %v2199_v19, %v2196_v37  ;;  %v2040_v37 = vpack.c.b16 %v2039_v0, %v2039_v0  ;;  %v2772_v19 = vrot.slane %v9488_v60, 2  ;;  %v3726_v0 = vld [vmem:[%s12177_s1 + $0x28] sm:$0xff] }
 0x1ef   : > { %12245 = vst [vmem:[#allocation4_spill] sm:$0xff] %v9455_v58  ;;  %3839 = vperm.xlu1 %8518, %v3737_v12   ;;  %v1840_v35 = vsel %vm1444_vm5, %v1837_v22, %v1839_v42  ;;  %v3745_v22 = vld [vmem:[%s12177_s1 + $0xc0] sm:$0xff]  ;;  %v12246_v58 = vrot.slane %v9436_v10, 2  ;;  %v3743_v10 = vld [vmem:[%s12177_s1 + $0xb0] sm:$0xff] }
 0x1f0   : > { %v2201_v36 = vsel %vm496_vm3, %v2191_v63, %v9470_v47  ;;  %v2445_v63 = vrot.slane %v2040_v37, 2 }
 0x1f1   : > { %v1946_v24 = vpop.f32.mrf.mxu0  ;;  %v1593_v52 = vpop.f32.mrf.mxu3 }
 0x1f2   : > { %v2014_v28 = vadd.f32 %v1946_v24, %v9404_v53  ;;  %v9474_v33 = vadd.f32 %v1593_v52, %v9093_v29  ;;  %v3742_v53 = vld [vmem:[%s12177_s1 + $0xa8] sm:$0xff]  ;;  %v9492_v29 = vpack.c.b16 %v12187_v61, %v2715_v59  ;;  %v2203_v52 = vshrl.u32 %v2040_v37, 16 }
 0x1f3   : > { %7866 = vmatmul.msk.bf16.gmra.mxu2 %vm667_vm1, %v2444_v45  ;;  %3784 = vperm.xlu2 %8519, %v3726_v0  }
 0x1f4   : > { %v9485_v11 = vadd.f32 %v2314_v3, %v2014_v28  ;;  %3864 = vperm.xlu0 %8517, %v3742_v53   ;;  %v2771_v3 = vrot.slane %v9492_v29, 2  ;;  %v2206_v28 = vshll.u32 %v2040_v37, 16  ;;  %v3740_v53 = vld [vmem:[%s12177_s1 + $0x98] sm:$0xff]  ;;  %v1786_v37 = vunpack.c.l.b16 %v1710_v9 }
 0x1f5   : > { %v2205_v61 = vrot.slane %v2203_v52, 1  ;;  %v3729_v52 = vld [vmem:[%s12177_s1 + $0x40] sm:$0xff] }
 0x1f6   : > { %v2553_v34 = vpop.f32.mrf.mxu2  ;;  %v2317_v25 = vpop.f32.mrf.mxu1  ;;  %v2208_v18 = vrot.slane %v2206_v28, 2 }
 0x1f7   : > { %3854 = vperm.xlu1 %8518, %v3740_v53   ;;  %v3369_v53 = vld [vmem:[%s8661_s28 + $0x10] sm:$0x8] }
 0x1f8   : > { %v2209_v9 = vor.u32 %v2208_v18, %v2205_v61  ;;  %v9542_v18 = vld [vmem:[%s8661_s28 + $0x20] sm:$0xff] }
 0x1f9   : > { %v1949_v45 = vpop.f32.mrf.mxu0  ;;  %7847 = vmatmul.msk.bf16.gmra.mxu1 %vm667_vm1, %v2201_v36  ;;  %v1595_v59 = vpop.f32.mrf.mxu3 }
 0x1fa   : > { %v2015_v24 = vadd.f32 %v1949_v45, %v9423_v41  ;;  %v9504_v12 = vadd.f32 %v1595_v59, %v9109_v32  ;;  %v2773_v41 = vsel %vm2409_vm6, %v2771_v3, %v2772_v19 }
 0x1fb   : > { %3799 = vperm.xlu2 %8519, %v3729_v52   ;;  %v3016_v52 = vshrl.u32 %v9488_v60, 16 }
 0x1fc   : > { %7828 = vmatmul.msk.bf16.gmra.mxu0 %vm667_vm1, %v1840_v35  ;;  %v2383_v36 = vadd.f32 %v2317_v25, %v2015_v24  ;;  %3879 = vperm.xlu0 %8517, %v3745_v22   ;;  %v2446_v35 = vsel %vm2409_vm6, %v12246_v58, %v2445_v63  ;;  %v1805_v25 = vpack.c.b16 %v1786_v37, %v1786_v37  ;;  %v3748_v58 = vld [vmem:[%s12177_s1 + $0xd8] sm:$0xff]  ;;  %v2774_v22 = vrot.slane %v9542_v18, 2 }
 0x1fd   : > { %v2210_v63 = vsel %vm496_vm3, %v9470_v47, %v2209_v9  ;;  %v3746_v47 = vld [vmem:[%s12177_s1 + $0xc8] sm:$0xff]  ;;  %v3011_v9 = vshll.u32 %v9492_v29, 16 }
 0x1fe   : > { %v9517_v32 = vpop.f32.mrf.mxu2  ;;  %v9519_v45 = vadd.f32 %v2553_v34, %v2383_v36  ;;  %v2319_v59 = vpop.f32.mrf.mxu1  ;;  %7937 = vmatmul.msk.bf16.vlgmr.msra.gmra.mxu3 %vm667_vm1, %v2773_v41  ;;  %v1841_v61 = vrot.slane %v1805_v25, 1  ;;  %v3732_v25 = vld [vmem:[%s12177_s1 + $0x58] sm:$0xff] }
 0x1ff   : > { %3869 = vperm.xlu1 %8518, %v3743_v10   ;;  %v3019_v10 = vshll.u32 %v9488_v60, 16 }
 0x200   : > { %v1842_v36 = vsel %vm1444_vm5, %v1839_v42, %v1841_v61 }
 0x201   : > { %v1951_v3 = vpop.f32.mrf.mxu0  ;;  %v1598_v24 = vpop.f32.mrf.mxu3 }
 0x202   : > { %v2016_v0 = vadd.f32 %v1951_v3, %v9444_v13  ;;  %v9528_v34 = vadd.f32 %v1598_v24, %v9123_v62  ;;  %v3751_v24 = vld [vmem:[%s12177_s1 + $0xf0] sm:$0xff] }
 0x203   : > { %7867 = vmatmul.msk.bf16.gmra.mxu2 %vm667_vm1, %v2446_v35  ;;  %v3373_v35 = vunpack.c.l.b16 %v3369_v53  ;;  %3814 = vperm.xlu2 %8519, %v3732_v25  }
 0x204   : > { %v9539_v13 = vadd.f32 %v2319_v59, %v2016_v0  ;;  %3894 = vperm.xlu0 %8517, %v3748_v58   ;;  %v3008_v0 = vshrl.u32 %v9492_v29, 16  ;;  %v3021_v29 = vrot.slane %v3019_v10, 3 }
 0x206   : > { %v2558_v62 = vpop.f32.mrf.mxu2  ;;  %v2322_v28 = vpop.f32.mrf.mxu1  ;;  %v3010_v53 = vrot.slane %v3008_v0, 2 }
 0x207   : > { %3884 = vperm.xlu1 %8518, %v3746_v47   ;;  %v3377_v47 = vrot.slane %v9488_v60, 3 }
 0x209   : > { %v1954_v41 = vpop.f32.mrf.mxu0  ;;  %7848 = vmatmul.msk.bf16.gmra.mxu1 %vm667_vm1, %v2210_v63  ;;  %v1600_v37 = vpop.f32.mrf.mxu3  ;;  %v12247_v63 = vunpack.c.l.b16 %v9459_v30  ;;  %v3735_v30 = vld [vmem:[%s12177_s1 + $0x70] sm:$0xff] }
 0x20a   : > { %v2017_v59 = vadd.f32 %v1954_v41, %v9474_v33  ;;  %v9552_v3 = vadd.f32 %v1600_v37, %v9139_v31  ;;  %v2775_v33 = vsel %vm2409_vm6, %v2772_v19, %v2774_v22  ;;  %v3013_v41 = vrot.slane %v3011_v9, 3 }
 0x20b   : > { %v3374_v19 = vpack.c.b16 %v12247_v63, %v3373_v35  ;;  %v3749_v35 = vld [vmem:[%s12177_s1 + $0xe0] sm:$0xff]  ;;  %3829 = vperm.xlu2 %8519, %v3735_v30  }
 0x20c   : > { %7829 = vmatmul.msk.bf16.gmra.mxu0 %vm667_vm1, %v1842_v36  ;;  %v2385_v42 = vadd.f32 %v2322_v28, %v2017_v59  ;;  %3909 = vperm.xlu0 %8517, %v3751_v24   ;;  %v3018_v36 = vrot.slane %v3016_v52, 2  ;;  %v3754_v24 = vld [vmem:[%s12177_s1 + $0x108] sm:$0xff]  ;;  %v3014_v60 = vor.u32 %v3013_v41, %v3010_v53  ;;  %v3752_v41 = vld [vmem:[%s12177_s1 + $0xf8] sm:$0xff] }
 0x20d   : > { %v3376_v25 = vrot.slane %v3374_v19, 3  ;;  %v3738_v53 = vld [vmem:[%s12177_s1 + $0x88] sm:$0xff] }
 0x20e   : > { %v9565_v31 = vpop.f32.mrf.mxu2  ;;  %v9571_v58 = vadd.f32 %v2558_v62, %v2385_v42  ;;  %v2324_v61 = vpop.f32.mrf.mxu1  ;;  %7938 = vmatmul.msk.bf16.gmra.mxu3 %vm667_vm1, %v2775_v33 }
 0x20f   : > { %3899 = vperm.xlu1 %8518, %v3749_v35   ;;  %v3378_v9 = vsel %vm3375_vm9, %v3376_v25, %v3377_v47 }
 0x211   : > { %v1956_v28 = vpop.f32.mrf.mxu0  ;;  %v1603_v37 = vpop.f32.mrf.mxu3 }
 0x212   : > { %v2018_v59 = vadd.f32 %v1956_v28, %v9504_v12  ;;  %v1660_v62 = vadd.f32 %v1603_v37, %v9153_v21  ;;  %v9591_v12 = vld [vmem:[%s8661_s28 + $0x28] sm:$0xff]  ;;  %v3022_v21 = vor.u32 %v3021_v29, %v3018_v36 }
 0x213   : > { %v2776_v52 = vrot.slane %v9591_v12, 2  ;;  %3844 = vperm.xlu2 %8519, %v3738_v53  }
 0x214   : > { %v9588_v33 = vadd.f32 %v2324_v61, %v2018_v59  ;;  %3924 = vperm.xlu0 %8517, %v3754_v24   ;;  %v3023_v61 = vsel %vm3006_vm10, %v3014_v60, %v3022_v21 }
 0x215   : > { %v2777_v36 = vsel %vm2409_vm6, %v2774_v22, %v2776_v52 }
 0x216   : > { %v2563_v42 = vpop.f32.mrf.mxu2  ;;  %v2327_v0 = vpop.f32.mrf.mxu1 }
 0x217   : > { %3914 = vperm.xlu1 %8518, %v3752_v41  }
 0x219   : > { %v1959_v10 = vpop.f32.mrf.mxu0  ;;  %7975 = vmatmul.msk.bf16.vlgmr.msra.gmra.mxu1 %vm667_vm1, %v3378_v9  ;;  %v1605_v63 = vpop.f32.mrf.mxu3 }
 0x21a   : > { %v2019_v19 = vadd.f32 %v1959_v10, %v9528_v34  ;;  %v1661_v28 = vadd.f32 %v1605_v63, %v9169_v54  ;;  %v3025_v34 = vshrl.u32 %v9542_v18, 16  ;;  %v3028_v54 = vshll.u32 %v9542_v18, 16  ;;  %v3741_v10 = vld [vmem:[%s12177_s1 + $0xa0] sm:$0xff]  ;;  %v9626_v63 = vld [vmem:[%s8661_s28 + $0x30] sm:$0xff] }
 0x21b   : > { %3859 = vperm.xlu2 %8519, %v3741_v10  }
 0x21c   : > { %7956 = vmatmul.msk.bf16.vlgmr.msra.gmra.mxu0 %vm667_vm1, %v3023_v61  ;;  %v2387_v29 = vadd.f32 %v2327_v0, %v2019_v19  ;;  %v3027_v35 = vrot.slane %v3025_v34, 2  ;;  %v3030_v22 = vrot.slane %v3028_v54, 3  ;;  %v3379_v0 = vrot.slane %v9542_v18, 3 }
 0x21e   : > { %v9607_v37 = vpop.f32.mrf.mxu2  ;;  %v9611_v59 = vadd.f32 %v2563_v42, %v2387_v29  ;;  %v2329_v25 = vpop.f32.mrf.mxu1  ;;  %7939 = vmatmul.msk.bf16.gmra.mxu3 %vm667_vm1, %v2777_v36  ;;  %v3755_v42 = vld [vmem:[%s12177_s1 + $0x110] sm:$0xff]  ;;  %v3031_v19 = vor.u32 %v3030_v22, %v3027_v35  ;;  %v3380_v18 = vsel %vm3375_vm9, %v3377_v47, %v3379_v0  ;;  %v3034_v22 = vshrl.u32 %v9591_v12, 16 }
 0x21f   : > { %3929 = vperm.xlu1 %8518, %v3755_v42  }
 0x220   : > { %v3032_v36 = vsel %vm3006_vm10, %v3022_v21, %v3031_v19  ;;  %v3037_v21 = vshll.u32 %v9591_v12, 16 }
 0x221   : > { %v1961_v30 = vpop.f32.mrf.mxu0  ;;  %v1608_v24 = vpop.f32.mrf.mxu3 }
 0x222   : > { %v2020_v60 = vadd.f32 %v1961_v30, %v9552_v3  ;;  %v1662_v9 = vadd.f32 %v1608_v24, %v9183_v7  ;;  %v2778_v7 = vrot.slane %v9626_v63, 2  ;;  %v3039_v10 = vrot.slane %v3037_v21, 3 }
 0x224   : > { %v9623_v61 = vadd.f32 %v2329_v25, %v2020_v60  ;;  %v3744_v25 = vld [vmem:[%s12177_s1 + $0xb8] sm:$0xff]  ;;  %v2779_v30 = vsel %vm2409_vm6, %v2776_v52, %v2778_v7  ;;  %v3036_v60 = vrot.slane %v3034_v22, 2 }
 0x225   : > { %3874 = vperm.xlu2 %8519, %v3744_v25  }
 0x226   : > { %v2568_v53 = vpop.f32.mrf.mxu2  ;;  %v2332_v3 = vpop.f32.mrf.mxu1 }
 0x229   : > { %v1964_v41 = vpop.f32.mrf.mxu0  ;;  %7976 = vmatmul.msk.bf16.gmra.mxu1 %vm667_vm1, %v3380_v18  ;;  %v1610_v29 = vpop.f32.mrf.mxu3 }
 0x22a   : > { %v2021_v34 = vadd.f32 %v1964_v41, %v1660_v62  ;;  %v1663_v54 = vadd.f32 %v1610_v29, %v9199_v2  ;;  %v3747_v41 = vld [vmem:[%s12177_s1 + $0xd0] sm:$0xff]  ;;  %v3040_v29 = vor.u32 %v3039_v10, %v3036_v60  ;;  %v3043_v10 = vshrl.u32 %v9626_v63, 16 }
 0x22c   : > { %7957 = vmatmul.msk.bf16.gmra.mxu0 %vm667_vm1, %v3032_v36  ;;  %v2389_v47 = vadd.f32 %v2332_v3, %v2021_v34  ;;  %v3381_v3 = vrot.slane %v9591_v12, 3 }
 0x22d   : > { %3889 = vperm.xlu2 %8519, %v3747_v41  }
 0x22e   : > { %v9638_v35 = vpop.f32.mrf.mxu2  ;;  %v9642_v62 = vadd.f32 %v2568_v53, %v2389_v47  ;;  %v2334_v2 = vpop.f32.mrf.mxu1  ;;  %7940 = vmatmul.msk.bf16.gmra.mxu3 %vm667_vm1, %v2779_v30  ;;  %v9653_v53 = vld [vmem:[%s8661_s28 + $0x38] sm:$0xff]  ;;  %v3382_v30 = vsel %vm3375_vm9, %v3379_v0, %v3381_v3 }
 0x231   : > { %v1966_v24 = vpop.f32.mrf.mxu0  ;;  %v1613_v52 = vpop.f32.mrf.mxu3 }
 0x232   : > { %v2022_v42 = vadd.f32 %v1966_v24, %v1661_v28  ;;  %v1664_v18 = vadd.f32 %v1613_v52, %v9211_v27  ;;  %v2780_v28 = vrot.slane %v9653_v53, 2  ;;  %v3041_v27 = vsel %vm3006_vm10, %v3031_v19, %v3040_v29 }
 0x233   : > { %v3046_v19 = vshll.u32 %v9626_v63, 16 }
 0x234   : > { %v9650_v36 = vadd.f32 %v2334_v2, %v2022_v42  ;;  %v3750_v2 = vld [vmem:[%s12177_s1 + $0xe8] sm:$0xff]  ;;  %v2781_v24 = vsel %vm2409_vm6, %v2778_v7, %v2780_v28  ;;  %v3045_v42 = vrot.slane %v3043_v10, 2 }
 0x235   : > { %3904 = vperm.xlu2 %8519, %v3750_v2   ;;  %v3048_v41 = vrot.slane %v3046_v19, 3 }
 0x236   : > { %v2573_v34 = vpop.f32.mrf.mxu2  ;;  %v2337_v25 = vpop.f32.mrf.mxu1 }
 0x239   : > { %v1969_v47 = vpop.f32.mrf.mxu0  ;;  %7977 = vmatmul.msk.bf16.gmra.mxu1 %vm667_vm1, %v3382_v30  ;;  %v1615_v12 = vpop.f32.mrf.mxu3 }
 0x23a   : > { %v2023_v22 = vadd.f32 %v1969_v47, %v1662_v9  ;;  %v1665_v21 = vadd.f32 %v1615_v12, %v9225_v55 }
 0x23c   : > { %7958 = vmatmul.msk.bf16.gmra.mxu0 %vm667_vm1, %v3041_v27  ;;  %v2391_v0 = vadd.f32 %v2337_v25, %v2023_v22  ;;  %v3383_v25 = vrot.slane %v9626_v63, 3  ;;  %v3753_v27 = vld [vmem:[%s12177_s1 + $0x100] sm:$0xff]  ;;  %v3049_v22 = vor.u32 %v3048_v41, %v3045_v42 }
 0x23d   : > { %3919 = vperm.xlu2 %8519, %v3753_v27  }
 0x23e   : > { %v9665_v60 = vpop.f32.mrf.mxu2  ;;  %v9669_v9 = vadd.f32 %v2573_v34, %v2391_v0  ;;  %v2339_v55 = vpop.f32.mrf.mxu1  ;;  %7941 = vmatmul.msk.bf16.gmra.mxu3 %vm667_vm1, %v2781_v24  ;;  %v9680_v34 = vld [vmem:[%s8661_s28 + $0x40] sm:$0xff]  ;;  %v3384_v0 = vsel %vm3375_vm9, %v3381_v3, %v3383_v25 }
 0x23f   : > { %12248 = vst [vmem:[#allocation5_spill] sm:$0xff] %v9665_v60 }
 0x240   : > { %12249 = vst [vmem:[#allocation6_spill] sm:$0xff] %v9669_v9 }
 0x241   : > { %v1971_v52 = vpop.f32.mrf.mxu0  ;;  %v1618_v7 = vpop.f32.mrf.mxu3 }
 0x242   : > { %v2024_v30 = vadd.f32 %v1971_v52, %v1663_v54  ;;  %v1666_v47 = vadd.f32 %v1618_v7, %v9085_v14  ;;  %v2782_v54 = vrot.slane %v9680_v34, 2  ;;  %v3050_v14 = vsel %vm3006_vm10, %v3040_v29, %v3049_v22  ;;  %v3756_v52 = vld [vmem:[%s12177_s1 + $0x118] sm:$0xff] }
 0x243   : > { %v3052_v7 = vshrl.u32 %v9653_v53, 16  ;;  %v3055_v29 = vshll.u32 %v9653_v53, 16 }
 0x244   : > { %v9677_v12 = vadd.f32 %v2339_v55, %v2024_v30  ;;  %v2783_v42 = vsel %vm2409_vm6, %v2780_v28, %v2782_v54 }
 0x245   : > { %3934 = vperm.xlu2 %8519, %v3756_v52   ;;  %v3054_v27 = vrot.slane %v3052_v7, 2 }
 0x246   : > { %12250 = vst [vmem:[#allocation7_spill] sm:$0xff] %v9677_v12  ;;  %v2578_v2 = vpop.f32.mrf.mxu2  ;;  %v2342_v24 = vpop.f32.mrf.mxu1 }
 0x249   : > { %v1974_v10 = vpop.f32.mrf.mxu0  ;;  %7978 = vmatmul.msk.bf16.gmra.mxu1 %vm667_vm1, %v3384_v0  ;;  %v1620_v63 = vpop.f32.mrf.mxu3  ;;  %v3057_v0 = vrot.slane %v3055_v29, 3 }
 0x24a   : > { %v2025_v19 = vadd.f32 %v1974_v10, %v1664_v18  ;;  %v1667_v55 = vadd.f32 %v1620_v63, %v9102_v1 }
 0x24b   : > { %v3058_v52 = vor.u32 %v3057_v0, %v3054_v27  ;;  %v3064_v27 = vshll.u32 %v9680_v34, 16 }
 0x24c   : > { %7959 = vmatmul.msk.bf16.gmra.mxu0 %vm667_vm1, %v3050_v14  ;;  %v2393_v3 = vadd.f32 %v2342_v24, %v2025_v19  ;;  %v3385_v24 = vrot.slane %v9653_v53, 3  ;;  %v9704_v19 = vld [vmem:[%s8661_s28 + $0x48] sm:$0xff] }
 0x24e   : > { %v9692_v41 = vpop.f32.mrf.mxu2  ;;  %v9696_v18 = vadd.f32 %v2578_v2, %v2393_v3  ;;  %v2344_v1 = vpop.f32.mrf.mxu1  ;;  %7942 = vmatmul.msk.bf16.gmra.mxu3 %vm667_vm1, %v2783_v42  ;;  %v3386_v3 = vsel %vm3375_vm9, %v3383_v25, %v3385_v24  ;;  %v2784_v42 = vrot.slane %v9704_v19, 2  ;;  %v3061_v25 = vshrl.u32 %v9680_v34, 16 }
 0x24f   : > { %12251 = vst [vmem:[#allocation8_spill] sm:$0xff] %v9692_v41 }
 0x250   : > { %12252 = vst [vmem:[#allocation9_spill] sm:$0xff] %v9696_v18  ;;  %v2785_v29 = vsel %vm2409_vm6, %v2782_v54, %v2784_v42 }
 0x251   : > { %v1976_v30 = vpop.f32.mrf.mxu0  ;;  %v1623_v28 = vpop.f32.mrf.mxu3 }
 0x252   : > { %v2026_v10 = vadd.f32 %v1976_v30, %v1665_v21  ;;  %v1668_v14 = vadd.f32 %v1623_v28, %v9115_v50  ;;  %v3059_v21 = vsel %vm3006_vm10, %v3049_v22, %v3058_v52  ;;  %v3063_v22 = vrot.slane %v3061_v25, 2 }
 0x254   : > { %v9701_v63 = vadd.f32 %v2344_v1, %v2026_v10  ;;  %v3387_v10 = vrot.slane %v9680_v34, 3 }
 0x256   : > { %12253 = vst [vmem:[#allocation10_spill] sm:$0xff] %v9701_v63  ;;  %v2583_v41 = vpop.f32.mrf.mxu2  ;;  %v2347_v2 = vpop.f32.mrf.mxu1 }
 0x259   : > { %v1979_v18 = vpop.f32.mrf.mxu0  ;;  %7979 = vmatmul.msk.bf16.gmra.mxu1 %vm667_vm1, %v3386_v3  ;;  %v1625_v7 = vpop.f32.mrf.mxu3 }
 0x25a   : > { %v2027_v53 = vadd.f32 %v1979_v18, %v1666_v47  ;;  %v1669_v50 = vadd.f32 %v1625_v7, %v9132_v46  ;;  %v3066_v46 = vrot.slane %v3064_v27, 3 }
 0x25c   : > { %7960 = vmatmul.msk.bf16.gmra.mxu0 %vm667_vm1, %v3059_v21  ;;  %v2395_v1 = vadd.f32 %v2347_v2, %v2027_v53  ;;  %v9725_v21 = vld [vmem:[%s8661_s28 + $0x50] sm:$0xff]  ;;  %v3067_v7 = vor.u32 %v3066_v46, %v3063_v22  ;;  %v3073_v22 = vshll.u32 %v9704_v19, 16 }
 0x25e   : > { %v9713_v30 = vpop.f32.mrf.mxu2  ;;  %v9717_v0 = vadd.f32 %v2583_v41, %v2395_v1  ;;  %v2349_v28 = vpop.f32.mrf.mxu1  ;;  %7943 = vmatmul.msk.bf16.gmra.mxu3 %vm667_vm1, %v2785_v29  ;;  %v3388_v1 = vsel %vm3375_vm9, %v3385_v24, %v3387_v10  ;;  %v2786_v29 = vrot.slane %v9725_v21, 2  ;;  %v3070_v24 = vshrl.u32 %v9704_v19, 16 }
 0x25f   : > { %12254 = vst [vmem:[#allocation11_spill] sm:$0xff] %v9713_v30 }
 0x260   : > { %12255 = vst [vmem:[#allocation12_spill] sm:$0xff] %v9717_v0  ;;  %v2787_v27 = vsel %vm2409_vm6, %v2784_v42, %v2786_v29 }
 0x261   : > { %v1981_v47 = vpop.f32.mrf.mxu0  ;;  %v1628_v18 = vpop.f32.mrf.mxu3 }
 0x262   : > { %v2028_v54 = vadd.f32 %v1981_v47, %v1667_v55  ;;  %v1670_v2 = vadd.f32 %v1628_v18, %v9145_v8  ;;  %v3068_v55 = vsel %vm3006_vm10, %v3058_v52, %v3067_v7  ;;  %v3072_v52 = vrot.slane %v3070_v24, 2 }
 0x264   : > { %v9722_v3 = vadd.f32 %v2349_v28, %v2028_v54  ;;  %v3389_v54 = vrot.slane %v9704_v19, 3 }
 0x266   : > { %12256 = vst [vmem:[#allocation13_spill] sm:$0xff] %v9722_v3  ;;  %v2588_v53 = vpop.f32.mrf.mxu2  ;;  %v2352_v41 = vpop.f32.mrf.mxu1 }
 0x269   : > { %v1984_v30 = vpop.f32.mrf.mxu0  ;;  %7980 = vmatmul.msk.bf16.gmra.mxu1 %vm667_vm1, %v3388_v1  ;;  %v1630_v25 = vpop.f32.mrf.mxu3 }
 0x26a   : > { %v2029_v34 = vadd.f32 %v1984_v30, %v1668_v14  ;;  %v1671_v8 = vadd.f32 %v1630_v25, %v9162_v40  ;;  %v3075_v40 = vrot.slane %v3073_v22, 3 }
 0x26c   : > { %7961 = vmatmul.msk.bf16.gmra.mxu0 %vm667_vm1, %v3068_v55  ;;  %v2397_v28 = vadd.f32 %v2352_v41, %v2029_v34  ;;  %v9746_v55 = vld [vmem:[%s8661_s28 + $0x58] sm:$0xff]  ;;  %v3076_v25 = vor.u32 %v3075_v40, %v3072_v52 }
 0x26e   : > { %v9734_v47 = vpop.f32.mrf.mxu2  ;;  %v9738_v46 = vadd.f32 %v2588_v53, %v2397_v28  ;;  %v2354_v18 = vpop.f32.mrf.mxu1  ;;  %7944 = vmatmul.msk.bf16.gmra.mxu3 %vm667_vm1, %v2787_v27  ;;  %v3390_v53 = vsel %vm3375_vm9, %v3387_v10, %v3389_v54  ;;  %v2788_v27 = vrot.slane %v9746_v55, 2  ;;  %v3079_v10 = vshrl.u32 %v9725_v21, 16 }
 0x26f   : > { %12257 = vst [vmem:[#allocation14_spill] sm:$0xff] %v9734_v47 }
 0x270   : > { %12258 = vst [vmem:[#allocation15_spill] sm:$0xff] %v9738_v46  ;;  %v2789_v22 = vsel %vm2409_vm6, %v2786_v29, %v2788_v27  ;;  %v3391_v29 = vrot.slane %v9725_v21, 3 }
 0x271   : > { %v1986_v14 = vpop.f32.mrf.mxu0  ;;  %v1633_v30 = vpop.f32.mrf.mxu3 }
 0x272   : > { %v2030_v42 = vadd.f32 %v1986_v14, %v1669_v50  ;;  %v1672_v41 = vadd.f32 %v1633_v30, %v9175_v38  ;;  %v3077_v50 = vsel %vm3006_vm10, %v3067_v7, %v3076_v25  ;;  %v3082_v14 = vshll.u32 %v9725_v21, 16 }
 0x274   : > { %v9743_v1 = vadd.f32 %v2354_v18, %v2030_v42 }
 0x276   : > { %12259 = vst [vmem:[#allocation16_spill] sm:$0xff] %v9743_v1  ;;  %v2357_v34 = vpop.f32.mrf.mxu1  ;;  %v2593_v28 = vpop.f32.mrf.mxu2 }
 0x279   : > { %v1989_v47 = vpop.f32.mrf.mxu0  ;;  %7981 = vmatmul.msk.bf16.gmra.mxu1 %vm667_vm1, %v3390_v53  ;;  %v1635_v24 = vpop.f32.mrf.mxu3  ;;  %v9764_v53 = vld [vmem:[%s8661_s28 + $0x60] sm:$0xff] }
 0x27a   : > { %v2031_v19 = vadd.f32 %v1989_v47, %v1670_v2  ;;  %v1673_v38 = vadd.f32 %v1635_v24, %v9192_v26  ;;  %v3081_v2 = vrot.slane %v3079_v10, 2  ;;  %v3084_v26 = vrot.slane %v3082_v14, 3 }
 0x27b   : > { %v12263_v24 = vmov 0  ;;  %v2790_v14 = vrot.slane %v9764_v53, 2 }
 0x27c   : > { %7962 = vmatmul.msk.bf16.gmra.mxu0 %vm667_vm1, %v3077_v50  ;;  %v2399_v18 = vadd.f32 %v2357_v34, %v2031_v19  ;;  %v3085_v50 = vor.u32 %v3084_v26, %v3081_v2  ;;  %v12264_v24 = vsel %vm9769_vm14, 4294967295, %v12263_v24  ;;  %v3985_v19 = vld [vmem:[#allocation2 + $0x98] sm:$0xe] }
 0x27d   : > { %12265 = vst [vmem:[#allocation20_spill] sm:$0xff] %v12264_v24  ;;  %v3986_v10 = vsel %vm9776_vm0, 0, %v3985_v19  ;;  %v3091_v19 = vshll.u32 %v9746_v55, 16 }
 0x27e   : > { %v9757_v52 = vadd.f32 %v2593_v28, %v2399_v18  ;;  %v2359_v40 = vpop.f32.mrf.mxu1  ;;  %7945 = vmatmul.msk.bf16.gmra.mxu3 %vm667_vm1, %v2789_v22  ;;  %v9760_v30 = vpop.f32.mrf.mxu2  ;;  %v3979_v28 = vld [vmem:[#allocation2 + $0x8] sm:$0x3]  ;;  %3987 = vst [vmem:[#allocation2 + $0x98] sm:$0xe] %v3986_v10 }
 0x27f   : > { %12261 = vst [vmem:[#allocation18_spill] sm:$0xff] %v9760_v30  ;;  %v3980_v21 = vsel %vm9769_vm14, 0, %v3979_v28  ;;  %v3093_v30 = vrot.slane %v3091_v19, 3 }
 0x280   : > { %12260 = vst [vmem:[#allocation17_spill] sm:$0xff] %v9757_v52 }
 0x281   : > { %v1991_v7 = vpop.f32.mrf.mxu0  ;;  %v2874_v47 = vpop.f32.mrf.mxu3  ;;  %3981 = vst [vmem:[#allocation2 + $0x8] sm:$0x3] %v3980_v21  ;;  %v3088_v21 = vshrl.u32 %v9746_v55, 16 }
 0x282   : > { %v2032_v42 = vadd.f32 %v1991_v7, %v1671_v8  ;;  %v3392_v8 = vsel %vm3375_vm9, %v3389_v54, %v3391_v29  ;;  %v3086_v7 = vsel %vm3006_vm10, %v3076_v25, %v3085_v50 }
 0x283   : > { %v3090_v25 = vrot.slane %v3088_v21, 2 }
 0x284   : > { %v9766_v34 = vadd.f32 %v2359_v40, %v2032_v42  ;;  %v2791_v42 = vsel %vm2409_vm6, %v2788_v27, %v2790_v14 }
 0x286   : > { %12262 = vst [vmem:[#allocation19_spill] sm:$0xff] %v9766_v34  ;;  %v2362_v22 = vpop.f32.mrf.mxu1  ;;  %v2598_v26 = vpop.f32.mrf.mxu2  ;;  %v3393_v34 = vrot.slane %v9746_v55, 3  ;;  %v9806_v55 = vld [vmem:[%s12179_s3] ss:$0 sm:$0xff] }
 0x288   : > { %v3394_v52 = vsel %vm3375_vm9, %v3391_v29, %v3393_v34  ;;  %v9811_v29 = vld [vmem:[%s12180_s4] ss:$0 sm:$0xff] }
 0x289   : > { %v1994_v40 = vpop.f32.mrf.mxu0  ;;  %7982 = vmatmul.msk.bf16.gmra.mxu1 %vm667_vm1, %v3392_v8  ;;  %v2876_v54 = vpop.f32.mrf.mxu3 }
 0x28a   : > { %v2033_v2 = vadd.f32 %v1994_v40, %v1672_v41 }
 0x28c   : > { %7963 = vmatmul.msk.bf16.gmra.mxu0 %vm667_vm1, %v3086_v7  ;;  %v2401_v28 = vadd.f32 %v2362_v22, %v2033_v2  ;;  %v9796_v7 = vld [vmem:[%s8661_s28 + $0x68] sm:$0xff]  ;;  %v3094_v22 = vor.u32 %v3093_v30, %v3090_v25 }
 0x28e   : > { %v9789_v24 = vadd.f32 %v2598_v26, %v2401_v28  ;;  %v2364_v10 = vpop.f32.mrf.mxu1  ;;  %7946 = vmatmul.msk.bf16.gmra.mxu3 %vm667_vm1, %v2791_v42  ;;  %v2964_v26 = vadd.f32 %v2874_v47, %v9246_v44  ;;  %v2792_v28 = vrot.slane %v9796_v7, 2  ;;  %v3095_v21 = vsel %vm3006_vm10, %v3085_v50, %v3094_v22 }
 0x28f   : > { %v3100_v47 = vshll.u32 %v9764_v53, 16 }
 0x290   : > { %12268 = vst [vmem:[#allocation21_spill] sm:$0xff] %v9789_v24  ;;  %v2793_v44 = vsel %vm2409_vm6, %v2790_v14, %v2792_v28  ;;  %v9825_v24 = vld [vmem:[%s8661_s28 + $0x70] sm:$0xff] }
 0x291   : > { %v1996_v8 = vpop.f32.mrf.mxu0  ;;  %v2879_v41 = vpop.f32.mrf.mxu3  ;;  %v3102_v14 = vrot.slane %v3100_v47, 3  ;;  %v12191_v47 = vrot.slane %v9825_v24, 2 }
 0x292   : > { %v2034_v40 = vadd.f32 %v1996_v8, %v1673_v38  ;;  %v2965_v8 = vadd.f32 %v2876_v54, %v9253_v39 }
 0x294   : > { %v9793_v27 = vadd.f32 %v2364_v10, %v2034_v40  ;;  %v3760_v40 = vpop.permute.xlu0 %3759 }
 0x296   : > { %12269 = vst [vmem:[#allocation22_spill] sm:$0xff] %v9793_v27  ;;  %v3479_v2 = vpop.f32.mrf.mxu1  ;;  %v12190_v27 = vrot.slane %v9764_v53, 3 }
 0x299   : > { %v3243_v42 = vpop.f32.mrf.mxu0  ;;  %7983 = vmatmul.msk.bf16.gmra.mxu1 %vm667_vm1, %v3394_v52  ;;  %v2881_v38 = vpop.f32.mrf.mxu3  ;;  %v3097_v52 = vshrl.u32 %v9764_v53, 16 }
 0x29a   : > { %v3333_v19 = vadd.f32 %v3243_v42, %v2964_v26 }
 0x29b   : > { %v3099_v26 = vrot.slane %v3097_v52, 2  ;;  %v3396_v52 = vsel %vm3375_vm9, %v3393_v34, %v12190_v27 }
 0x29c   : > { %v3569_v30 = vadd.f32 %v3479_v2, %v3333_v19  ;;  %7964 = vmatmul.msk.bf16.gmra.mxu0 %vm667_vm1, %v3095_v21 }
 0x29d   : > { %v9827_v46 = vor.u32 %v3102_v14, %v3099_v26 }
 0x29e   : > { %v3609_v50 = vmul.f32 %v9806_v55, %v3569_v30  ;;  %v3481_v10 = vpop.f32.mrf.mxu1  ;;  %7947 = vmatmul.msk.bf16.gmra.mxu3 %vm667_vm1, %v2793_v44 }
 0x2a0   : > { %v3649_v25 = vadd.f32 %v9811_v29, %v3609_v50  ;;  %v2966_v50 = vadd.f32 %v2879_v41, %v9272_v23 }
 0x2a1   : > { %v3245_v2 = vpop.f32.mrf.mxu0  ;;  %v9821_v21 = vpop.f32.mrf.mxu3 }
 0x2a2   : > { %v3685_v42 = vmax.f32 %v3649_v25, 0.0  ;;  %v3334_v19 = vadd.f32 %v3245_v2, %v2965_v8 }
 0x2a4   : > { %v3937_v30 = vmul.f32 %v3760_v40, %v3685_v42  ;;  %v3570_v1 = vadd.f32 %v3481_v10, %v3334_v19  ;;  %v3104_v10 = vsel %vm3006_vm10, %v3094_v22, %v9827_v46  ;;  %v3765_v19 = vpop.permute.xlu0 %3764  ;;  %v3109_v22 = vshll.u32 %v9796_v7, 16 }
 0x2a6   : > { %v3993_v44 = vpack.c.bf16 %v3937_v30, %v3937_v30  ;;  %v3610_v39 = vmul.f32 %v9806_v55, %v3570_v1  ;;  %v3484_v54 = vpop.f32.mrf.mxu1  ;;  %v4427_v30 = vld [vmem:[#allocation2 + $0x8] sm:$0xe] }
 0x2a8   : > { %v4032_v8 = vshrl.u32 %v3993_v44, 16  ;;  %v4035_v25 = vshll.u32 %v3993_v44, 16  ;;  %v3650_v2 = vadd.f32 %v9811_v29, %v3610_v39  ;;  %v2795_v44 = vsel %vm2409_vm6, %v2792_v28, %v12191_v47  ;;  %v4504_v28 = vld [vmem:[%s12181_s5] sm:$0xf] }
 0x2a9   : > { %v3248_v40 = vpop.f32.mrf.mxu0  ;;  %7984 = vmatmul.msk.bf16.gmra.mxu1 %vm667_vm1, %v3396_v52  ;;  %v9839_v42 = vpop.f32.mrf.mxu3  ;;  %v3106_v39 = vshrl.u32 %v9796_v7, 16 }
 0x2aa   : > { %v4034_v1 = vrot.slane %v4032_v8, 6  ;;  %v4037_v26 = vrot.slane %v4035_v25, 7  ;;  %v3686_v14 = vmax.f32 %v3650_v2, 0.0  ;;  %v3335_v34 = vadd.f32 %v3248_v40, %v2966_v50 }
 0x2ac   : > { %v4038_v27 = vor.u32 %v4037_v26, %v4034_v1  ;;  %v3938_v23 = vmul.f32 %v3765_v19, %v3686_v14  ;;  %v3571_v41 = vadd.f32 %v3484_v54, %v3335_v34  ;;  %7965 = vmatmul.msk.bf16.gmra.mxu0 %vm667_vm1, %v3104_v10  ;;  %v2967_v54 = vadd.f32 %v2881_v38, %v9279_v56  ;;  %v3770_v1 = vpop.permute.xlu1 %3769  ;;  %v9859_v34 = vld [vmem:[%s8661_s28 + $0x78] sm:$0xff] }
 0x2ad   : > { %v4943_v10 = vsel %vm4803_vm7, %v4504_v28, 0  ;;  %v12192_v14 = vrot.slane %v9796_v7, 3  ;;  %v3108_v56 = vrot.slane %v3106_v39, 2  ;;  %v3111_v38 = vrot.slane %v3109_v22, 3 }
 0x2ae   : > { %v4428_v52 = vsel %vm9776_vm0, %v4038_v27, %v4427_v30  ;;  %v3994_v50 = vpack.c.bf16 %v3938_v23, %v3938_v23  ;;  %v3611_v8 = vmul.f32 %v9806_v55, %v3571_v41  ;;  %v3486_v25 = vpop.f32.mrf.mxu1  ;;  %7948 = vmatmul.msk.bf16.gmra.mxu3 %vm667_vm1, %v2795_v44  ;;  %v12272_v22 = vrot.slane %v9764_v53, 3  ;;  %v8204_v53 = vld [vmem:[%s12181_s5 + $0x10] sm:$0xf] }
 0x2af   : > { %4429 = vst [vmem:[#allocation2 + $0x8] sm:$0xe] %v4428_v52  ;;  %4952 = vmatpush.bf16.msrb.mxu3 %v4943_v10 }
 0x2b0   : > { %v4041_v2 = vshrl.u32 %v3994_v50, 16  ;;  %v4044_v40 = vshll.u32 %v3994_v50, 16  ;;  %v3651_v18 = vadd.f32 %v9811_v29, %v3611_v8  ;;  %v9869_v50 = vld [vmem:[#allocation2] sm:$0xff]   ;;  %v4039_v8 = vrot.slane %v4038_v27, 4 }
 0x2b1   : > { %v3250_v26 = vpop.f32.mrf.mxu0  ;;  %v9861_v41 = vpop.f32.mrf.mxu3 }
 0x2b2   : > { %v4043_v19 = vrot.slane %v4041_v2, 6  ;;  %v4046_v30 = vrot.slane %v4044_v40, 7  ;;  %v3687_v23 = vmax.f32 %v3651_v18, 0.0  ;;  %v3336_v44 = vadd.f32 %v3250_v26, %v2967_v54 }
 0x2b3   : > { %v3398_v2 = vsel %vm3375_vm9, %v12272_v22, %v12192_v14  ;;  %v12193_v54 = vrot.slane %v9859_v34, 2  ;;  %v9877_v40 = vor.u32 %v3111_v38, %v3108_v56  ;;  %v8098_v56 = vld [vmem:[%s12181_s5 + $0x8] sm:$0xf] }
 0x2b4   : > { %v4047_v28 = vor.u32 %v4046_v30, %v4043_v19  ;;  %v3939_v47 = vmul.f32 %v3770_v1, %v3687_v23  ;;  %v3572_v39 = vadd.f32 %v3486_v25, %v3336_v44  ;;  %v4604_v1 = vshll.u32 %v9869_v50, 16 }
 0x2b5   : > { %v2968_v25 = vadd.f32 %v9821_v21, %v9294_v4  ;;  %v5871_v30 = vsel %vm4803_vm7, %v8204_v53, 0  ;;  %v3113_v4 = vsel %vm3006_vm10, %v9827_v46, %v9877_v40  ;;  %v5142_v21 = vsel %vm4803_vm7, %v8098_v56, 0 }
 0x2b6   : > { %v4048_v18 = vsel %vm9865_vm13, %v4039_v8, %v4047_v28  ;;  %v3995_v10 = vpack.c.bf16 %v3939_v47, %v3939_v47  ;;  %v3612_v26 = vmul.f32 %v9806_v55, %v3572_v39  ;;  %v3489_v27 = vpop.f32.mrf.mxu1  ;;  %5880 = vmatpush.bf16.msrb.mxu2 %v5871_v30  ;;  %5151 = vmatpush.bf16.msrb.mxu0 %v5142_v21  ;;  %v4602_v53 = vshrl.u32 %v9869_v50, 16 }
 0x2b7   : > { %4430 = vst.msk [vmem:[#allocation2 + $0xc] sm:$0xf] %vm3973_vm8, %v4048_v18  ;;  %v4606_v46 = vrot.slane %v4604_v1, 1  ;;  %v4049_v30 = vrot.slane %v4047_v28, 4  ;;  %v2969_v28 = vadd.f32 %v9839_v42, %v9301_v49  ;;  %v8117_v1 = vld [vmem:[%s12181_s5 + $0xc] sm:$0xf] }
 0x2b8   : > { %v4051_v38 = vshrl.u32 %v3995_v10, 16  ;;  %v4054_v47 = vshll.u32 %v3995_v10, 16  ;;  %v3652_v19 = vadd.f32 %v9811_v29, %v3612_v26  ;;  %v3775_v10 = vpop.permute.xlu1 %3774  ;;  %v12273_v26 = vrot.slane %v9825_v24, 2 }
 0x2b9   : > { %v3253_v23 = vpop.f32.mrf.mxu0  ;;  %7985 = vmatmul.msk.bf16.gmra.mxu1 %vm667_vm1, %v3398_v2  ;;  %v9899_v22 = vpop.f32.mrf.mxu3  ;;  %v12194_v49 = vrot.slane %v9825_v24, 3  ;;  %v5503_v42 = vsel %vm4803_vm7, %v8117_v1, 0 }
 0x2ba   : > { %v4053_v44 = vrot.slane %v4051_v38, 6  ;;  %v4056_v8 = vrot.slane %v4054_v47, 7  ;;  %v3688_v39 = vmax.f32 %v3652_v19, 0.0  ;;  %v3337_v18 = vadd.f32 %v3253_v23, %v2968_v25  ;;  %5512 = vmatpush.bf16.msrb.mxu1 %v5503_v42 }
 0x2bb   : > { %v2797_v2 = vsel %vm2409_vm6, %v12273_v26, %v12193_v54  ;;  %v3115_v47 = vshrl.u32 %v9825_v24, 16  ;;  %v3118_v25 = vshll.u32 %v9825_v24, 16  ;;  %v3124_v42 = vshrl.u32 %v9859_v34, 16 }
 0x2bc   : > { %v4057_v14 = vor.u32 %v4056_v8, %v4053_v44  ;;  %v3940_v56 = vmul.f32 %v3775_v10, %v3688_v39  ;;  %v3573_v38 = vadd.f32 %v3489_v27, %v3337_v18  ;;  %7966 = vmatmul.msk.bf16.gmra.mxu0 %vm667_vm1, %v3113_v4  ;;  %v4607_v27 = vor.u32 %v4606_v46, %v4602_v53  ;;  %v3780_v18 = vpop.permute.xlu2 %3779 }
 0x2be   : > { %v4058_v19 = vsel %vm9865_vm13, %v4049_v30, %v4057_v14  ;;  %v3996_v23 = vpack.c.bf16 %v3940_v56, %v3940_v56  ;;  %v3613_v21 = vmul.f32 %v9806_v55, %v3573_v38  ;;  %v3491_v26 = vpop.f32.mrf.mxu1  ;;  %v9913_v54 = vld [vmem:[#allocation2 + $0x8] sm:$0xff]  ;;  %7949 = vmatmul.msk.bf16.gmra.mxu3 %vm667_vm1, %v2797_v2  ;;  %v3117_v30 = vrot.slane %v3115_v47, 2 }
 0x2bf   : > { %4431 = vst.msk [vmem:[#allocation2 + $0x10] sm:$0xf] %vm3973_vm8, %v4058_v19  ;;  %v4609_v39 = vshll.u32 %v9913_v54, 16  ;;  %v3120_v2 = vrot.slane %v3118_v25, 3  ;;  %v4059_v3 = vrot.slane %v4057_v14, 4  ;;  %v12274_v14 = vrot.slane %v9796_v7, 3 }
 0x2c0   : > { %v4061_v4 = vshrl.u32 %v3996_v23, 16  ;;  %v4064_v44 = vshll.u32 %v3996_v23, 16  ;;  %v3653_v8 = vadd.f32 %v9811_v29, %v3613_v21  ;;  %v9931_v21 = vld [vmem:[%s8661_s28 + $0x80] sm:$0xff] }
 0x2c1   : > { %v3255_v10 = vpop.f32.mrf.mxu0  ;;  %v9926_v38 = vpop.f32.mrf.mxu3  ;;  %v9928_v23 = vrot.slane %v4609_v39, 1  ;;  %v9935_v47 = vor.u32 %v3120_v2, %v3117_v30  ;;  %v3127_v30 = vshll.u32 %v9859_v34, 16 }
 0x2c2   : > { %v4063_v53 = vrot.slane %v4061_v4, 6  ;;  %v4066_v46 = vrot.slane %v4064_v44, 7  ;;  %v3689_v56 = vmax.f32 %v3653_v8, 0.0  ;;  %v3338_v19 = vadd.f32 %v3255_v10, %v2969_v28  ;;  %v5280_v8 = vld [vmem:[#allocation2 + $0xc] sm:$0xf] }
 0x2c3   : > { %v4612_v1 = vsel %vm995_vm2, %v4607_v27, %v9928_v23  ;;  %v12195_v27 = vrot.slane %v9931_v21, 2  ;;  %v3122_v7 = vsel %vm3006_vm10, %v9877_v40, %v9935_v47  ;;  %v5356_v2 = vunpack.c.l.b16 %v5280_v8  ;;  %v9965_v40 = vld [vmem:[%s8661_s28 + $0x88] sm:$0xff] }
 0x2c4   : > { %v4067_v0 = vor.u32 %v4066_v46, %v4063_v53  ;;  %v3941_v63 = vmul.f32 %v3780_v18, %v3689_v56  ;;  %v3574_v60 = vadd.f32 %v3491_v26, %v3338_v19  ;;  %8062 = vmatmul.msk.bf16.vlgmr.msra.gmra.mxu2 %vm825_vm4, %v4612_v1  ;;  %v3400_v26 = vsel %vm3375_vm9, %v12274_v14, %v12194_v49  ;;  %v5279_v18 = vld [vmem:[#allocation2 + $0x8] sm:$0xe]  ;;  %v3785_v1 = vpop.permute.xlu2 %3784 }
 0x2c5   : > { %v6008_v19 = vld [vmem:[#allocation2 + $0x8] sm:$0xc] }
 0x2c6   : > { %v4068_v25 = vsel %vm9865_vm13, %v4059_v3, %v4067_v0  ;;  %v3997_v4 = vpack.c.bf16 %v3941_v63, %v3941_v63  ;;  %v3614_v28 = vmul.f32 %v9806_v55, %v3574_v60  ;;  %v3494_v44 = vpop.f32.mrf.mxu1  ;;  %v2970_v3 = vadd.f32 %v9861_v41, %v9316_v5 }
 0x2c7   : > { %4432 = vst.msk [vmem:[#allocation2 + $0x14] sm:$0xf] %vm3973_vm8, %v4068_v25  ;;  %v12275_v25 = vrot.slane %v9859_v34, 2  ;;  %v4069_v14 = vrot.slane %v4067_v0, 4 }
 0x2c8   : > { %v4071_v63 = vshrl.u32 %v3997_v4, 16  ;;  %v4074_v39 = vshll.u32 %v3997_v4, 16  ;;  %v3654_v60 = vadd.f32 %v9811_v29, %v3614_v28  ;;  %v5355_v28 = vunpack.c.l.b16 %v5279_v18 }
 0x2c9   : > { %v3258_v10 = vpop.f32.mrf.mxu0  ;;  %7986 = vmatmul.msk.bf16.gmra.mxu1 %vm667_vm1, %v3400_v26  ;;  %v9957_v46 = vpop.f32.mrf.mxu3  ;;  %v2799_v4 = vsel %vm2409_vm6, %v12275_v25, %v12195_v27  ;;  %v12197_v18 = vrot.slane %v9859_v34, 3 }
 0x2ca   : > { %v4073_v53 = vrot.slane %v4071_v63, 6  ;;  %v4076_v5 = vrot.slane %v4074_v39, 7  ;;  %v3690_v41 = vmax.f32 %v3654_v60, 0.0  ;;  %v3339_v56 = vadd.f32 %v3258_v10, %v2970_v3 }
 0x2cb   : > { %v3126_v39 = vrot.slane %v3124_v42, 2  ;;  %v3129_v60 = vrot.slane %v3127_v30, 3  ;;  %v9968_v3 = vpack.c.b16 %v5356_v2, %v5355_v28  ;;  %v6012_v10 = vunpack.c.l.b16 %v6008_v19 }
 0x2cc   : > { %v4077_v26 = vor.u32 %v4076_v5, %v4073_v53  ;;  %v3942_v8 = vmul.f32 %v3785_v1, %v3690_v41  ;;  %v3575_v63 = vadd.f32 %v3494_v44, %v3339_v56  ;;  %7967 = vmatmul.msk.bf16.gmra.mxu0 %vm667_vm1, %v3122_v7  ;;  %v2971_v44 = vadd.f32 %v9899_v22, %v9323_v17 }
 0x2cd   : > { %v6013_v42 = vpack.c.b16 %v5356_v2, %v6012_v10  ;;  %v4613_v19 = vshrl.u32 %v9913_v54, 16  ;;  %v9986_v1 = vor.u32 %v3129_v60, %v3126_v39  ;;  %v5647_v17 = vshrl.u32 %v9968_v3, 16 }
 0x2ce   : > { %v4078_v49 = vsel %vm9865_vm13, %v4069_v14, %v4077_v26  ;;  %v3998_v12 = vpack.c.bf16 %v3942_v8, %v3942_v8  ;;  %v3615_v25 = vmul.f32 %v9806_v55, %v3575_v63  ;;  %v3496_v27 = vpop.f32.mrf.mxu1  ;;  %v9973_v9 = vld [vmem:[#allocation2 + $0x10] sm:$0xff]  ;;  %7950 = vmatmul.msk.bf16.gmra.mxu3 %vm667_vm1, %v2799_v4  ;;  %v5650_v10 = vshll.u32 %v9968_v3, 16 }
 0x2cf   : > { %v9975_v0 = vld [vmem:[#allocation2 + $0x10] sm:$0xff]  ;;  %4433 = vst.msk [vmem:[#allocation2 + $0x18] sm:$0xf] %vm3973_vm8, %v4078_v49  ;;  %v4617_v41 = vshll.u32 %v9973_v9, 16  ;;  %v4615_v8 = vor.u32 %v4613_v19, %v9928_v23  ;;  %v6014_v54 = vrot.slane %v6013_v42, 2  ;;  %v4079_v39 = vrot.slane %v4077_v26, 4 }
 0x2d0   : > { %v4081_v30 = vshrl.u32 %v3998_v12, 16  ;;  %v4084_v53 = vshll.u32 %v3998_v12, 16  ;;  %v3655_v5 = vadd.f32 %v9811_v29, %v3615_v25  ;;  %v5655_v22 = vshrl.u32 %v9975_v0, 16  ;;  %v3790_v12 = vpop.permute.xlu0 %3789 }
 0x2d1   : > { %v3260_v56 = vpop.f32.mrf.mxu0  ;;  %v9990_v14 = vpop.f32.mrf.mxu3  ;;  %v9993_v63 = vrot.slane %v4617_v41, 1  ;;  %v5649_v19 = vrot.slane %v5647_v17, 1  ;;  %v3131_v17 = vsel %vm3006_vm10, %v9935_v47, %v9986_v1 }
 0x2d2   : > { %v4083_v49 = vrot.slane %v4081_v30, 6  ;;  %v4086_v4 = vrot.slane %v4084_v53, 7  ;;  %v3691_v28 = vmax.f32 %v3655_v5, 0.0  ;;  %v3340_v2 = vadd.f32 %v3260_v56, %v2971_v44 }
 0x2d3   : > { %v4620_v30 = vsel %vm995_vm2, %v4615_v8, %v9993_v63  ;;  %v5657_v53 = vrot.slane %v5655_v22, 1  ;;  %v5658_v5 = vshll.u32 %v9975_v0, 16  ;;  %v12196_v44 = vrot.slane %v9975_v0, 2 }
 0x2d4   : > { %v4087_v60 = vor.u32 %v4086_v4, %v4083_v49  ;;  %v3943_v25 = vmul.f32 %v3790_v12, %v3691_v28  ;;  %v3576_v7 = vadd.f32 %v3496_v27, %v3340_v2  ;;  %8063 = vmatmul.msk.bf16.gmra.mxu2 %vm825_vm4, %v4620_v30  ;;  %v12276_v27 = vrot.slane %v9825_v24, 3 }
 0x2d5   : > { %v5652_v22 = vrot.slane %v5650_v10, 2  ;;  %v5660_v49 = vrot.slane %v5658_v5, 2  ;;  %v10013_v4 = vsel %vm2409_vm6, %v6014_v54, %v12196_v44  ;;  %v12279_v5 = vrot.slane %v9931_v21, 2 }
 0x2d6   : > { %v4088_v23 = vsel %vm9865_vm13, %v4079_v39, %v4087_v60  ;;  %v3999_v41 = vpack.c.bf16 %v3943_v25, %v3943_v25  ;;  %v3616_v56 = vmul.f32 %v9806_v55, %v3576_v7  ;;  %v3499_v26 = vpop.f32.mrf.mxu1  ;;  %v3402_v42 = vsel %vm3375_vm9, %v12276_v27, %v12197_v18  ;;  %12277 = vst [vmem:[#allocation23_spill] sm:$0xff] %v10013_v4 }
 0x2d7   : > { %4434 = vst.msk [vmem:[#allocation2 + $0x1c] sm:$0xf] %vm3973_vm8, %v4088_v23  ;;  %v2972_v7 = vadd.f32 %v9926_v38, %v9345_v20  ;;  %v10022_v8 = vor.u32 %v5660_v49, %v5657_v53  ;;  %v3795_v20 = vpop.permute.xlu1 %3794  ;;  %v12278_v38 = vrot.slane %v9965_v40, 2  ;;  %v5653_v47 = vor.u32 %v5652_v22, %v5649_v19 }
 0x2d8   : > { %v4091_v28 = vshrl.u32 %v3999_v41, 16  ;;  %v4094_v2 = vshll.u32 %v3999_v41, 16  ;;  %v3656_v12 = vadd.f32 %v9811_v29, %v3616_v56  ;;  %v3133_v41 = vshrl.u32 %v9931_v21, 16 }
 0x2d9   : > { %v3263_v24 = vpop.f32.mrf.mxu0  ;;  %7987 = vmatmul.msk.bf16.gmra.mxu1 %vm667_vm1, %v3402_v42  ;;  %v10024_v25 = vpop.f32.mrf.mxu3  ;;  %v2801_v23 = vsel %vm2409_vm6, %v12279_v5, %v12278_v38  ;;  %v3136_v56 = vshll.u32 %v9931_v21, 16  ;;  %v4089_v53 = vrot.slane %v4087_v60, 4  ;;  %v2973_v60 = vadd.f32 %v9957_v46, %v9357_v48 }
 0x2da   : > { %v4093_v10 = vrot.slane %v4091_v28, 6  ;;  %v4096_v39 = vrot.slane %v4094_v2, 7  ;;  %v3692_v54 = vmax.f32 %v3656_v12, 0.0  ;;  %v3341_v30 = vadd.f32 %v3263_v24, %v2972_v7 }
 0x2db   : > { %v10036_v7 = vsel %vm496_vm3, %v5653_v47, %v10022_v8  ;;  %v3138_v22 = vrot.slane %v3136_v56, 3  ;;  %v12200_v5 = vrot.slane %v9931_v21, 3  ;;  %v3800_v56 = vpop.permute.xlu2 %3799 }
 0x2dc   : > { %v4097_v27 = vor.u32 %v4096_v39, %v4093_v10  ;;  %v3944_v42 = vmul.f32 %v3795_v20, %v3692_v54  ;;  %v3577_v49 = vadd.f32 %v3499_v26, %v3341_v30  ;;  %7968 = vmatmul.msk.bf16.gmra.mxu0 %vm667_vm1, %v3131_v17  ;;  %v3135_v26 = vrot.slane %v3133_v41, 2 }
 0x2dd   : > { %v4621_v20 = vshrl.u32 %v9973_v9, 16 }
 0x2de   : > { %v4098_v28 = vsel %vm9865_vm13, %v4089_v53, %v4097_v27  ;;  %v4000_v2 = vpack.c.bf16 %v3944_v42, %v3944_v42  ;;  %v3617_v12 = vmul.f32 %v9806_v55, %v3577_v49  ;;  %v3501_v24 = vpop.f32.mrf.mxu1  ;;  %v10041_v38 = vld [vmem:[#allocation2 + $0x18] sm:$0xff]  ;;  %7951 = vmatmul.msk.bf16.gmra.mxu3 %vm667_vm1, %v2801_v23  ;;  %v4099_v9 = vrot.slane %v4097_v27, 4 }
 0x2df   : > { %v10043_v19 = vld [vmem:[#allocation2 + $0x18] sm:$0xff]  ;;  %4435 = vst.msk [vmem:[#allocation2 + $0x20] sm:$0xf] %vm3973_vm8, %v4098_v28  ;;  %v4625_v54 = vshll.u32 %v10041_v38, 16  ;;  %v4623_v42 = vor.u32 %v4621_v20, %v9993_v63  ;;  %v10060_v28 = vld [vmem:[%s8661_s28 + $0x90] sm:$0xff] }
 0x2e0   : > { %v4101_v17 = vshrl.u32 %v4000_v2, 16  ;;  %v4104_v10 = vshll.u32 %v4000_v2, 16  ;;  %v3657_v39 = vadd.f32 %v9811_v29, %v3617_v12  ;;  %v5664_v48 = vshrl.u32 %v10043_v19, 16 }
 0x2e1   : > { %v3265_v30 = vpop.f32.mrf.mxu0  ;;  %v10054_v23 = vpop.f32.mrf.mxu3  ;;  %v10057_v49 = vrot.slane %v4625_v54, 1  ;;  %v10062_v2 = vor.u32 %v3138_v22, %v3135_v26  ;;  %v12199_v22 = vrot.slane %v10060_v28, 2 }
 0x2e2   : > { %v4103_v46 = vrot.slane %v4101_v17, 6  ;;  %v4106_v47 = vrot.slane %v4104_v10, 7  ;;  %v3693_v53 = vmax.f32 %v3657_v39, 0.0  ;;  %v3342_v41 = vadd.f32 %v3265_v30, %v2973_v60 }
 0x2e3   : > { %v4628_v17 = vsel %vm995_vm2, %v4623_v42, %v10057_v49  ;;  %v5666_v10 = vrot.slane %v5664_v48, 1  ;;  %v5667_v39 = vshll.u32 %v10043_v19, 16  ;;  %v12198_v60 = vrot.slane %v10043_v19, 2 }
 0x2e4   : > { %v4107_v12 = vor.u32 %v4106_v47, %v4103_v46  ;;  %v3945_v44 = vmul.f32 %v3800_v56, %v3693_v53  ;;  %v3578_v18 = vadd.f32 %v3501_v24, %v3342_v41  ;;  %8064 = vmatmul.msk.bf16.gmra.mxu2 %vm825_vm4, %v4628_v17  ;;  %v12280_v24 = vrot.slane %v9859_v34, 3 }
 0x2e5   : > { %v5669_v20 = vrot.slane %v5667_v39, 2  ;;  %v2974_v48 = vadd.f32 %v9990_v14, %v9378_v15  ;;  %v3140_v41 = vsel %vm3006_vm10, %v9986_v1, %v10062_v2  ;;  %v3805_v15 = vpop.permute.xlu0 %3804  ;;  %v12283_v14 = vrot.slane %v9965_v40, 2 }
 0x2e6   : > { %v4108_v63 = vsel %vm9865_vm13, %v4099_v9, %v4107_v12  ;;  %v4001_v54 = vpack.c.bf16 %v3945_v44, %v3945_v44  ;;  %v3618_v30 = vmul.f32 %v9806_v55, %v3578_v18  ;;  %v3504_v27 = vpop.f32.mrf.mxu1  ;;  %v3404_v26 = vsel %vm3375_vm9, %v12280_v24, %v12200_v5 }
 0x2e7   : > { %4436 = vst.msk [vmem:[#allocation2 + $0x24] sm:$0xf] %vm3973_vm8, %v4108_v63  ;;  %v12281_v44 = vrot.slane %v9975_v0, 2  ;;  %v10093_v56 = vor.u32 %v5669_v20, %v5666_v10  ;;  %v3142_v1 = vshrl.u32 %v9965_v40, 16  ;;  %v3145_v10 = vshll.u32 %v9965_v40, 16 }
 0x2e8   : > { %v4111_v46 = vshrl.u32 %v4001_v54, 16  ;;  %v4114_v47 = vshll.u32 %v4001_v54, 16  ;;  %v3658_v34 = vadd.f32 %v9811_v29, %v3618_v30  ;;  %v2803_v54 = vsel %vm2409_vm6, %v12283_v14, %v12199_v22  ;;  %v10131_v22 = vld [vmem:[%s8661_s28 + $0x98] sm:$0xff] }
 0x2e9   : > { %v10084_v18 = vsel %vm2409_vm6, %v12281_v44, %v12198_v60  ;;  %v3268_v53 = vpop.f32.mrf.mxu0  ;;  %7988 = vmatmul.msk.bf16.gmra.mxu1 %vm667_vm1, %v3404_v26  ;;  %v10095_v39 = vpop.f32.mrf.mxu3  ;;  %v4109_v30 = vrot.slane %v4107_v12, 4  ;;  %v10108_v20 = vsel %vm496_vm3, %v10022_v8, %v10093_v56  ;;  %v3144_v14 = vrot.slane %v3142_v1, 2 }
 0x2ea   : > { %12282 = vst [vmem:[#allocation24_spill] sm:$0xff] %v10084_v18  ;;  %v4113_v42 = vrot.slane %v4111_v46, 6  ;;  %v4116_v9 = vrot.slane %v4114_v47, 7  ;;  %v3694_v17 = vmax.f32 %v3658_v34, 0.0  ;;  %v3343_v63 = vadd.f32 %v3268_v53, %v2974_v48 }
 0x2ec   : > { %v4117_v24 = vor.u32 %v4116_v9, %v4113_v42  ;;  %v3946_v26 = vmul.f32 %v3805_v15, %v3694_v17  ;;  %v3579_v44 = vadd.f32 %v3504_v27, %v3343_v63  ;;  %7969 = vmatmul.msk.bf16.gmra.mxu0 %vm667_vm1, %v3140_v41  ;;  %v2975_v27 = vadd.f32 %v10024_v25, %v9392_v57 }
 0x2ed   : > { %v4629_v63 = vshrl.u32 %v10041_v38, 16  ;;  %v12203_v15 = vrot.slane %v9965_v40, 3  ;;  %v3147_v57 = vrot.slane %v3145_v10, 3 }
 0x2ee   : > { %v4118_v48 = vsel %vm9865_vm13, %v4109_v30, %v4117_v24  ;;  %v4002_v46 = vpack.c.bf16 %v3946_v26, %v3946_v26  ;;  %v3619_v12 = vmul.f32 %v9806_v55, %v3579_v44  ;;  %v3506_v47 = vpop.f32.mrf.mxu1  ;;  %v10113_v34 = vld [vmem:[#allocation2 + $0x20] sm:$0xff]  ;;  %7952 = vmatmul.msk.bf16.gmra.mxu3 %vm667_vm1, %v2803_v54 }
 0x2ef   : > { %4437 = vst.msk [vmem:[#allocation2 + $0x28] sm:$0xf] %vm3973_vm8, %v4118_v48  ;;  %v4633_v42 = vshll.u32 %v10113_v34, 16  ;;  %v10121_v9 = vld [vmem:[#allocation2 + $0x20] sm:$0xff]  ;;  %v3810_v48 = vpop.permute.xlu1 %3809 }
 0x2f0   : > { %v4121_v53 = vshrl.u32 %v4002_v46, 16  ;;  %v4124_v41 = vshll.u32 %v4002_v46, 16  ;;  %v3659_v8 = vadd.f32 %v9811_v29, %v3619_v12  ;;  %v4119_v46 = vrot.slane %v4117_v24, 4 }
 0x2f1   : > { %v3270_v17 = vpop.f32.mrf.mxu0  ;;  %v10125_v54 = vpop.f32.mrf.mxu3  ;;  %v4631_v12 = vor.u32 %v4629_v63, %v10057_v49  ;;  %v10128_v60 = vrot.slane %v4633_v42, 1  ;;  %v5673_v1 = vshrl.u32 %v10121_v9, 16 }
 0x2f2   : > { %v4123_v25 = vrot.slane %v4121_v53, 6  ;;  %v4126_v30 = vrot.slane %v4124_v41, 7  ;;  %v3695_v26 = vmax.f32 %v3659_v8, 0.0  ;;  %v3344_v44 = vadd.f32 %v3270_v17, %v2975_v27 }
 0x2f3   : > { %v4636_v10 = vsel %vm995_vm2, %v4631_v12, %v10128_v60  ;;  %v10136_v53 = vor.u32 %v3147_v57, %v3144_v14  ;;  %v5676_v27 = vshll.u32 %v10121_v9, 16  ;;  %v12202_v17 = vrot.slane %v10131_v22, 2 }
 0x2f4   : > { %v4127_v5 = vor.u32 %v4126_v30, %v4123_v25  ;;  %v3947_v18 = vmul.f32 %v3810_v48, %v3695_v26  ;;  %v3580_v4 = vadd.f32 %v3506_v47, %v3344_v44  ;;  %8065 = vmatmul.msk.bf16.gmra.mxu2 %vm825_vm4, %v4636_v10  ;;  %v12284_v47 = vrot.slane %v9931_v21, 3 }
 0x2f5   : > { %v5675_v63 = vrot.slane %v5673_v1, 1  ;;  %v5678_v14 = vrot.slane %v5676_v27, 2  ;;  %v3149_v21 = vsel %vm3006_vm10, %v10062_v2, %v10136_v53  ;;  %v12201_v44 = vrot.slane %v10121_v9, 2  ;;  %v3815_v1 = vpop.permute.xlu2 %3814 }
 0x2f6   : > { %v4128_v24 = vsel %vm9865_vm13, %v4119_v46, %v4127_v5  ;;  %v4003_v49 = vpack.c.bf16 %v3947_v18, %v3947_v18  ;;  %v3620_v41 = vmul.f32 %v9806_v55, %v3580_v4  ;;  %v3509_v8 = vpop.f32.mrf.mxu1  ;;  %v3406_v42 = vsel %vm3375_vm9, %v12284_v47, %v12203_v15  ;;  %v2675_v47 = vld [vmem:[%s8661_s28 + $0xa0] sm:$0x3] }
 0x2f7   : > { %4438 = vst.msk [vmem:[#allocation2 + $0x2c] sm:$0xf] %vm3973_vm8, %v4128_v24  ;;  %v2976_v18 = vadd.f32 %v10054_v23, %v9417_v51  ;;  %v10157_v26 = vor.u32 %v5678_v14, %v5675_v63  ;;  %v4129_v10 = vrot.slane %v4127_v5, 4  ;;  %v12285_v27 = vrot.slane %v10060_v28, 2 }
 0x2f8   : > { %v4131_v57 = vshrl.u32 %v4003_v49, 16  ;;  %v4134_v4 = vshll.u32 %v4003_v49, 16  ;;  %v3660_v25 = vadd.f32 %v9811_v29, %v3620_v41  ;;  %v2616_v5 = vadd.f32 %v9415_v43, %v9431_v16 }
 0x2f9   : > { %v3273_v30 = vpop.f32.mrf.mxu0  ;;  %7989 = vmatmul.msk.bf16.gmra.mxu1 %vm667_vm1, %v3406_v42  ;;  %v10160_v51 = vpop.f32.mrf.mxu3  ;;  %v2805_v24 = vsel %vm2409_vm6, %v12285_v27, %v12202_v17  ;;  %v10172_v42 = vsel %vm496_vm3, %v10093_v56, %v10157_v26  ;;  %v3151_v63 = vshrl.u32 %v10060_v28, 16  ;;  %v3154_v14 = vshll.u32 %v10060_v28, 16 }
 0x2fa   : > { %v4133_v48 = vrot.slane %v4131_v57, 6  ;;  %v4136_v46 = vrot.slane %v4134_v4, 7  ;;  %v3696_v12 = vmax.f32 %v3660_v25, 0.0  ;;  %v3345_v23 = vadd.f32 %v3273_v30, %v2976_v18  ;;  %12286 = vst [vmem:[#allocation25_spill] sm:$0xff] %v10172_v42 }
 0x2fb   : > { %v12287_v18 = vrot.slane %v10043_v19, 2  ;;  %v2977_v16 = vadd.f32 %v10095_v39, %v2616_v5  ;;  %v4637_v27 = vshrl.u32 %v10113_v34, 16 }
 0x2fc   : > { %v4137_v49 = vor.u32 %v4136_v46, %v4133_v48  ;;  %v3948_v2 = vmul.f32 %v3815_v1, %v3696_v12  ;;  %v3581_v41 = vadd.f32 %v3509_v8, %v3345_v23  ;;  %7970 = vmatmul.msk.bf16.gmra.mxu0 %vm667_vm1, %v3149_v21  ;;  %v2751_v48 = vunpack.c.l.b16 %v2675_v47  ;;  %v3820_v47 = vpop.permute.xlu0 %3819 }
 0x2fd   : > { %v10183_v8 = vsel %vm2409_vm6, %v12287_v18, %v12201_v44 }
 0x2fe   : > { %12288 = vst [vmem:[#allocation26_spill] sm:$0xff] %v10183_v8  ;;  %v4138_v57 = vsel %vm9865_vm13, %v4129_v10, %v4137_v49  ;;  %v4004_v4 = vpack.c.bf16 %v3948_v2, %v3948_v2  ;;  %v3621_v56 = vmul.f32 %v9806_v55, %v3581_v41  ;;  %v3511_v25 = vpop.f32.mrf.mxu1  ;;  %v10188_v30 = vld [vmem:[#allocation2 + $0x28] sm:$0xff]  ;;  %7953 = vmatmul.msk.bf16.gmra.mxu3 %vm667_vm1, %v2805_v24  ;;  %v3153_v2 = vrot.slane %v3151_v63, 2 }
 0x2ff   : > { %v10190_v43 = vld [vmem:[#allocation2 + $0x28] sm:$0xff]  ;;  %4439 = vst.msk [vmem:[#allocation2 + $0x30] sm:$0xf] %vm3973_vm8, %v4138_v57  ;;  %v4641_v1 = vshll.u32 %v10188_v30, 16  ;;  %v3156_v41 = vrot.slane %v3154_v14, 3  ;;  %v4139_v15 = vrot.slane %v4137_v49, 4 }
 0x300   : > { %v4141_v46 = vshrl.u32 %v4004_v4, 16  ;;  %v4144_v12 = vshll.u32 %v4004_v4, 16  ;;  %v3661_v23 = vadd.f32 %v9811_v29, %v3621_v56  ;;  %v5682_v39 = vshrl.u32 %v10190_v43, 16 }
 0x301   : > { %v3275_v10 = vpop.f32.mrf.mxu0  ;;  %v10200_v24 = vpop.f32.mrf.mxu3  ;;  %v4639_v4 = vor.u32 %v4637_v27, %v10128_v60  ;;  %v10203_v17 = vrot.slane %v4641_v1, 1  ;;  %v2770_v56 = vpack.c.b16 %v2751_v48, %v2751_v48  ;;  %v10207_v14 = vor.u32 %v3156_v41, %v3153_v2 }
 0x302   : > { %v4143_v5 = vrot.slane %v4141_v46, 6  ;;  %v4146_v18 = vrot.slane %v4144_v12, 7  ;;  %v3697_v57 = vmax.f32 %v3661_v23, 0.0  ;;  %v3346_v44 = vadd.f32 %v3275_v10, %v2977_v16 }
 0x303   : > { %v4644_v63 = vsel %vm995_vm2, %v4639_v4, %v10203_v17  ;;  %v5684_v46 = vrot.slane %v5682_v39, 1  ;;  %v5685_v12 = vshll.u32 %v10190_v43, 16  ;;  %v12289_v48 = vrot.slane %v10060_v28, 3 }
 0x304   : > { %v4147_v21 = vor.u32 %v4146_v18, %v4143_v5  ;;  %v3949_v8 = vmul.f32 %v3820_v47, %v3697_v57  ;;  %v3582_v42 = vadd.f32 %v3511_v25, %v3346_v44  ;;  %8066 = vmatmul.msk.bf16.gmra.mxu2 %vm825_vm4, %v4644_v63  ;;  %v12290_v44 = vrot.slane %v9965_v40, 3 }
 0x305   : > { %v2806_v1 = vrot.slane %v2770_v56, 2  ;;  %v5687_v10 = vrot.slane %v5685_v12, 2  ;;  %v2978_v27 = vadd.f32 %v10125_v54, %v9461_v6  ;;  %v3158_v40 = vsel %vm3006_vm10, %v10136_v53, %v10207_v14  ;;  %v3825_v54 = vpop.permute.xlu1 %3824 }
 0x306   : > { %v4148_v16 = vsel %vm9865_vm13, %v4139_v15, %v4147_v21  ;;  %v4005_v23 = vpack.c.bf16 %v3949_v8, %v3949_v8  ;;  %v3622_v60 = vmul.f32 %v9806_v55, %v3582_v42  ;;  %v3514_v49 = vpop.f32.mrf.mxu1  ;;  %v3408_v25 = vsel %vm3375_vm9, %v12290_v44, %v12289_v48 }
 0x307   : > { %4440 = vst.msk [vmem:[#allocation2 + $0x34] sm:$0xf] %vm3973_vm8, %v4148_v16  ;;  %v10227_v41 = vor.u32 %v5687_v10, %v5684_v46  ;;  %v12204_v39 = vrot.slane %v10190_v43, 2  ;;  %v4149_v4 = vrot.slane %v4147_v21, 4  ;;  %v12291_v56 = vrot.slane %v10131_v22, 2  ;;  %v12292_v46 = vld [vmem:[#allocation4_spill] sm:$0xff] }
 0x308   : > { %v4151_v15 = vshrl.u32 %v4005_v23, 16  ;;  %v4154_v8 = vshll.u32 %v4005_v23, 16  ;;  %v3662_v42 = vadd.f32 %v9811_v29, %v3622_v60  ;;  %v2618_v60 = vadd.f32 %v12292_v46, %v9485_v11 }
 0x309   : > { %v3278_v2 = vpop.f32.mrf.mxu0  ;;  %7990 = vmatmul.msk.bf16.gmra.mxu1 %vm667_vm1, %v3408_v25  ;;  %v10230_v47 = vpop.f32.mrf.mxu3  ;;  %v2807_v63 = vsel %vm2409_vm6, %v12291_v56, %v2806_v1  ;;  %v10239_v53 = vsel %vm496_vm3, %v10157_v26, %v10227_v41  ;;  %v3160_v48 = vshrl.u32 %v10131_v22, 16  ;;  %v3163_v21 = vshll.u32 %v10131_v22, 16 }
 0x30a   : > { %v4153_v5 = vrot.slane %v4151_v15, 6  ;;  %v4156_v18 = vrot.slane %v4154_v8, 7  ;;  %v3698_v57 = vmax.f32 %v3662_v42, 0.0  ;;  %v3347_v6 = vadd.f32 %v3278_v2, %v2978_v27  ;;  %v10263_v42 = vld [vmem:[#allocation2 + $0x14] sm:$0xf] }
 0x30b   : > { %v12293_v44 = vrot.slane %v10121_v9, 2  ;;  %v2979_v15 = vadd.f32 %v10160_v51, %v2618_v60  ;;  %12295 = vst [vmem:[#allocation27_spill] sm:$0xff] %v10263_v42  ;;  %v3165_v51 = vrot.slane %v3163_v21, 3  ;;  %v3830_v60 = vpop.permute.xlu2 %3829  ;;  %v6972_v8 = vld [vmem:[#allocation2 + $0x10] sm:$0x8] }
 0x30c   : > { %v4157_v12 = vor.u32 %v4156_v18, %v4153_v5  ;;  %v3950_v16 = vmul.f32 %v3825_v54, %v3698_v57  ;;  %v3583_v23 = vadd.f32 %v3514_v49, %v3347_v6  ;;  %7971 = vmatmul.msk.bf16.gmra.mxu0 %vm667_vm1, %v3158_v40  ;;  %v3000_v18 = vld [vmem:[%s8661_s28 + $0xa0] sm:$0x7]  ;;  %v4645_v6 = vshrl.u32 %v10188_v30, 16 }
 0x30d   : > { %v10250_v49 = vsel %vm2409_vm6, %v12293_v44, %v12204_v39  ;;  %v3162_v54 = vrot.slane %v3160_v48, 2 }
 0x30e   : > { %12294 = vst [vmem:[#allocation4_spill] sm:$0xff] %v10250_v49  ;;  %v4158_v25 = vsel %vm9865_vm13, %v4149_v4, %v4157_v12  ;;  %v4006_v26 = vpack.c.bf16 %v3950_v16, %v3950_v16  ;;  %v3623_v1 = vmul.f32 %v9806_v55, %v3583_v23  ;;  %v3516_v10 = vpop.f32.mrf.mxu1  ;;  %v10255_v11 = vld [vmem:[#allocation2 + $0x30] sm:$0xff]  ;;  %7954 = vmatmul.msk.bf16.gmra.mxu3 %vm667_vm1, %v2807_v63 }
 0x30f   : > { %v10257_v27 = vld [vmem:[#allocation2 + $0x30] sm:$0xff]  ;;  %4441 = vst.msk [vmem:[#allocation2 + $0x38] sm:$0xf] %vm3973_vm8, %v4158_v25  ;;  %v4649_v55 = vshll.u32 %v10255_v11, 16  ;;  %v4647_v44 = vor.u32 %v4645_v6, %v10203_v17  ;;  %v3004_v25 = vunpack.c.l.b16 %v3000_v18  ;;  %v12297_v6 = vrot.slane %v10060_v28, 3 }
 0x310   : > { %v4161_v2 = vshrl.u32 %v4006_v26, 16  ;;  %v4164_v40 = vshll.u32 %v4006_v26, 16  ;;  %v3663_v5 = vadd.f32 %v9811_v29, %v3623_v1  ;;  %v5691_v4 = vshrl.u32 %v10257_v27, 16 }
 0x311   : > { %v3280_v57 = vpop.f32.mrf.mxu0  ;;  %v10270_v23 = vpop.f32.mrf.mxu3  ;;  %v10273_v29 = vrot.slane %v4649_v55, 1  ;;  %v12205_v26 = vunpack.c.l.b16 %v10263_v42  ;;  %v4159_v1 = vrot.slane %v4157_v12, 4  ;;  %v10286_v12 = vld [vmem:[%s12179_s3] ss:$0 sm:$0xff] }
 0x312   : > { %v4163_v56 = vrot.slane %v4161_v2, 6  ;;  %v4166_v63 = vrot.slane %v4164_v40, 7  ;;  %v3699_v16 = vmax.f32 %v3663_v5, 0.0  ;;  %v3348_v46 = vadd.f32 %v3280_v57, %v2979_v15 }
 0x313   : > { %v4652_v2 = vsel %vm995_vm2, %v4647_v44, %v10273_v29  ;;  %v10278_v40 = vor.u32 %v3165_v51, %v3162_v54  ;;  %v5693_v5 = vrot.slane %v5691_v4, 1  ;;  %v5694_v15 = vshll.u32 %v10257_v27, 16  ;;  %v10304_v44 = vld [vmem:[%s12180_s4] ss:$0 sm:$0xff] }
 0x314   : > { %v4167_v39 = vor.u32 %v4166_v63, %v4163_v56  ;;  %v3951_v48 = vmul.f32 %v3830_v60, %v3699_v16  ;;  %v3584_v21 = vadd.f32 %v3516_v10, %v3348_v46  ;;  %8067 = vmatmul.msk.bf16.gmra.mxu2 %vm825_vm4, %v4652_v2  ;;  %v12296_v57 = vrot.slane %v10131_v22, 3 }
 0x315   : > { %v10296_v51 = vpack.c.b16 %v3004_v25, %v3004_v25  ;;  %v5696_v4 = vrot.slane %v5694_v15, 2  ;;  %v12206_v56 = vrot.slane %v10257_v27, 2  ;;  %v6976_v63 = vunpack.c.l.b16 %v6972_v8 }
 0x316   : > { %v4168_v17 = vsel %vm9865_vm13, %v4159_v1, %v4167_v39  ;;  %v4007_v55 = vpack.c.bf16 %v3951_v48, %v3951_v48  ;;  %v3624_v10 = vmul.f32 %v10286_v12, %v3584_v21  ;;  %v3519_v18 = vpop.f32.mrf.mxu1  ;;  %v3410_v54 = vsel %vm3375_vm9, %v12297_v6, %v12296_v57  ;;  %v8472_v48 = vld [vmem:[#allocation2 + $0x18] sm:$0xff]  ;;  %v3835_v57 = vpop.permute.xlu0 %3834 }
 0x317   : > { %4442 = vst.msk [vmem:[#allocation2 + $0x3c] sm:$0xf] %vm3973_vm8, %v4168_v17  ;;  %v2980_v16 = vadd.f32 %v10200_v24, %v9519_v45  ;;  %v3167_v25 = vsel %vm3006_vm10, %v10207_v14, %v10278_v40  ;;  %v10311_v8 = vor.u32 %v5696_v4, %v5693_v5  ;;  %v10313_v45 = vld [vmem:[#allocation2 + $0x20] sm:$0xff]  ;;  %v12298_v24 = vrot.slane %v10190_v43, 2 }
 0x318   : > { %v4171_v46 = vshrl.u32 %v4007_v55, 16  ;;  %v4174_v60 = vshll.u32 %v4007_v55, 16  ;;  %v3664_v28 = vadd.f32 %v10304_v44, %v3624_v10  ;;  %v6977_v2 = vpack.c.b16 %v12205_v26, %v6976_v63 }
 0x319   : > { %v3283_v1 = vpop.f32.mrf.mxu0  ;;  %7991 = vmatmul.msk.bf16.gmra.mxu1 %vm667_vm1, %v3410_v54  ;;  %v10320_v21 = vsel %vm2409_vm6, %v12298_v24, %v12206_v56  ;;  %v10324_v10 = vpop.f32.mrf.mxu3  ;;  %v2620_v5 = vadd.f32 %v9517_v32, %v9539_v13  ;;  %v3169_v6 = vshrl.u32 %v10296_v51, 16  ;;  %v10332_v54 = vsel %vm496_vm3, %v10227_v41, %v10311_v8 }
 0x31a   : > { %12299 = vst [vmem:[#allocation28_spill] sm:$0xff] %v10320_v21  ;;  %v4173_v15 = vrot.slane %v4171_v46, 6  ;;  %v4176_v17 = vrot.slane %v4174_v60, 7  ;;  %v3700_v55 = vmax.f32 %v3664_v28, 0.0  ;;  %v3349_v14 = vadd.f32 %v3283_v1, %v2980_v16 }
 0x31b   : > { %12300 = vst [vmem:[#allocation29_spill] sm:$0xff] %v10332_v54  ;;  %v4169_v4 = vrot.slane %v4167_v39, 4  ;;  %v3172_v60 = vshll.u32 %v10296_v51, 16  ;;  %v6978_v16 = vrot.slane %v6977_v2, 3  ;;  %v6979_v28 = vrot.slane %v8472_v48, 3 }
 0x31c   : > { %v4177_v24 = vor.u32 %v4176_v17, %v4173_v15  ;;  %v3952_v63 = vmul.f32 %v3835_v57, %v3700_v55  ;;  %v3585_v46 = vadd.f32 %v3519_v18, %v3349_v14  ;;  %7972 = vmatmul.msk.bf16.gmra.mxu0 %vm667_vm1, %v3167_v25  ;;  %v12207_v32 = vrot.slane %v10313_v45, 3 }
 0x31d   : > { %v2981_v18 = vadd.f32 %v10230_v47, %v2620_v5  ;;  %v3411_v25 = vrot.slane %v10296_v51, 3  ;;  %v10350_v48 = vsel %vm3375_vm9, %v6978_v16, %v6979_v28  ;;  %v4653_v5 = vshrl.u32 %v10255_v11, 16 }
 0x31e   : > { %v4178_v13 = vsel %vm9865_vm13, %v4169_v4, %v4177_v24  ;;  %v4008_v1 = vpack.c.bf16 %v3952_v63, %v3952_v63  ;;  %v3625_v26 = vmul.f32 %v10286_v12, %v3585_v46  ;;  %v3521_v41 = vpop.f32.mrf.mxu1  ;;  %v10340_v56 = vld [vmem:[#allocation2 + $0x38] sm:$0xff]  ;;  %8080 = vmatmul.msk.bf16.vlgmr.msrb.gmra.mxu3 %vm825_vm4, %v9869_v50  ;;  %12301 = vst [vmem:[#allocation30_spill] sm:$0xff] %v10350_v48  ;;  %v3171_v50 = vrot.slane %v3169_v6, 2 }
 0x31f   : > { %v10342_v39 = vld [vmem:[#allocation2 + $0x38] sm:$0xff]  ;;  %4443 = vst.msk [vmem:[#allocation2 + $0x40] sm:$0xf] %vm3973_vm8, %v4178_v13  ;;  %v10355_v2 = vsel %vm3375_vm9, %v6979_v28, %v12207_v32  ;;  %v4657_v47 = vshll.u32 %v10340_v56, 16  ;;  %v3174_v57 = vrot.slane %v3172_v60, 3  ;;  %v3840_v13 = vpop.permute.xlu1 %3839 }
 0x320   : > { %12302 = vst [vmem:[#allocation31_spill] sm:$0xff] %v10355_v2  ;;  %v4181_v15 = vshrl.u32 %v4008_v1, 16  ;;  %v4184_v17 = vshll.u32 %v4008_v1, 16  ;;  %v3665_v55 = vadd.f32 %v10304_v44, %v3625_v26  ;;  %v5700_v51 = vshrl.u32 %v10342_v39, 16 }
 0x321   : > { %v3285_v14 = vpop.f32.mrf.mxu0  ;;  %v10361_v16 = vpop.f32.mrf.mxu3  ;;  %v4655_v1 = vor.u32 %v4653_v5, %v10273_v29  ;;  %v10364_v32 = vrot.slane %v4657_v47, 1  ;;  %v4179_v26 = vrot.slane %v4177_v24, 4  ;;  %v3175_v60 = vor.u32 %v3174_v57, %v3171_v50 }
 0x322   : > { %v4183_v4 = vrot.slane %v4181_v15, 6  ;;  %v4186_v63 = vrot.slane %v4184_v17, 7  ;;  %v3701_v46 = vmax.f32 %v3665_v55, 0.0  ;;  %v3350_v28 = vadd.f32 %v3285_v14, %v2981_v18 }
 0x323   : > { %v4660_v6 = vsel %vm995_vm2, %v4655_v1, %v10364_v32  ;;  %v5702_v49 = vrot.slane %v5700_v51, 1  ;;  %v5703_v15 = vshll.u32 %v10342_v39, 16  ;;  %v12303_v24 = vrot.slane %v10131_v22, 3  ;;  %v3845_v1 = vpop.permute.xlu2 %3844 }
 0x324   : > { %v4187_v2 = vor.u32 %v4186_v63, %v4183_v4  ;;  %v3953_v48 = vmul.f32 %v3840_v13, %v3701_v46  ;;  %v3586_v21 = vadd.f32 %v3521_v41, %v3350_v28  ;;  %8068 = vmatmul.msk.bf16.gmra.mxu2 %vm825_vm4, %v4660_v6  ;;  %v6025_v14 = vrot.slane %v10342_v39, 2 }
 0x325   : > { %v3412_v41 = vsel %vm3375_vm9, %v12303_v24, %v3411_v25  ;;  %v5705_v47 = vrot.slane %v5703_v15, 2  ;;  %v2982_v5 = vadd.f32 %v10270_v23, %v9571_v58  ;;  %v3176_v22 = vsel %vm3006_vm10, %v10278_v40, %v3175_v60 }
 0x326   : > { %v4188_v17 = vsel %vm9865_vm13, %v4179_v26, %v4187_v2  ;;  %v4009_v18 = vpack.c.bf16 %v3953_v48, %v3953_v48  ;;  %v3626_v55 = vmul.f32 %v10286_v12, %v3586_v21  ;;  %v3524_v29 = vpop.f32.mrf.mxu1  ;;  %v10381_v21 = vld [vmem:[#allocation2 + $0x28] sm:$0xff]  ;;  %v12304_v4 = vrot.slane %v10257_v27, 2 }
 0x327   : > { %4444 = vst.msk [vmem:[#allocation2 + $0x44] sm:$0xf] %vm3973_vm8, %v4188_v17  ;;  %v10386_v25 = vor.u32 %v5705_v47, %v5702_v49  ;;  %v4189_v26 = vrot.slane %v4187_v2, 4  ;;  %v6983_v15 = vrot.slane %v10381_v21, 3  ;;  %v2622_v17 = vadd.f32 %v9565_v31, %v9588_v33  ;;  %v8501_v47 = vld [vmem:[#allocation2] sm:$0xe] }
 0x328   : > { %v4191_v50 = vshrl.u32 %v4009_v18, 16  ;;  %v4194_v57 = vshll.u32 %v4009_v18, 16  ;;  %v3666_v48 = vadd.f32 %v10304_v44, %v3626_v55  ;;  %v10393_v58 = vsel %vm2409_vm6, %v12304_v4, %v6025_v14  ;;  %v8500_v18 = vld [vmem:[#allocation2] sm:$0xf0] }
 0x329   : > { %v3288_v51 = vpop.f32.mrf.mxu0  ;;  %7992 = vmatmul.msk.bf16.gmra.mxu1 %vm667_vm1, %v3412_v41  ;;  %12305 = vst [vmem:[#allocation32_spill] sm:$0xff] %v10393_v58  ;;  %v10395_v28 = vpop.f32.mrf.mxu3  ;;  %v10400_v49 = vsel %vm496_vm3, %v10311_v8, %v10386_v25  ;;  %v12307_v31 = vrot.slane %v10313_v45, 3  ;;  %v4661_v4 = vshrl.u32 %v10340_v56, 16 }
 0x32a   : > { %v4193_v23 = vrot.slane %v4191_v50, 6  ;;  %v4196_v63 = vrot.slane %v4194_v57, 7  ;;  %v3702_v46 = vmax.f32 %v3666_v48, 0.0  ;;  %v3351_v13 = vadd.f32 %v3288_v51, %v2982_v5  ;;  %12306 = vst [vmem:[#allocation33_spill] sm:$0xff] %v10400_v49  ;;  %v10415_v50 = vld [vmem:[#allocation2 + $0x8] sm:$0xff] }
 0x32b   : > { %v10424_v33 = vsel %vm3375_vm9, %v12307_v31, %v6983_v15 }
 0x32c   : > { %v4197_v40 = vor.u32 %v4196_v63, %v4193_v23  ;;  %v3954_v6 = vmul.f32 %v3845_v1, %v3702_v46  ;;  %v3587_v60 = vadd.f32 %v3524_v29, %v3351_v13  ;;  %7973 = vmatmul.msk.bf16.gmra.mxu0 %vm667_vm1, %v3176_v22  ;;  %v2983_v29 = vadd.f32 %v10324_v10, %v2622_v17 }
 0x32d   : > { %12308 = vst [vmem:[#allocation34_spill] sm:$0xff] %v10424_v33  ;;  %v8502_v23 = vor.u32 %v8501_v47, %v8500_v18 }
 0x32e   : > { %v4198_v55 = vsel %vm9865_vm13, %v4189_v26, %v4197_v40  ;;  %v4010_v2 = vpack.c.bf16 %v3954_v6, %v3954_v6  ;;  %v3627_v24 = vmul.f32 %v10286_v12, %v3587_v60  ;;  %v3526_v41 = vpop.f32.mrf.mxu1  ;;  %v10409_v8 = vld [vmem:[#allocation2 + $0x40] sm:$0xff]  ;;  %8081 = vmatmul.msk.bf16.gmra.mxu3 %vm825_vm4, %v10415_v50  ;;  %v3850_v6 = vpop.permute.xlu0 %3849  ;;  %v4663_v60 = vor.u32 %v4661_v4, %v10364_v32 }
 0x32f   : > { %v10411_v5 = vld [vmem:[#allocation2 + $0x40] sm:$0xff]  ;;  %4445 = vst.msk [vmem:[#allocation2 + $0x48] sm:$0xf] %vm3973_vm8, %v4198_v55  ;;  %v4665_v10 = vshll.u32 %v10409_v8, 16  ;;  %v5411_v55 = vrot.slane %v9968_v3, 1  ;;  %v12209_v4 = vrot.slane %v10415_v50, 1 }
 0x330   : > { %v4201_v57 = vshrl.u32 %v4010_v2, 16  ;;  %v4204_v48 = vshll.u32 %v4010_v2, 16  ;;  %v3667_v51 = vadd.f32 %v10304_v44, %v3627_v24  ;;  %v5709_v63 = vshrl.u32 %v10411_v5, 16 }
 0x331   : > { %v3290_v22 = vpop.f32.mrf.mxu0  ;;  %v10430_v26 = vpop.f32.mrf.mxu3  ;;  %v10433_v17 = vrot.slane %v4665_v10, 1  ;;  %v12211_v2 = vrot.slane %v9975_v0, 1  ;;  %v4199_v24 = vrot.slane %v4197_v40, 4 }
 0x332   : > { %v4203_v46 = vrot.slane %v4201_v57, 6  ;;  %v4206_v13 = vrot.slane %v4204_v48, 7  ;;  %v3703_v1 = vmax.f32 %v3667_v51, 0.0  ;;  %v3352_v45 = vadd.f32 %v3290_v22, %v2983_v29 }
 0x333   : > { %v4668_v57 = vsel %vm995_vm2, %v4663_v60, %v10433_v17  ;;  %v5711_v48 = vrot.slane %v5709_v63, 1  ;;  %v5712_v51 = vshll.u32 %v10411_v5, 16  ;;  %v12210_v29 = vrot.slane %v10411_v5, 2 }
 0x334   : > { %v4207_v31 = vor.u32 %v4206_v13, %v4203_v46  ;;  %v3955_v18 = vmul.f32 %v3850_v6, %v3703_v1  ;;  %v3588_v47 = vadd.f32 %v3526_v41, %v3352_v45  ;;  %8069 = vmatmul.msk.bf16.gmra.mxu2 %vm825_vm4, %v4668_v57  ;;  %v5050_v22 = vrot.slane %v8502_v23, 1  ;;  %v10460_v6 = vld [vmem:[#allocation2 + $0x30] sm:$0xff] }
 0x335   : > { %v5413_v41 = vsel %vm1444_vm5, %v5411_v55, %v12211_v2  ;;  %v5714_v63 = vrot.slane %v5712_v51, 2  ;;  %v10455_v46 = vsel %vm2409_vm6, %v6025_v14, %v12210_v29  ;;  %v2984_v13 = vadd.f32 %v10361_v16, %v9611_v59  ;;  %v3855_v51 = vpop.permute.xlu1 %3854 }
 0x336   : > { %v4208_v32 = vsel %vm9865_vm13, %v4199_v24, %v4207_v31  ;;  %v4011_v10 = vpack.c.bf16 %v3955_v18, %v3955_v18  ;;  %v3628_v3 = vmul.f32 %v10286_v12, %v3588_v47  ;;  %v3529_v40 = vpop.f32.mrf.mxu1  ;;  %12309 = vst [vmem:[#allocation35_spill] sm:$0xff] %v10455_v46  ;;  %v5052_v59 = vsel %vm1444_vm5, %v5050_v22, %v12209_v4 }
 0x337   : > { %4446 = vst.msk [vmem:[#allocation2 + $0x4c] sm:$0xf] %vm3973_vm8, %v4208_v32  ;;  %v10463_v55 = vor.u32 %v5714_v63, %v5711_v48  ;;  %v4209_v32 = vrot.slane %v4207_v31, 4  ;;  %v2624_v63 = vadd.f32 %v9607_v37, %v9623_v61 }
 0x338   : > { %v4211_v23 = vshrl.u32 %v4011_v10, 16  ;;  %v4214_v1 = vshll.u32 %v4011_v10, 16  ;;  %v3668_v45 = vadd.f32 %v10304_v44, %v3628_v3 }
 0x339   : > { %v3293_v60 = vpop.f32.mrf.mxu0  ;;  %8186 = vmatmul.msk.bf16.vlgmr.msrb.gmra.mxu1 %vm825_vm4, %v5413_v41  ;;  %v10465_v57 = vpop.f32.mrf.mxu3  ;;  %v10473_v16 = vsel %vm496_vm3, %v10386_v25, %v10463_v55  ;;  %v12208_v41 = vrot.slane %v10460_v6, 3 }
 0x33a   : > { %v4213_v24 = vrot.slane %v4211_v23, 6  ;;  %v4216_v18 = vrot.slane %v4214_v1, 7  ;;  %v3704_v47 = vmax.f32 %v3668_v45, 0.0  ;;  %v3353_v14 = vadd.f32 %v3293_v60, %v2984_v13  ;;  %12310 = vst [vmem:[#allocation36_spill] sm:$0xff] %v10473_v16  ;;  %v10488_v45 = vld [vmem:[#allocation2 + $0x10] sm:$0xff] }
 0x33b   : > { %v10497_v37 = vsel %vm3375_vm9, %v6983_v15, %v12208_v41 }
 0x33c   : > { %v4217_v10 = vor.u32 %v4216_v18, %v4213_v24  ;;  %v3956_v48 = vmul.f32 %v3855_v51, %v3704_v47  ;;  %v3589_v3 = vadd.f32 %v3529_v40, %v3353_v14  ;;  %8099 = vmatmul.msk.bf16.vlgmr.msrb.gmra.mxu0 %vm825_vm4, %v5052_v59  ;;  %v2985_v40 = vadd.f32 %v10395_v28, %v2624_v63  ;;  %v10501_v18 = vpop.f32.mrf.mxu2 }
 0x33d   : > { %12311 = vst [vmem:[#allocation37_spill] sm:$0xff] %v10497_v37  ;;  %v4669_v14 = vshrl.u32 %v10409_v8, 16 }
 0x33e   : > { %v4218_v31 = vsel %vm9865_vm13, %v4209_v32, %v4217_v10  ;;  %v4012_v13 = vpack.c.bf16 %v3956_v48, %v3956_v48  ;;  %v3629_v22 = vmul.f32 %v10286_v12, %v3589_v3  ;;  %v3531_v23 = vpop.f32.mrf.mxu1  ;;  %v10482_v1 = vld [vmem:[#allocation2 + $0x48] sm:$0xff]  ;;  %8082 = vmatmul.msk.bf16.gmra.mxu3 %vm825_vm4, %v10488_v45  ;;  %v3860_v3 = vpop.permute.xlu2 %3859 }
 0x33f   : > { %v10484_v25 = vld [vmem:[#allocation2 + $0x48] sm:$0xff]  ;;  %4447 = vst.msk [vmem:[#allocation2 + $0x50] sm:$0xf] %vm3973_vm8, %v4218_v31  ;;  %v4673_v28 = vshll.u32 %v10482_v1, 16  ;;  %v4671_v63 = vor.u32 %v4669_v14, %v10433_v17  ;;  %v12213_v14 = vrot.slane %v10488_v45, 1 }
 0x340   : > { %v4221_v61 = vshrl.u32 %v4012_v13, 16  ;;  %v4224_v60 = vshll.u32 %v4012_v13, 16  ;;  %v3669_v24 = vadd.f32 %v10304_v44, %v3629_v22  ;;  %v5718_v51 = vshrl.u32 %v10484_v25, 16 }
 0x341   : > { %v3295_v47 = vpop.f32.mrf.mxu0  ;;  %v10505_v21 = vpop.f32.mrf.mxu3  ;;  %v10508_v31 = vrot.slane %v4673_v28, 1  ;;  %v12215_v13 = vrot.slane %v10043_v19, 1  ;;  %v4219_v22 = vrot.slane %v4217_v10, 4 }
 0x342   : > { %v4223_v32 = vrot.slane %v4221_v61, 6  ;;  %v4226_v59 = vrot.slane %v4224_v60, 7  ;;  %v3705_v48 = vmax.f32 %v3669_v24, 0.0  ;;  %v3354_v15 = vadd.f32 %v3295_v47, %v2985_v40 }
 0x343   : > { %v4676_v2 = vsel %vm995_vm2, %v4671_v63, %v10508_v31  ;;  %v5720_v61 = vrot.slane %v5718_v51, 1  ;;  %v5721_v60 = vshll.u32 %v10484_v25, 16  ;;  %v12214_v24 = vrot.slane %v10484_v25, 2 }
 0x344   : > { %v4227_v41 = vor.u32 %v4226_v59, %v4223_v32  ;;  %v3957_v4 = vmul.f32 %v3860_v3, %v3705_v48  ;;  %v3590_v29 = vadd.f32 %v3531_v23, %v3354_v15  ;;  %8070 = vmatmul.msk.bf16.gmra.mxu2 %vm825_vm4, %v4676_v2  ;;  %v12312_v23 = vrot.slane %v9975_v0, 1  ;;  %v10536_v0 = vld [vmem:[#allocation2 + $0x38] sm:$0xff] }
 0x345   : > { %v5723_v51 = vrot.slane %v5721_v60, 2  ;;  %v2986_v2 = vadd.f32 %v10430_v26, %v9642_v62  ;;  %v3865_v62 = vpop.permute.xlu0 %3864 }
 0x346   : > { %v4228_v40 = vsel %vm9865_vm13, %v4219_v22, %v4227_v41  ;;  %v4013_v17 = vpack.c.bf16 %v3957_v4, %v3957_v4  ;;  %v3630_v28 = vmul.f32 %v10286_v12, %v3590_v29  ;;  %v3534_v10 = vpop.f32.mrf.mxu1  ;;  %v5415_v47 = vsel %vm1444_vm5, %v12312_v23, %v12215_v13 }
 0x347   : > { %4448 = vst.msk [vmem:[#allocation2 + $0x54] sm:$0xf] %vm3973_vm8, %v4228_v40  ;;  %v12313_v4 = vrot.slane %v10411_v5, 2  ;;  %v10538_v3 = vpop.f32.mrf.mxu2  ;;  %v10541_v63 = vor.u32 %v5723_v51, %v5720_v61  ;;  %v4229_v26 = vrot.slane %v4227_v41, 4  ;;  %v2626_v41 = vadd.f32 %v9638_v35, %v9650_v36 }
 0x348   : > { %v4231_v32 = vshrl.u32 %v4013_v17, 16  ;;  %v4234_v59 = vshll.u32 %v4013_v17, 16  ;;  %v3670_v48 = vadd.f32 %v10304_v44, %v3630_v28  ;;  %v12315_v17 = vrot.slane %v10415_v50, 1 }
 0x349   : > { %v10531_v29 = vsel %vm2409_vm6, %v12313_v4, %v12214_v24  ;;  %v3298_v15 = vpop.f32.mrf.mxu0  ;;  %8187 = vmatmul.msk.bf16.gmra.mxu1 %vm825_vm4, %v5415_v47  ;;  %v10543_v23 = vpop.f32.mrf.mxu3  ;;  %v10553_v47 = vsel %vm496_vm3, %v10463_v55, %v10541_v63  ;;  %v12317_v35 = vrot.slane %v10460_v6, 3 }
 0x34a   : > { %12314 = vst [vmem:[#allocation38_spill] sm:$0xff] %v10531_v29  ;;  %v4233_v22 = vrot.slane %v4231_v32, 6  ;;  %v4236_v60 = vrot.slane %v4234_v59, 7  ;;  %v3706_v40 = vmax.f32 %v3670_v48, 0.0  ;;  %v3355_v4 = vadd.f32 %v3298_v15, %v2986_v2 }
 0x34b   : > { %v5054_v28 = vsel %vm1444_vm5, %v12315_v17, %v12213_v14  ;;  %12316 = vst [vmem:[#allocation39_spill] sm:$0xff] %v10553_v47  ;;  %v12212_v2 = vrot.slane %v10536_v0, 3 }
 0x34c   : > { %v4237_v61 = vor.u32 %v4236_v60, %v4233_v22  ;;  %v3958_v51 = vmul.f32 %v3865_v62, %v3706_v40  ;;  %v3591_v32 = vadd.f32 %v3534_v10, %v3355_v4  ;;  %8100 = vmatmul.msk.bf16.gmra.mxu0 %vm825_vm4, %v5054_v28  ;;  %v2987_v10 = vadd.f32 %v10465_v57, %v2626_v41 }
 0x34d   : > { %v10575_v36 = vsel %vm3375_vm9, %v12317_v35, %v12212_v2 }
 0x34e   : > { %v4238_v50 = vsel %vm9865_vm13, %v4229_v26, %v4237_v61  ;;  %v4014_v59 = vpack.c.bf16 %v3958_v51, %v3958_v51  ;;  %v3631_v48 = vmul.f32 %v10286_v12, %v3591_v32  ;;  %v3536_v15 = vpop.f32.mrf.mxu1  ;;  %v10562_v17 = vld [vmem:[#allocation2 + $0x50] sm:$0xff]  ;;  %8083 = vmatmul.msk.bf16.gmra.mxu3 %vm825_vm4, %v10041_v38  ;;  %12318 = vst [vmem:[#allocation40_spill] sm:$0xff] %v10575_v36  ;;  %v4677_v26 = vshrl.u32 %v10482_v1, 16 }
 0x34f   : > { %v10564_v55 = vld [vmem:[#allocation2 + $0x50] sm:$0xff]  ;;  %4449 = vst.msk [vmem:[#allocation2 + $0x58] sm:$0xf] %vm3973_vm8, %v4238_v50  ;;  %v4681_v4 = vshll.u32 %v10562_v17, 16  ;;  %v10579_v57 = vpop.f32.mrf.mxu2  ;;  %v3870_v50 = vpop.permute.xlu1 %3869  ;;  %v4239_v2 = vrot.slane %v4237_v61, 4 }
 0x350   : > { %v4241_v22 = vshrl.u32 %v4014_v59, 16  ;;  %v4244_v60 = vshll.u32 %v4014_v59, 16  ;;  %v3671_v40 = vadd.f32 %v10304_v44, %v3631_v48  ;;  %v5727_v38 = vshrl.u32 %v10564_v55, 16 }
 0x351   : > { %v3300_v62 = vpop.f32.mrf.mxu0  ;;  %v10583_v6 = vpop.f32.mrf.mxu3  ;;  %v4679_v59 = vor.u32 %v4677_v26, %v10508_v31  ;;  %v10586_v35 = vrot.slane %v4681_v4, 1  ;;  %v12217_v48 = vrot.slane %v10121_v9, 1  ;;  %v10603_v26 = vld [vmem:[#allocation2 + $0x18] sm:$0xff] }
 0x352   : > { %v4243_v28 = vrot.slane %v4241_v22, 6  ;;  %v4246_v51 = vrot.slane %v4244_v60, 7  ;;  %v3707_v32 = vmax.f32 %v3671_v40, 0.0  ;;  %v3356_v41 = vadd.f32 %v3300_v62, %v2987_v10 }
 0x353   : > { %v4684_v36 = vsel %vm995_vm2, %v4679_v59, %v10586_v35  ;;  %v5729_v22 = vrot.slane %v5727_v38, 1  ;;  %v5730_v60 = vshll.u32 %v10564_v55, 16  ;;  %v12216_v40 = vrot.slane %v10564_v55, 2 }
 0x354   : > { %v4247_v14 = vor.u32 %v4246_v51, %v4243_v28  ;;  %v3959_v24 = vmul.f32 %v3870_v50, %v3707_v32  ;;  %v3592_v13 = vadd.f32 %v3536_v15, %v3356_v41  ;;  %8071 = vmatmul.msk.bf16.gmra.mxu2 %vm825_vm4, %v4684_v36  ;;  %v12319_v15 = vrot.slane %v10043_v19, 1  ;;  %v10616_v41 = vld [vmem:[#allocation2 + $0x40] sm:$0xff] }
 0x355   : > { %v12218_v38 = vrot.slane %v10603_v26, 1  ;;  %v5732_v28 = vrot.slane %v5730_v60, 2 }
 0x356   : > { %v4248_v10 = vsel %vm9865_vm13, %v4239_v2, %v4247_v14  ;;  %v4015_v31 = vpack.c.bf16 %v3959_v24, %v3959_v24  ;;  %v3632_v4 = vmul.f32 %v10286_v12, %v3592_v13  ;;  %v3539_v61 = vpop.f32.mrf.mxu1  ;;  %v5417_v62 = vsel %vm1444_vm5, %v12319_v15, %v12217_v48  ;;  %v12322_v2 = vld [vmem:[#allocation6_spill] sm:$0xff] }
 0x357   : > { %4450 = vst.msk [vmem:[#allocation2 + $0x5c] sm:$0xf] %vm3973_vm8, %v4248_v10  ;;  %v12320_v13 = vrot.slane %v10484_v25, 2  ;;  %v2988_v36 = vadd.f32 %v10505_v21, %v12322_v2  ;;  %v10618_v59 = vpop.f32.mrf.mxu2  ;;  %v10621_v60 = vor.u32 %v5732_v28, %v5729_v22  ;;  %v3875_v21 = vpop.permute.xlu2 %3874  ;;  %v4249_v2 = vrot.slane %v4247_v14, 4  ;;  %v12326_v14 = vld [vmem:[#allocation5_spill] sm:$0xff] }
 0x358   : > { %v4251_v51 = vshrl.u32 %v4015_v31, 16  ;;  %v4254_v32 = vshll.u32 %v4015_v31, 16  ;;  %v3672_v19 = vadd.f32 %v10304_v44, %v3632_v4  ;;  %v12323_v31 = vrot.slane %v10488_v45, 1 }
 0x359   : > { %v10611_v24 = vsel %vm2409_vm6, %v12320_v13, %v12216_v40  ;;  %v3303_v50 = vpop.f32.mrf.mxu0  ;;  %8188 = vmatmul.msk.bf16.gmra.mxu1 %vm825_vm4, %v5417_v62  ;;  %v10623_v40 = vpop.f32.mrf.mxu3  ;;  %v10633_v62 = vsel %vm496_vm3, %v10541_v63, %v10621_v60 }
 0x35a   : > { %12321 = vst [vmem:[#allocation41_spill] sm:$0xff] %v10611_v24  ;;  %v4253_v10 = vrot.slane %v4251_v51, 6  ;;  %v4256_v15 = vrot.slane %v4254_v32, 7  ;;  %v3708_v13 = vmax.f32 %v3672_v19, 0.0  ;;  %v3357_v48 = vadd.f32 %v3303_v50, %v2988_v36  ;;  %v12325_v32 = vld [vmem:[#allocation7_spill] sm:$0xff] }
 0x35b   : > { %v5056_v4 = vsel %vm1444_vm5, %v12323_v31, %v12218_v38  ;;  %12324 = vst [vmem:[#allocation6_spill] sm:$0xff] %v10633_v62  ;;  %v12219_v36 = vrot.slane %v10616_v41, 3  ;;  %v2628_v19 = vadd.f32 %v12326_v14, %v12325_v32 }
 0x35c   : > { %v4257_v22 = vor.u32 %v4256_v15, %v4253_v10  ;;  %v3960_v28 = vmul.f32 %v3875_v21, %v3708_v13  ;;  %v3593_v51 = vadd.f32 %v3539_v61, %v3357_v48  ;;  %8101 = vmatmul.msk.bf16.gmra.mxu0 %vm825_vm4, %v5056_v4  ;;  %v12327_v61 = vrot.slane %v10536_v0, 3 }
 0x35d   : > { %v2989_v48 = vadd.f32 %v10543_v23, %v2628_v19 }
 0x35e   : > { %v4258_v45 = vsel %vm9865_vm13, %v4249_v2, %v4257_v22  ;;  %v4016_v50 = vpack.c.bf16 %v3960_v28, %v3960_v28  ;;  %v3633_v31 = vmul.f32 %v10286_v12, %v3593_v51  ;;  %v3541_v38 = vpop.f32.mrf.mxu1  ;;  %v10642_v37 = vld [vmem:[#allocation2 + $0x58] sm:$0xff]  ;;  %8084 = vmatmul.msk.bf16.gmra.mxu3 %vm825_vm4, %v10113_v34  ;;  %v10655_v10 = vsel %vm3375_vm9, %v12327_v61, %v12219_v36 }
 0x35f   : > { %v10644_v63 = vld [vmem:[#allocation2 + $0x58] sm:$0xff]  ;;  %4451 = vst.msk [vmem:[#allocation2 + $0x60] sm:$0xf] %vm3973_vm8, %v4258_v45  ;;  %v4689_v2 = vshll.u32 %v10642_v37, 16  ;;  %v10659_v23 = vpop.f32.mrf.mxu2  ;;  %v4685_v28 = vshrl.u32 %v10562_v17, 16  ;;  %v3880_v45 = vpop.permute.xlu0 %3879  ;;  %v4259_v36 = vrot.slane %v4257_v22, 4 }
 0x360   : > { %12328 = vst [vmem:[#allocation7_spill] sm:$0xff] %v10655_v10  ;;  %v4261_v15 = vshrl.u32 %v4016_v50, 16  ;;  %v4264_v13 = vshll.u32 %v4016_v50, 16  ;;  %v3673_v21 = vadd.f32 %v10304_v44, %v3633_v31  ;;  %v5736_v34 = vshrl.u32 %v10644_v63, 16 }
 0x361   : > { %v3305_v4 = vpop.f32.mrf.mxu0  ;;  %v10663_v0 = vpop.f32.mrf.mxu3  ;;  %v4687_v50 = vor.u32 %v4685_v28, %v10586_v35  ;;  %v10666_v61 = vrot.slane %v4689_v2, 1  ;;  %v12221_v31 = vrot.slane %v10190_v43, 1  ;;  %v10683_v28 = vld [vmem:[#allocation2 + $0x20] sm:$0xff] }
 0x362   : > { %v4263_v51 = vrot.slane %v4261_v15, 6  ;;  %v4266_v32 = vrot.slane %v4264_v13, 7  ;;  %v3709_v14 = vmax.f32 %v3673_v21, 0.0  ;;  %v3358_v19 = vadd.f32 %v3305_v4, %v2989_v48 }
 0x363   : > { %v4692_v29 = vsel %vm995_vm2, %v4687_v50, %v10666_v61  ;;  %v5738_v15 = vrot.slane %v5736_v34, 1  ;;  %v5739_v13 = vshll.u32 %v10644_v63, 16  ;;  %v12220_v21 = vrot.slane %v10644_v63, 2 }
 0x364   : > { %v4267_v10 = vor.u32 %v4266_v32, %v4263_v51  ;;  %v3961_v33 = vmul.f32 %v3880_v45, %v3709_v14  ;;  %v3594_v24 = vadd.f32 %v3541_v38, %v3358_v19  ;;  %8072 = vmatmul.msk.bf16.gmra.mxu2 %vm825_vm4, %v4692_v29  ;;  %v12329_v38 = vrot.slane %v10121_v9, 1  ;;  %v10696_v19 = vld [vmem:[#allocation2 + $0x48] sm:$0xff] }
 0x365   : > { %v12222_v34 = vrot.slane %v10683_v28, 1  ;;  %v5741_v51 = vrot.slane %v5739_v13, 2 }
 0x366   : > { %v4268_v48 = vsel %vm9865_vm13, %v4259_v36, %v4267_v10  ;;  %v4017_v35 = vpack.c.bf16 %v3961_v33, %v3961_v33  ;;  %v3634_v2 = vmul.f32 %v10286_v12, %v3594_v24  ;;  %v3544_v22 = vpop.f32.mrf.mxu1  ;;  %v5419_v4 = vsel %vm1444_vm5, %v12329_v38, %v12221_v31  ;;  %v12332_v24 = vld [vmem:[#allocation9_spill] sm:$0xff] }
 0x367   : > { %4452 = vst.msk [vmem:[#allocation2 + $0x64] sm:$0xf] %vm3973_vm8, %v4268_v48  ;;  %v12330_v33 = vrot.slane %v10564_v55, 2  ;;  %v2990_v36 = vadd.f32 %v10583_v6, %v12332_v24  ;;  %v10698_v50 = vpop.f32.mrf.mxu2  ;;  %v10701_v13 = vor.u32 %v5741_v51, %v5738_v15  ;;  %v3885_v6 = vpop.permute.xlu1 %3884  ;;  %v4269_v24 = vrot.slane %v4267_v10, 4  ;;  %v12336_v10 = vld [vmem:[#allocation8_spill] sm:$0xff] }
 0x368   : > { %v4271_v32 = vshrl.u32 %v4017_v35, 16  ;;  %v4274_v14 = vshll.u32 %v4017_v35, 16  ;;  %v3674_v9 = vadd.f32 %v10304_v44, %v3634_v2  ;;  %v12333_v35 = vrot.slane %v10603_v26, 1 }
 0x369   : > { %v10691_v29 = vsel %vm2409_vm6, %v12330_v33, %v12220_v21  ;;  %v3308_v45 = vpop.f32.mrf.mxu0  ;;  %8189 = vmatmul.msk.bf16.gmra.mxu1 %vm825_vm4, %v5419_v4  ;;  %v10703_v21 = vpop.f32.mrf.mxu3  ;;  %v10713_v4 = vsel %vm496_vm3, %v10621_v60, %v10701_v13 }
 0x36a   : > { %12331 = vst [vmem:[#allocation5_spill] sm:$0xff] %v10691_v29  ;;  %v4273_v48 = vrot.slane %v4271_v32, 6  ;;  %v4276_v38 = vrot.slane %v4274_v14, 7  ;;  %v3710_v33 = vmax.f32 %v3674_v9, 0.0  ;;  %v3359_v31 = vadd.f32 %v3308_v45, %v2990_v36  ;;  %v12335_v14 = vld [vmem:[#allocation10_spill] sm:$0xff] }
 0x36b   : > { %v5058_v2 = vsel %vm1444_vm5, %v12333_v35, %v12222_v34  ;;  %12334 = vst [vmem:[#allocation9_spill] sm:$0xff] %v10713_v4  ;;  %v12223_v36 = vrot.slane %v10696_v19, 3  ;;  %v2630_v9 = vadd.f32 %v12336_v10, %v12335_v14 }
 0x36c   : > { %v4277_v15 = vor.u32 %v4276_v38, %v4273_v48  ;;  %v3962_v51 = vmul.f32 %v3885_v6, %v3710_v33  ;;  %v3595_v32 = vadd.f32 %v3544_v22, %v3359_v31  ;;  %8102 = vmatmul.msk.bf16.gmra.mxu0 %vm825_vm4, %v5058_v2  ;;  %v12337_v22 = vrot.slane %v10616_v41, 3 }
 0x36d   : > { %v2991_v31 = vadd.f32 %v10623_v40, %v2630_v9 }
 0x36e   : > { %v4278_v26 = vsel %vm9865_vm13, %v4269_v24, %v4277_v15  ;;  %v4018_v45 = vpack.c.bf16 %v3962_v51, %v3962_v51  ;;  %v3635_v35 = vmul.f32 %v10286_v12, %v3595_v32  ;;  %v3546_v34 = vpop.f32.mrf.mxu1  ;;  %v10722_v29 = vld [vmem:[#allocation2 + $0x60] sm:$0xff]  ;;  %8085 = vmatmul.msk.bf16.gmra.mxu3 %vm825_vm4, %v10188_v30  ;;  %v10735_v48 = vsel %vm3375_vm9, %v12337_v22, %v12223_v36 }
 0x36f   : > { %v10724_v60 = vld [vmem:[#allocation2 + $0x60] sm:$0xff]  ;;  %4453 = vst.msk [vmem:[#allocation2 + $0x68] sm:$0xf] %vm3973_vm8, %v4278_v26  ;;  %v4697_v24 = vshll.u32 %v10722_v29, 16  ;;  %v10739_v40 = vpop.f32.mrf.mxu2  ;;  %v4693_v51 = vshrl.u32 %v10642_v37, 16  ;;  %v3890_v26 = vpop.permute.xlu2 %3889  ;;  %v4279_v36 = vrot.slane %v4277_v15, 4 }
 0x370   : > { %12338 = vst [vmem:[#allocation10_spill] sm:$0xff] %v10735_v48  ;;  %v4281_v38 = vshrl.u32 %v4018_v45, 16  ;;  %v4284_v33 = vshll.u32 %v4018_v45, 16  ;;  %v3675_v6 = vadd.f32 %v10304_v44, %v3635_v35  ;;  %v5745_v30 = vshrl.u32 %v10724_v60, 16 }
 0x371   : > { %v3310_v2 = vpop.f32.mrf.mxu0  ;;  %v10743_v41 = vpop.f32.mrf.mxu3  ;;  %v4695_v45 = vor.u32 %v4693_v51, %v10666_v61  ;;  %v10746_v22 = vrot.slane %v4697_v24, 1  ;;  %v12225_v35 = vrot.slane %v10257_v27, 1  ;;  %v10763_v51 = vld [vmem:[#allocation2 + $0x28] sm:$0xff] }
 0x372   : > { %v4283_v32 = vrot.slane %v4281_v38, 6  ;;  %v4286_v14 = vrot.slane %v4284_v33, 7  ;;  %v3711_v10 = vmax.f32 %v3675_v6, 0.0  ;;  %v3360_v9 = vadd.f32 %v3310_v2, %v2991_v31 }
 0x373   : > { %v4700_v4 = vsel %vm995_vm2, %v4695_v45, %v10746_v22  ;;  %v5747_v38 = vrot.slane %v5745_v30, 1  ;;  %v5748_v33 = vshll.u32 %v10724_v60, 16  ;;  %v12224_v6 = vrot.slane %v10724_v60, 2 }
 0x374   : > { %v4287_v48 = vor.u32 %v4286_v14, %v4283_v32  ;;  %v3963_v46 = vmul.f32 %v3890_v26, %v3711_v10  ;;  %v3596_v58 = vadd.f32 %v3546_v34, %v3360_v9  ;;  %8073 = vmatmul.msk.bf16.gmra.mxu2 %vm825_vm4, %v4700_v4  ;;  %v12339_v34 = vrot.slane %v10190_v43, 1  ;;  %v12342_v4 = vld [vmem:[#allocation12_spill] sm:$0xff] }
 0x375   : > { %v12226_v30 = vrot.slane %v10763_v51, 1  ;;  %v5750_v32 = vrot.slane %v5748_v33, 2  ;;  %v10776_v9 = vld [vmem:[#allocation2 + $0x50] sm:$0xff] }
 0x376   : > { %v4288_v31 = vsel %vm9865_vm13, %v4279_v36, %v4287_v48  ;;  %v4019_v61 = vpack.c.bf16 %v3963_v46, %v3963_v46  ;;  %v3636_v24 = vmul.f32 %v10286_v12, %v3596_v58  ;;  %v3549_v15 = vpop.f32.mrf.mxu1  ;;  %v5421_v2 = vsel %vm1444_vm5, %v12339_v34, %v12225_v35 }
 0x377   : > { %4454 = vst.msk [vmem:[#allocation2 + $0x6c] sm:$0xf] %vm3973_vm8, %v4288_v31  ;;  %v12340_v58 = vrot.slane %v10644_v63, 2  ;;  %v2992_v36 = vadd.f32 %v10663_v0, %v12342_v4  ;;  %v10778_v45 = vpop.f32.mrf.mxu2  ;;  %v10781_v33 = vor.u32 %v5750_v32, %v5747_v38  ;;  %v3895_v0 = vpop.permute.xlu0 %3894  ;;  %v4289_v4 = vrot.slane %v4287_v48, 4  ;;  %v12346_v48 = vld [vmem:[#allocation11_spill] sm:$0xff] }
 0x378   : > { %v4291_v14 = vshrl.u32 %v4019_v61, 16  ;;  %v4294_v10 = vshll.u32 %v4019_v61, 16  ;;  %v3676_v43 = vadd.f32 %v10304_v44, %v3636_v24  ;;  %v12343_v61 = vrot.slane %v10683_v28, 1 }
 0x379   : > { %v10771_v46 = vsel %vm2409_vm6, %v12340_v58, %v12224_v6  ;;  %v3313_v26 = vpop.f32.mrf.mxu0  ;;  %8190 = vmatmul.msk.bf16.gmra.mxu1 %vm825_vm4, %v5421_v2  ;;  %v10783_v6 = vpop.f32.mrf.mxu3  ;;  %v10793_v2 = vsel %vm496_vm3, %v10701_v13, %v10781_v33 }
 0x37a   : > { %12341 = vst [vmem:[#allocation8_spill] sm:$0xff] %v10771_v46  ;;  %v4293_v31 = vrot.slane %v4291_v14, 6  ;;  %v4296_v34 = vrot.slane %v4294_v10, 7  ;;  %v3712_v58 = vmax.f32 %v3676_v43, 0.0  ;;  %v3361_v35 = vadd.f32 %v3313_v26, %v2992_v36  ;;  %v12345_v10 = vld [vmem:[#allocation13_spill] sm:$0xff] }
 0x37b   : > { %v5060_v24 = vsel %vm1444_vm5, %v12343_v61, %v12226_v30  ;;  %12344 = vst [vmem:[#allocation12_spill] sm:$0xff] %v10793_v2  ;;  %v12227_v36 = vrot.slane %v10776_v9, 3  ;;  %v2632_v43 = vadd.f32 %v12346_v48, %v12345_v10 }
 0x37c   : > { %v4297_v38 = vor.u32 %v4296_v34, %v4293_v31  ;;  %v3964_v32 = vmul.f32 %v3895_v0, %v3712_v58  ;;  %v3597_v14 = vadd.f32 %v3549_v15, %v3361_v35  ;;  %8103 = vmatmul.msk.bf16.gmra.mxu0 %vm825_vm4, %v5060_v24  ;;  %v12347_v15 = vrot.slane %v10696_v19, 3 }
 0x37d   : > { %v2993_v35 = vadd.f32 %v10703_v21, %v2632_v43 }
 0x37e   : > { %v4298_v28 = vsel %vm9865_vm13, %v4289_v4, %v4297_v38  ;;  %v4020_v26 = vpack.c.bf16 %v3964_v32, %v3964_v32  ;;  %v3637_v61 = vmul.f32 %v10286_v12, %v3597_v14  ;;  %v3551_v30 = vpop.f32.mrf.mxu1  ;;  %v10802_v46 = vld [vmem:[#allocation2 + $0x68] sm:$0xff]  ;;  %8086 = vmatmul.msk.bf16.gmra.mxu3 %vm825_vm4, %v10255_v11  ;;  %v10815_v31 = vsel %vm3375_vm9, %v12347_v15, %v12227_v36 }
 0x37f   : > { %v10804_v13 = vld [vmem:[#allocation2 + $0x68] sm:$0xff]  ;;  %4455 = vst.msk [vmem:[#allocation2 + $0x70] sm:$0xf] %vm3973_vm8, %v4298_v28  ;;  %v4705_v4 = vshll.u32 %v10802_v46, 16  ;;  %v10819_v21 = vpop.f32.mrf.mxu2  ;;  %v4701_v32 = vshrl.u32 %v10722_v29, 16  ;;  %v3900_v28 = vpop.permute.xlu1 %3899  ;;  %v4299_v36 = vrot.slane %v4297_v38, 4 }
 0x380   : > { %12348 = vst [vmem:[#allocation13_spill] sm:$0xff] %v10815_v31  ;;  %v4301_v34 = vshrl.u32 %v4020_v26, 16  ;;  %v4304_v58 = vshll.u32 %v4020_v26, 16  ;;  %v3677_v0 = vadd.f32 %v10304_v44, %v3637_v61  ;;  %v5754_v11 = vshrl.u32 %v10804_v13, 16 }
 0x381   : > { %v3315_v24 = vpop.f32.mrf.mxu0  ;;  %v10823_v19 = vpop.f32.mrf.mxu3  ;;  %v4703_v26 = vor.u32 %v4701_v32, %v10746_v22  ;;  %v10826_v15 = vrot.slane %v4705_v4, 1  ;;  %v12231_v61 = vrot.slane %v10342_v39, 1  ;;  %v10843_v32 = vld [vmem:[#allocation2 + $0x30] sm:$0xff] }
 0x382   : > { %v4303_v14 = vrot.slane %v4301_v34, 6  ;;  %v4306_v10 = vrot.slane %v4304_v58, 7  ;;  %v3713_v48 = vmax.f32 %v3677_v0, 0.0  ;;  %v3362_v43 = vadd.f32 %v3315_v24, %v2993_v35 }
 0x383   : > { %v4708_v47 = vsel %vm995_vm2, %v4703_v26, %v10826_v15  ;;  %v5756_v34 = vrot.slane %v5754_v11, 1  ;;  %v5757_v58 = vshll.u32 %v10804_v13, 16  ;;  %v12228_v0 = vrot.slane %v10804_v13, 2 }
 0x384   : > { %v4307_v31 = vor.u32 %v4306_v10, %v4303_v14  ;;  %v3965_v2 = vmul.f32 %v3900_v28, %v3713_v48  ;;  %v3598_v62 = vadd.f32 %v3551_v30, %v3362_v43  ;;  %8074 = vmatmul.msk.bf16.gmra.mxu2 %vm825_vm4, %v4708_v47  ;;  %v12349_v30 = vrot.slane %v10257_v27, 1  ;;  %v10856_v48 = vld [vmem:[#allocation2 + $0x58] sm:$0xff] }
 0x385   : > { %v12230_v11 = vrot.slane %v10843_v32, 1  ;;  %v5759_v14 = vrot.slane %v5757_v58, 2 }
 0x386   : > { %v4308_v35 = vsel %vm9865_vm13, %v4299_v36, %v4307_v31  ;;  %v4021_v22 = vpack.c.bf16 %v3965_v2, %v3965_v2  ;;  %v3638_v4 = vmul.f32 %v10286_v12, %v3598_v62  ;;  %v3554_v38 = vpop.f32.mrf.mxu1  ;;  %v5423_v24 = vsel %vm1444_vm5, %v12349_v30, %v12231_v61  ;;  %v12352_v62 = vld [vmem:[#allocation15_spill] sm:$0xff] }
 0x387   : > { %4456 = vst.msk [vmem:[#allocation2 + $0x74] sm:$0xf] %vm3973_vm8, %v4308_v35  ;;  %v12350_v12 = vrot.slane %v10724_v60, 2  ;;  %v2994_v2 = vadd.f32 %v10743_v41, %v12352_v62  ;;  %v10858_v28 = vpop.f32.mrf.mxu2  ;;  %v10861_v26 = vor.u32 %v5759_v14, %v5756_v34  ;;  %v3905_v41 = vpop.permute.xlu2 %3904  ;;  %v4309_v62 = vrot.slane %v4307_v31, 4  ;;  %v12356_v31 = vld [vmem:[#allocation14_spill] sm:$0xff] }
 0x388   : > { %v4311_v36 = vshrl.u32 %v4021_v22, 16  ;;  %v4314_v10 = vshll.u32 %v4021_v22, 16  ;;  %v3678_v27 = vadd.f32 %v10304_v44, %v3638_v4  ;;  %v12353_v44 = vrot.slane %v10763_v51, 1 }
 0x389   : > { %v10851_v47 = vsel %vm2409_vm6, %v12350_v12, %v12228_v0  ;;  %v3318_v43 = vpop.f32.mrf.mxu0  ;;  %8191 = vmatmul.msk.bf16.gmra.mxu1 %vm825_vm4, %v5423_v24  ;;  %v10863_v12 = vpop.f32.mrf.mxu3  ;;  %v10873_v4 = vsel %vm496_vm3, %v10781_v33, %v10861_v26 }
 0x38a   : > { %12351 = vst [vmem:[#allocation11_spill] sm:$0xff] %v10851_v47  ;;  %v4313_v58 = vrot.slane %v4311_v36, 6  ;;  %v4316_v35 = vrot.slane %v4314_v10, 7  ;;  %v3714_v30 = vmax.f32 %v3678_v27, 0.0  ;;  %v3363_v0 = vadd.f32 %v3318_v43, %v2994_v2  ;;  %v12355_v36 = vld [vmem:[#allocation16_spill] sm:$0xff] }
 0x38b   : > { %v5062_v22 = vsel %vm1444_vm5, %v12353_v44, %v12230_v11  ;;  %12354 = vst [vmem:[#allocation15_spill] sm:$0xff] %v10873_v4  ;;  %v12229_v2 = vrot.slane %v10856_v48, 3  ;;  %v2634_v10 = vadd.f32 %v12356_v31, %v12355_v36  ;;  %v10884_v43 = vld [vmem:[%s12179_s3] ss:$0 sm:$0xff]  ;;  %v4709_v36 = vshrl.u32 %v10802_v46, 16 }
 0x38c   : > { %v4317_v34 = vor.u32 %v4316_v35, %v4313_v58  ;;  %v3966_v24 = vmul.f32 %v3905_v41, %v3714_v30  ;;  %v3599_v14 = vadd.f32 %v3554_v38, %v3363_v0  ;;  %8104 = vmatmul.msk.bf16.gmra.mxu0 %vm825_vm4, %v5062_v22  ;;  %v12357_v30 = vrot.slane %v10776_v9, 3  ;;  %v10905_v22 = vld [vmem:[%s12180_s4] ss:$0 sm:$0xff] }
 0x38d   : > { %v2995_v35 = vadd.f32 %v10783_v6, %v2634_v10  ;;  %v4711_v11 = vor.u32 %v4709_v36, %v10826_v15 }
 0x38e   : > { %v4318_v51 = vsel %vm9865_vm13, %v4309_v62, %v4317_v34  ;;  %v4022_v27 = vpack.c.bf16 %v3966_v24, %v3966_v24  ;;  %v3639_v33 = vmul.f32 %v10884_v43, %v3599_v14  ;;  %v3556_v58 = vpop.f32.mrf.mxu1  ;;  %v10887_v0 = vld [vmem:[#allocation2 + $0x70] sm:$0xff]  ;;  %8087 = vmatmul.msk.bf16.gmra.mxu3 %vm825_vm4, %v10340_v56  ;;  %v10900_v41 = vsel %vm3375_vm9, %v12357_v30, %v12229_v2  ;;  %v3910_v2 = vpop.permute.xlu0 %3909 }
 0x38f   : > { %v10889_v38 = vld [vmem:[#allocation2 + $0x70] sm:$0xff]  ;;  %4457 = vst.msk [vmem:[#allocation2 + $0x78] sm:$0xf] %vm3973_vm8, %v4318_v51  ;;  %v4713_v24 = vshll.u32 %v10887_v0, 16  ;;  %v10909_v56 = vpop.f32.mrf.mxu2 }
 0x390   : > { %12358 = vst [vmem:[#allocation16_spill] sm:$0xff] %v10900_v41  ;;  %v4321_v62 = vshrl.u32 %v4022_v27, 16  ;;  %v4324_v44 = vshll.u32 %v4022_v27, 16  ;;  %v3679_v6 = vadd.f32 %v10905_v22, %v3639_v33  ;;  %v5763_v9 = vshrl.u32 %v10889_v38, 16 }
 0x391   : > { %v3320_v14 = vpop.f32.mrf.mxu0  ;;  %v10913_v27 = vpop.f32.mrf.mxu3  ;;  %v10916_v61 = vrot.slane %v4713_v24, 1  ;;  %v12233_v33 = vrot.slane %v10411_v5, 1  ;;  %v4319_v41 = vrot.slane %v4317_v34, 4 }
 0x392   : > { %v4323_v31 = vrot.slane %v4321_v62, 6  ;;  %v4326_v10 = vrot.slane %v4324_v44, 7  ;;  %v3715_v51 = vmax.f32 %v3679_v6, 0.0  ;;  %v3364_v30 = vadd.f32 %v3320_v14, %v2995_v35 }
 0x393   : > { %v4716_v16 = vsel %vm995_vm2, %v4711_v11, %v10916_v61  ;;  %v5765_v62 = vrot.slane %v5763_v9, 1  ;;  %v5766_v44 = vshll.u32 %v10889_v38, 16  ;;  %v12234_v6 = vrot.slane %v10889_v38, 2 }
 0x394   : > { %v4327_v47 = vor.u32 %v4326_v10, %v4323_v31  ;;  %v3967_v4 = vmul.f32 %v3910_v2, %v3715_v51  ;;  %v3600_v42 = vadd.f32 %v3556_v58, %v3364_v30  ;;  %8075 = vmatmul.msk.bf16.gmra.mxu2 %vm825_vm4, %v4716_v16  ;;  %v12359_v11 = vrot.slane %v10342_v39, 1  ;;  %v10933_v58 = vld [vmem:[#allocation2 + $0x38] sm:$0xff] }
 0x395   : > { %v5768_v36 = vrot.slane %v5766_v44, 2 }
 0x396   : > { %v4328_v35 = vsel %vm9865_vm13, %v4319_v41, %v4327_v47  ;;  %v4023_v15 = vpack.c.bf16 %v3967_v4, %v3967_v4  ;;  %v3640_v24 = vmul.f32 %v10884_v43, %v3600_v42  ;;  %v3559_v34 = vpop.f32.mrf.mxu1  ;;  %v5425_v2 = vsel %vm1444_vm5, %v12359_v11, %v12233_v33  ;;  %v10936_v41 = vld [vmem:[#allocation2 + $0x60] sm:$0xff]  ;;  %v12362_v4 = vld [vmem:[#allocation17_spill] sm:$0xff] }
 0x397   : > { %4458 = vst.msk [vmem:[#allocation2 + $0x7c] sm:$0xf] %vm3973_vm8, %v4328_v35  ;;  %v12360_v42 = vrot.slane %v10804_v13, 2  ;;  %v2996_v9 = vadd.f32 %v10823_v19, %v12362_v4  ;;  %v10948_v30 = vpop.f32.mrf.mxu2  ;;  %v10951_v44 = vor.u32 %v5768_v36, %v5765_v62  ;;  %v12363_v19 = vrot.slane %v10933_v58, 1 }
 0x398   : > { %v4331_v39 = vshrl.u32 %v4023_v15, 16  ;;  %v4334_v31 = vshll.u32 %v4023_v15, 16  ;;  %v3680_v10 = vadd.f32 %v10905_v22, %v3640_v24  ;;  %v12364_v15 = vrot.slane %v10843_v32, 1 }
 0x399   : > { %v10943_v16 = vsel %vm2409_vm6, %v12360_v42, %v12234_v6  ;;  %v3323_v51 = vpop.f32.mrf.mxu0  ;;  %8192 = vmatmul.msk.bf16.gmra.mxu1 %vm825_vm4, %v5425_v2  ;;  %v10953_v14 = vpop.f32.mrf.mxu3  ;;  %v10963_v4 = vsel %vm496_vm3, %v10861_v26, %v10951_v44  ;;  %v12235_v62 = vrot.slane %v10936_v41, 3  ;;  %v4329_v2 = vrot.slane %v4327_v47, 4 }
 0x39a   : > { %12361 = vst [vmem:[#allocation14_spill] sm:$0xff] %v10943_v16  ;;  %v4333_v35 = vrot.slane %v4331_v39, 6  ;;  %v4336_v11 = vrot.slane %v4334_v31, 7  ;;  %v3716_v33 = vmax.f32 %v3680_v10, 0.0  ;;  %v3365_v42 = vadd.f32 %v3323_v51, %v2996_v9  ;;  %v3915_v6 = vpop.permute.xlu1 %3914  ;;  %v12366_v9 = vld [vmem:[#allocation19_spill] sm:$0xff]  ;;  %v12367_v10 = vld [vmem:[#allocation18_spill] sm:$0xff] }
 0x39b   : > { %v5064_v24 = vsel %vm1444_vm5, %v12364_v15, %v12363_v19  ;;  %12365 = vst [vmem:[#allocation17_spill] sm:$0xff] %v10963_v4  ;;  %v2636_v51 = vadd.f32 %v12367_v10, %v12366_v9  ;;  %v12368_v32 = vrot.slane %v10856_v48, 3 }
 0x39c   : > { %v4337_v36 = vor.u32 %v4336_v11, %v4333_v35  ;;  %v3968_v39 = vmul.f32 %v3915_v6, %v3716_v33  ;;  %v3601_v31 = vadd.f32 %v3559_v34, %v3365_v42  ;;  %8105 = vmatmul.msk.bf16.gmra.mxu0 %vm825_vm4, %v5064_v24 }
 0x39d   : > { %v10974_v19 = vsel %vm3375_vm9, %v12368_v32, %v12235_v62  ;;  %v2997_v35 = vadd.f32 %v10863_v12, %v2636_v51 }
 0x39e   : > { %12369 = vst [vmem:[#allocation19_spill] sm:$0xff] %v10974_v19  ;;  %v4338_v26 = vsel %vm9865_vm13, %v4329_v2, %v4337_v36  ;;  %v4024_v15 = vpack.c.bf16 %v3968_v39, %v3968_v39  ;;  %v3641_v47 = vmul.f32 %v10884_v43, %v3601_v31  ;;  %v3561_v33 = vpop.f32.mrf.mxu1  ;;  %v10979_v6 = vld [vmem:[#allocation2 + $0x78] sm:$0xff]  ;;  %8088 = vmatmul.msk.bf16.gmra.mxu3 %vm825_vm4, %v10409_v8  ;;  %v4717_v31 = vshrl.u32 %v10887_v0, 16  ;;  %v3920_v8 = vpop.permute.xlu2 %3919 }
 0x39f   : > { %v10981_v34 = vld [vmem:[#allocation2 + $0x78] sm:$0xff]  ;;  %4459 = vst.msk [vmem:[#allocation2 + $0x80] sm:$0xf] %vm3973_vm8, %v4338_v26  ;;  %v4721_v24 = vshll.u32 %v10979_v6, 16  ;;  %v10989_v39 = vpop.f32.mrf.mxu2  ;;  %v4339_v19 = vrot.slane %v4337_v36, 4  ;;  %v12370_v36 = vrot.slane %v10411_v5, 1 }
 0x3a0   : > { %v4341_v48 = vshrl.u32 %v4024_v15, 16  ;;  %v4344_v11 = vshll.u32 %v4024_v15, 16  ;;  %v3681_v42 = vadd.f32 %v10905_v22, %v3641_v47  ;;  %v5772_v9 = vshrl.u32 %v10981_v34, 16 }
 0x3a1   : > { %v3325_v2 = vpop.f32.mrf.mxu0  ;;  %v10993_v32 = vpop.f32.mrf.mxu3  ;;  %v4719_v15 = vor.u32 %v4717_v31, %v10916_v61  ;;  %v10996_v62 = vrot.slane %v4721_v24, 1  ;;  %v12236_v47 = vrot.slane %v10484_v25, 1 }
 0x3a2   : > { %v4343_v10 = vrot.slane %v4341_v48, 6  ;;  %v4346_v12 = vrot.slane %v4344_v11, 7  ;;  %v3717_v51 = vmax.f32 %v3681_v42, 0.0  ;;  %v3366_v26 = vadd.f32 %v3325_v2, %v2997_v35  ;;  %v11012_v2 = vld [vmem:[#allocation2 + $0x40] sm:$0xff] }
 0x3a3   : > { %v4724_v54 = vsel %vm995_vm2, %v4719_v15, %v10996_v62  ;;  %v5774_v48 = vrot.slane %v5772_v9, 1  ;;  %v5775_v11 = vshll.u32 %v10981_v34, 16  ;;  %v12238_v31 = vrot.slane %v11012_v2, 1 }
 0x3a4   : > { %v4347_v16 = vor.u32 %v4346_v12, %v4343_v10  ;;  %v3969_v4 = vmul.f32 %v3920_v8, %v3717_v51  ;;  %v3602_v49 = vadd.f32 %v3561_v33, %v3366_v26  ;;  %8076 = vmatmul.msk.bf16.gmra.mxu2 %vm825_vm4, %v4724_v54  ;;  %v5427_v33 = vsel %vm1444_vm5, %v12370_v36, %v12236_v47  ;;  %v3925_v47 = vpop.permute.xlu0 %3924 }
 0x3a5   : > { %v5777_v9 = vrot.slane %v5775_v11, 2 }
 0x3a6   : > { %v4348_v35 = vsel %vm9865_vm13, %v4339_v19, %v4347_v16  ;;  %v4025_v42 = vpack.c.bf16 %v3969_v4, %v3969_v4  ;;  %v3642_v61 = vmul.f32 %v10884_v43, %v3602_v49  ;;  %v3564_v24 = vpop.f32.mrf.mxu1  ;;  %v11015_v19 = vld [vmem:[#allocation2 + $0x68] sm:$0xff]  ;;  %v12371_v4 = vld [vmem:[#allocation21_spill] sm:$0xff] }
 0x3a7   : > { %4460 = vst.msk [vmem:[#allocation2 + $0x84] sm:$0xf] %vm3973_vm8, %v4348_v35  ;;  %v2998_v49 = vadd.f32 %v10913_v27, %v12371_v4  ;;  %v11020_v26 = vpop.f32.mrf.mxu2  ;;  %v11023_v5 = vor.u32 %v5777_v9, %v5774_v48  ;;  %v12373_v27 = vrot.slane %v10933_v58, 1  ;;  %v12237_v48 = vrot.slane %v11015_v19, 3 }
 0x3a8   : > { %v4351_v54 = vshrl.u32 %v4025_v42, 16  ;;  %v4354_v10 = vshll.u32 %v4025_v42, 16  ;;  %v3682_v12 = vadd.f32 %v10905_v22, %v3642_v61  ;;  %12372 = vst [vmem:[#allocation18_spill] sm:$0xff] %v11020_v26  ;;  %v12376_v58 = vrot.slane %v10936_v41, 3 }
 0x3a9   : > { %v3328_v51 = vpop.f32.mrf.mxu0  ;;  %8193 = vmatmul.msk.bf16.gmra.mxu1 %vm825_vm4, %v5427_v33  ;;  %v11025_v11 = vpop.f32.mrf.mxu3  ;;  %v5066_v42 = vsel %vm1444_vm5, %v12373_v27, %v12238_v31  ;;  %v11035_v61 = vsel %vm496_vm3, %v10951_v44, %v11023_v5  ;;  %v4349_v33 = vrot.slane %v4347_v16, 4 }
 0x3aa   : > { %v4353_v8 = vrot.slane %v4351_v54, 6  ;;  %v4356_v15 = vrot.slane %v4354_v10, 7  ;;  %v3718_v35 = vmax.f32 %v3682_v12, 0.0  ;;  %v3367_v36 = vadd.f32 %v3328_v51, %v2998_v49  ;;  %12374 = vst [vmem:[#allocation21_spill] sm:$0xff] %v11035_v61  ;;  %v12375_v49 = vld [vmem:[#allocation22_spill] sm:$0xff] }
 0x3ab   : > { %v2638_v10 = vadd.f32 %v10501_v18, %v12375_v49  ;;  %v11046_v12 = vsel %vm3375_vm9, %v12376_v58, %v12237_v48 }
 0x3ac   : > { %v4357_v9 = vor.u32 %v4356_v15, %v4353_v8  ;;  %v3970_v4 = vmul.f32 %v3925_v47, %v3718_v35  ;;  %v3603_v54 = vadd.f32 %v3564_v24, %v3367_v36  ;;  %8106 = vmatmul.msk.bf16.gmra.mxu0 %vm825_vm4, %v5066_v42  ;;  %12377 = vst [vmem:[#allocation22_spill] sm:$0xff] %v11046_v12 }
 0x3ad   : > { %v2999_v18 = vadd.f32 %v10953_v14, %v2638_v10 }
 0x3ae   : > { %v4358_v44 = vsel %vm9865_vm13, %v4349_v33, %v4357_v9  ;;  %v4026_v51 = vpack.c.bf16 %v3970_v4, %v3970_v4  ;;  %v3643_v16 = vmul.f32 %v10884_v43, %v3603_v54  ;;  %v3566_v47 = vpop.f32.mrf.mxu1  ;;  %v11051_v24 = vld [vmem:[#allocation2 + $0x80] sm:$0xff]  ;;  %8089 = vmatmul.msk.bf16.gmra.mxu3 %vm825_vm4, %v10482_v1  ;;  %v4725_v33 = vshrl.u32 %v10979_v6, 16  ;;  %v3930_v1 = vpop.permute.xlu1 %3929 }
 0x3af   : > { %v11053_v8 = vld [vmem:[#allocation2 + $0x80] sm:$0xff]  ;;  %4461 = vst.msk [vmem:[#allocation2 + $0x88] sm:$0xf] %vm3973_vm8, %v4358_v44  ;;  %v4729_v36 = vshll.u32 %v11051_v24, 16  ;;  %v11061_v42 = vpop.f32.mrf.mxu2  ;;  %v4359_v48 = vrot.slane %v4357_v9, 4  ;;  %v12379_v9 = vrot.slane %v10484_v25, 1 }
 0x3b0   : > { %v4361_v41 = vshrl.u32 %v4026_v51, 16  ;;  %v4364_v15 = vshll.u32 %v4026_v51, 16  ;;  %v3683_v35 = vadd.f32 %v10905_v22, %v3643_v16  ;;  %12378 = vst [vmem:[#allocation42_spill] sm:$0xff] %v11061_v42  ;;  %v5781_v4 = vshrl.u32 %v11053_v8, 16 }
 0x3b1   : > { %v3330_v27 = vpop.f32.mrf.mxu0  ;;  %v11065_v10 = vpop.f32.mrf.mxu3  ;;  %v4727_v44 = vor.u32 %v4725_v33, %v10996_v62  ;;  %v4731_v51 = vrot.slane %v4729_v36, 1  ;;  %v5428_v16 = vrot.slane %v10564_v55, 1  ;;  %v11081_v36 = vld [vmem:[#allocation2 + $0x48] sm:$0xff]  ;;  %v8484_v55 = vld [vmem:[#allocation2 + $0x78] sm:$0xff] }
 0x3b2   : > { %v4363_v54 = vrot.slane %v4361_v41, 6  ;;  %v4366_v14 = vrot.slane %v4364_v15, 7  ;;  %v3719_v49 = vmax.f32 %v3683_v35, 0.0  ;;  %v3368_v58 = vadd.f32 %v3330_v27, %v2999_v18 }
 0x3b3   : > { %v4732_v42 = vsel %vm995_vm2, %v4727_v44, %v4731_v51  ;;  %v5783_v26 = vrot.slane %v5781_v4, 1  ;;  %v5784_v41 = vshll.u32 %v11053_v8, 16  ;;  %v5067_v27 = vrot.slane %v11081_v36, 1 }
 0x3b4   : > { %v4367_v31 = vor.u32 %v4366_v14, %v4363_v54  ;;  %v3971_v12 = vmul.f32 %v3930_v1, %v3719_v49  ;;  %v3604_v61 = vadd.f32 %v3566_v47, %v3368_v58  ;;  %8077 = vmatmul.msk.bf16.gmra.mxu2 %vm825_vm4, %v4732_v42  ;;  %v5429_v47 = vsel %vm1444_vm5, %v12379_v9, %v5428_v16  ;;  %v11092_v54 = vld [vmem:[#allocation2 + $0x70] sm:$0xff] }
 0x3b5   : > { %v5786_v33 = vrot.slane %v5784_v41, 2  ;;  %v12239_v9 = vrot.slane %v11092_v54, 3  ;;  %v12384_v36 = vrot.slane %v10889_v38, 2 }
 0x3b6   : > { %v4368_v15 = vsel %vm9865_vm13, %v4359_v48, %v4367_v31  ;;  %v4027_v35 = vpack.c.bf16 %v3971_v12, %v3971_v12  ;;  %v3644_v18 = vmul.f32 %v10884_v43, %v3604_v61  ;;  %v5514_v62 = vpop.f32.mrf.mxu1  ;;  %v4955_v48 = vadd.f32 %v10993_v32, %v10538_v3  ;;  %v3935_v3 = vpop.permute.xlu2 %3934 }
 0x3b7   : > { %4462 = vst.msk [vmem:[#allocation2 + $0x8c] sm:$0xf] %vm3973_vm8, %v4368_v15  ;;  %v11087_v42 = vpop.f32.mrf.mxu2  ;;  %v11090_v25 = vor.u32 %v5786_v33, %v5783_v26  ;;  %v4369_v41 = vrot.slane %v4367_v31, 4  ;;  %v4733_v31 = vshrl.u32 %v11051_v24, 16 }
 0x3b8   : > { %v4371_v43 = vshrl.u32 %v4027_v35, 16  ;;  %v4374_v61 = vshll.u32 %v4027_v35, 16  ;;  %v3684_v12 = vadd.f32 %v10905_v22, %v3644_v18  ;;  %v12380_v22 = vrot.slane %v11012_v2, 1 }
 0x3b9   : > { %v5153_v4 = vpop.f32.mrf.mxu0  ;;  %8194 = vmatmul.msk.bf16.gmra.mxu1 %vm825_vm4, %v5429_v47  ;;  %v11094_v1 = vpop.f32.mrf.mxu3  ;;  %v11104_v26 = vsel %vm496_vm3, %v11023_v5, %v11090_v25  ;;  %v12381_v5 = vrot.slane %v11015_v19, 3 }
 0x3ba   : > { %v4373_v14 = vrot.slane %v4371_v43, 6  ;;  %v4376_v49 = vrot.slane %v4374_v61, 7  ;;  %v3720_v58 = vmax.f32 %v3684_v12, 0.0  ;;  %v5243_v44 = vadd.f32 %v5153_v4, %v4955_v48 }
 0x3bb   : > { %v5068_v32 = vsel %vm1444_vm5, %v12380_v22, %v5067_v27  ;;  %v4957_v61 = vadd.f32 %v11025_v11, %v10579_v57  ;;  %v12241_v57 = vrot.slane %v10644_v63, 1  ;;  %v8223_v11 = vld [vmem:[%s12181_s5 + $0x14] sm:$0xf] }
 0x3bc   : > { %v4377_v15 = vor.u32 %v4376_v49, %v4373_v14  ;;  %v3972_v35 = vmul.f32 %v3935_v3, %v3720_v58  ;;  %8107 = vmatmul.msk.bf16.gmra.mxu0 %vm825_vm4, %v5068_v32  ;;  %v11107_v18 = vadd.f32 %v5514_v62, %v5243_v44  ;;  %v11125_v62 = vsel %vm3375_vm9, %v12381_v5, %v12239_v9 }
 0x3bd   : > { %12382 = vst [vmem:[#allocation43_spill] sm:$0xff] %v11125_v62  ;;  %v6106_v5 = vsel %vm4803_vm7, %v8223_v11, 0 }
 0x3be   : > { %v4378_v47 = vsel %vm9865_vm13, %v4369_v41, %v4377_v15  ;;  %v4028_v2 = vpack.c.bf16 %v3972_v35, %v3972_v35  ;;  %v5516_v33 = vpop.f32.mrf.mxu1  ;;  %v11112_v48 = vld [vmem:[#allocation2 + $0x88] sm:$0xff]  ;;  %8090 = vmatmul.msk.bf16.gmra.mxu3 %vm825_vm4, %v10562_v17  ;;  %v4735_v17 = vor.u32 %v4733_v31, %v4731_v51 }
 0x3bf   : > { %v11114_v43 = vld [vmem:[#allocation2 + $0x88] sm:$0xff]  ;;  %4463 = vst.msk [vmem:[#allocation2 + $0x90] sm:$0xf] %vm3973_vm8, %v4378_v47  ;;  %v4737_v14 = vshll.u32 %v11112_v48, 16  ;;  %v11130_v49 = vpop.f32.mrf.mxu2  ;;  %6115 = vmatpush.bf16.msra.mxu3 %v6106_v5 }
 0x3c0   : > { %v4381_v12 = vshrl.u32 %v4028_v2, 16  ;;  %v4384_v4 = vshll.u32 %v4028_v2, 16  ;;  %v5790_v44 = vshrl.u32 %v11114_v43, 16  ;;  %v5793_v3 = vshll.u32 %v11114_v43, 16 }
 0x3c1   : > { %v5155_v58 = vpop.f32.mrf.mxu0  ;;  %v11134_v32 = vpop.f32.mrf.mxu3  ;;  %v11136_v35 = vrot.slane %v4737_v14, 1  ;;  %v4379_v2 = vrot.slane %v4377_v15, 4  ;;  %v8348_v15 = vld [vmem:[%s12181_s5 + $0x20] sm:$0xf] }
 0x3c2   : > { %v4383_v22 = vrot.slane %v4381_v12, 6  ;;  %v4386_v19 = vrot.slane %v4384_v4, 7  ;;  %v5244_v41 = vadd.f32 %v5155_v58, %v4957_v61  ;;  %v5792_v47 = vrot.slane %v5790_v44, 1  ;;  %v4465_v12 = vld [vmem:[#allocation2 + $0x98] sm:$0x3] }
 0x3c3   : > { %v4740_v31 = vsel %vm995_vm2, %v4735_v17, %v11136_v35  ;;  %v5795_v61 = vrot.slane %v5793_v3, 2  ;;  %v11154_v17 = vld [vmem:[#allocation2 + $0x50] sm:$0xff]  ;;  %v7070_v3 = vsel %vm4803_vm7, %v8348_v15, 0 }
 0x3c4   : > { %v4387_v51 = vor.u32 %v4386_v19, %v4383_v22  ;;  %v11145_v4 = vadd.f32 %v5516_v33, %v5244_v41  ;;  %8078 = vmatmul.msk.bf16.gmra.mxu2 %vm825_vm4, %v4740_v31  ;;  %v12240_v33 = vrot.slane %v11154_v17, 1  ;;  %v4960_v19 = vadd.f32 %v11065_v10, %v10618_v59 }
 0x3c5   : > { %v5796_v52 = vor.u32 %v5795_v61, %v5792_v47  ;;  %7079 = vmatpush.bf16.msra.mxu2 %v7070_v3  ;;  %v8242_v61 = vld [vmem:[%s12181_s5 + $0x18] sm:$0xf] }
 0x3c6   : > { %v4388_v14 = vsel %vm9865_vm13, %v4379_v2, %v4387_v51  ;;  %v4389_v58 = vrot.slane %v4387_v51, 4  ;;  %v5519_v9 = vpop.f32.mrf.mxu1  ;;  %v4505_v44 = vld [vmem:[#allocation2 + $0x90] sm:$0x1]  ;;  %v5431_v2 = vsel %vm1444_vm5, %v5428_v16, %v12241_v57  ;;  %v5070_v16 = vsel %vm1444_vm5, %v5067_v27, %v12240_v33 }
 0x3c7   : > { %4464 = vst.msk [vmem:[#allocation2 + $0x94] sm:$0xf] %vm3973_vm8, %v4388_v14  ;;  %v4581_v22 = vunpack.c.l.b16 %v4505_v44  ;;  %v11167_v51 = vpop.f32.mrf.mxu2  ;;  %v11174_v59 = vsel %vm496_vm3, %v11090_v25, %v5796_v52  ;;  %v8329_v25 = vld [vmem:[%s12181_s5 + $0x1c] sm:$0xf]  ;;  %v6467_v14 = vsel %vm4803_vm7, %v8242_v61, 0  ;;  %v12386_v61 = vrot.slane %v11092_v54, 3 }
 0x3c8   : > { %v4466_v11 = vsel %vm9769_vm14, %v4389_v58, %v4465_v12  ;;  %v6041_v12 = vrot.slane %v10981_v34, 2  ;;  %v6835_v58 = vsel %vm4803_vm7, %v8329_v25, 0  ;;  %6476 = vmatpush.bf16.msra.mxu0 %v6467_v14 }
 0x3c9   : > { %4467 = vst [vmem:[#allocation2 + $0x98] sm:$0x3] %v4466_v11  ;;  %v5158_v31 = vpop.f32.mrf.mxu0  ;;  %8195 = vmatmul.msk.bf16.gmra.mxu1 %vm825_vm4, %v5431_v2  ;;  %v11170_v47 = vpack.c.b16 %v4581_v22, %v4581_v22  ;;  %v4966_v10 = vpop.f32.mrf.mxu3 }
 0x3ca   : > { %v5245_v5 = vadd.f32 %v5158_v31, %v4960_v19  ;;  %v11196_v27 = vsel %vm2409_vm6, %v12384_v36, %v6041_v12  ;;  %6844 = vmatpush.bf16.msra.mxu1 %v6835_v58  ;;  %v7003_v19 = vrot.slane %v8484_v55, 3 }
 0x3cb   : > { %12385 = vst [vmem:[#allocation20_spill] sm:$0xff] %v11196_v27  ;;  %v4745_v15 = vshll.u32 %v11170_v47, 16  ;;  %v12417_v27 = vld [vmem:[#allocation9_spill] sm:$0xff] }
 0x3cc   : > { %8108 = vmatmul.msk.bf16.gmra.mxu0 %vm825_vm4, %v5070_v16  ;;  %v11191_v44 = vadd.f32 %v5519_v9, %v5245_v5  ;;  %v4962_v9 = vadd.f32 %v11094_v1, %v10659_v23  ;;  %v4741_v5 = vshrl.u32 %v11112_v48, 16  ;;  %v11213_v55 = vsel %vm3375_vm9, %v12386_v61, %v7003_v19 }
 0x3cd   : > { %v4747_v16 = vrot.slane %v4745_v15, 1  ;;  %12387 = vst [vmem:[#allocation44_spill] sm:$0xff] %v11213_v55  ;;  %v5432_v1 = vrot.slane %v10724_v60, 1  ;;  %v12389_v60 = vrot.slane %v10644_v63, 1 }
 0x3ce   : > { %v5521_v22 = vpop.f32.mrf.mxu1  ;;  %v11199_v3 = vld [vmem:[#allocation2 + $0x90] sm:$0xff]  ;;  %8091 = vmatmul.msk.bf16.gmra.mxu3 %vm825_vm4, %v10642_v37  ;;  %v4743_v23 = vor.u32 %v4741_v5, %v11136_v35  ;;  %v4965_v35 = vadd.f32 %v11134_v32, %v10698_v50 }
 0x3cf   : > { %v5799_v41 = vshrl.u32 %v11199_v3, 16  ;;  %v5802_v11 = vshll.u32 %v11199_v3, 16  ;;  %v11207_v2 = vpop.f32.mrf.mxu2 }
 0x3d0   : > { %v4748_v62 = vsel %vm995_vm2, %v4743_v23, %v4747_v16  ;;  %v12390_v16 = vrot.slane %v11154_v17, 1 }
 0x3d1   : > { %v5160_v31 = vpop.f32.mrf.mxu0  ;;  %v4969_v25 = vpop.f32.mrf.mxu3  ;;  %v5801_v58 = vrot.slane %v5799_v41, 1  ;;  %v5804_v36 = vrot.slane %v5802_v11, 2  ;;  %v8485_v41 = vld [vmem:[#allocation2 + $0x80] sm:$0xff] }
 0x3d2   : > { %v5246_v14 = vadd.f32 %v5160_v31, %v4962_v9  ;;  %v5071_v9 = vrot.slane %v10642_v37, 1  ;;  %v7005_v61 = vrot.slane %v8485_v41, 3 }
 0x3d3   : > { %v11219_v57 = vor.u32 %v5804_v36, %v5801_v58  ;;  %v4967_v58 = vadd.f32 %v4966_v10, %v10739_v40  ;;  %v8486_v40 = vld [vmem:[#allocation2 + $0x88] sm:$0xff] }
 0x3d4   : > { %v11217_v33 = vadd.f32 %v5521_v22, %v5246_v14  ;;  %8079 = vmatmul.msk.bf16.gmra.mxu2 %vm825_vm4, %v4748_v62  ;;  %v5433_v22 = vsel %vm1444_vm5, %v12389_v60, %v5432_v1  ;;  %v5072_v37 = vsel %vm1444_vm5, %v12390_v16, %v5071_v9  ;;  %v11247_v32 = vsel %vm3375_vm9, %v7003_v19, %v7005_v61 }
 0x3d5   : > { %12388 = vst [vmem:[#allocation45_spill] sm:$0xff] %v11219_v57  ;;  %v11225_v15 = vsel %vm496_vm3, %v5796_v52, %v11219_v57  ;;  %v6043_v52 = vrot.slane %v11053_v8, 2  ;;  %v5073_v19 = vrot.slane %v10722_v29, 1  ;;  %v6045_v16 = vrot.slane %v11114_v43, 2 }
 0x3d6   : > { %v5524_v54 = vpop.f32.mrf.mxu1  ;;  %12392 = vst [vmem:[#allocation47_spill] sm:$0xff] %v11247_v32 }
 0x3d7   : > { %v11233_v11 = vpop.f32.mrf.mxu2  ;;  %v11244_v50 = vsel %vm2409_vm6, %v6041_v12, %v6043_v52 }
 0x3d8   : > { %12391 = vst [vmem:[#allocation46_spill] sm:$0xff] %v11244_v50 }
 0x3d9   : > { %v5163_v31 = vpop.f32.mrf.mxu0  ;;  %8196 = vmatmul.msk.bf16.gmra.mxu1 %vm825_vm4, %v5433_v22  ;;  %v4971_v62 = vpop.f32.mrf.mxu3  ;;  %v4970_v22 = vadd.f32 %v4969_v25, %v10778_v45  ;;  %v11271_v45 = vsel %vm2409_vm6, %v6043_v52, %v6045_v16  ;;  %v5640_v52 = vld [vmem:[#allocation2 + $0x98] sm:$0x3] }
 0x3da   : > { %v5247_v5 = vadd.f32 %v5163_v31, %v4965_v35  ;;  %12393 = vst [vmem:[#allocation48_spill] sm:$0xff] %v11271_v45 }
 0x3dc   : > { %8109 = vmatmul.msk.bf16.gmra.mxu0 %vm825_vm4, %v5072_v37  ;;  %v11241_v63 = vadd.f32 %v5524_v54, %v5247_v5  ;;  %v5434_v54 = vrot.slane %v10804_v13, 1  ;;  %v5074_v37 = vsel %vm1444_vm5, %v5071_v9, %v5073_v19 }
 0x3de   : > { %v5526_v14 = vpop.f32.mrf.mxu1  ;;  %8092 = vmatmul.msk.bf16.gmra.mxu3 %vm825_vm4, %v10722_v29  ;;  %v5435_v41 = vsel %vm1444_vm5, %v5432_v1, %v5434_v54 }
 0x3df   : > { %v11252_v17 = vpop.f32.mrf.mxu2 }
 0x3e1   : > { %v5165_v36 = vpop.f32.mrf.mxu0  ;;  %v4974_v23 = vpop.f32.mrf.mxu3 }
 0x3e2   : > { %v5248_v35 = vadd.f32 %v5165_v36, %v4967_v58 }
 0x3e4   : > { %v11255_v60 = vadd.f32 %v5526_v14, %v5248_v35  ;;  %8205 = vmatmul.msk.bf16.vlgmr.msrb.gmra.mxu2 %vm825_vm4, %v10036_v7  ;;  %v7007_v7 = vrot.slane %v8486_v40, 3  ;;  %v4972_v14 = vadd.f32 %v4971_v62, %v10819_v21  ;;  %v5644_v40 = vunpack.c.l.b16 %v5640_v52 }
 0x3e5   : > { %v4975_v21 = vadd.f32 %v4974_v23, %v10858_v28  ;;  %v8487_v23 = vld [vmem:[#allocation2 + $0x90] sm:$0xff] }
 0x3e6   : > { %v5529_v12 = vpop.f32.mrf.mxu1  ;;  %v11274_v25 = vsel %vm3375_vm9, %v7005_v61, %v7007_v7 }
 0x3e7   : > { %v11262_v10 = vpop.f32.mrf.mxu2  ;;  %12394 = vst [vmem:[#allocation49_spill] sm:$0xff] %v11274_v25 }
 0x3e9   : > { %v5168_v31 = vpop.f32.mrf.mxu0  ;;  %8197 = vmatmul.msk.bf16.gmra.mxu1 %vm825_vm4, %v5435_v41  ;;  %v4976_v5 = vpop.f32.mrf.mxu3  ;;  %v5075_v41 = vrot.slane %v10802_v46, 1 }
 0x3ea   : > { %v5249_v13 = vadd.f32 %v5168_v31, %v4970_v22  ;;  %v6604_v31 = vld [vmem:[#allocation2 + $0xa0] sm:$0x7] }
 0x3ec   : > { %8110 = vmatmul.msk.bf16.gmra.mxu0 %vm825_vm4, %v5074_v37  ;;  %v11268_v29 = vadd.f32 %v5529_v12, %v5249_v13  ;;  %v5436_v12 = vrot.slane %v10889_v38, 1 }
 0x3ee   : > { %v5531_v1 = vpop.f32.mrf.mxu1  ;;  %8093 = vmatmul.msk.bf16.gmra.mxu3 %vm825_vm4, %v10802_v46  ;;  %v5437_v62 = vsel %vm1444_vm5, %v5434_v54, %v5436_v12  ;;  %v8488_v54 = vld [vmem:[#allocation2 + $0x98] sm:$0xff] }
 0x3ef   : > { %v11279_v58 = vpop.f32.mrf.mxu2 }
 0x3f1   : > { %v5170_v9 = vpop.f32.mrf.mxu0  ;;  %v4979_v36 = vpop.f32.mrf.mxu3 }
 0x3f2   : > { %v5250_v35 = vadd.f32 %v5170_v9, %v4972_v14  ;;  %v6047_v14 = vrot.slane %v11199_v3, 2  ;;  %v6608_v9 = vunpack.c.l.b16 %v6604_v31 }
 0x3f4   : > { %v11282_v22 = vadd.f32 %v5531_v1, %v5250_v35  ;;  %8206 = vmatmul.msk.bf16.gmra.mxu2 %vm825_vm4, %v10108_v20  ;;  %v5076_v20 = vsel %vm1444_vm5, %v5073_v19, %v5075_v41  ;;  %v11294_v35 = vpack.c.b16 %v5644_v40, %v5644_v40  ;;  %v11300_v28 = vsel %vm2409_vm6, %v6045_v16, %v6047_v14 }
 0x3f5   : > { %12395 = vst [vmem:[#allocation50_spill] sm:$0xff] %v11300_v28  ;;  %v4977_v19 = vadd.f32 %v4976_v5, %v10909_v56  ;;  %v7009_v16 = vrot.slane %v8487_v23, 3  ;;  %v5438_v56 = vrot.slane %v10981_v34, 1 }
 0x3f6   : > { %v5534_v61 = vpop.f32.mrf.mxu1  ;;  %v6049_v31 = vrot.slane %v11294_v35, 2 }
 0x3f7   : > { %v11289_v13 = vpop.f32.mrf.mxu2  ;;  %v11315_v25 = vsel %vm3375_vm9, %v7007_v7, %v7009_v16  ;;  %v5439_v7 = vsel %vm1444_vm5, %v5436_v12, %v5438_v56 }
 0x3f8   : > { %12398 = vst [vmem:[#allocation53_spill] sm:$0xff] %v11315_v25 }
 0x3f9   : > { %v5173_v37 = vpop.f32.mrf.mxu0  ;;  %8198 = vmatmul.msk.bf16.gmra.mxu1 %vm825_vm4, %v5437_v62  ;;  %v4981_v38 = vpop.f32.mrf.mxu3  ;;  %v11302_v62 = vpack.c.b16 %v6608_v9, %v6608_v9 }
 0x3fa   : > { %v5251_v1 = vadd.f32 %v5173_v37, %v4975_v21  ;;  %v7011_v37 = vrot.slane %v8488_v54, 3  ;;  %v5077_v54 = vrot.slane %v10887_v0, 1 }
 0x3fb   : > { %12396 = vst [vmem:[#allocation51_spill] sm:$0xff] %v11302_v62  ;;  %v7013_v9 = vrot.slane %v11302_v62, 3 }
 0x3fc   : > { %8111 = vmatmul.msk.bf16.gmra.mxu0 %vm825_vm4, %v5076_v20  ;;  %v11297_v46 = vadd.f32 %v5534_v61, %v5251_v1  ;;  %v11311_v61 = vsel %vm2409_vm6, %v6047_v14, %v6049_v31  ;;  %v11318_v32 = vsel %vm3375_vm9, %v7009_v16, %v7011_v37  ;;  %v12401_v14 = vld [vmem:[#allocation25_spill] sm:$0xff]  ;;  %v4980_v31 = vadd.f32 %v4979_v36, %v10948_v30 }
 0x3fd   : > { %12397 = vst [vmem:[#allocation52_spill] sm:$0xff] %v11311_v61  ;;  %v11324_v55 = vsel %vm3375_vm9, %v7011_v37, %v7013_v9  ;;  %v5078_v16 = vsel %vm1444_vm5, %v5075_v41, %v5077_v54  ;;  %v12411_v61 = vld [vmem:[#allocation24_spill] sm:$0xff] }
 0x3fe   : > { %v5536_v52 = vpop.f32.mrf.mxu1  ;;  %8094 = vmatmul.msk.bf16.gmra.mxu3 %vm825_vm4, %v10887_v0  ;;  %12399 = vst [vmem:[#allocation54_spill] sm:$0xff] %v11318_v32  ;;  %v4982_v0 = vadd.f32 %v4981_v38, %v10989_v39 }
 0x3ff   : > { %v11308_v40 = vpop.f32.mrf.mxu2  ;;  %12400 = vst [vmem:[#allocation55_spill] sm:$0xff] %v11324_v55  ;;  %v12406_v55 = vld [vmem:[#allocation23_spill] sm:$0xff] }
 0x401   : > { %v5175_v21 = vpop.f32.mrf.mxu0  ;;  %v4984_v1 = vpop.f32.mrf.mxu3 }
 0x402   : > { %v5252_v20 = vadd.f32 %v5175_v21, %v4977_v19 }
 0x404   : > { %v11321_v5 = vadd.f32 %v5536_v52, %v5252_v20  ;;  %8207 = vmatmul.msk.bf16.gmra.mxu2 %vm825_vm4, %v12401_v14  ;;  %v5440_v14 = vrot.slane %v11053_v8, 1 }
 0x406   : > { %v5539_v23 = vpop.f32.mrf.mxu1 }
 0x407   : > { %v11331_v19 = vpop.f32.mrf.mxu2 }
 0x409   : > { %v5178_v21 = vpop.f32.mrf.mxu0  ;;  %8199 = vmatmul.msk.bf16.gmra.mxu1 %vm825_vm4, %v5439_v7  ;;  %v4986_v34 = vpop.f32.mrf.mxu3  ;;  %v12402_v7 = vld [vmem:[#allocation18_spill] sm:$0xff] }
 0x40a   : > { %v5253_v52 = vadd.f32 %v5178_v21, %v4980_v31  ;;  %v4985_v21 = vadd.f32 %v4984_v1, %v12402_v7 }
 0x40c   : > { %8112 = vmatmul.msk.bf16.gmra.mxu0 %vm825_vm4, %v5078_v16  ;;  %v11336_v37 = vadd.f32 %v5539_v23, %v5253_v52  ;;  %v5079_v23 = vrot.slane %v10979_v6, 1  ;;  %v5441_v52 = vsel %vm1444_vm5, %v5438_v56, %v5440_v14 }
 0x40e   : > { %v5541_v20 = vpop.f32.mrf.mxu1  ;;  %8095 = vmatmul.msk.bf16.gmra.mxu3 %vm825_vm4, %v10979_v6  ;;  %v5080_v8 = vsel %vm1444_vm5, %v5077_v54, %v5079_v23  ;;  %v12403_v6 = vld [vmem:[#allocation42_spill] sm:$0xff]  ;;  %v12404_v54 = vld [vmem:[#allocation29_spill] sm:$0xff] }
 0x40f   : > { %v11341_v30 = vpop.f32.mrf.mxu2  ;;  %v4987_v1 = vadd.f32 %v4986_v34, %v12403_v6 }
 0x411   : > { %v5180_v36 = vpop.f32.mrf.mxu0  ;;  %v4989_v12 = vpop.f32.mrf.mxu3 }
 0x412   : > { %v5254_v9 = vadd.f32 %v5180_v36, %v4982_v0 }
 0x414   : > { %v11344_v31 = vadd.f32 %v5541_v20, %v5254_v9  ;;  %8208 = vmatmul.msk.bf16.gmra.mxu2 %vm825_vm4, %v10239_v53 }
 0x416   : > { %v5544_v41 = vpop.f32.mrf.mxu1 }
 0x417   : > { %v11351_v39 = vpop.f32.mrf.mxu2 }
 0x419   : > { %v5183_v38 = vpop.f32.mrf.mxu0  ;;  %8200 = vmatmul.msk.bf16.gmra.mxu1 %vm825_vm4, %v5441_v52  ;;  %v4991_v16 = vpop.f32.mrf.mxu3  ;;  %v5442_v52 = vrot.slane %v11114_v43, 1 }
 0x41a   : > { %v5255_v0 = vadd.f32 %v5183_v38, %v4985_v21  ;;  %v5081_v38 = vrot.slane %v11051_v24, 1 }
 0x41c   : > { %8113 = vmatmul.msk.bf16.gmra.mxu0 %vm825_vm4, %v5080_v8  ;;  %v11356_v20 = vadd.f32 %v5544_v41, %v5255_v0  ;;  %v4990_v0 = vadd.f32 %v4989_v12, %v11087_v42  ;;  %v5443_v8 = vsel %vm1444_vm5, %v5440_v14, %v5442_v52  ;;  %v5082_v43 = vsel %vm1444_vm5, %v5079_v23, %v5081_v38  ;;  %v12405_v23 = vld [vmem:[#allocation33_spill] sm:$0xff] }
 0x41e   : > { %v5546_v53 = vpop.f32.mrf.mxu1  ;;  %8096 = vmatmul.msk.bf16.gmra.mxu3 %vm825_vm4, %v11051_v24  ;;  %v4992_v24 = vadd.f32 %v4991_v16, %v11130_v49 }
 0x41f   : > { %v11361_v56 = vpop.f32.mrf.mxu2 }
 0x421   : > { %v5185_v36 = vpop.f32.mrf.mxu0  ;;  %v4994_v9 = vpop.f32.mrf.mxu3 }
 0x422   : > { %v5256_v7 = vadd.f32 %v5185_v36, %v4987_v1 }
 0x424   : > { %v11364_v21 = vadd.f32 %v5546_v53, %v5256_v7  ;;  %8209 = vmatmul.msk.bf16.gmra.mxu2 %vm825_vm4, %v12404_v54 }
 0x426   : > { %v5549_v41 = vpop.f32.mrf.mxu1 }
 0x427   : > { %v11371_v34 = vpop.f32.mrf.mxu2 }
 0x429   : > { %v5188_v6 = vpop.f32.mrf.mxu0  ;;  %8201 = vmatmul.msk.bf16.gmra.mxu1 %vm825_vm4, %v5443_v8  ;;  %v4996_v1 = vpop.f32.mrf.mxu3  ;;  %v5444_v8 = vrot.slane %v11199_v3, 1 }
 0x42a   : > { %v5257_v36 = vadd.f32 %v5188_v6, %v4990_v0  ;;  %v5083_v6 = vrot.slane %v11112_v48, 1 }
 0x42c   : > { %8114 = vmatmul.msk.bf16.gmra.mxu0 %vm825_vm4, %v5082_v43  ;;  %v11376_v53 = vadd.f32 %v5549_v41, %v5257_v36  ;;  %v4995_v36 = vadd.f32 %v4994_v9, %v11167_v51  ;;  %v5445_v43 = vsel %vm1444_vm5, %v5442_v52, %v5444_v8  ;;  %v4997_v51 = vadd.f32 %v4996_v1, %v11207_v2 }
 0x42e   : > { %v5551_v7 = vpop.f32.mrf.mxu1  ;;  %8097 = vmatmul.msk.bf16.gmra.mxu3 %vm825_vm4, %v11112_v48 }
 0x42f   : > { %v11381_v42 = vpop.f32.mrf.mxu2 }
 0x431   : > { %v5190_v12 = vpop.f32.mrf.mxu0  ;;  %v4999_v14 = vpop.f32.mrf.mxu3 }
 0x432   : > { %v5258_v54 = vadd.f32 %v5190_v12, %v4992_v24  ;;  %v5315_v24 = vld [vmem:[#allocation2 + $0x98] sm:$0x1] }
 0x434   : > { %v11384_v0 = vadd.f32 %v5551_v7, %v5258_v54  ;;  %8210 = vmatmul.msk.bf16.gmra.mxu2 %vm825_vm4, %v12405_v23  ;;  %v5084_v7 = vsel %vm1444_vm5, %v5081_v38, %v5083_v6  ;;  %v5391_v54 = vunpack.c.l.b16 %v5315_v24  ;;  %v6243_v38 = vld [vmem:[#allocation2 + $0x10] sm:$0xc]  ;;  %v5085_v24 = vrot.slane %v11170_v47, 1  ;;  %v8543_v47 = vld [vmem:[#allocation2 + $0x18] sm:$0xff] }
 0x435   : > { %v6319_v1 = vunpack.c.l.b16 %v6243_v38  ;;  %v6619_v62 = vshrl.u32 %v8543_v47, 16  ;;  %v6376_v50 = vrot.slane %v8543_v47, 2 }
 0x436   : > { %v5554_v41 = vpop.f32.mrf.mxu1  ;;  %v5410_v9 = vpack.c.b16 %v5391_v54, %v5391_v54 }
 0x437   : > { %v11391_v49 = vpop.f32.mrf.mxu2 }
 0x439   : > { %v5193_v16 = vpop.f32.mrf.mxu0  ;;  %8202 = vmatmul.msk.bf16.gmra.mxu1 %vm825_vm4, %v5445_v43  ;;  %v5001_v12 = vpop.f32.mrf.mxu3 }
 0x43a   : > { %v5259_v3 = vadd.f32 %v5193_v16, %v4995_v36  ;;  %v5446_v36 = vrot.slane %v5410_v9, 1 }
 0x43c   : > { %8115 = vmatmul.msk.bf16.gmra.mxu0 %vm825_vm4, %v5084_v7  ;;  %v11396_v23 = vadd.f32 %v5554_v41, %v5259_v3  ;;  %v12407_v7 = vld [vmem:[#allocation36_spill] sm:$0xff]  ;;  %v5447_v2 = vsel %vm1444_vm5, %v5444_v8, %v5446_v36 }
 0x43e   : > { %v5556_v48 = vpop.f32.mrf.mxu1  ;;  %8224 = vmatmul.msk.bf16.vlgmr.msra.gmra.mxu3 %vm825_vm4, %v12406_v55  ;;  %v5000_v55 = vadd.f32 %v4999_v14, %v11233_v11  ;;  %v6622_v11 = vshll.u32 %v8543_v47, 16 }
 0x43f   : > { %v11401_v52 = vpop.f32.mrf.mxu2 }
 0x441   : > { %v5195_v43 = vpop.f32.mrf.mxu0  ;;  %v5004_v32 = vpop.f32.mrf.mxu3 }
 0x442   : > { %v5260_v25 = vadd.f32 %v5195_v43, %v4997_v51 }
 0x444   : > { %v11403_v16 = vadd.f32 %v5556_v48, %v5260_v25  ;;  %8211 = vmatmul.msk.bf16.gmra.mxu2 %vm825_vm4, %v12407_v7  ;;  %v12408_v48 = vld [vmem:[#allocation27_spill] sm:$0xff]  ;;  %v5086_v7 = vsel %vm1444_vm5, %v5083_v6, %v5085_v24 }
 0x445   : > { %v12409_v9 = vunpack.c.l.b16 %v12408_v48 }
 0x446   : > { %v5559_v41 = vpop.f32.mrf.mxu1 }
 0x447   : > { %v11410_v3 = vpop.f32.mrf.mxu2  ;;  %v6356_v43 = vpack.c.b16 %v12409_v9, %v6319_v1 }
 0x449   : > { %v5198_v54 = vpop.f32.mrf.mxu0  ;;  %8203 = vmatmul.msk.bf16.gmra.mxu1 %vm825_vm4, %v5447_v2  ;;  %v5006_v51 = vpop.f32.mrf.mxu3  ;;  %v6611_v36 = vshrl.u32 %v6356_v43, 16  ;;  %v6614_v38 = vshll.u32 %v6356_v43, 16  ;;  %v6621_v2 = vrot.slane %v6619_v62, 2 }
 0x44a   : > { %v5261_v25 = vadd.f32 %v5198_v54, %v5000_v55  ;;  %v5002_v55 = vadd.f32 %v5001_v12, %v11252_v17  ;;  %v6624_v54 = vrot.slane %v6622_v11, 3  ;;  %v5005_v17 = vadd.f32 %v5004_v32, %v11262_v10  ;;  %v12414_v32 = vld [vmem:[#allocation26_spill] sm:$0xff] }
 0x44b   : > { %v6613_v9 = vrot.slane %v6611_v36, 2  ;;  %v6375_v36 = vrot.slane %v6356_v43, 2  ;;  %v5007_v10 = vadd.f32 %v5006_v51, %v11279_v58 }
 0x44c   : > { %8116 = vmatmul.msk.bf16.gmra.mxu0 %vm825_vm4, %v5086_v7  ;;  %v11417_v14 = vadd.f32 %v5559_v41, %v5261_v25  ;;  %v6616_v7 = vrot.slane %v6614_v38, 3  ;;  %v6625_v28 = vor.u32 %v6624_v54, %v6621_v2  ;;  %v12413_v25 = vld [vmem:[#allocation39_spill] sm:$0xff] }
 0x44d   : > { %v8544_v2 = vld [vmem:[#allocation2 + $0x20] sm:$0xff] }
 0x44e   : > { %12410 = vst [vmem:[#allocation25_spill] sm:$0xff] %v11417_v14  ;;  %v5561_v8 = vpop.f32.mrf.mxu1  ;;  %8225 = vmatmul.msk.bf16.gmra.mxu3 %vm825_vm4, %v12411_v61  ;;  %v6617_v61 = vor.u32 %v6616_v7, %v6613_v9  ;;  %v6628_v54 = vshrl.u32 %v8544_v2, 16  ;;  %v6631_v47 = vshll.u32 %v8544_v2, 16 }
 0x44f   : > { %v11422_v1 = vpop.f32.mrf.mxu2 }
 0x450   : > { %v6626_v62 = vsel %vm3006_vm10, %v6617_v61, %v6625_v28  ;;  %v6633_v9 = vrot.slane %v6631_v47, 3 }
 0x451   : > { %v5200_v6 = vpop.f32.mrf.mxu0  ;;  %v5009_v24 = vpop.f32.mrf.mxu3 }
 0x452   : > { %v5262_v48 = vadd.f32 %v5200_v6, %v5002_v55  ;;  %v6377_v55 = vsel %vm2409_vm6, %v6375_v36, %v6376_v50  ;;  %v6378_v36 = vrot.slane %v8544_v2, 2 }
 0x454   : > { %v11424_v41 = vadd.f32 %v5561_v8, %v5262_v48  ;;  %8212 = vmatmul.msk.bf16.gmra.mxu2 %vm825_vm4, %v12413_v25  ;;  %v6630_v48 = vrot.slane %v6628_v54, 2 }
 0x456   : > { %12412 = vst [vmem:[#allocation18_spill] sm:$0xff] %v11424_v41  ;;  %v11428_v45 = vpop.f32.mrf.mxu1 }
 0x457   : > { %v11432_v12 = vpop.f32.mrf.mxu2 }
 0x459   : > { %v5203_v11 = vpop.f32.mrf.mxu0  ;;  %8330 = vmatmul.msk.bf16.vlgmr.msra.gmra.mxu1 %vm825_vm4, %v6626_v62  ;;  %v5011_v38 = vpop.f32.mrf.mxu3  ;;  %v12415_v62 = vld [vmem:[#allocation6_spill] sm:$0xff] }
 0x45a   : > { %v11435_v8 = vadd.f32 %v5203_v11, %v5005_v17  ;;  %v6634_v17 = vor.u32 %v6633_v9, %v6630_v48  ;;  %v6379_v48 = vsel %vm2409_vm6, %v6376_v50, %v6378_v36  ;;  %v8545_v9 = vld [vmem:[#allocation2 + $0x28] sm:$0xff] }
 0x45b   : > { %v6637_v2 = vshrl.u32 %v8545_v9, 16  ;;  %v6380_v14 = vrot.slane %v8545_v9, 2 }
 0x45c   : > { %8311 = vmatmul.msk.bf16.vlgmr.msra.gmra.mxu0 %vm825_vm4, %v6377_v55  ;;  %v5010_v55 = vadd.f32 %v5009_v24, %v11289_v13  ;;  %v5012_v24 = vadd.f32 %v5011_v38, %v11308_v40 }
 0x45e   : > { %v11439_v6 = vpop.f32.mrf.mxu1  ;;  %8226 = vmatmul.msk.bf16.gmra.mxu3 %vm825_vm4, %v12414_v32  ;;  %v6635_v32 = vsel %vm3006_vm10, %v6625_v28, %v6634_v17  ;;  %v12416_v28 = vld [vmem:[#allocation4_spill] sm:$0xff] }
 0x45f   : > { %v11444_v43 = vpop.f32.mrf.mxu2 }
 0x461   : > { %v5205_v7 = vpop.f32.mrf.mxu0  ;;  %v5014_v25 = vpop.f32.mrf.mxu3 }
 0x462   : > { %v11446_v61 = vadd.f32 %v5205_v7, %v5007_v10  ;;  %v6640_v7 = vshll.u32 %v8545_v9, 16 }
 0x464   : > { %8213 = vmatmul.msk.bf16.gmra.mxu2 %vm825_vm4, %v12415_v62  ;;  %v6639_v62 = vrot.slane %v6637_v2, 2 }
 0x466   : > { %v11450_v11 = vpop.f32.mrf.mxu1 }
 0x467   : > { %v5882_v51 = vpop.f32.mrf.mxu2 }
 0x468   : > { %v11458_v10 = vadd.f32 %v5882_v51, %v11107_v18 }
 0x469   : > { %v5208_v58 = vpop.f32.mrf.mxu0  ;;  %8331 = vmatmul.msk.bf16.gmra.mxu1 %vm825_vm4, %v6635_v32  ;;  %v5016_v54 = vpop.f32.mrf.mxu3 }
 0x46a   : > { %v11455_v47 = vadd.f32 %v5208_v58, %v5010_v55  ;;  %v6642_v55 = vrot.slane %v6640_v7, 3 }
 0x46c   : > { %8312 = vmatmul.msk.bf16.gmra.mxu0 %vm825_vm4, %v6379_v48  ;;  %v6643_v48 = vor.u32 %v6642_v55, %v6639_v62  ;;  %v6381_v62 = vsel %vm2409_vm6, %v6378_v36, %v6380_v14 }
 0x46e   : > { %v11462_v13 = vpop.f32.mrf.mxu1  ;;  %8227 = vmatmul.msk.bf16.gmra.mxu3 %vm825_vm4, %v12416_v28  ;;  %v5015_v28 = vadd.f32 %v5014_v25, %v11331_v19  ;;  %v6644_v40 = vsel %vm3006_vm10, %v6634_v17, %v6643_v48  ;;  %v12418_v19 = vld [vmem:[#allocation28_spill] sm:$0xff]  ;;  %v5017_v25 = vadd.f32 %v5016_v54, %v11341_v30 }
 0x46f   : > { %v5884_v58 = vpop.f32.mrf.mxu2 }
 0x470   : > { %v11470_v50 = vadd.f32 %v5884_v58, %v11145_v4 }
 0x471   : > { %v5210_v32 = vpop.f32.mrf.mxu0  ;;  %v5019_v18 = vpop.f32.mrf.mxu3 }
 0x472   : > { %v11467_v51 = vadd.f32 %v5210_v32, %v5012_v24  ;;  %v5020_v54 = vadd.f32 %v5019_v18, %v11351_v39 }
 0x474   : > { %8214 = vmatmul.msk.bf16.gmra.mxu2 %vm825_vm4, %v12417_v27  ;;  %v8546_v27 = vld [vmem:[#allocation2 + $0x30] sm:$0xff] }
 0x475   : > { %v6646_v9 = vshrl.u32 %v8546_v27, 16  ;;  %v6649_v55 = vshll.u32 %v8546_v27, 16  ;;  %v6382_v30 = vrot.slane %v8546_v27, 2  ;;  %v12420_v27 = vld [vmem:[#allocation32_spill] sm:$0xff] }
 0x476   : > { %v11474_v41 = vpop.f32.mrf.mxu1 }
 0x477   : > { %v5887_v2 = vpop.f32.mrf.mxu2  ;;  %v6648_v32 = vrot.slane %v6646_v9, 2  ;;  %v6651_v58 = vrot.slane %v6649_v55, 3 }
 0x478   : > { %v11482_v4 = vadd.f32 %v5887_v2, %v11191_v44 }
 0x479   : > { %v5213_v38 = vpop.f32.mrf.mxu0  ;;  %8332 = vmatmul.msk.bf16.gmra.mxu1 %vm825_vm4, %v6644_v40  ;;  %v5021_v7 = vpop.f32.mrf.mxu3  ;;  %v6652_v2 = vor.u32 %v6651_v58, %v6648_v32 }
 0x47a   : > { %v11479_v24 = vadd.f32 %v5213_v38, %v5015_v28 }
 0x47b   : > { %v6653_v9 = vsel %vm3006_vm10, %v6643_v48, %v6652_v2  ;;  %v11516_v48 = vadd.f32 %v11439_v6, %v11446_v61  ;;  %v12421_v6 = vld [vmem:[#allocation15_spill] sm:$0xff]  ;;  %v11532_v61 = vadd.f32 %v11450_v11, %v11455_v47 }
 0x47c   : > { %8313 = vmatmul.msk.bf16.gmra.mxu0 %vm825_vm4, %v6381_v62  ;;  %v12419_v62 = vld [vmem:[#allocation12_spill] sm:$0xff]  ;;  %v8548_v11 = vld [vmem:[#allocation2 + $0x40] sm:$0xff] }
 0x47d   : > { %v6664_v47 = vshrl.u32 %v8548_v11, 16 }
 0x47e   : > { %8228 = vmatmul.msk.bf16.gmra.mxu3 %vm825_vm4, %v12418_v19  ;;  %v11489_v17 = vpop.f32.mrf.mxu1  ;;  %v11500_v19 = vadd.f32 %v11428_v45, %v11435_v8  ;;  %v6383_v45 = vsel %vm2409_vm6, %v6380_v14, %v6382_v30  ;;  %v8547_v8 = vld [vmem:[#allocation2 + $0x38] sm:$0xff] }
 0x47f   : > { %v5889_v40 = vpop.f32.mrf.mxu2  ;;  %v6655_v39 = vshrl.u32 %v8547_v8, 16  ;;  %v6658_v18 = vshll.u32 %v8547_v8, 16 }
 0x480   : > { %v11494_v36 = vadd.f32 %v5889_v40, %v11217_v33 }
 0x481   : > { %v5215_v28 = vpop.f32.mrf.mxu0  ;;  %v5024_v44 = vpop.f32.mrf.mxu3  ;;  %v6657_v40 = vrot.slane %v6655_v39, 2 }
 0x482   : > { %v11491_v38 = vadd.f32 %v5215_v28, %v5017_v25  ;;  %v5022_v28 = vadd.f32 %v5021_v7, %v11361_v56  ;;  %v6384_v56 = vrot.slane %v8547_v8, 2  ;;  %v5025_v7 = vadd.f32 %v5024_v44, %v11371_v34 }
 0x483   : > { %v6667_v8 = vshll.u32 %v8548_v11, 16  ;;  %v11548_v44 = vadd.f32 %v11462_v13, %v11467_v51  ;;  %v11562_v13 = vadd.f32 %v11474_v41, %v11479_v24  ;;  %v6386_v51 = vrot.slane %v8548_v11, 2  ;;  %v8549_v24 = vld [vmem:[#allocation2 + $0x48] sm:$0xff]  ;;  %v12424_v11 = vld [vmem:[#allocation38_spill] sm:$0xff] }
 0x484   : > { %8215 = vmatmul.msk.bf16.gmra.mxu2 %vm825_vm4, %v12419_v62  ;;  %v6660_v62 = vrot.slane %v6658_v18, 3 }
 0x485   : > { %v6387_v41 = vsel %vm2409_vm6, %v6384_v56, %v6386_v51 }
 0x486   : > { %v11505_v33 = vpop.f32.mrf.mxu1 }
 0x487   : > { %v5892_v57 = vpop.f32.mrf.mxu2 }
 0x488   : > { %v11510_v58 = vadd.f32 %v5892_v57, %v11241_v63 }
 0x489   : > { %v5218_v55 = vpop.f32.mrf.mxu0  ;;  %8333 = vmatmul.msk.bf16.gmra.mxu1 %vm825_vm4, %v6653_v9  ;;  %v5026_v25 = vpop.f32.mrf.mxu3 }
 0x48a   : > { %v11507_v32 = vadd.f32 %v5218_v55, %v5020_v54 }
 0x48c   : > { %8314 = vmatmul.msk.bf16.gmra.mxu0 %vm825_vm4, %v6383_v45  ;;  %v6661_v45 = vor.u32 %v6660_v62, %v6657_v40  ;;  %v6385_v62 = vsel %vm2409_vm6, %v6382_v30, %v6384_v56 }
 0x48e   : > { %8229 = vmatmul.msk.bf16.gmra.mxu3 %vm825_vm4, %v12420_v27  ;;  %v11526_v55 = vpop.f32.mrf.mxu1  ;;  %v6662_v39 = vsel %vm3006_vm10, %v6652_v2, %v6661_v45  ;;  %v12422_v2 = vld [vmem:[#allocation35_spill] sm:$0xff] }
 0x48f   : > { %v5894_v63 = vpop.f32.mrf.mxu2 }
 0x490   : > { %v11524_v9 = vadd.f32 %v5894_v63, %v11255_v60  ;;  %v6669_v63 = vrot.slane %v6667_v8, 3 }
 0x491   : > { %v5220_v57 = vpop.f32.mrf.mxu0  ;;  %v5029_v54 = vpop.f32.mrf.mxu3 }
 0x492   : > { %v11521_v14 = vadd.f32 %v5220_v57, %v5022_v28  ;;  %v5027_v57 = vadd.f32 %v5026_v25, %v11381_v42  ;;  %v5030_v42 = vadd.f32 %v5029_v54, %v11391_v49  ;;  %v6673_v49 = vshrl.u32 %v8549_v24, 16 }
 0x493   : > { %v6676_v54 = vshll.u32 %v8549_v24, 16 }
 0x494   : > { %8216 = vmatmul.msk.bf16.gmra.mxu2 %vm825_vm4, %v12421_v6 }
 0x496   : > { %v11544_v34 = vpop.f32.mrf.mxu1 }
 0x497   : > { %v5897_v27 = vpop.f32.mrf.mxu2 }
 0x498   : > { %v11540_v40 = vadd.f32 %v5897_v27, %v11268_v29  ;;  %v6666_v29 = vrot.slane %v6664_v47, 2 }
 0x499   : > { %v5223_v18 = vpop.f32.mrf.mxu0  ;;  %8334 = vmatmul.msk.bf16.gmra.mxu1 %vm825_vm4, %v6662_v39  ;;  %v5031_v60 = vpop.f32.mrf.mxu3 }
 0x49a   : > { %v11537_v28 = vadd.f32 %v5223_v18, %v5025_v7  ;;  %v6670_v27 = vor.u32 %v6669_v63, %v6666_v29  ;;  %v5032_v63 = vadd.f32 %v5031_v60, %v11401_v52  ;;  %v6388_v52 = vrot.slane %v8549_v24, 2 }
 0x49c   : > { %8315 = vmatmul.msk.bf16.gmra.mxu0 %vm825_vm4, %v6385_v62  ;;  %v12423_v62 = vld [vmem:[#allocation17_spill] sm:$0xff]  ;;  %v6671_v47 = vsel %vm3006_vm10, %v6661_v45, %v6670_v27  ;;  %v11578_v45 = vadd.f32 %v11489_v17, %v11491_v38  ;;  %v11594_v38 = vadd.f32 %v11505_v33, %v11507_v32 }
 0x49d   : > { %v12425_v17 = vld [vmem:[#allocation21_spill] sm:$0xff] }
 0x49e   : > { %8230 = vmatmul.msk.bf16.gmra.mxu3 %vm825_vm4, %v12422_v2  ;;  %v11565_v25 = vpop.f32.mrf.mxu1  ;;  %v8550_v33 = vld [vmem:[#allocation2 + $0x50] sm:$0xff] }
 0x49f   : > { %v5899_v30 = vpop.f32.mrf.mxu2  ;;  %v6685_v32 = vshll.u32 %v8550_v33, 16 }
 0x4a0   : > { %v11556_v18 = vadd.f32 %v5899_v30, %v11282_v22  ;;  %v6678_v30 = vrot.slane %v6676_v54, 3 }
 0x4a1   : > { %v5225_v6 = vpop.f32.mrf.mxu0  ;;  %v5034_v7 = vpop.f32.mrf.mxu3 }
 0x4a2   : > { %v11553_v39 = vadd.f32 %v5225_v6, %v5027_v57  ;;  %v6675_v6 = vrot.slane %v6673_v49, 2  ;;  %v5035_v60 = vadd.f32 %v5034_v7, %v11410_v3  ;;  %v6682_v3 = vshrl.u32 %v8550_v33, 16 }
 0x4a3   : > { %v11610_v7 = vadd.f32 %v11526_v55, %v11521_v14  ;;  %v6390_v55 = vrot.slane %v8550_v33, 2  ;;  %v12427_v33 = vld [vmem:[#allocation5_spill] sm:$0xff] }
 0x4a4   : > { %8217 = vmatmul.msk.bf16.gmra.mxu2 %vm825_vm4, %v12423_v62 }
 0x4a7   : > { %v5902_v2 = vpop.f32.mrf.mxu2 }
 0x4a8   : > { %v11572_v29 = vadd.f32 %v5902_v2, %v11297_v46  ;;  %v6679_v2 = vor.u32 %v6678_v30, %v6675_v6  ;;  %v6389_v6 = vsel %vm2409_vm6, %v6386_v51, %v6388_v52 }
 0x4a9   : > { %v5228_v8 = vpop.f32.mrf.mxu0  ;;  %8335 = vmatmul.msk.bf16.gmra.mxu1 %vm825_vm4, %v6671_v47  ;;  %v5036_v22 = vpop.f32.mrf.mxu3 }
 0x4aa   : > { %v11569_v57 = vadd.f32 %v5228_v8, %v5030_v42  ;;  %v11583_v42 = vpop.f32.mrf.mxu1  ;;  %v5037_v24 = vadd.f32 %v5036_v22, %v11422_v1  ;;  %v11625_v1 = vadd.f32 %v11544_v34, %v11537_v28  ;;  %v6391_v28 = vsel %vm2409_vm6, %v6388_v52, %v6390_v55  ;;  %v8551_v34 = vld [vmem:[#allocation2 + $0x58] sm:$0xff] }
 0x4ac   : > { %8316 = vmatmul.msk.bf16.gmra.mxu0 %vm825_vm4, %v6387_v41  ;;  %v6680_v41 = vsel %vm3006_vm10, %v6670_v27, %v6679_v2  ;;  %v12426_v27 = vld [vmem:[#allocation41_spill] sm:$0xff] }
 0x4ae   : > { %8231 = vmatmul.msk.bf16.gmra.mxu3 %vm825_vm4, %v12424_v11 }
 0x4af   : > { %v5904_v62 = vpop.f32.mrf.mxu2 }
 0x4b0   : > { %v11588_v8 = vadd.f32 %v5904_v62, %v11321_v5 }
 0x4b1   : > { %v5230_v46 = vpop.f32.mrf.mxu0  ;;  %v5039_v56 = vpop.f32.mrf.mxu3 }
 0x4b2   : > { %v11585_v47 = vadd.f32 %v5230_v46, %v5032_v63  ;;  %v11605_v30 = vpop.f32.mrf.mxu1  ;;  %v6687_v46 = vrot.slane %v6685_v32, 3  ;;  %v5040_v22 = vadd.f32 %v5039_v56, %v11432_v12  ;;  %v6691_v12 = vshrl.u32 %v8551_v34, 16 }
 0x4b3   : > { %v6694_v56 = vshll.u32 %v8551_v34, 16 }
 0x4b4   : > { %8218 = vmatmul.msk.bf16.gmra.mxu2 %vm825_vm4, %v12425_v17 }
 0x4b7   : > { %v5907_v54 = vpop.f32.mrf.mxu2 }
 0x4b8   : > { %v11602_v63 = vadd.f32 %v5907_v54, %v11336_v37  ;;  %v6684_v37 = vrot.slane %v6682_v3, 2 }
 0x4b9   : > { %v5233_v49 = vpop.f32.mrf.mxu0  ;;  %8336 = vmatmul.msk.bf16.gmra.mxu1 %vm825_vm4, %v6680_v41  ;;  %v5041_v11 = vpop.f32.mrf.mxu3 }
 0x4ba   : > { %v11599_v5 = vadd.f32 %v5233_v49, %v5035_v60  ;;  %v6688_v54 = vor.u32 %v6687_v46, %v6684_v37  ;;  %v5594_v14 = vpop.f32.mrf.mxu1  ;;  %v6693_v37 = vrot.slane %v6691_v12, 2  ;;  %v6696_v46 = vrot.slane %v6694_v56, 3 }
 0x4bc   : > { %8317 = vmatmul.msk.bf16.gmra.mxu0 %vm825_vm4, %v6389_v6  ;;  %v6689_v6 = vsel %vm3006_vm10, %v6679_v2, %v6688_v54  ;;  %v11640_v2 = vadd.f32 %v11565_v25, %v11553_v39  ;;  %v6697_v39 = vor.u32 %v6696_v46, %v6693_v37  ;;  %v6392_v25 = vrot.slane %v8551_v34, 2 }
 0x4bd   : > { %v11673_v34 = vadd.f32 %v11605_v30, %v11585_v47  ;;  %v11686_v47 = vadd.f32 %v5594_v14, %v11599_v5 }
 0x4be   : > { %8232 = vmatmul.msk.bf16.gmra.mxu3 %vm825_vm4, %v12426_v27 }
 0x4bf   : > { %v5909_v51 = vpop.f32.mrf.mxu2 }
 0x4c0   : > { %v11618_v41 = vadd.f32 %v5909_v51, %v11344_v31 }
 0x4c1   : > { %v5235_v62 = vpop.f32.mrf.mxu0  ;;  %v6117_v17 = vpop.f32.mrf.mxu3 }
 0x4c2   : > { %v11615_v60 = vadd.f32 %v5235_v62, %v5037_v24  ;;  %v6207_v49 = vadd.f32 %v6117_v17, %v11458_v10  ;;  %v5042_v24 = vadd.f32 %v5041_v11, %v11444_v43  ;;  %v11655_v43 = vadd.f32 %v11583_v42, %v11569_v57  ;;  %v11667_v57 = vld [vmem:[#allocation2 + $0x60] sm:$0xff] }
 0x4c3   : > { %v6698_v11 = vsel %vm3006_vm10, %v6688_v54, %v6697_v39  ;;  %v6700_v42 = vshrl.u32 %v11667_v57, 16  ;;  %v6703_v54 = vshll.u32 %v11667_v57, 16  ;;  %v6394_v30 = vrot.slane %v11667_v57, 2 }
 0x4c4   : > { %8219 = vmatmul.msk.bf16.gmra.mxu2 %vm825_vm4, %v11104_v26 }
 0x4c5   : > { %v6705_v12 = vrot.slane %v6703_v54, 3  ;;  %v6395_v14 = vsel %vm2409_vm6, %v6392_v25, %v6394_v30  ;;  %v12429_v54 = vld [vmem:[#allocation11_spill] sm:$0xff] }
 0x4c7   : > { %v5912_v32 = vpop.f32.mrf.mxu2 }
 0x4c8   : > { %v11633_v27 = vadd.f32 %v5912_v32, %v11356_v20  ;;  %v5596_v20 = vpop.f32.mrf.mxu1 }
 0x4c9   : > { %v5238_v3 = vpop.f32.mrf.mxu0  ;;  %8337 = vmatmul.msk.bf16.gmra.mxu1 %vm825_vm4, %v6689_v6  ;;  %v6119_v31 = vpop.f32.mrf.mxu3 }
 0x4ca   : > { %v11630_v10 = vadd.f32 %v5238_v3, %v5040_v22  ;;  %v6208_v26 = vadd.f32 %v6119_v31, %v11470_v50 }
 0x4cc   : > { %8318 = vmatmul.msk.bf16.gmra.mxu0 %vm825_vm4, %v6391_v28  ;;  %v6393_v28 = vsel %vm2409_vm6, %v6390_v55, %v6392_v25 }
 0x4ce   : > { %8233 = vmatmul.msk.bf16.gmra.mxu3 %vm825_vm4, %v12427_v33 }
 0x4cf   : > { %v5914_v62 = vpop.f32.mrf.mxu2 }
 0x4d0   : > { %v11648_v17 = vadd.f32 %v5914_v62, %v11364_v21  ;;  %v5599_v32 = vpop.f32.mrf.mxu1 }
 0x4d1   : > { %v5240_v50 = vpop.f32.mrf.mxu0  ;;  %v6122_v52 = vpop.f32.mrf.mxu3 }
 0x4d2   : > { %v11645_v51 = vadd.f32 %v5240_v50, %v5042_v24  ;;  %v6209_v22 = vadd.f32 %v6122_v52, %v11482_v4 }
 0x4d4   : > { %8220 = vmatmul.msk.bf16.gmra.mxu2 %vm825_vm4, %v11174_v59 }
 0x4d7   : > { %v5917_v6 = vpop.f32.mrf.mxu2 }
 0x4d8   : > { %v11660_v31 = vadd.f32 %v5917_v6, %v11376_v53  ;;  %v12428_v53 = vld [vmem:[#allocation8_spill] sm:$0xff]  ;;  %v5601_v46 = vpop.f32.mrf.mxu1 }
 0x4d9   : > { %v6478_v3 = vpop.f32.mrf.mxu0  ;;  %8338 = vmatmul.msk.bf16.gmra.mxu1 %vm825_vm4, %v6698_v11  ;;  %v6124_v21 = vpop.f32.mrf.mxu3 }
 0x4da   : > { %v11662_v4 = vadd.f32 %v6478_v3, %v6207_v49  ;;  %v6210_v59 = vadd.f32 %v6124_v21, %v11494_v36  ;;  %v6702_v49 = vrot.slane %v6700_v42, 2 }
 0x4dc   : > { %8319 = vmatmul.msk.bf16.gmra.mxu0 %vm825_vm4, %v6393_v28  ;;  %v6706_v50 = vor.u32 %v6705_v12, %v6702_v49 }
 0x4de   : > { %8234 = vmatmul.msk.bf16.gmra.mxu3 %vm825_vm4, %v12428_v53  ;;  %v6707_v62 = vsel %vm3006_vm10, %v6697_v39, %v6706_v50  ;;  %v8553_v39 = vld [vmem:[#allocation2 + $0x68] sm:$0xff] }
 0x4df   : > { %v5919_v36 = vpop.f32.mrf.mxu2  ;;  %v6709_v3 = vshrl.u32 %v8553_v39, 16  ;;  %v6712_v21 = vshll.u32 %v8553_v39, 16 }
 0x4e0   : > { %v11678_v33 = vadd.f32 %v5919_v36, %v11384_v0  ;;  %v5808_v0 = vshrl.u32 %v11294_v35, 16  ;;  %v6846_v42 = vpop.f32.mrf.mxu1 }
 0x4e1   : > { %v6480_v56 = vpop.f32.mrf.mxu0  ;;  %v6127_v55 = vpop.f32.mrf.mxu3 }
 0x4e2   : > { %v11680_v24 = vadd.f32 %v6480_v56, %v6208_v26  ;;  %v6211_v37 = vadd.f32 %v6127_v55, %v11510_v58  ;;  %v5811_v58 = vshll.u32 %v11294_v35, 16  ;;  %v5810_v28 = vrot.slane %v5808_v0, 1 }
 0x4e3   : > { %v11702_v35 = vadd.f32 %v5596_v20, %v11615_v60  ;;  %v11716_v20 = vadd.f32 %v5599_v32, %v11630_v10  ;;  %v8554_v10 = vld [vmem:[#allocation2 + $0x70] sm:$0xff] }
 0x4e4   : > { %8221 = vmatmul.msk.bf16.gmra.mxu2 %vm825_vm4, %v11225_v15  ;;  %v5813_v57 = vrot.slane %v5811_v58, 2  ;;  %v6718_v32 = vshrl.u32 %v8554_v10, 16 }
 0x4e6   : > { %v5814_v49 = vor.u32 %v5813_v57, %v5810_v28  ;;  %v12432_v28 = vld [vmem:[#allocation14_spill] sm:$0xff]  ;;  %v6720_v57 = vrot.slane %v6718_v32, 2  ;;  %v12435_v32 = vld [vmem:[#allocation20_spill] sm:$0xff] }
 0x4e7   : > { %v5922_v52 = vpop.f32.mrf.mxu2 }
 0x4e8   : > { %v11694_v6 = vadd.f32 %v5922_v52, %v11396_v23  ;;  %v6711_v23 = vrot.slane %v6709_v3, 2  ;;  %v6396_v52 = vrot.slane %v8553_v39, 2  ;;  %v6721_v39 = vshll.u32 %v8554_v10, 16 }
 0x4e9   : > { %v6483_v11 = vpop.f32.mrf.mxu0  ;;  %8339 = vmatmul.msk.bf16.gmra.mxu1 %vm825_vm4, %v6707_v62  ;;  %v6129_v26 = vpop.f32.mrf.mxu3  ;;  %v12430_v62 = vld [vmem:[#allocation45_spill] sm:$0xff] }
 0x4ea   : > { %v11696_v15 = vadd.f32 %v6483_v11, %v6209_v22  ;;  %v6212_v5 = vadd.f32 %v6129_v26, %v11524_v9  ;;  %v6714_v22 = vrot.slane %v6712_v21, 3  ;;  %v5815_v60 = vsel %vm496_vm3, %v12430_v62, %v5814_v49  ;;  %v6848_v11 = vpop.f32.mrf.mxu1  ;;  %v12431_v26 = vld [vmem:[#allocation25_spill] sm:$0xff]  ;;  %v12434_v62 = vld [vmem:[#allocation30_spill] sm:$0xff] }
 0x4eb   : > { %v6397_v21 = vsel %vm2409_vm6, %v6394_v30, %v6396_v52 }
 0x4ec   : > { %8320 = vmatmul.msk.bf16.gmra.mxu0 %vm825_vm4, %v6395_v14  ;;  %v6715_v55 = vor.u32 %v6714_v22, %v6711_v23 }
 0x4ee   : > { %8235 = vmatmul.msk.bf16.gmra.mxu3 %vm825_vm4, %v12429_v54  ;;  %v6716_v0 = vsel %vm3006_vm10, %v6706_v50, %v6715_v55  ;;  %v11729_v50 = vadd.f32 %v5601_v46, %v11645_v51  ;;  %v6723_v54 = vrot.slane %v6721_v39, 3  ;;  %v11742_v51 = vadd.f32 %v6846_v42, %v11662_v4  ;;  %v8555_v4 = vld [vmem:[#allocation2 + $0x78] sm:$0xff] }
 0x4ef   : > { %v5924_v53 = vpop.f32.mrf.mxu2  ;;  %v6398_v46 = vrot.slane %v8554_v10, 2  ;;  %v6727_v42 = vshrl.u32 %v8555_v4, 16  ;;  %v11755_v10 = vadd.f32 %v6848_v11, %v11680_v24  ;;  %v6400_v11 = vrot.slane %v8555_v4, 2 }
 0x4f0   : > { %v11707_v12 = vadd.f32 %v5924_v53, %v11403_v16 }
 0x4f1   : > { %v6485_v9 = vpop.f32.mrf.mxu0  ;;  %v6132_v25 = vpop.f32.mrf.mxu3 }
 0x4f2   : > { %v11709_v36 = vadd.f32 %v6485_v9, %v6210_v59  ;;  %v6213_v56 = vadd.f32 %v6132_v25, %v11540_v40  ;;  %v6851_v22 = vpop.f32.mrf.mxu1  ;;  %v6724_v25 = vor.u32 %v6723_v54, %v6720_v57 }
 0x4f3   : > { %v11768_v24 = vadd.f32 %v6851_v22, %v11696_v15  ;;  %v8556_v15 = vld [vmem:[#allocation2 + $0x80] sm:$0xff] }
 0x4f4   : > { %8222 = vmatmul.msk.bf16.gmra.mxu2 %vm825_vm4, %v5815_v60  ;;  %v6725_v60 = vsel %vm3006_vm10, %v6715_v55, %v6724_v25  ;;  %v6730_v55 = vshll.u32 %v8555_v4, 16  ;;  %v6736_v22 = vshrl.u32 %v8556_v15, 16 }
 0x4f6   : > { %v6732_v39 = vrot.slane %v6730_v55, 3 }
 0x4f7   : > { %v5927_v58 = vpop.f32.mrf.mxu2 }
 0x4f8   : > { %v11721_v40 = vadd.f32 %v5927_v58, %v12431_v26  ;;  %v6399_v26 = vsel %vm2409_vm6, %v6396_v52, %v6398_v46 }
 0x4f9   : > { %v6488_v16 = vpop.f32.mrf.mxu0  ;;  %8340 = vmatmul.msk.bf16.gmra.mxu1 %vm825_vm4, %v6716_v0  ;;  %v6134_v59 = vpop.f32.mrf.mxu3 }
 0x4fa   : > { %v11723_v14 = vadd.f32 %v6488_v16, %v6211_v37  ;;  %v6214_v3 = vadd.f32 %v6134_v59, %v11556_v18  ;;  %v12433_v18 = vld [vmem:[#allocation18_spill] sm:$0xff] }
 0x4fc   : > { %8321 = vmatmul.msk.bf16.gmra.mxu0 %vm825_vm4, %v6397_v21  ;;  %v6853_v21 = vpop.f32.mrf.mxu1 }
 0x4fe   : > { %8236 = vmatmul.msk.bf16.gmra.mxu3 %vm825_vm4, %v12432_v28 }
 0x4ff   : > { %v5929_v23 = vpop.f32.mrf.mxu2 }
 0x500   : > { %v11734_v9 = vadd.f32 %v5929_v23, %v12433_v18 }
 0x501   : > { %v6490_v37 = vpop.f32.mrf.mxu0  ;;  %v6137_v53 = vpop.f32.mrf.mxu3 }
 0x502   : > { %v11736_v30 = vadd.f32 %v6490_v37, %v6212_v5  ;;  %v6215_v49 = vadd.f32 %v6137_v53, %v11572_v29  ;;  %v12436_v53 = vld [vmem:[#allocation31_spill] sm:$0xff] }
 0x504   : > { %8349 = vmatmul.msk.bf16.vlgmr.msra.gmra.mxu2 %vm825_vm4, %v12434_v62  ;;  %v6856_v37 = vpop.f32.mrf.mxu1 }
 0x507   : > { %v5932_v0 = vpop.f32.mrf.mxu2 }
 0x508   : > { %v11747_v5 = vadd.f32 %v5932_v0, %v11500_v19  ;;  %v6729_v19 = vrot.slane %v6727_v42, 2 }
 0x509   : > { %v6493_v58 = vpop.f32.mrf.mxu0  ;;  %8341 = vmatmul.msk.bf16.gmra.mxu1 %vm825_vm4, %v6725_v60  ;;  %v6139_v16 = vpop.f32.mrf.mxu3 }
 0x50a   : > { %v11749_v59 = vadd.f32 %v6493_v58, %v6213_v56  ;;  %v6216_v29 = vadd.f32 %v6139_v16, %v11588_v8  ;;  %v6733_v23 = vor.u32 %v6732_v39, %v6729_v19  ;;  %v6401_v58 = vsel %vm2409_vm6, %v6398_v46, %v6400_v11  ;;  %v12438_v19 = vld [vmem:[#allocation34_spill] sm:$0xff] }
 0x50b   : > { %v6739_v16 = vshll.u32 %v8556_v15, 16  ;;  %v11791_v39 = vadd.f32 %v6856_v37, %v11723_v14 }
 0x50c   : > { %8322 = vmatmul.msk.bf16.gmra.mxu0 %vm825_vm4, %v6399_v26  ;;  %v6734_v18 = vsel %vm3006_vm10, %v6724_v25, %v6733_v23  ;;  %v11781_v25 = vadd.f32 %v6853_v21, %v11709_v36  ;;  %v12437_v26 = vld [vmem:[#allocation46_spill] sm:$0xff]  ;;  %v6858_v4 = vpop.f32.mrf.mxu1  ;;  %v6402_v36 = vrot.slane %v8556_v15, 2 }
 0x50d   : > { %v6741_v42 = vrot.slane %v6739_v16, 3  ;;  %v11801_v37 = vadd.f32 %v6858_v4, %v11736_v30  ;;  %v12440_v16 = vld [vmem:[#allocation37_spill] sm:$0xff] }
 0x50e   : > { %8237 = vmatmul.msk.bf16.gmra.mxu3 %vm825_vm4, %v12435_v32 }
 0x50f   : > { %v5934_v56 = vpop.f32.mrf.mxu2 }
 0x510   : > { %v11760_v8 = vadd.f32 %v5934_v56, %v11516_v48 }
 0x511   : > { %v6495_v28 = vpop.f32.mrf.mxu0  ;;  %v6142_v57 = vpop.f32.mrf.mxu3 }
 0x512   : > { %v11762_v52 = vadd.f32 %v6495_v28, %v6214_v3  ;;  %v6217_v54 = vadd.f32 %v6142_v57, %v11602_v63 }
 0x514   : > { %8350 = vmatmul.msk.bf16.gmra.mxu2 %vm825_vm4, %v12436_v53  ;;  %v6861_v53 = vpop.f32.mrf.mxu1 }
 0x517   : > { %v5937_v62 = vpop.f32.mrf.mxu2 }
 0x518   : > { %v11773_v3 = vadd.f32 %v5937_v62, %v11532_v61  ;;  %v6738_v61 = vrot.slane %v6736_v22, 2 }
 0x519   : > { %v6498_v60 = vpop.f32.mrf.mxu0  ;;  %8342 = vmatmul.msk.bf16.gmra.mxu1 %vm825_vm4, %v6734_v18  ;;  %v6144_v48 = vpop.f32.mrf.mxu3  ;;  %v8557_v18 = vld [vmem:[#allocation2 + $0x88] sm:$0xff] }
 0x51a   : > { %v11775_v63 = vadd.f32 %v6498_v60, %v6215_v49  ;;  %v6218_v0 = vadd.f32 %v6144_v48, %v11618_v41  ;;  %v6742_v32 = vor.u32 %v6741_v42, %v6738_v61  ;;  %v6745_v62 = vshrl.u32 %v8557_v18, 16 }
 0x51b   : > { %v6748_v14 = vshll.u32 %v8557_v18, 16  ;;  %v6404_v30 = vrot.slane %v8557_v18, 2 }
 0x51c   : > { %8323 = vmatmul.msk.bf16.gmra.mxu0 %vm825_vm4, %v6401_v58  ;;  %v6743_v21 = vsel %vm3006_vm10, %v6733_v23, %v6742_v32  ;;  %v12439_v23 = vld [vmem:[#allocation48_spill] sm:$0xff]  ;;  %v6747_v60 = vrot.slane %v6745_v62, 2  ;;  %v6863_v22 = vpop.f32.mrf.mxu1 }
 0x51d   : > { %v6750_v48 = vrot.slane %v6748_v14, 3 }
 0x51e   : > { %8238 = vmatmul.msk.bf16.gmra.mxu3 %vm825_vm4, %v12437_v26  ;;  %v11811_v26 = vadd.f32 %v6861_v53, %v11749_v59 }
 0x51f   : > { %v5939_v49 = vpop.f32.mrf.mxu2 }
 0x520   : > { %v11786_v41 = vadd.f32 %v5939_v49, %v11548_v44 }
 0x521   : > { %v6500_v55 = vpop.f32.mrf.mxu0 }
 0x522   : > { %v6577_v46 = vadd.f32 %v6500_v55, %v6216_v29  ;;  %v6403_v29 = vsel %vm2409_vm6, %v6400_v11, %v6402_v36  ;;  %v6751_v11 = vor.u32 %v6750_v48, %v6747_v60  ;;  %v8559_v60 = vld [vmem:[#allocation2 + $0x98] sm:$0xff] }
 0x523   : > { %v6763_v48 = vshrl.u32 %v8559_v60, 16 }
 0x524   : > { %8351 = vmatmul.msk.bf16.gmra.mxu2 %vm825_vm4, %v12438_v19  ;;  %v6752_v4 = vsel %vm3006_vm10, %v6742_v32, %v6751_v11  ;;  %v11821_v19 = vadd.f32 %v6863_v22, %v11762_v52  ;;  %v6866_v59 = vpop.f32.mrf.mxu1 }
 0x527   : > { %v5942_v56 = vpop.f32.mrf.mxu2 }
 0x528   : > { %v11796_v57 = vadd.f32 %v5942_v56, %v11562_v13 }
 0x529   : > { %v6503_v28 = vpop.f32.mrf.mxu0  ;;  %8343 = vmatmul.msk.bf16.gmra.mxu1 %vm825_vm4, %v6743_v21  ;;  %v12441_v21 = vld [vmem:[#allocation50_spill] sm:$0xff] }
 0x52a   : > { %v6578_v44 = vadd.f32 %v6503_v28, %v6217_v54 }
 0x52c   : > { %8324 = vmatmul.msk.bf16.gmra.mxu0 %vm825_vm4, %v6403_v29  ;;  %v11831_v29 = vadd.f32 %v6866_v59, %v11775_v63  ;;  %v6868_v62 = vpop.f32.mrf.mxu1  ;;  %v12443_v63 = vld [vmem:[#allocation52_spill] sm:$0xff] }
 0x52e   : > { %8239 = vmatmul.msk.bf16.gmra.mxu3 %vm825_vm4, %v12439_v23 }
 0x52f   : > { %v5944_v58 = vpop.f32.mrf.mxu2 }
 0x530   : > { %v11806_v54 = vadd.f32 %v5944_v58, %v11578_v45  ;;  %v6405_v45 = vsel %vm2409_vm6, %v6402_v36, %v6404_v30  ;;  %v12442_v36 = vld [vmem:[#allocation40_spill] sm:$0xff]  ;;  %v6766_v58 = vshll.u32 %v8559_v60, 16 }
 0x531   : > { %v6505_v13 = vpop.f32.mrf.mxu0 }
 0x532   : > { %v6579_v15 = vadd.f32 %v6505_v13, %v6218_v0  ;;  %v8558_v0 = vld [vmem:[#allocation2 + $0x90] sm:$0xff]  ;;  %v11840_v13 = vadd.f32 %v6868_v62, %v6577_v46  ;;  %v6768_v22 = vrot.slane %v6766_v58, 3 }
 0x533   : > { %v6754_v49 = vshrl.u32 %v8558_v0, 16  ;;  %v6757_v55 = vshll.u32 %v8558_v0, 16  ;;  %v6406_v18 = vrot.slane %v8558_v0, 2  ;;  %v6408_v0 = vrot.slane %v8559_v60, 2 }
 0x534   : > { %8352 = vmatmul.msk.bf16.gmra.mxu2 %vm825_vm4, %v12440_v16 }
 0x535   : > { %v6756_v32 = vrot.slane %v6754_v49, 2  ;;  %v6759_v56 = vrot.slane %v6757_v55, 3  ;;  %v6409_v59 = vsel %vm2409_vm6, %v6406_v18, %v6408_v0 }
 0x537   : > { %v5947_v61 = vpop.f32.mrf.mxu2  ;;  %v6760_v53 = vor.u32 %v6759_v56, %v6756_v32  ;;  %v6279_v56 = vld [vmem:[#allocation2 + $0xa0] sm:$0x3] }
 0x538   : > { %v11816_v42 = vadd.f32 %v5947_v61, %v11594_v38 }
 0x539   : > { %8344 = vmatmul.msk.bf16.gmra.mxu1 %vm825_vm4, %v6752_v4  ;;  %v6761_v52 = vsel %vm3006_vm10, %v6751_v11, %v6760_v53  ;;  %v6765_v11 = vrot.slane %v6763_v48, 2 }
 0x53b   : > { %v6769_v61 = vor.u32 %v6768_v22, %v6765_v11  ;;  %v12447_v22 = vld [vmem:[#allocation13_spill] sm:$0xff] }
 0x53c   : > { %8325 = vmatmul.msk.bf16.gmra.mxu0 %vm825_vm4, %v6405_v45  ;;  %v12444_v45 = vld [vmem:[#allocation7_spill] sm:$0xff] }
 0x53d   : > { %v6770_v46 = vsel %vm3006_vm10, %v6760_v53, %v6769_v61 }
 0x53e   : > { %8240 = vmatmul.msk.bf16.gmra.mxu3 %vm825_vm4, %v12441_v21 }
 0x53f   : > { %v5949_v28 = vpop.f32.mrf.mxu2 }
 0x540   : > { %v11826_v38 = vadd.f32 %v5949_v28, %v11610_v7  ;;  %v6407_v7 = vsel %vm2409_vm6, %v6404_v30, %v6406_v18  ;;  %v12446_v18 = vld [vmem:[#allocation10_spill] sm:$0xff] }
 0x544   : > { %8353 = vmatmul.msk.bf16.gmra.mxu2 %vm825_vm4, %v12442_v36  ;;  %v6355_v36 = vunpack.c.l.b16 %v6279_v56 }
 0x547   : > { %v5952_v14 = vpop.f32.mrf.mxu2 }
 0x548   : > { %v11836_v23 = vadd.f32 %v5952_v14, %v11625_v1  ;;  %v6871_v1 = vpop.f32.mrf.mxu1 }
 0x549   : > { %8345 = vmatmul.msk.bf16.gmra.mxu1 %vm825_vm4, %v6761_v52  ;;  %v11849_v30 = vadd.f32 %v6871_v1, %v6578_v44 }
 0x54c   : > { %8326 = vmatmul.msk.bf16.gmra.mxu0 %vm825_vm4, %v6407_v7 }
 0x54e   : > { %8241 = vmatmul.msk.bf16.gmra.mxu3 %vm825_vm4, %v12443_v63 }
 0x54f   : > { %v5954_v16 = vpop.f32.mrf.mxu2 }
 0x550   : > { %v11845_v4 = vadd.f32 %v5954_v16, %v11640_v2  ;;  %v12445_v2 = vld [vmem:[#allocation51_spill] sm:$0xff]  ;;  %v6873_v44 = vpop.f32.mrf.mxu1 }
 0x551   : > { %v6772_v21 = vshrl.u32 %v12445_v2, 16  ;;  %v6775_v32 = vshll.u32 %v12445_v2, 16  ;;  %v11860_v28 = vadd.f32 %v6873_v44, %v6579_v15  ;;  %v7323_v2 = vld [vmem:[#allocation3] sm:$0xff] }
 0x553   : > { %v6774_v53 = vrot.slane %v6772_v21, 2  ;;  %v6777_v52 = vrot.slane %v6775_v32, 3 }
 0x554   : > { %8354 = vmatmul.msk.bf16.gmra.mxu2 %vm825_vm4, %v12444_v45  ;;  %v12448_v45 = vld [vmem:[#allocation16_spill] sm:$0xff] }
 0x555   : > { %v6778_v7 = vor.u32 %v6777_v52, %v6774_v53  ;;  %v12449_v53 = vld [vmem:[#allocation19_spill] sm:$0xff] }
 0x557   : > { %v5957_v49 = vpop.f32.mrf.mxu2  ;;  %v6779_v48 = vsel %vm3006_vm10, %v6769_v61, %v6778_v7 }
 0x558   : > { %v11854_v55 = vadd.f32 %v5957_v49, %v11655_v43  ;;  %v6374_v43 = vpack.c.b16 %v6355_v36, %v6355_v36 }
 0x559   : > { %8346 = vmatmul.msk.bf16.gmra.mxu1 %vm825_vm4, %v6770_v46 }
 0x55a   : > { %v6410_v60 = vrot.slane %v6374_v43, 2 }
 0x55c   : > { %8327 = vmatmul.msk.bf16.gmra.mxu0 %vm825_vm4, %v6409_v59  ;;  %v6411_v63 = vsel %vm2409_vm6, %v6408_v0, %v6410_v60  ;;  %v11890_v0 = vld [vmem:[%s12182_s6] ss:$0 sm:$0xff] }
 0x55f   : > { %v5959_v62 = vpop.f32.mrf.mxu2 }
 0x560   : > { %v11863_v14 = vadd.f32 %v5959_v62, %v11673_v34 }
 0x564   : > { %8355 = vmatmul.msk.bf16.gmra.mxu2 %vm825_vm4, %v12446_v18 }
 0x567   : > { %v5962_v58 = vpop.f32.mrf.mxu2 }
 0x568   : > { %v11870_v15 = vadd.f32 %v5962_v58, %v11686_v47 }
 0x569   : > { %8347 = vmatmul.msk.bf16.gmra.mxu1 %vm825_vm4, %v6779_v48 }
 0x56c   : > { %8328 = vmatmul.msk.bf16.gmra.mxu0 %vm825_vm4, %v6411_v63  ;;  %v7325_v63 = vld [vmem:[#allocation3 + $0x10] sm:$0xff] }
 0x56f   : > { %v5964_v34 = vpop.f32.mrf.mxu2 }
 0x570   : > { %v11875_v11 = vadd.f32 %v5964_v34, %v11702_v35 }
 0x574   : > { %8356 = vmatmul.msk.bf16.gmra.mxu2 %vm825_vm4, %v12447_v22 }
 0x577   : > { %v5967_v16 = vpop.f32.mrf.mxu2 }
 0x578   : > { %v11880_v1 = vadd.f32 %v5967_v16, %v11716_v20  ;;  %v11896_v20 = vld [vmem:[%s12183_s7] ss:$0 sm:$0xff] }
 0x57f   : > { %v5969_v61 = vpop.f32.mrf.mxu2 }
 0x580   : > { %v11883_v47 = vadd.f32 %v5969_v61, %v11729_v50 }
 0x584   : > { %8357 = vmatmul.msk.bf16.gmra.mxu2 %vm825_vm4, %v12448_v45 }
 0x587   : > { %v7081_v35 = vpop.f32.mrf.mxu2 }
 0x588   : > { %v7171_v46 = vadd.f32 %v7081_v35, %v11742_v51  ;;  %v12450_v35 = vld [vmem:[#allocation22_spill] sm:$0xff] }
 0x58a   : > { %v7211_v49 = vmul.f32 %v11890_v0, %v7171_v46 }
 0x58c   : > { %v7251_v50 = vadd.f32 %v11896_v20, %v7211_v49  ;;  %v7326_v49 = vld [vmem:[#allocation3 + $0x18] sm:$0xff] }
 0x58e   : > { %v7287_v59 = vmax.f32 %v7251_v50, 0.0 }
 0x58f   : > { %v7083_v21 = vpop.f32.mrf.mxu2 }
 0x590   : > { %v7359_v32 = vadd.f32 %v7323_v2, %v7287_v59  ;;  %v7172_v56 = vadd.f32 %v7083_v21, %v11755_v10  ;;  %v7324_v10 = vld [vmem:[#allocation3 + $0x8] sm:$0xff] }
 0x592   : > { %v7395_v51 = vpack.c.bf16 %v7359_v32, %v7359_v32  ;;  %v7212_v44 = vmul.f32 %v11890_v0, %v7172_v56 }
 0x594   : > { %7431 = vst.msk [vmem:[%s11905_s29] sm:$0xf] %vm3973_vm8, %v7395_v51  ;;  %v7252_v36 = vadd.f32 %v11896_v20, %v7212_v44  ;;  %8358 = vmatmul.msk.bf16.gmra.mxu2 %vm825_vm4, %v12449_v53  ;;  %v11930_v51 = vpop.f32.mrf.mxu3  ;;  %v7327_v44 = vld [vmem:[#allocation3 + $0x20] sm:$0xff] }
 0x596   : > { %v7288_v52 = vmax.f32 %v7252_v36, 0.0 }
 0x597   : > { %v7086_v62 = vpop.f32.mrf.mxu2 }
 0x598   : > { %v7360_v43 = vadd.f32 %v7324_v10, %v7288_v52  ;;  %v7173_v7 = vadd.f32 %v7086_v62, %v11768_v24  ;;  %v11933_v10 = vpop.f32.mrf.mxu0 }
 0x59a   : > { %v7396_v18 = vpack.c.bf16 %v7360_v43, %v7360_v43  ;;  %v7213_v60 = vmul.f32 %v11890_v0, %v7173_v7  ;;  %v12451_v7 = vld [vmem:[#allocation43_spill] sm:$0xff] }
 0x59c   : > { %7432 = vst.msk [vmem:[%s11905_s29 + $0x4] sm:$0xf] %vm3973_vm8, %v7396_v18  ;;  %v7253_v48 = vadd.f32 %v11896_v20, %v7213_v60  ;;  %v11941_v60 = vpop.f32.mrf.mxu1 }
 0x59e   : > { %v7289_v58 = vmax.f32 %v7253_v48, 0.0  ;;  %v7328_v48 = vld [vmem:[#allocation3 + $0x28] sm:$0xff] }
 0x59f   : > { %v7088_v34 = vpop.f32.mrf.mxu2 }
 0x5a0   : > { %v7361_v22 = vadd.f32 %v7325_v63, %v7289_v58  ;;  %v7174_v16 = vadd.f32 %v7088_v34, %v11781_v25  ;;  %v11944_v34 = vpop.f32.mrf.mxu3 }
 0x5a2   : > { %v7397_v61 = vpack.c.bf16 %v7361_v22, %v7361_v22  ;;  %v7214_v45 = vmul.f32 %v11890_v0, %v7174_v16 }
 0x5a4   : > { %7433 = vst.msk [vmem:[%s11905_s29 + $0x8] sm:$0xf] %vm3973_vm8, %v7397_v61  ;;  %v7254_v24 = vadd.f32 %v11896_v20, %v7214_v45  ;;  %8359 = vmatmul.msk.bf16.gmra.mxu2 %vm825_vm4, %v12450_v35  ;;  %v11947_v61 = vpop.f32.mrf.mxu0  ;;  %v7329_v35 = vld [vmem:[#allocation3 + $0x30] sm:$0xff] }
 0x5a6   : > { %v7290_v46 = vmax.f32 %v7254_v24, 0.0 }
 0x5a7   : > { %v7091_v50 = vpop.f32.mrf.mxu2 }
 0x5a8   : > { %v7362_v59 = vadd.f32 %v7326_v49, %v7290_v46  ;;  %v7175_v2 = vadd.f32 %v7091_v50, %v11791_v39 }
 0x5aa   : > { %v7398_v21 = vpack.c.bf16 %v7362_v59, %v7362_v59  ;;  %v7215_v25 = vmul.f32 %v11890_v0, %v7175_v2  ;;  %v11953_v59 = vpop.f32.mrf.mxu1 }
 0x5ac   : > { %7434 = vst.msk [vmem:[%s11905_s29 + $0xc] sm:$0xf] %vm3973_vm8, %v7398_v21  ;;  %v7255_v32 = vadd.f32 %v11896_v20, %v7215_v25  ;;  %v11956_v21 = vpop.f32.mrf.mxu3 }
 0x5ae   : > { %v7291_v56 = vmax.f32 %v7255_v32, 0.0  ;;  %v12452_v32 = vld [vmem:[#allocation44_spill] sm:$0xff] }
 0x5af   : > { %v7093_v36 = vpop.f32.mrf.mxu2 }
 0x5b0   : > { %v7363_v53 = vadd.f32 %v7327_v44, %v7291_v56  ;;  %v7176_v52 = vadd.f32 %v7093_v36, %v11801_v37  ;;  %v11963_v56 = vpop.f32.mrf.mxu0  ;;  %v7330_v36 = vld [vmem:[#allocation3 + $0x38] sm:$0xff] }
 0x5b2   : > { %v7399_v62 = vpack.c.bf16 %v7363_v53, %v7363_v53  ;;  %v7216_v39 = vmul.f32 %v11890_v0, %v7176_v52 }
 0x5b4   : > { %7435 = vst.msk [vmem:[%s11905_s29 + $0x10] sm:$0xf] %vm3973_vm8, %v7399_v62  ;;  %v7256_v43 = vadd.f32 %v11896_v20, %v7216_v39  ;;  %8360 = vmatmul.msk.bf16.gmra.mxu2 %vm825_vm4, %v12451_v7 }
 0x5b6   : > { %v7292_v18 = vmax.f32 %v7256_v43, 0.0  ;;  %v11967_v43 = vpop.f32.mrf.mxu1 }
 0x5b7   : > { %v7096_v58 = vpop.f32.mrf.mxu2 }
 0x5b8   : > { %v7364_v63 = vadd.f32 %v7328_v48, %v7292_v18  ;;  %v7177_v37 = vadd.f32 %v7096_v58, %v11811_v26  ;;  %v11972_v18 = vpop.f32.mrf.mxu3  ;;  %v11974_v58 = vpop.f32.mrf.mxu0 }
 0x5ba   : > { %v7400_v22 = vpack.c.bf16 %v7364_v63, %v7364_v63  ;;  %v7217_v16 = vmul.f32 %v11890_v0, %v7177_v37  ;;  %v7331_v63 = vld [vmem:[#allocation3 + $0x40] sm:$0xff] }
 0x5bc   : > { %7436 = vst.msk [vmem:[%s11905_s29 + $0x14] sm:$0xf] %vm3973_vm8, %v7400_v22  ;;  %v7257_v45 = vadd.f32 %v11896_v20, %v7217_v16 }
 0x5be   : > { %v7293_v24 = vmax.f32 %v7257_v45, 0.0 }
 0x5bf   : > { %v7098_v46 = vpop.f32.mrf.mxu2 }
 0x5c0   : > { %v7365_v49 = vadd.f32 %v7329_v35, %v7293_v24  ;;  %v7178_v50 = vadd.f32 %v7098_v46, %v11821_v19  ;;  %v12453_v35 = vld [vmem:[#allocation47_spill] sm:$0xff]  ;;  %v11983_v46 = vpop.f32.mrf.mxu1 }
 0x5c2   : > { %v7401_v26 = vpack.c.bf16 %v7365_v49, %v7365_v49  ;;  %v7218_v2 = vmul.f32 %v11890_v0, %v7178_v50  ;;  %v11985_v50 = vpop.f32.mrf.mxu3 }
 0x5c4   : > { %7437 = vst.msk [vmem:[%s11905_s29 + $0x18] sm:$0xf] %vm3973_vm8, %v7401_v26  ;;  %v7258_v25 = vadd.f32 %v11896_v20, %v7218_v2  ;;  %8361 = vmatmul.msk.bf16.gmra.mxu2 %vm825_vm4, %v12452_v32  ;;  %v7332_v26 = vld [vmem:[#allocation3 + $0x48] sm:$0xff]  ;;  %v11988_v32 = vpop.f32.mrf.mxu0 }
 0x5c6   : > { %v7294_v44 = vmax.f32 %v7258_v25, 0.0 }
 0x5c7   : > { %v7101_v19 = vpop.f32.mrf.mxu2 }
 0x5c8   : > { %v7366_v53 = vadd.f32 %v7330_v36, %v7294_v44  ;;  %v7179_v52 = vadd.f32 %v7101_v19, %v11831_v29 }
 0x5ca   : > { %v7402_v62 = vpack.c.bf16 %v7366_v53, %v7366_v53  ;;  %v7219_v39 = vmul.f32 %v11890_v0, %v7179_v52  ;;  %v11994_v52 = vpop.f32.mrf.mxu1 }
 0x5cc   : > { %7438 = vst.msk [vmem:[%s11905_s29 + $0x1c] sm:$0xf] %vm3973_vm8, %v7402_v62  ;;  %v7259_v7 = vadd.f32 %v11896_v20, %v7219_v39  ;;  %v7333_v62 = vld [vmem:[#allocation3 + $0x50] sm:$0xff] }
 0x5ce   : > { %v7295_v48 = vmax.f32 %v7259_v7, 0.0  ;;  %v6219_v7 = vadd.f32 %v11930_v51, %v11633_v27  ;;  %v7334_v51 = vld [vmem:[#allocation3 + $0x58] sm:$0xff] }
 0x5cf   : > { %v7103_v37 = vpop.f32.mrf.mxu2 }
 0x5d0   : > { %v7367_v22 = vadd.f32 %v7331_v63, %v7295_v48  ;;  %v7180_v16 = vadd.f32 %v7103_v37, %v11840_v13  ;;  %v11999_v63 = vpop.f32.mrf.mxu3  ;;  %v6580_v37 = vadd.f32 %v11933_v10, %v6219_v7  ;;  %v6220_v10 = vadd.f32 %v11944_v34, %v11648_v17  ;;  %v7335_v34 = vld [vmem:[#allocation3 + $0x60] sm:$0xff] }
 0x5d2   : > { %v7403_v29 = vpack.c.bf16 %v7367_v22, %v7367_v22  ;;  %v7220_v45 = vmul.f32 %v11890_v0, %v7180_v16 }
 0x5d4   : > { %7439 = vst.msk [vmem:[%s11905_s29 + $0x20] sm:$0xf] %vm3973_vm8, %v7403_v29  ;;  %v7260_v24 = vadd.f32 %v11896_v20, %v7220_v45  ;;  %8362 = vmatmul.msk.bf16.gmra.mxu2 %vm825_vm4, %v12453_v35  ;;  %v12003_v29 = vpop.f32.mrf.mxu0 }
 0x5d6   : > { %v7296_v49 = vmax.f32 %v7260_v24, 0.0  ;;  %v12454_v24 = vld [vmem:[#allocation49_spill] sm:$0xff] }
 0x5d7   : > { %v7106_v2 = vpop.f32.mrf.mxu2 }
 0x5d8   : > { %v7368_v25 = vadd.f32 %v7332_v26, %v7296_v49  ;;  %v7181_v13 = vadd.f32 %v7106_v2, %v11849_v30  ;;  %v12013_v2 = vpop.f32.mrf.mxu1 }
 0x5da   : > { %v7404_v44 = vpack.c.bf16 %v7368_v25, %v7368_v25  ;;  %v7221_v36 = vmul.f32 %v11890_v0, %v7181_v13  ;;  %v6581_v25 = vadd.f32 %v11947_v61, %v6220_v10  ;;  %v6221_v61 = vadd.f32 %v11956_v21, %v11660_v31 }
 0x5dc   : > { %7440 = vst.msk [vmem:[%s11905_s29 + $0x24] sm:$0xf] %vm3973_vm8, %v7404_v44  ;;  %v7261_v19 = vadd.f32 %v11896_v20, %v7221_v36  ;;  %v12017_v36 = vpop.f32.mrf.mxu3  ;;  %v6949_v17 = vadd.f32 %v11953_v59, %v6581_v25  ;;  %v12455_v59 = vld [vmem:[#allocation53_spill] sm:$0xff] }
 0x5de   : > { %v7297_v53 = vmax.f32 %v7261_v19, 0.0  ;;  %v12022_v19 = vpop.f32.mrf.mxu0 }
 0x5df   : > { %v7108_v39 = vpop.f32.mrf.mxu2 }
 0x5e0   : > { %v7369_v48 = vadd.f32 %v7333_v62, %v7297_v53  ;;  %v7182_v30 = vadd.f32 %v7108_v39, %v11860_v28  ;;  %v6948_v28 = vadd.f32 %v11941_v60, %v6580_v37 }
 0x5e2   : > { %v7405_v22 = vpack.c.bf16 %v7369_v48, %v7369_v48  ;;  %v7222_v16 = vmul.f32 %v11890_v0, %v7182_v30  ;;  %v6582_v48 = vadd.f32 %v11963_v56, %v6221_v61  ;;  %v7336_v56 = vld [vmem:[#allocation3 + $0x68] sm:$0xff] }
 0x5e4   : > { %7441 = vst.msk [vmem:[%s11905_s29 + $0x28] sm:$0xf] %vm3973_vm8, %v7405_v22  ;;  %v7262_v45 = vadd.f32 %v11896_v20, %v7222_v16  ;;  %8363 = vmatmul.msk.bf16.gmra.mxu2 %vm825_vm4, %v12454_v24  ;;  %v12029_v22 = vpop.f32.mrf.mxu1  ;;  %v6950_v21 = vadd.f32 %v11967_v43, %v6582_v48 }
 0x5e6   : > { %v7298_v27 = vmax.f32 %v7262_v45, 0.0  ;;  %v12036_v45 = vpop.f32.mrf.mxu3  ;;  %v12039_v24 = vpop.f32.mrf.mxu0 }
 0x5e7   : > { %v7111_v35 = vpop.f32.mrf.mxu2 }
 0x5e8   : > { %v7370_v49 = vadd.f32 %v7334_v51, %v7298_v27  ;;  %v7183_v26 = vadd.f32 %v7111_v35, %v6948_v28  ;;  %v6222_v28 = vadd.f32 %v11972_v18, %v11678_v33  ;;  %v6223_v18 = vadd.f32 %v11985_v50, %v11694_v6  ;;  %v7338_v50 = vld [vmem:[#allocation3 + $0x78] sm:$0xff] }
 0x5ea   : > { %v7406_v13 = vpack.c.bf16 %v7370_v49, %v7370_v49  ;;  %v7223_v44 = vmul.f32 %v11890_v0, %v7183_v26  ;;  %v6583_v10 = vadd.f32 %v11974_v58, %v6222_v28 }
 0x5ec   : > { %7442 = vst.msk [vmem:[%s11905_s29 + $0x2c] sm:$0xf] %vm3973_vm8, %v7406_v13  ;;  %v7263_v60 = vadd.f32 %v11896_v20, %v7223_v44  ;;  %v6893_v43 = vpop.f32.mrf.mxu1  ;;  %v6951_v44 = vadd.f32 %v11983_v46, %v6583_v10  ;;  %v7339_v10 = vld [vmem:[#allocation3 + $0x80] sm:$0xff] }
 0x5ee   : > { %v7299_v53 = vmax.f32 %v7263_v60, 0.0  ;;  %v12049_v60 = vpop.f32.mrf.mxu3 }
 0x5ef   : > { %v7113_v62 = vpop.f32.mrf.mxu2 }
 0x5f0   : > { %v7371_v39 = vadd.f32 %v7335_v34, %v7299_v53  ;;  %v7184_v7 = vadd.f32 %v7113_v62, %v6949_v17  ;;  %v7337_v53 = vld [vmem:[#allocation3 + $0x70] sm:$0xff]  ;;  %v6528_v34 = vpop.f32.mrf.mxu0  ;;  %v6584_v62 = vadd.f32 %v11988_v32, %v6223_v18  ;;  %v6224_v32 = vadd.f32 %v11999_v63, %v11707_v12 }
 0x5f1   : > { %v6225_v12 = vadd.f32 %v12017_v36, %v11721_v40  ;;  %v7340_v36 = vld [vmem:[#allocation3 + $0x88] sm:$0xff] }
 0x5f2   : > { %v7407_v30 = vpack.c.bf16 %v7371_v39, %v7371_v39  ;;  %v7224_v37 = vmul.f32 %v11890_v0, %v7184_v7  ;;  %v12456_v7 = vld [vmem:[#allocation54_spill] sm:$0xff] }
 0x5f4   : > { %7443 = vst.msk [vmem:[%s11905_s29 + $0x30] sm:$0xf] %vm3973_vm8, %v7407_v30  ;;  %v7264_v16 = vadd.f32 %v11896_v20, %v7224_v37  ;;  %8364 = vmatmul.msk.bf16.gmra.mxu2 %vm825_vm4, %v12455_v59  ;;  %v6952_v30 = vadd.f32 %v11994_v52, %v6584_v62  ;;  %v6896_v6 = vpop.f32.mrf.mxu1 }
 0x5f6   : > { %v7300_v31 = vmax.f32 %v7264_v16, 0.0 }
 0x5f7   : > { %v7116_v27 = vpop.f32.mrf.mxu2 }
 0x5f8   : > { %v7372_v51 = vadd.f32 %v7336_v56, %v7300_v31  ;;  %v7185_v35 = vadd.f32 %v7116_v27, %v6950_v21  ;;  %v6169_v31 = vpop.f32.mrf.mxu3  ;;  %v6585_v21 = vadd.f32 %v12003_v29, %v6224_v32  ;;  %v6530_v28 = vpop.f32.mrf.mxu0 }
 0x5fa   : > { %v7408_v49 = vpack.c.bf16 %v7372_v51, %v7372_v51  ;;  %v7225_v26 = vmul.f32 %v11890_v0, %v7185_v35  ;;  %v6953_v35 = vadd.f32 %v12013_v2, %v6585_v21  ;;  %v12457_v2 = vld [vmem:[#allocation55_spill] sm:$0xff] }
 0x5fc   : > { %7444 = vst.msk [vmem:[%s11905_s29 + $0x34] sm:$0xf] %vm3973_vm8, %v7408_v49  ;;  %v7265_v25 = vadd.f32 %v11896_v20, %v7225_v26  ;;  %v6898_v29 = vpop.f32.mrf.mxu1 }
 0x5fe   : > { %v7301_v13 = vmax.f32 %v7265_v25, 0.0  ;;  %v6586_v25 = vadd.f32 %v12022_v19, %v6225_v12  ;;  %v6226_v19 = vadd.f32 %v12036_v45, %v11734_v9  ;;  %v6227_v9 = vadd.f32 %v12049_v60, %v11747_v5 }
 0x5ff   : > { %v7118_v33 = vpop.f32.mrf.mxu2 }
 0x600   : > { %v7373_v58 = vadd.f32 %v7337_v53, %v7301_v13  ;;  %v7186_v17 = vadd.f32 %v7118_v33, %v6951_v44  ;;  %v6172_v53 = vpop.f32.mrf.mxu3  ;;  %v6533_v18 = vpop.f32.mrf.mxu0  ;;  %v6954_v40 = vadd.f32 %v12029_v22, %v6586_v25  ;;  %v6588_v21 = vadd.f32 %v6528_v34, %v6227_v9 }
 0x602   : > { %v7409_v61 = vpack.c.bf16 %v7373_v58, %v7373_v58  ;;  %v7226_v39 = vmul.f32 %v11890_v0, %v7186_v17 }
 0x604   : > { %7445 = vst.msk [vmem:[%s11905_s29 + $0x38] sm:$0xf] %vm3973_vm8, %v7409_v61  ;;  %v7266_v46 = vadd.f32 %v11896_v20, %v7226_v39  ;;  %8365 = vmatmul.msk.bf16.gmra.mxu2 %vm825_vm4, %v12456_v7  ;;  %v6587_v39 = vadd.f32 %v12039_v24, %v6226_v19 }
 0x606   : > { %v7302_v48 = vmax.f32 %v7266_v46, 0.0 }
 0x607   : > { %v7121_v37 = vpop.f32.mrf.mxu2 }
 0x608   : > { %v7374_v16 = vadd.f32 %v7338_v50, %v7302_v48  ;;  %v7187_v59 = vadd.f32 %v7121_v37, %v6952_v30  ;;  %v6901_v48 = vpop.f32.mrf.mxu1  ;;  %v6174_v50 = vpop.f32.mrf.mxu3  ;;  %v6955_v37 = vadd.f32 %v6893_v43, %v6587_v39  ;;  %v6956_v43 = vadd.f32 %v6896_v6, %v6588_v21 }
 0x609   : > { %v6535_v32 = vpop.f32.mrf.mxu0 }
 0x60a   : > { %v7410_v56 = vpack.c.bf16 %v7374_v16, %v7374_v16  ;;  %v7227_v27 = vmul.f32 %v11890_v0, %v7187_v59  ;;  %v7341_v16 = vld [vmem:[#allocation3 + $0x90] sm:$0xff] }
 0x60c   : > { %7446 = vst.msk [vmem:[%s11905_s29 + $0x3c] sm:$0xf] %vm3973_vm8, %v7410_v56  ;;  %v7267_v52 = vadd.f32 %v11896_v20, %v7227_v27 }
 0x60e   : > { %v7303_v51 = vmax.f32 %v7267_v52, 0.0 }
 0x60f   : > { %v7123_v49 = vpop.f32.mrf.mxu2 }
 0x610   : > { %v7375_v63 = vadd.f32 %v7339_v10, %v7303_v51  ;;  %v7188_v26 = vadd.f32 %v7123_v49, %v6953_v35  ;;  %v6903_v51 = vpop.f32.mrf.mxu1  ;;  %v6177_v10 = vpop.f32.mrf.mxu3  ;;  %v7342_v49 = vld [vmem:[#allocation3 + $0x98] sm:$0xff] }
 0x612   : > { %v7411_v13 = vpack.c.bf16 %v7375_v63, %v7375_v63  ;;  %v7228_v44 = vmul.f32 %v11890_v0, %v7188_v26  ;;  %v6228_v63 = vadd.f32 %v6169_v31, %v11760_v8  ;;  %v6538_v26 = vpop.f32.mrf.mxu0 }
 0x614   : > { %7447 = vst.msk [vmem:[%s11905_s29 + $0x40] sm:$0xf] %vm3973_vm8, %v7411_v13  ;;  %v7268_v33 = vadd.f32 %v11896_v20, %v7228_v44  ;;  %8366 = vmatmul.msk.bf16.gmra.mxu2 %vm825_vm4, %v12457_v2  ;;  %v6589_v34 = vadd.f32 %v6530_v28, %v6228_v63 }
 0x616   : > { %v7304_v58 = vmax.f32 %v7268_v33, 0.0  ;;  %v6957_v2 = vadd.f32 %v6898_v29, %v6589_v34  ;;  %v7346_v34 = vld [vmem:[#allocation3 + $0xb8] sm:$0xff] }
 0x617   : > { %v7126_v17 = vpop.f32.mrf.mxu2 }
 0x618   : > { %v7376_v62 = vadd.f32 %v7340_v36, %v7304_v58  ;;  %v7189_v61 = vadd.f32 %v7126_v17, %v6954_v40  ;;  %v6906_v6 = vpop.f32.mrf.mxu1  ;;  %v7343_v58 = vld [vmem:[#allocation3 + $0xa0] sm:$0xff]  ;;  %v6229_v36 = vadd.f32 %v6172_v53, %v11773_v3  ;;  %v6179_v17 = vpop.f32.mrf.mxu3 }
 0x61a   : > { %v7412_v46 = vpack.c.bf16 %v7376_v62, %v7376_v62  ;;  %v7229_v7 = vmul.f32 %v11890_v0, %v7189_v61  ;;  %v6590_v19 = vadd.f32 %v6533_v18, %v6229_v36  ;;  %v6540_v61 = vpop.f32.mrf.mxu0 }
 0x61c   : > { %7448 = vst.msk [vmem:[%s11905_s29 + $0x44] sm:$0xf] %vm3973_vm8, %v7412_v46  ;;  %v7269_v30 = vadd.f32 %v11896_v20, %v7229_v7  ;;  %v6958_v29 = vadd.f32 %v6901_v48, %v6590_v19  ;;  %v7344_v7 = vld [vmem:[#allocation3 + $0xa8] sm:$0xff] }
 0x61e   : > { %v7305_v22 = vmax.f32 %v7269_v30, 0.0 }
 0x61f   : > { %v7128_v59 = vpop.f32.mrf.mxu2 }
 0x620   : > { %v7377_v45 = vadd.f32 %v7341_v16, %v7305_v22  ;;  %v7190_v24 = vadd.f32 %v7128_v59, %v6955_v37  ;;  %v6230_v22 = vadd.f32 %v6174_v50, %v11786_v41  ;;  %v6908_v37 = vpop.f32.mrf.mxu1  ;;  %v6182_v9 = vpop.f32.mrf.mxu3  ;;  %v6231_v41 = vadd.f32 %v6177_v10, %v11796_v57 }
 0x621   : > { %v6232_v57 = vadd.f32 %v6179_v17, %v11806_v54  ;;  %v6233_v19 = vadd.f32 %v6182_v9, %v11816_v42 }
 0x622   : > { %v7413_v56 = vpack.c.bf16 %v7377_v45, %v7377_v45  ;;  %v7230_v27 = vmul.f32 %v11890_v0, %v7190_v24  ;;  %v6591_v16 = vadd.f32 %v6535_v32, %v6230_v22  ;;  %v6543_v24 = vpop.f32.mrf.mxu0  ;;  %v7348_v22 = vld [vmem:[#allocation3 + $0xc8] sm:$0xff] }
 0x624   : > { %7449 = vst.msk [vmem:[%s11905_s29 + $0x48] sm:$0xf] %vm3973_vm8, %v7413_v56  ;;  %v7270_v52 = vadd.f32 %v11896_v20, %v7230_v27  ;;  %v6959_v48 = vadd.f32 %v6903_v51, %v6591_v16  ;;  %v7345_v56 = vld [vmem:[#allocation3 + $0xb0] sm:$0xff] }
 0x626   : > { %v7306_v35 = vmax.f32 %v7270_v52, 0.0 }
 0x627   : > { %v7131_v12 = vpop.f32.mrf.mxu2 }
 0x628   : > { %v7378_v5 = vadd.f32 %v7342_v49, %v7306_v35  ;;  %v7191_v60 = vadd.f32 %v7131_v12, %v6956_v43  ;;  %v6592_v35 = vadd.f32 %v6538_v26, %v6231_v41  ;;  %v6911_v49 = vpop.f32.mrf.mxu1  ;;  %v6184_v63 = vpop.f32.mrf.mxu3  ;;  %v6593_v26 = vadd.f32 %v6540_v61, %v6232_v57 }
 0x62a   : > { %v7414_v25 = vpack.c.bf16 %v7378_v5, %v7378_v5  ;;  %v7231_v13 = vmul.f32 %v11890_v0, %v7191_v60  ;;  %v6960_v60 = vadd.f32 %v6906_v6, %v6592_v35  ;;  %v6545_v51 = vpop.f32.mrf.mxu0  ;;  %v6961_v36 = vadd.f32 %v6908_v37, %v6593_v26 }
 0x62c   : > { %7450 = vst.msk [vmem:[%s11905_s29 + $0x4c] sm:$0xf] %vm3973_vm8, %v7414_v25  ;;  %v7271_v44 = vadd.f32 %v11896_v20, %v7231_v13 }
 0x62e   : > { %v7307_v33 = vmax.f32 %v7271_v44, 0.0 }
 0x62f   : > { %v7133_v40 = vpop.f32.mrf.mxu2 }
 0x630   : > { %v7379_v8 = vadd.f32 %v7343_v58, %v7307_v33  ;;  %v7192_v31 = vadd.f32 %v7133_v40, %v6957_v2  ;;  %v6913_v58 = vpop.f32.mrf.mxu1  ;;  %v6187_v6 = vpop.f32.mrf.mxu3 }
 0x631   : > { %v6235_v41 = vadd.f32 %v6187_v6, %v11836_v23  ;;  %v7351_v6 = vld [vmem:[#allocation3 + $0xe0] sm:$0xff] }
 0x632   : > { %v7415_v28 = vpack.c.bf16 %v7379_v8, %v7379_v8  ;;  %v7232_v62 = vmul.f32 %v11890_v0, %v7192_v31  ;;  %v7347_v8 = vld [vmem:[#allocation3 + $0xc0] sm:$0xff] }
 0x634   : > { %7451 = vst.msk [vmem:[%s11905_s29 + $0x50] sm:$0xf] %vm3973_vm8, %v7415_v28  ;;  %v7272_v39 = vadd.f32 %v11896_v20, %v7232_v62  ;;  %v6548_v28 = vpop.f32.mrf.mxu0  ;;  %v6594_v62 = vadd.f32 %v6543_v24, %v6233_v19 }
 0x635   : > { %v6596_v35 = vadd.f32 %v6548_v28, %v6235_v41 }
 0x636   : > { %v7308_v46 = vmax.f32 %v7272_v39, 0.0 }
 0x637   : > { %v7136_v30 = vpop.f32.mrf.mxu2 }
 0x638   : > { %v7380_v3 = vadd.f32 %v7344_v7, %v7308_v46  ;;  %v7193_v53 = vadd.f32 %v7136_v30, %v6958_v29  ;;  %v6962_v7 = vadd.f32 %v6911_v49, %v6594_v62  ;;  %v6916_v30 = vpop.f32.mrf.mxu1  ;;  %v6189_v16 = vpop.f32.mrf.mxu3 }
 0x639   : > { %v6236_v23 = vadd.f32 %v6189_v16, %v11845_v4 }
 0x63a   : > { %v7416_v18 = vpack.c.bf16 %v7380_v3, %v7380_v3  ;;  %v7233_v59 = vmul.f32 %v11890_v0, %v7193_v53  ;;  %v6234_v53 = vadd.f32 %v6184_v63, %v11826_v38 }
 0x63c   : > { %7452 = vst.msk [vmem:[%s11905_s29 + $0x54] sm:$0xf] %vm3973_vm8, %v7416_v18  ;;  %v7273_v45 = vadd.f32 %v11896_v20, %v7233_v59  ;;  %v6595_v18 = vadd.f32 %v6545_v51, %v6234_v53  ;;  %v7350_v51 = vld [vmem:[#allocation3 + $0xd8] sm:$0xff] }
 0x63e   : > { %v7309_v21 = vmax.f32 %v7273_v45, 0.0  ;;  %v6550_v45 = vpop.f32.mrf.mxu0 }
 0x63f   : > { %v7138_v27 = vpop.f32.mrf.mxu2 }
 0x640   : > { %v7381_v50 = vadd.f32 %v7345_v56, %v7309_v21  ;;  %v7194_v52 = vadd.f32 %v7138_v27, %v6959_v48  ;;  %v6963_v48 = vadd.f32 %v6913_v58, %v6595_v18  ;;  %v7349_v56 = vld [vmem:[#allocation3 + $0xd0] sm:$0xff]  ;;  %v6192_v49 = vpop.f32.mrf.mxu3 }
 0x641   : > { %v6237_v4 = vadd.f32 %v6192_v49, %v11854_v55  ;;  %v7354_v49 = vld [vmem:[#allocation3 + $0xf8] sm:$0xff] }
 0x642   : > { %v7417_v32 = vpack.c.bf16 %v7381_v50, %v7381_v50  ;;  %v7234_v43 = vmul.f32 %v11890_v0, %v7194_v52  ;;  %v6918_v52 = vpop.f32.mrf.mxu1 }
 0x644   : > { %7453 = vst.msk [vmem:[%s11905_s29 + $0x58] sm:$0xf] %vm3973_vm8, %v7417_v32  ;;  %v7274_v12 = vadd.f32 %v11896_v20, %v7234_v43 }
 0x646   : > { %v7310_v5 = vmax.f32 %v7274_v12, 0.0  ;;  %v6553_v63 = vpop.f32.mrf.mxu0 }
 0x647   : > { %v7141_v25 = vpop.f32.mrf.mxu2 }
 0x648   : > { %v7382_v10 = vadd.f32 %v7346_v34, %v7310_v5  ;;  %v7195_v13 = vadd.f32 %v7141_v25, %v6960_v60  ;;  %v6964_v60 = vadd.f32 %v6916_v30, %v6596_v35 }
 0x64a   : > { %v7418_v44 = vpack.c.bf16 %v7382_v10, %v7382_v10  ;;  %v7235_v33 = vmul.f32 %v11890_v0, %v7195_v13  ;;  %v6597_v10 = vadd.f32 %v6550_v45, %v6236_v23 }
 0x64c   : > { %7454 = vst.msk [vmem:[%s11905_s29 + $0x5c] sm:$0xf] %vm3973_vm8, %v7418_v44  ;;  %v7275_v2 = vadd.f32 %v11896_v20, %v7235_v33  ;;  %v6921_v44 = vpop.f32.mrf.mxu1 }
 0x64e   : > { %v7311_v40 = vmax.f32 %v7275_v2, 0.0  ;;  %v6194_v2 = vpop.f32.mrf.mxu3 }
 0x64f   : > { %v7143_v31 = vpop.f32.mrf.mxu2 }
 0x650   : > { %v7383_v54 = vadd.f32 %v7347_v8, %v7311_v40  ;;  %v7196_v17 = vadd.f32 %v7143_v31, %v6961_v36  ;;  %v6965_v40 = vadd.f32 %v6918_v52, %v6597_v10  ;;  %v6555_v36 = vpop.f32.mrf.mxu0 }
 0x652   : > { %v7419_v61 = vpack.c.bf16 %v7383_v54, %v7383_v54  ;;  %v7236_v39 = vmul.f32 %v11890_v0, %v7196_v17  ;;  %v6598_v54 = vadd.f32 %v6553_v63, %v6237_v4 }
 0x654   : > { %7455 = vst.msk [vmem:[%s11905_s29 + $0x60] sm:$0xf] %vm3973_vm8, %v7419_v61  ;;  %v7276_v46 = vadd.f32 %v11896_v20, %v7236_v39  ;;  %v6923_v61 = vpop.f32.mrf.mxu1 }
 0x656   : > { %v7312_v29 = vmax.f32 %v7276_v46, 0.0  ;;  %v6966_v46 = vadd.f32 %v6921_v44, %v6598_v54  ;;  %v7355_v44 = vld [vmem:[#allocation3 + $0x100] sm:$0xff] }
 0x657   : > { %v7146_v3 = vpop.f32.mrf.mxu2 }
 0x658   : > { %v7384_v42 = vadd.f32 %v7348_v22, %v7312_v29  ;;  %v7197_v37 = vadd.f32 %v7146_v3, %v6962_v7  ;;  %v6197_v29 = vpop.f32.mrf.mxu3  ;;  %v7352_v7 = vld [vmem:[#allocation3 + $0xe8] sm:$0xff]  ;;  %v6238_v22 = vadd.f32 %v6194_v2, %v11863_v14  ;;  %v6558_v53 = vpop.f32.mrf.mxu0 }
 0x65a   : > { %v7420_v59 = vpack.c.bf16 %v7384_v42, %v7384_v42  ;;  %v7237_v9 = vmul.f32 %v11890_v0, %v7197_v37  ;;  %v6599_v42 = vadd.f32 %v6555_v36, %v6238_v22 }
 0x65c   : > { %7456 = vst.msk [vmem:[%s11905_s29 + $0x64] sm:$0xf] %vm3973_vm8, %v7420_v59  ;;  %v7277_v24 = vadd.f32 %v11896_v20, %v7237_v9  ;;  %v6967_v9 = vadd.f32 %v6923_v61, %v6599_v42  ;;  %v6926_v45 = vpop.f32.mrf.mxu1 }
 0x65e   : > { %v7313_v21 = vmax.f32 %v7277_v24, 0.0  ;;  %v7353_v24 = vld [vmem:[#allocation3 + $0xf0] sm:$0xff] }
 0x65f   : > { %v7148_v27 = vpop.f32.mrf.mxu2 }
 0x660   : > { %v7385_v38 = vadd.f32 %v7349_v56, %v7313_v21  ;;  %v7198_v50 = vadd.f32 %v7148_v27, %v6963_v48  ;;  %v6239_v48 = vadd.f32 %v6197_v29, %v11870_v15  ;;  %v6199_v27 = vpop.f32.mrf.mxu3  ;;  %v6560_v52 = vpop.f32.mrf.mxu0 }
 0x661   : > { %v6240_v63 = vadd.f32 %v6199_v27, %v11875_v11 }
 0x662   : > { %v7421_v32 = vpack.c.bf16 %v7385_v38, %v7385_v38  ;;  %v7238_v43 = vmul.f32 %v11890_v0, %v7198_v50  ;;  %v6600_v41 = vadd.f32 %v6558_v53, %v6239_v48  ;;  %v7357_v53 = vld [vmem:[#allocation3 + $0x110] sm:$0xff] }
 0x664   : > { %7457 = vst.msk [vmem:[%s11905_s29 + $0x68] sm:$0xf] %vm3973_vm8, %v7421_v32  ;;  %v7278_v12 = vadd.f32 %v11896_v20, %v7238_v43  ;;  %v6968_v43 = vadd.f32 %v6926_v45, %v6600_v41  ;;  %v7358_v45 = vld [vmem:[#allocation3 + $0x118] sm:$0xff] }
 0x666   : > { %v7314_v5 = vmax.f32 %v7278_v12, 0.0 }
 0x667   : > { %v7151_v34 = vpop.f32.mrf.mxu2 }
 0x668   : > { %v7386_v25 = vadd.f32 %v7350_v51, %v7314_v5  ;;  %v7199_v57 = vadd.f32 %v7151_v34, %v6964_v60  ;;  %v6928_v60 = vpop.f32.mrf.mxu1  ;;  %v6601_v51 = vadd.f32 %v6560_v52, %v6240_v63  ;;  %v6563_v10 = vpop.f32.mrf.mxu0 }
 0x66a   : > { %v7422_v13 = vpack.c.bf16 %v7386_v25, %v7386_v25  ;;  %v7239_v26 = vmul.f32 %v11890_v0, %v7199_v57  ;;  %v6202_v25 = vpop.f32.mrf.mxu3 }
 0x66b   : > { %v6241_v11 = vadd.f32 %v6202_v25, %v11880_v1 }
 0x66c   : > { %7458 = vst.msk [vmem:[%s11905_s29 + $0x6c] sm:$0xf] %vm3973_vm8, %v7422_v13  ;;  %v7279_v33 = vadd.f32 %v11896_v20, %v7239_v26  ;;  %v6969_v26 = vadd.f32 %v6928_v60, %v6601_v51 }
 0x66e   : > { %v7315_v58 = vmax.f32 %v7279_v33, 0.0 }
 0x66f   : > { %v7153_v8 = vpop.f32.mrf.mxu2 }
 0x670   : > { %v7387_v31 = vadd.f32 %v7351_v6, %v7315_v58  ;;  %v7200_v19 = vadd.f32 %v7153_v8, %v6965_v40  ;;  %v6602_v40 = vadd.f32 %v6563_v10, %v6241_v11  ;;  %v6931_v8 = vpop.f32.mrf.mxu1 }
 0x672   : > { %v7423_v17 = vpack.c.bf16 %v7387_v31, %v7387_v31  ;;  %v7240_v28 = vmul.f32 %v11890_v0, %v7200_v19  ;;  %v6204_v31 = vpop.f32.mrf.mxu3  ;;  %v6970_v54 = vadd.f32 %v6931_v8, %v6602_v40 }
 0x673   : > { %v6242_v1 = vadd.f32 %v6204_v31, %v11883_v47 }
 0x674   : > { %7459 = vst.msk [vmem:[%s11905_s29 + $0x70] sm:$0xf] %vm3973_vm8, %v7423_v17  ;;  %v7280_v62 = vadd.f32 %v11896_v20, %v7240_v28  ;;  %v6565_v17 = vpop.f32.mrf.mxu0  ;;  %v7356_v28 = vld [vmem:[#allocation3 + $0x108] sm:$0xff] }
 0x676   : > { %v7316_v39 = vmax.f32 %v7280_v62, 0.0 }
 0x677   : > { %v7156_v30 = vpop.f32.mrf.mxu2 }
 0x678   : > { %v7388_v55 = vadd.f32 %v7352_v7, %v7316_v39  ;;  %v7201_v3 = vadd.f32 %v7156_v30, %v6966_v46  ;;  %v6603_v46 = vadd.f32 %v6565_v17, %v6242_v1  ;;  %v6933_v22 = vpop.f32.mrf.mxu1 }
 0x67a   : > { %v7424_v37 = vpack.c.bf16 %v7388_v55, %v7388_v55  ;;  %v7241_v16 = vmul.f32 %v11890_v0, %v7201_v3  ;;  %v6971_v3 = vadd.f32 %v6933_v22, %v6603_v46 }
 0x67c   : > { %7460 = vst.msk [vmem:[%s11905_s29 + $0x74] sm:$0xf] %vm3973_vm8, %v7424_v37  ;;  %v7281_v18 = vadd.f32 %v11896_v20, %v7241_v16 }
 0x67e   : > { %v7317_v59 = vmax.f32 %v7281_v18, 0.0 }
 0x67f   : > { %v7158_v21 = vpop.f32.mrf.mxu2 }
 0x680   : > { %v7389_v14 = vadd.f32 %v7353_v24, %v7317_v59  ;;  %v7202_v56 = vadd.f32 %v7158_v21, %v6967_v9 }
 0x682   : > { %v7425_v38 = vpack.c.bf16 %v7389_v14, %v7389_v14  ;;  %v7242_v50 = vmul.f32 %v11890_v0, %v7202_v56 }
 0x684   : > { %7461 = vst.msk [vmem:[%s11905_s29 + $0x78] sm:$0xf] %vm3973_vm8, %v7425_v38  ;;  %v7282_v35 = vadd.f32 %v11896_v20, %v7242_v50 }
 0x686   : > { %v7318_v32 = vmax.f32 %v7282_v35, 0.0 }
 0x687   : > { %v7161_v12 = vpop.f32.mrf.mxu2 }
 0x688   : > { %v7390_v15 = vadd.f32 %v7354_v49, %v7318_v32  ;;  %v7203_v5 = vadd.f32 %v7161_v12, %v6968_v43 }
 0x68a   : > { %v7426_v34 = vpack.c.bf16 %v7390_v15, %v7390_v15  ;;  %v7243_v23 = vmul.f32 %v11890_v0, %v7203_v5 }
 0x68c   : > { %7462 = vst.msk [vmem:[%s11905_s29 + $0x7c] sm:$0xf] %vm3973_vm8, %v7426_v34  ;;  %v7283_v57 = vadd.f32 %v11896_v20, %v7243_v23 }
 0x68e   : > { %v7319_v13 = vmax.f32 %v7283_v57, 0.0 }
 0x68f   : > { %v7163_v33 = vpop.f32.mrf.mxu2 }
 0x690   : > { %v7391_v2 = vadd.f32 %v7355_v44, %v7319_v13  ;;  %v7204_v58 = vadd.f32 %v7163_v33, %v6969_v26 }
 0x692   : > { %v7427_v36 = vpack.c.bf16 %v7391_v2, %v7391_v2  ;;  %v7244_v6 = vmul.f32 %v11890_v0, %v7204_v58 }
 0x694   : > { %7463 = vst.msk [vmem:[%s11905_s29 + $0x80] sm:$0xf] %vm3973_vm8, %v7427_v36  ;;  %v7284_v4 = vadd.f32 %v11896_v20, %v7244_v6 }
 0x696   : > { %v7320_v19 = vmax.f32 %v7284_v4, 0.0 }
 0x697   : > { %v7166_v62 = vpop.f32.mrf.mxu2 }
 0x698   : > { %v7392_v61 = vadd.f32 %v7356_v28, %v7320_v19  ;;  %v7205_v39 = vadd.f32 %v7166_v62, %v6970_v54 }
 0x69a   : > { %v7428_v29 = vpack.c.bf16 %v7392_v61, %v7392_v61  ;;  %v7245_v7 = vmul.f32 %v11890_v0, %v7205_v39 }
 0x69c   : > { %7464 = vst.msk [vmem:[%s11905_s29 + $0x84] sm:$0xf] %vm3973_vm8, %v7428_v29  ;;  %v7285_v30 = vadd.f32 %v11896_v20, %v7245_v7 }
 0x69e   : > { %v7321_v55 = vmax.f32 %v7285_v30, 0.0 }
 0x69f   : > { %v7168_v42 = vpop.f32.mrf.mxu2 }
 0x6a0   : > { %v7393_v37 = vadd.f32 %v7357_v53, %v7321_v55  ;;  %v7206_v16 = vadd.f32 %v7168_v42, %v6971_v3 }
 0x6a2   : > { %v7429_v47 = vpack.c.bf16 %v7393_v37, %v7393_v37  ;;  %v7246_v18 = vmul.f32 %v11890_v0, %v7206_v16 }
 0x6a4   : > { %7465 = vst.msk [vmem:[%s11905_s29 + $0x88] sm:$0xf] %vm3973_vm8, %v7429_v47  ;;  %v7286_v59 = vadd.f32 %v11896_v20, %v7246_v18 }
 0x6a6   : > { %v7322_v9 = vmax.f32 %v7286_v59, 0.0 }
 0x6a8   : > { %v7394_v24 = vadd.f32 %v7358_v45, %v7322_v9 }
 0x6aa   : > { %v7430_v21 = vpack.c.bf16 %v7394_v24, %v7394_v24 }
 0x6ac   : > { %7466 = vst.msk [vmem:[%s11905_s29 + $0x8c] sm:$0xf] %vm3973_vm8, %v7430_v21 }
 0x6ad PF: > { %s20_s13 = sadd.s32 1, %s8566_s13  }
 0x6ae   : > { %p17_p4 = scmp.ge.s32.totalorder %s20_s13, 4  }
 0x6b0   :  { %19 = sbr.rel (!%p17_p4) target bundleno = 1 (0x1), region = 106 }

</bundles_post_ra>
